<compile_context>
chip_gen: v7x
topology: tpu7x:2x2x1
jax: 0.10.0
libtpu: 0.0.40
codegen_flags: <defaults>
</compile_context>

<pallas_src>
import numpy as np

import jax
import jax.numpy as jnp
from jax.experimental import pallas as pl
from jax.experimental.pallas import tpu as pltpu


# ----------------------------------------------------------------------------
# Fused Pallas kernel
# ----------------------------------------------------------------------------
def _cnn_fused_kernel(x_ref, w1_ref, b1_ref, w2_ref, b2_ref,
                      wf1_ref, bf1_ref, wf2_ref, bf2_ref, o_ref):
    nb = x_ref.shape[0]
    f32, bf16 = jnp.float32, jnp.bfloat16

    def pool2x2_relu(rows, c):
        # rows: list over H of (nb, W*c) slabs -> list over H//2 of (nb, (W//2)*c)
        ow = rows[0].shape[-1] // c
        out = []
        for j in range(len(rows) // 2):
            t = jnp.maximum(rows[2 * j], rows[2 * j + 1])            # pool over H
            parts = [jnp.maximum(t[:, (2 * g) * c:(2 * g + 1) * c],
                                 t[:, (2 * g + 1) * c:(2 * g + 2) * c])
                     for g in range(ow // 2)]                        # pool over W
            out.append(jnp.maximum(jnp.concatenate(parts, axis=-1), 0.0))
        return out

    # ---- conv1 (1->10, 5x5, valid) + bias, banded-Toeplitz matmul per row ---
    x = x_ref[...].astype(f32)                                       # (nb, 28, 28)
    xrow = [x[:, r, :] for r in range(28)]                           # 28 x (nb, 28)
    w1 = w1_ref[...]                                                 # (140, 240) bf16
    b1 = b1_ref[...]                                                 # (1, 240)  f32
    c1 = []
    for oh in range(24):
        lhs = jnp.concatenate([xrow[oh + dy] for dy in range(5)], axis=-1)   # (nb, 140)
        c1.append(jnp.dot(lhs.astype(bf16), w1, preferred_element_type=f32) + b1)
    a1 = pool2x2_relu(c1, 10)                                        # 12 x (nb, 120)

    # ---- conv2 (10->20, 5x5, valid) + bias ----------------------------------
    # TODO(synk): Dropout2d after conv2 is identity in eval mode; training-mode
    # channel dropout is not implemented.
    w2 = w2_ref[...]                                                 # (600, 160) bf16
    b2 = b2_ref[...]                                                 # (1, 160)  f32
    c2 = []
    for oh in range(8):
        lhs = jnp.concatenate([a1[oh + dy] for dy in range(5)], axis=-1)     # (nb, 600)
        c2.append(jnp.dot(lhs.astype(bf16), w2, preferred_element_type=f32) + b2)
    a2 = pool2x2_relu(c2, 20)                                        # 4 x (nb, 80)

    # ---- fc1 (320->50) + ReLU (weight pre-permuted to per-row layout) -------
    h = jnp.zeros((nb, 50), f32)
    for r in range(4):
        h = h + jnp.dot(a2[r].astype(bf16), wf1_ref[r], preferred_element_type=f32)
    h = jnp.maximum(h + bf1_ref[...], 0.0)
    # TODO(synk): F.dropout after fc1 is identity in eval mode.

    # ---- fc2 (50->10) + log_softmax -----------------------------------------
    z = jnp.dot(h.astype(bf16), wf2_ref[...], preferred_element_type=f32) + bf2_ref[...]
    m = jnp.max(z, axis=-1, keepdims=True)
    lse = m + jnp.log(jnp.sum(jnp.exp(z - m), axis=-1, keepdims=True))
    o_ref[...] = (z - lse).astype(o_ref.dtype)


# ----------------------------------------------------------------------------
# Host-side wrappers
# ----------------------------------------------------------------------------
def _pick_batch_block(n):
    if n <= 64:
        return n
    for nb in (64, 32, 16, 8):
        if n % nb == 0:
            return nb
    return n  # fallback: whole batch in one block


def cnn_forward(kparams, x):
    """x: (N, 1, 28, 28) float32 (PyTorch NCHW). Returns (N, 10) log-probs."""
    n = x.shape[0]
    x = x.reshape(n, 28, 28).astype(jnp.float32)     # C == 1 -> free layout change
    nb = _pick_batch_block(n)
    grid = (n // nb,)

    c2d = lambda i: (0, 0)
    c3d = lambda i: (0, 0, 0)
    in_specs = [
        pl.BlockSpec((nb, 28, 28), lambda i: (i, 0, 0)),
        pl.BlockSpec((140, 240), c2d), pl.BlockSpec((1, 240), c2d),
        pl.BlockSpec((600, 160), c2d), pl.BlockSpec((1, 160), c2d),
        pl.BlockSpec((4, 80, 50), c3d), pl.BlockSpec((1, 50), c2d),
        pl.BlockSpec((50, 10), c2d), pl.BlockSpec((1, 10), c2d),
    ]
    return pl.pallas_call(
        _cnn_fused_kernel,
        out_shape=jax.ShapeDtypeStruct((n, 10), jnp.float32),
        grid=grid,
        in_specs=in_specs,
        out_specs=pl.BlockSpec((nb, 10), lambda i: (i, 0)),
        compiler_params=pltpu.CompilerParams(dimension_semantics=("parallel",)),
    )(x, kparams["w1t"], kparams["b1t"], kparams["w2t"], kparams["b2t"],
      kparams["wf1"], kparams["bf1"], kparams["wf2"], kparams["bf2"])


def prepare_params(p):
    """One-time host-side fold of PyTorch weight layouts into the kernel's
    lane-dense, row-banded layouts (bf16 MXU operands, f32 biases)."""
    w1 = np.asarray(p["conv1_w"], np.float32)       # (10, 1, 5, 5)  (Cout, Cin, kh, kw)
    b1 = np.asarray(p["conv1_b"], np.float32)
    w2 = np.asarray(p["conv2_w"], np.float32)       # (20, 10, 5, 5)
    b2 = np.asarray(p["conv2_b"], np.float32)
    f1w = np.asarray(p["fc1_w"], np.float32)        # (50, 320)
    f1b = np.asarray(p["fc1_b"], np.float32)
    f2w = np.asarray(p["fc2_w"], np.float32)        # (10, 50)
    f2b = np.asarray(p["fc2_b"], np.float32)

    # conv1 as banded (5*28, 24*10): rows = dy*28 + w, cols = ow*10 + co.
    w1p = np.transpose(w1[:, 0], (1, 2, 0))                         # (dy, dx, co)
    w1t = np.zeros((140, 240), np.float32)
    for dy in range(5):
        for ow in range(24):
            w1t[dy * 28 + ow: dy * 28 + ow + 5, ow * 10:(ow + 1) * 10] = w1p[dy]

    # conv2 as banded (5*12*10, 8*20): rows = dy*120 + w*10 + ci, cols = ow*20 + co.
    w2p = np.transpose(w2, (2, 3, 1, 0)).reshape(5, 50, 20)         # (dy, dx*ci, co)
    w2t = np.zeros((600, 160), np.float32)
    for dy in range(5):
        for ow in range(8):
            w2t[dy * 120 + ow * 10: dy * 120 + ow * 10 + 50,
                ow * 20:(ow + 1) * 20] = w2p[dy]

    # fc1: from PyTorch NCHW .view(-1, 320) ordering (c*16 + h*4 + w) to the
    # kernel's per-row (h) x lane (w*20 + c) ordering.
    wf1 = np.transpose(f1w.reshape(50, 20, 4, 4), (2, 3, 1, 0)).reshape(4, 80, 50)

    bf = lambda a: jnp.asarray(a, jnp.bfloat16)
    ff = lambda a: jnp.asarray(a, jnp.float32)
    return {
        "w1t": bf(w1t), "b1t": ff(np.tile(b1, 24).reshape(1, 240)),
        "w2t": bf(w2t), "b2t": ff(np.tile(b2, 8).reshape(1, 160)),
        "wf1": bf(wf1), "bf1": ff(f1b.reshape(1, 50)),
        "wf2": bf(f2w.T.copy()), "bf2": ff(f2b.reshape(1, 10)),
    }


def init_params(key):
    """PyTorch-layout parameters with PyTorch-default uniform init."""
    def uniform(k, shape, fan_in):
        bound = 1.0 / float(np.sqrt(fan_in))
        return jax.random.uniform(k, shape, jnp.float32, -bound, bound)

    ks = jax.random.split(key, 8)
    return {
        "conv1_w": uniform(ks[0], (10, 1, 5, 5), 25),
        "conv1_b": uniform(ks[1], (10,), 25),
        "conv2_w": uniform(ks[2], (20, 10, 5, 5), 250),
        "conv2_b": uniform(ks[3], (20,), 250),
        "fc1_w": uniform(ks[4], (50, 320), 320),
        "fc1_b": uniform(ks[5], (50,), 320),
        "fc2_w": uniform(ks[6], (10, 50), 50),
        "fc2_b": uniform(ks[7], (10,), 50),
    }


def cnn_reference(params, x):
    """Pure-JAX (XLA) reference with PyTorch eval-mode semantics."""
    def conv(y, w, b):
        y = jax.lax.conv_general_dilated(
            y, w, (1, 1), "VALID", dimension_numbers=("NCHW", "OIHW", "NCHW"))
        return y + b.reshape(1, -1, 1, 1)

    def pool_relu(y):
        n, c, hh, ww = y.shape
        y = y.reshape(n, c, hh // 2, 2, ww // 2, 2).max(axis=(3, 5))
        return jnp.maximum(y, 0.0)

    y = pool_relu(conv(x, params["conv1_w"], params["conv1_b"]))
    y = pool_relu(conv(y, params["conv2_w"], params["conv2_b"]))
    y = y.reshape(y.shape[0], 320)
    y = jnp.maximum(y @ params["fc1_w"].T + params["fc1_b"], 0.0)
    z = y @ params["fc2_w"].T + params["fc2_b"]
    return jax.nn.log_softmax(z, axis=-1)


if __name__ == "__main__":
    key = jax.random.PRNGKey(0)
    pkey, xkey = jax.random.split(key)
    params = init_params(pkey)
    kparams = prepare_params(params)

    # batch=2, channels=1, spatial=28 (required so the flatten gives 320 features)
    x = jax.random.normal(xkey, (2, 1, 28, 28), dtype=jnp.float32)

    out = jax.jit(cnn_forward)(kparams, x)
    out = jax.block_until_ready(out)

    assert out.shape == (2, 10), out.shape
    assert bool(jnp.all(jnp.isfinite(out)))
    row_sums = jnp.sum(jnp.exp(out), axis=-1)
    assert bool(jnp.allclose(row_sums, 1.0, atol=1e-4)), row_sums

    ref = cnn_reference(params, x)
    err = float(jnp.max(jnp.abs(out - ref)))
    assert err < 0.1, f"max |pallas - reference| = {err}"

    print("KERNEL_OK")
</pallas_src>

<mosaic_0001>
module attributes {stable_mosaic.version = 11 : i64} {
  func.func @_cnn_fused_kernel(%arg0: i32, %arg1: memref<2x28x28xf32, #tpu.memory_space<vmem>>, %arg2: memref<140x240xbf16, #tpu.memory_space<vmem>>, %arg3: memref<1x240xf32, #tpu.memory_space<vmem>>, %arg4: memref<600x160xbf16, #tpu.memory_space<vmem>>, %arg5: memref<1x160xf32, #tpu.memory_space<vmem>>, %arg6: memref<4x80x50xbf16, #tpu.memory_space<vmem>>, %arg7: memref<1x50xf32, #tpu.memory_space<vmem>>, %arg8: memref<50x10xbf16, #tpu.memory_space<vmem>>, %arg9: memref<1x10xf32, #tpu.memory_space<vmem>>, %arg10: memref<2x10xf32, #tpu.memory_space<vmem>>) attributes {dimension_semantics = [#tpu.dimension_semantics<parallel>], iteration_bounds = array<i64: 1>, scalar_prefetch = 0 : i64, scratch_operands = 0 : i64, tpu.core_type = #tpu.core_type<tc>, window_params = [{transform_indices = @transform_0, window_bounds = array<i64: 2, 28, 28>}, {pipeline_mode = #tpu.pipeline_mode<synchronous>, transform_indices = @transform_1, window_bounds = array<i64: 140, 240>}, {pipeline_mode = #tpu.pipeline_mode<synchronous>, transform_indices = @transform_2, window_bounds = array<i64: 1, 240>}, {pipeline_mode = #tpu.pipeline_mode<synchronous>, transform_indices = @transform_3, window_bounds = array<i64: 600, 160>}, {pipeline_mode = #tpu.pipeline_mode<synchronous>, transform_indices = @transform_4, window_bounds = array<i64: 1, 160>}, {pipeline_mode = #tpu.pipeline_mode<synchronous>, transform_indices = @transform_5, window_bounds = array<i64: 4, 80, 50>}, {pipeline_mode = #tpu.pipeline_mode<synchronous>, transform_indices = @transform_6, window_bounds = array<i64: 1, 50>}, {pipeline_mode = #tpu.pipeline_mode<synchronous>, transform_indices = @transform_7, window_bounds = array<i64: 50, 10>}, {pipeline_mode = #tpu.pipeline_mode<synchronous>, transform_indices = @transform_8, window_bounds = array<i64: 1, 10>}, {transform_indices = @transform_9, window_bounds = array<i64: 2, 10>}]} {
    %c0 = arith.constant 0 : index
    %c0_0 = arith.constant 0 : index
    %c0_1 = arith.constant 0 : index
    %0 = vector.load %arg1[%c0, %c0_0, %c0_1] : memref<2x28x28xf32, #tpu.memory_space<vmem>>, vector<2x28x28xf32>
    %1 = vector.extract_strided_slice %0 {offsets = [0, 0, 0], sizes = [2, 1, 28], strides = [1, 1, 1]} : vector<2x28x28xf32> to vector<2x1x28xf32>
    %2 = vector.shape_cast %1 : vector<2x1x28xf32> to vector<2x28xf32>
    %3 = vector.extract_strided_slice %0 {offsets = [0, 1, 0], sizes = [2, 1, 28], strides = [1, 1, 1]} : vector<2x28x28xf32> to vector<2x1x28xf32>
    %4 = vector.shape_cast %3 : vector<2x1x28xf32> to vector<2x28xf32>
    %5 = vector.extract_strided_slice %0 {offsets = [0, 2, 0], sizes = [2, 1, 28], strides = [1, 1, 1]} : vector<2x28x28xf32> to vector<2x1x28xf32>
    %6 = vector.shape_cast %5 : vector<2x1x28xf32> to vector<2x28xf32>
    %7 = vector.extract_strided_slice %0 {offsets = [0, 3, 0], sizes = [2, 1, 28], strides = [1, 1, 1]} : vector<2x28x28xf32> to vector<2x1x28xf32>
    %8 = vector.shape_cast %7 : vector<2x1x28xf32> to vector<2x28xf32>
    %9 = vector.extract_strided_slice %0 {offsets = [0, 4, 0], sizes = [2, 1, 28], strides = [1, 1, 1]} : vector<2x28x28xf32> to vector<2x1x28xf32>
    %10 = vector.shape_cast %9 : vector<2x1x28xf32> to vector<2x28xf32>
    %11 = vector.extract_strided_slice %0 {offsets = [0, 5, 0], sizes = [2, 1, 28], strides = [1, 1, 1]} : vector<2x28x28xf32> to vector<2x1x28xf32>
    %12 = vector.shape_cast %11 : vector<2x1x28xf32> to vector<2x28xf32>
    %13 = vector.extract_strided_slice %0 {offsets = [0, 6, 0], sizes = [2, 1, 28], strides = [1, 1, 1]} : vector<2x28x28xf32> to vector<2x1x28xf32>
    %14 = vector.shape_cast %13 : vector<2x1x28xf32> to vector<2x28xf32>
    %15 = vector.extract_strided_slice %0 {offsets = [0, 7, 0], sizes = [2, 1, 28], strides = [1, 1, 1]} : vector<2x28x28xf32> to vector<2x1x28xf32>
    %16 = vector.shape_cast %15 : vector<2x1x28xf32> to vector<2x28xf32>
    %17 = vector.extract_strided_slice %0 {offsets = [0, 8, 0], sizes = [2, 1, 28], strides = [1, 1, 1]} : vector<2x28x28xf32> to vector<2x1x28xf32>
    %18 = vector.shape_cast %17 : vector<2x1x28xf32> to vector<2x28xf32>
    %19 = vector.extract_strided_slice %0 {offsets = [0, 9, 0], sizes = [2, 1, 28], strides = [1, 1, 1]} : vector<2x28x28xf32> to vector<2x1x28xf32>
    %20 = vector.shape_cast %19 : vector<2x1x28xf32> to vector<2x28xf32>
    %21 = vector.extract_strided_slice %0 {offsets = [0, 10, 0], sizes = [2, 1, 28], strides = [1, 1, 1]} : vector<2x28x28xf32> to vector<2x1x28xf32>
    %22 = vector.shape_cast %21 : vector<2x1x28xf32> to vector<2x28xf32>
    %23 = vector.extract_strided_slice %0 {offsets = [0, 11, 0], sizes = [2, 1, 28], strides = [1, 1, 1]} : vector<2x28x28xf32> to vector<2x1x28xf32>
    %24 = vector.shape_cast %23 : vector<2x1x28xf32> to vector<2x28xf32>
    %25 = vector.extract_strided_slice %0 {offsets = [0, 12, 0], sizes = [2, 1, 28], strides = [1, 1, 1]} : vector<2x28x28xf32> to vector<2x1x28xf32>
    %26 = vector.shape_cast %25 : vector<2x1x28xf32> to vector<2x28xf32>
    %27 = vector.extract_strided_slice %0 {offsets = [0, 13, 0], sizes = [2, 1, 28], strides = [1, 1, 1]} : vector<2x28x28xf32> to vector<2x1x28xf32>
    %28 = vector.shape_cast %27 : vector<2x1x28xf32> to vector<2x28xf32>
    %29 = vector.extract_strided_slice %0 {offsets = [0, 14, 0], sizes = [2, 1, 28], strides = [1, 1, 1]} : vector<2x28x28xf32> to vector<2x1x28xf32>
    %30 = vector.shape_cast %29 : vector<2x1x28xf32> to vector<2x28xf32>
    %31 = vector.extract_strided_slice %0 {offsets = [0, 15, 0], sizes = [2, 1, 28], strides = [1, 1, 1]} : vector<2x28x28xf32> to vector<2x1x28xf32>
    %32 = vector.shape_cast %31 : vector<2x1x28xf32> to vector<2x28xf32>
    %33 = vector.extract_strided_slice %0 {offsets = [0, 16, 0], sizes = [2, 1, 28], strides = [1, 1, 1]} : vector<2x28x28xf32> to vector<2x1x28xf32>
    %34 = vector.shape_cast %33 : vector<2x1x28xf32> to vector<2x28xf32>
    %35 = vector.extract_strided_slice %0 {offsets = [0, 17, 0], sizes = [2, 1, 28], strides = [1, 1, 1]} : vector<2x28x28xf32> to vector<2x1x28xf32>
    %36 = vector.shape_cast %35 : vector<2x1x28xf32> to vector<2x28xf32>
    %37 = vector.extract_strided_slice %0 {offsets = [0, 18, 0], sizes = [2, 1, 28], strides = [1, 1, 1]} : vector<2x28x28xf32> to vector<2x1x28xf32>
    %38 = vector.shape_cast %37 : vector<2x1x28xf32> to vector<2x28xf32>
    %39 = vector.extract_strided_slice %0 {offsets = [0, 19, 0], sizes = [2, 1, 28], strides = [1, 1, 1]} : vector<2x28x28xf32> to vector<2x1x28xf32>
    %40 = vector.shape_cast %39 : vector<2x1x28xf32> to vector<2x28xf32>
    %41 = vector.extract_strided_slice %0 {offsets = [0, 20, 0], sizes = [2, 1, 28], strides = [1, 1, 1]} : vector<2x28x28xf32> to vector<2x1x28xf32>
    %42 = vector.shape_cast %41 : vector<2x1x28xf32> to vector<2x28xf32>
    %43 = vector.extract_strided_slice %0 {offsets = [0, 21, 0], sizes = [2, 1, 28], strides = [1, 1, 1]} : vector<2x28x28xf32> to vector<2x1x28xf32>
    %44 = vector.shape_cast %43 : vector<2x1x28xf32> to vector<2x28xf32>
    %45 = vector.extract_strided_slice %0 {offsets = [0, 22, 0], sizes = [2, 1, 28], strides = [1, 1, 1]} : vector<2x28x28xf32> to vector<2x1x28xf32>
    %46 = vector.shape_cast %45 : vector<2x1x28xf32> to vector<2x28xf32>
    %47 = vector.extract_strided_slice %0 {offsets = [0, 23, 0], sizes = [2, 1, 28], strides = [1, 1, 1]} : vector<2x28x28xf32> to vector<2x1x28xf32>
    %48 = vector.shape_cast %47 : vector<2x1x28xf32> to vector<2x28xf32>
    %49 = vector.extract_strided_slice %0 {offsets = [0, 24, 0], sizes = [2, 1, 28], strides = [1, 1, 1]} : vector<2x28x28xf32> to vector<2x1x28xf32>
    %50 = vector.shape_cast %49 : vector<2x1x28xf32> to vector<2x28xf32>
    %51 = vector.extract_strided_slice %0 {offsets = [0, 25, 0], sizes = [2, 1, 28], strides = [1, 1, 1]} : vector<2x28x28xf32> to vector<2x1x28xf32>
    %52 = vector.shape_cast %51 : vector<2x1x28xf32> to vector<2x28xf32>
    %53 = vector.extract_strided_slice %0 {offsets = [0, 26, 0], sizes = [2, 1, 28], strides = [1, 1, 1]} : vector<2x28x28xf32> to vector<2x1x28xf32>
    %54 = vector.shape_cast %53 : vector<2x1x28xf32> to vector<2x28xf32>
    %55 = vector.extract_strided_slice %0 {offsets = [0, 27, 0], sizes = [2, 1, 28], strides = [1, 1, 1]} : vector<2x28x28xf32> to vector<2x1x28xf32>
    %56 = vector.shape_cast %55 : vector<2x1x28xf32> to vector<2x28xf32>
    %c0_2 = arith.constant 0 : index
    %c0_3 = arith.constant 0 : index
    %57 = vector.load %arg2[%c0_2, %c0_3] : memref<140x240xbf16, #tpu.memory_space<vmem>>, vector<140x240xbf16>
    %c0_4 = arith.constant 0 : index
    %c0_5 = arith.constant 0 : index
    %58 = vector.load %arg3[%c0_4, %c0_5] : memref<1x240xf32, #tpu.memory_space<vmem>>, vector<1x240xf32>
    %59 = tpu.concatenate %2, %4, %6, %8, %10 in 1 : vector<2x28xf32>, vector<2x28xf32>, vector<2x28xf32>, vector<2x28xf32>, vector<2x28xf32> -> vector<2x140xf32>
    %60 = arith.truncf %59 : vector<2x140xf32> to vector<2x140xbf16>
    %cst = arith.constant dense<0.000000e+00> : vector<2x240xf32>
    %61 = tpu.matmul %60, %57, %cst {dimension_numbers = #tpu.dot_dimension_numbers<[1], [0], [0], [1], [0, 0, 1, 1], [], []>} : vector<2x140xbf16>, vector<140x240xbf16>, vector<2x240xf32> -> vector<2x240xf32>
    %62 = vector.broadcast %58 : vector<1x240xf32> to vector<2x240xf32>
    %63 = arith.addf %61, %62 : vector<2x240xf32>
    %64 = tpu.concatenate %4, %6, %8, %10, %12 in 1 : vector<2x28xf32>, vector<2x28xf32>, vector<2x28xf32>, vector<2x28xf32>, vector<2x28xf32> -> vector<2x140xf32>
    %65 = arith.truncf %64 : vector<2x140xf32> to vector<2x140xbf16>
    %cst_6 = arith.constant dense<0.000000e+00> : vector<2x240xf32>
    %66 = tpu.matmul %65, %57, %cst_6 {dimension_numbers = #tpu.dot_dimension_numbers<[1], [0], [0], [1], [0, 0, 1, 1], [], []>} : vector<2x140xbf16>, vector<140x240xbf16>, vector<2x240xf32> -> vector<2x240xf32>
    %67 = vector.broadcast %58 : vector<1x240xf32> to vector<2x240xf32>
    %68 = arith.addf %66, %67 : vector<2x240xf32>
    %69 = tpu.concatenate %6, %8, %10, %12, %14 in 1 : vector<2x28xf32>, vector<2x28xf32>, vector<2x28xf32>, vector<2x28xf32>, vector<2x28xf32> -> vector<2x140xf32>
    %70 = arith.truncf %69 : vector<2x140xf32> to vector<2x140xbf16>
    %cst_7 = arith.constant dense<0.000000e+00> : vector<2x240xf32>
    %71 = tpu.matmul %70, %57, %cst_7 {dimension_numbers = #tpu.dot_dimension_numbers<[1], [0], [0], [1], [0, 0, 1, 1], [], []>} : vector<2x140xbf16>, vector<140x240xbf16>, vector<2x240xf32> -> vector<2x240xf32>
    %72 = vector.broadcast %58 : vector<1x240xf32> to vector<2x240xf32>
    %73 = arith.addf %71, %72 : vector<2x240xf32>
    %74 = tpu.concatenate %8, %10, %12, %14, %16 in 1 : vector<2x28xf32>, vector<2x28xf32>, vector<2x28xf32>, vector<2x28xf32>, vector<2x28xf32> -> vector<2x140xf32>
    %75 = arith.truncf %74 : vector<2x140xf32> to vector<2x140xbf16>
    %cst_8 = arith.constant dense<0.000000e+00> : vector<2x240xf32>
    %76 = tpu.matmul %75, %57, %cst_8 {dimension_numbers = #tpu.dot_dimension_numbers<[1], [0], [0], [1], [0, 0, 1, 1], [], []>} : vector<2x140xbf16>, vector<140x240xbf16>, vector<2x240xf32> -> vector<2x240xf32>
    %77 = vector.broadcast %58 : vector<1x240xf32> to vector<2x240xf32>
    %78 = arith.addf %76, %77 : vector<2x240xf32>
    %79 = tpu.concatenate %10, %12, %14, %16, %18 in 1 : vector<2x28xf32>, vector<2x28xf32>, vector<2x28xf32>, vector<2x28xf32>, vector<2x28xf32> -> vector<2x140xf32>
    %80 = arith.truncf %79 : vector<2x140xf32> to vector<2x140xbf16>
    %cst_9 = arith.constant dense<0.000000e+00> : vector<2x240xf32>
    %81 = tpu.matmul %80, %57, %cst_9 {dimension_numbers = #tpu.dot_dimension_numbers<[1], [0], [0], [1], [0, 0, 1, 1], [], []>} : vector<2x140xbf16>, vector<140x240xbf16>, vector<2x240xf32> -> vector<2x240xf32>
    %82 = vector.broadcast %58 : vector<1x240xf32> to vector<2x240xf32>
    %83 = arith.addf %81, %82 : vector<2x240xf32>
    %84 = tpu.concatenate %12, %14, %16, %18, %20 in 1 : vector<2x28xf32>, vector<2x28xf32>, vector<2x28xf32>, vector<2x28xf32>, vector<2x28xf32> -> vector<2x140xf32>
    %85 = arith.truncf %84 : vector<2x140xf32> to vector<2x140xbf16>
    %cst_10 = arith.constant dense<0.000000e+00> : vector<2x240xf32>
    %86 = tpu.matmul %85, %57, %cst_10 {dimension_numbers = #tpu.dot_dimension_numbers<[1], [0], [0], [1], [0, 0, 1, 1], [], []>} : vector<2x140xbf16>, vector<140x240xbf16>, vector<2x240xf32> -> vector<2x240xf32>
    %87 = vector.broadcast %58 : vector<1x240xf32> to vector<2x240xf32>
    %88 = arith.addf %86, %87 : vector<2x240xf32>
    %89 = tpu.concatenate %14, %16, %18, %20, %22 in 1 : vector<2x28xf32>, vector<2x28xf32>, vector<2x28xf32>, vector<2x28xf32>, vector<2x28xf32> -> vector<2x140xf32>
    %90 = arith.truncf %89 : vector<2x140xf32> to vector<2x140xbf16>
    %cst_11 = arith.constant dense<0.000000e+00> : vector<2x240xf32>
    %91 = tpu.matmul %90, %57, %cst_11 {dimension_numbers = #tpu.dot_dimension_numbers<[1], [0], [0], [1], [0, 0, 1, 1], [], []>} : vector<2x140xbf16>, vector<140x240xbf16>, vector<2x240xf32> -> vector<2x240xf32>
    %92 = vector.broadcast %58 : vector<1x240xf32> to vector<2x240xf32>
    %93 = arith.addf %91, %92 : vector<2x240xf32>
    %94 = tpu.concatenate %16, %18, %20, %22, %24 in 1 : vector<2x28xf32>, vector<2x28xf32>, vector<2x28xf32>, vector<2x28xf32>, vector<2x28xf32> -> vector<2x140xf32>
    %95 = arith.truncf %94 : vector<2x140xf32> to vector<2x140xbf16>
    %cst_12 = arith.constant dense<0.000000e+00> : vector<2x240xf32>
    %96 = tpu.matmul %95, %57, %cst_12 {dimension_numbers = #tpu.dot_dimension_numbers<[1], [0], [0], [1], [0, 0, 1, 1], [], []>} : vector<2x140xbf16>, vector<140x240xbf16>, vector<2x240xf32> -> vector<2x240xf32>
    %97 = vector.broadcast %58 : vector<1x240xf32> to vector<2x240xf32>
    %98 = arith.addf %96, %97 : vector<2x240xf32>
    %99 = tpu.concatenate %18, %20, %22, %24, %26 in 1 : vector<2x28xf32>, vector<2x28xf32>, vector<2x28xf32>, vector<2x28xf32>, vector<2x28xf32> -> vector<2x140xf32>
    %100 = arith.truncf %99 : vector<2x140xf32> to vector<2x140xbf16>
    %cst_13 = arith.constant dense<0.000000e+00> : vector<2x240xf32>
    %101 = tpu.matmul %100, %57, %cst_13 {dimension_numbers = #tpu.dot_dimension_numbers<[1], [0], [0], [1], [0, 0, 1, 1], [], []>} : vector<2x140xbf16>, vector<140x240xbf16>, vector<2x240xf32> -> vector<2x240xf32>
    %102 = vector.broadcast %58 : vector<1x240xf32> to vector<2x240xf32>
    %103 = arith.addf %101, %102 : vector<2x240xf32>
    %104 = tpu.concatenate %20, %22, %24, %26, %28 in 1 : vector<2x28xf32>, vector<2x28xf32>, vector<2x28xf32>, vector<2x28xf32>, vector<2x28xf32> -> vector<2x140xf32>
    %105 = arith.truncf %104 : vector<2x140xf32> to vector<2x140xbf16>
    %cst_14 = arith.constant dense<0.000000e+00> : vector<2x240xf32>
    %106 = tpu.matmul %105, %57, %cst_14 {dimension_numbers = #tpu.dot_dimension_numbers<[1], [0], [0], [1], [0, 0, 1, 1], [], []>} : vector<2x140xbf16>, vector<140x240xbf16>, vector<2x240xf32> -> vector<2x240xf32>
    %107 = vector.broadcast %58 : vector<1x240xf32> to vector<2x240xf32>
    %108 = arith.addf %106, %107 : vector<2x240xf32>
    %109 = tpu.concatenate %22, %24, %26, %28, %30 in 1 : vector<2x28xf32>, vector<2x28xf32>, vector<2x28xf32>, vector<2x28xf32>, vector<2x28xf32> -> vector<2x140xf32>
    %110 = arith.truncf %109 : vector<2x140xf32> to vector<2x140xbf16>
    %cst_15 = arith.constant dense<0.000000e+00> : vector<2x240xf32>
    %111 = tpu.matmul %110, %57, %cst_15 {dimension_numbers = #tpu.dot_dimension_numbers<[1], [0], [0], [1], [0, 0, 1, 1], [], []>} : vector<2x140xbf16>, vector<140x240xbf16>, vector<2x240xf32> -> vector<2x240xf32>
    %112 = vector.broadcast %58 : vector<1x240xf32> to vector<2x240xf32>
    %113 = arith.addf %111, %112 : vector<2x240xf32>
    %114 = tpu.concatenate %24, %26, %28, %30, %32 in 1 : vector<2x28xf32>, vector<2x28xf32>, vector<2x28xf32>, vector<2x28xf32>, vector<2x28xf32> -> vector<2x140xf32>
    %115 = arith.truncf %114 : vector<2x140xf32> to vector<2x140xbf16>
    %cst_16 = arith.constant dense<0.000000e+00> : vector<2x240xf32>
    %116 = tpu.matmul %115, %57, %cst_16 {dimension_numbers = #tpu.dot_dimension_numbers<[1], [0], [0], [1], [0, 0, 1, 1], [], []>} : vector<2x140xbf16>, vector<140x240xbf16>, vector<2x240xf32> -> vector<2x240xf32>
    %117 = vector.broadcast %58 : vector<1x240xf32> to vector<2x240xf32>
    %118 = arith.addf %116, %117 : vector<2x240xf32>
    %119 = tpu.concatenate %26, %28, %30, %32, %34 in 1 : vector<2x28xf32>, vector<2x28xf32>, vector<2x28xf32>, vector<2x28xf32>, vector<2x28xf32> -> vector<2x140xf32>
    %120 = arith.truncf %119 : vector<2x140xf32> to vector<2x140xbf16>
    %cst_17 = arith.constant dense<0.000000e+00> : vector<2x240xf32>
    %121 = tpu.matmul %120, %57, %cst_17 {dimension_numbers = #tpu.dot_dimension_numbers<[1], [0], [0], [1], [0, 0, 1, 1], [], []>} : vector<2x140xbf16>, vector<140x240xbf16>, vector<2x240xf32> -> vector<2x240xf32>
    %122 = vector.broadcast %58 : vector<1x240xf32> to vector<2x240xf32>
    %123 = arith.addf %121, %122 : vector<2x240xf32>
    %124 = tpu.concatenate %28, %30, %32, %34, %36 in 1 : vector<2x28xf32>, vector<2x28xf32>, vector<2x28xf32>, vector<2x28xf32>, vector<2x28xf32> -> vector<2x140xf32>
    %125 = arith.truncf %124 : vector<2x140xf32> to vector<2x140xbf16>
    %cst_18 = arith.constant dense<0.000000e+00> : vector<2x240xf32>
    %126 = tpu.matmul %125, %57, %cst_18 {dimension_numbers = #tpu.dot_dimension_numbers<[1], [0], [0], [1], [0, 0, 1, 1], [], []>} : vector<2x140xbf16>, vector<140x240xbf16>, vector<2x240xf32> -> vector<2x240xf32>
    %127 = vector.broadcast %58 : vector<1x240xf32> to vector<2x240xf32>
    %128 = arith.addf %126, %127 : vector<2x240xf32>
    %129 = tpu.concatenate %30, %32, %34, %36, %38 in 1 : vector<2x28xf32>, vector<2x28xf32>, vector<2x28xf32>, vector<2x28xf32>, vector<2x28xf32> -> vector<2x140xf32>
    %130 = arith.truncf %129 : vector<2x140xf32> to vector<2x140xbf16>
    %cst_19 = arith.constant dense<0.000000e+00> : vector<2x240xf32>
    %131 = tpu.matmul %130, %57, %cst_19 {dimension_numbers = #tpu.dot_dimension_numbers<[1], [0], [0], [1], [0, 0, 1, 1], [], []>} : vector<2x140xbf16>, vector<140x240xbf16>, vector<2x240xf32> -> vector<2x240xf32>
    %132 = vector.broadcast %58 : vector<1x240xf32> to vector<2x240xf32>
    %133 = arith.addf %131, %132 : vector<2x240xf32>
    %134 = tpu.concatenate %32, %34, %36, %38, %40 in 1 : vector<2x28xf32>, vector<2x28xf32>, vector<2x28xf32>, vector<2x28xf32>, vector<2x28xf32> -> vector<2x140xf32>
    %135 = arith.truncf %134 : vector<2x140xf32> to vector<2x140xbf16>
    %cst_20 = arith.constant dense<0.000000e+00> : vector<2x240xf32>
    %136 = tpu.matmul %135, %57, %cst_20 {dimension_numbers = #tpu.dot_dimension_numbers<[1], [0], [0], [1], [0, 0, 1, 1], [], []>} : vector<2x140xbf16>, vector<140x240xbf16>, vector<2x240xf32> -> vector<2x240xf32>
    %137 = vector.broadcast %58 : vector<1x240xf32> to vector<2x240xf32>
    %138 = arith.addf %136, %137 : vector<2x240xf32>
    %139 = tpu.concatenate %34, %36, %38, %40, %42 in 1 : vector<2x28xf32>, vector<2x28xf32>, vector<2x28xf32>, vector<2x28xf32>, vector<2x28xf32> -> vector<2x140xf32>
    %140 = arith.truncf %139 : vector<2x140xf32> to vector<2x140xbf16>
    %cst_21 = arith.constant dense<0.000000e+00> : vector<2x240xf32>
    %141 = tpu.matmul %140, %57, %cst_21 {dimension_numbers = #tpu.dot_dimension_numbers<[1], [0], [0], [1], [0, 0, 1, 1], [], []>} : vector<2x140xbf16>, vector<140x240xbf16>, vector<2x240xf32> -> vector<2x240xf32>
    %142 = vector.broadcast %58 : vector<1x240xf32> to vector<2x240xf32>
    %143 = arith.addf %141, %142 : vector<2x240xf32>
    %144 = tpu.concatenate %36, %38, %40, %42, %44 in 1 : vector<2x28xf32>, vector<2x28xf32>, vector<2x28xf32>, vector<2x28xf32>, vector<2x28xf32> -> vector<2x140xf32>
    %145 = arith.truncf %144 : vector<2x140xf32> to vector<2x140xbf16>
    %cst_22 = arith.constant dense<0.000000e+00> : vector<2x240xf32>
    %146 = tpu.matmul %145, %57, %cst_22 {dimension_numbers = #tpu.dot_dimension_numbers<[1], [0], [0], [1], [0, 0, 1, 1], [], []>} : vector<2x140xbf16>, vector<140x240xbf16>, vector<2x240xf32> -> vector<2x240xf32>
    %147 = vector.broadcast %58 : vector<1x240xf32> to vector<2x240xf32>
    %148 = arith.addf %146, %147 : vector<2x240xf32>
    %149 = tpu.concatenate %38, %40, %42, %44, %46 in 1 : vector<2x28xf32>, vector<2x28xf32>, vector<2x28xf32>, vector<2x28xf32>, vector<2x28xf32> -> vector<2x140xf32>
    %150 = arith.truncf %149 : vector<2x140xf32> to vector<2x140xbf16>
    %cst_23 = arith.constant dense<0.000000e+00> : vector<2x240xf32>
    %151 = tpu.matmul %150, %57, %cst_23 {dimension_numbers = #tpu.dot_dimension_numbers<[1], [0], [0], [1], [0, 0, 1, 1], [], []>} : vector<2x140xbf16>, vector<140x240xbf16>, vector<2x240xf32> -> vector<2x240xf32>
    %152 = vector.broadcast %58 : vector<1x240xf32> to vector<2x240xf32>
    %153 = arith.addf %151, %152 : vector<2x240xf32>
    %154 = tpu.concatenate %40, %42, %44, %46, %48 in 1 : vector<2x28xf32>, vector<2x28xf32>, vector<2x28xf32>, vector<2x28xf32>, vector<2x28xf32> -> vector<2x140xf32>
    %155 = arith.truncf %154 : vector<2x140xf32> to vector<2x140xbf16>
    %cst_24 = arith.constant dense<0.000000e+00> : vector<2x240xf32>
    %156 = tpu.matmul %155, %57, %cst_24 {dimension_numbers = #tpu.dot_dimension_numbers<[1], [0], [0], [1], [0, 0, 1, 1], [], []>} : vector<2x140xbf16>, vector<140x240xbf16>, vector<2x240xf32> -> vector<2x240xf32>
    %157 = vector.broadcast %58 : vector<1x240xf32> to vector<2x240xf32>
    %158 = arith.addf %156, %157 : vector<2x240xf32>
    %159 = tpu.concatenate %42, %44, %46, %48, %50 in 1 : vector<2x28xf32>, vector<2x28xf32>, vector<2x28xf32>, vector<2x28xf32>, vector<2x28xf32> -> vector<2x140xf32>
    %160 = arith.truncf %159 : vector<2x140xf32> to vector<2x140xbf16>
    %cst_25 = arith.constant dense<0.000000e+00> : vector<2x240xf32>
    %161 = tpu.matmul %160, %57, %cst_25 {dimension_numbers = #tpu.dot_dimension_numbers<[1], [0], [0], [1], [0, 0, 1, 1], [], []>} : vector<2x140xbf16>, vector<140x240xbf16>, vector<2x240xf32> -> vector<2x240xf32>
    %162 = vector.broadcast %58 : vector<1x240xf32> to vector<2x240xf32>
    %163 = arith.addf %161, %162 : vector<2x240xf32>
    %164 = tpu.concatenate %44, %46, %48, %50, %52 in 1 : vector<2x28xf32>, vector<2x28xf32>, vector<2x28xf32>, vector<2x28xf32>, vector<2x28xf32> -> vector<2x140xf32>
    %165 = arith.truncf %164 : vector<2x140xf32> to vector<2x140xbf16>
    %cst_26 = arith.constant dense<0.000000e+00> : vector<2x240xf32>
    %166 = tpu.matmul %165, %57, %cst_26 {dimension_numbers = #tpu.dot_dimension_numbers<[1], [0], [0], [1], [0, 0, 1, 1], [], []>} : vector<2x140xbf16>, vector<140x240xbf16>, vector<2x240xf32> -> vector<2x240xf32>
    %167 = vector.broadcast %58 : vector<1x240xf32> to vector<2x240xf32>
    %168 = arith.addf %166, %167 : vector<2x240xf32>
    %169 = tpu.concatenate %46, %48, %50, %52, %54 in 1 : vector<2x28xf32>, vector<2x28xf32>, vector<2x28xf32>, vector<2x28xf32>, vector<2x28xf32> -> vector<2x140xf32>
    %170 = arith.truncf %169 : vector<2x140xf32> to vector<2x140xbf16>
    %cst_27 = arith.constant dense<0.000000e+00> : vector<2x240xf32>
    %171 = tpu.matmul %170, %57, %cst_27 {dimension_numbers = #tpu.dot_dimension_numbers<[1], [0], [0], [1], [0, 0, 1, 1], [], []>} : vector<2x140xbf16>, vector<140x240xbf16>, vector<2x240xf32> -> vector<2x240xf32>
    %172 = vector.broadcast %58 : vector<1x240xf32> to vector<2x240xf32>
    %173 = arith.addf %171, %172 : vector<2x240xf32>
    %174 = tpu.concatenate %48, %50, %52, %54, %56 in 1 : vector<2x28xf32>, vector<2x28xf32>, vector<2x28xf32>, vector<2x28xf32>, vector<2x28xf32> -> vector<2x140xf32>
    %175 = arith.truncf %174 : vector<2x140xf32> to vector<2x140xbf16>
    %cst_28 = arith.constant dense<0.000000e+00> : vector<2x240xf32>
    %176 = tpu.matmul %175, %57, %cst_28 {dimension_numbers = #tpu.dot_dimension_numbers<[1], [0], [0], [1], [0, 0, 1, 1], [], []>} : vector<2x140xbf16>, vector<140x240xbf16>, vector<2x240xf32> -> vector<2x240xf32>
    %177 = vector.broadcast %58 : vector<1x240xf32> to vector<2x240xf32>
    %178 = arith.addf %176, %177 : vector<2x240xf32>
    %179 = arith.maximumf %63, %68 : vector<2x240xf32>
    %180 = vector.extract_strided_slice %179 {offsets = [0, 0], sizes = [2, 10], strides = [1, 1]} : vector<2x240xf32> to vector<2x10xf32>
    %181 = vector.extract_strided_slice %179 {offsets = [0, 10], sizes = [2, 10], strides = [1, 1]} : vector<2x240xf32> to vector<2x10xf32>
    %182 = arith.maximumf %180, %181 : vector<2x10xf32>
    %183 = vector.extract_strided_slice %179 {offsets = [0, 20], sizes = [2, 10], strides = [1, 1]} : vector<2x240xf32> to vector<2x10xf32>
    %184 = vector.extract_strided_slice %179 {offsets = [0, 30], sizes = [2, 10], strides = [1, 1]} : vector<2x240xf32> to vector<2x10xf32>
    %185 = arith.maximumf %183, %184 : vector<2x10xf32>
    %186 = vector.extract_strided_slice %179 {offsets = [0, 40], sizes = [2, 10], strides = [1, 1]} : vector<2x240xf32> to vector<2x10xf32>
    %187 = vector.extract_strided_slice %179 {offsets = [0, 50], sizes = [2, 10], strides = [1, 1]} : vector<2x240xf32> to vector<2x10xf32>
    %188 = arith.maximumf %186, %187 : vector<2x10xf32>
    %189 = vector.extract_strided_slice %179 {offsets = [0, 60], sizes = [2, 10], strides = [1, 1]} : vector<2x240xf32> to vector<2x10xf32>
    %190 = vector.extract_strided_slice %179 {offsets = [0, 70], sizes = [2, 10], strides = [1, 1]} : vector<2x240xf32> to vector<2x10xf32>
    %191 = arith.maximumf %189, %190 : vector<2x10xf32>
    %192 = vector.extract_strided_slice %179 {offsets = [0, 80], sizes = [2, 10], strides = [1, 1]} : vector<2x240xf32> to vector<2x10xf32>
    %193 = vector.extract_strided_slice %179 {offsets = [0, 90], sizes = [2, 10], strides = [1, 1]} : vector<2x240xf32> to vector<2x10xf32>
    %194 = arith.maximumf %192, %193 : vector<2x10xf32>
    %195 = vector.extract_strided_slice %179 {offsets = [0, 100], sizes = [2, 10], strides = [1, 1]} : vector<2x240xf32> to vector<2x10xf32>
    %196 = vector.extract_strided_slice %179 {offsets = [0, 110], sizes = [2, 10], strides = [1, 1]} : vector<2x240xf32> to vector<2x10xf32>
    %197 = arith.maximumf %195, %196 : vector<2x10xf32>
    %198 = vector.extract_strided_slice %179 {offsets = [0, 120], sizes = [2, 10], strides = [1, 1]} : vector<2x240xf32> to vector<2x10xf32>
    %199 = vector.extract_strided_slice %179 {offsets = [0, 130], sizes = [2, 10], strides = [1, 1]} : vector<2x240xf32> to vector<2x10xf32>
    %200 = arith.maximumf %198, %199 : vector<2x10xf32>
    %201 = vector.extract_strided_slice %179 {offsets = [0, 140], sizes = [2, 10], strides = [1, 1]} : vector<2x240xf32> to vector<2x10xf32>
    %202 = vector.extract_strided_slice %179 {offsets = [0, 150], sizes = [2, 10], strides = [1, 1]} : vector<2x240xf32> to vector<2x10xf32>
    %203 = arith.maximumf %201, %202 : vector<2x10xf32>
    %204 = vector.extract_strided_slice %179 {offsets = [0, 160], sizes = [2, 10], strides = [1, 1]} : vector<2x240xf32> to vector<2x10xf32>
    %205 = vector.extract_strided_slice %179 {offsets = [0, 170], sizes = [2, 10], strides = [1, 1]} : vector<2x240xf32> to vector<2x10xf32>
    %206 = arith.maximumf %204, %205 : vector<2x10xf32>
    %207 = vector.extract_strided_slice %179 {offsets = [0, 180], sizes = [2, 10], strides = [1, 1]} : vector<2x240xf32> to vector<2x10xf32>
    %208 = vector.extract_strided_slice %179 {offsets = [0, 190], sizes = [2, 10], strides = [1, 1]} : vector<2x240xf32> to vector<2x10xf32>
    %209 = arith.maximumf %207, %208 : vector<2x10xf32>
    %210 = vector.extract_strided_slice %179 {offsets = [0, 200], sizes = [2, 10], strides = [1, 1]} : vector<2x240xf32> to vector<2x10xf32>
    %211 = vector.extract_strided_slice %179 {offsets = [0, 210], sizes = [2, 10], strides = [1, 1]} : vector<2x240xf32> to vector<2x10xf32>
    %212 = arith.maximumf %210, %211 : vector<2x10xf32>
    %213 = vector.extract_strided_slice %179 {offsets = [0, 220], sizes = [2, 10], strides = [1, 1]} : vector<2x240xf32> to vector<2x10xf32>
    %214 = vector.extract_strided_slice %179 {offsets = [0, 230], sizes = [2, 10], strides = [1, 1]} : vector<2x240xf32> to vector<2x10xf32>
    %215 = arith.maximumf %213, %214 : vector<2x10xf32>
    %216 = tpu.concatenate %182, %185, %188, %191, %194, %197, %200, %203, %206, %209, %212, %215 in 1 : vector<2x10xf32>, vector<2x10xf32>, vector<2x10xf32>, vector<2x10xf32>, vector<2x10xf32>, vector<2x10xf32>, vector<2x10xf32>, vector<2x10xf32>, vector<2x10xf32>, vector<2x10xf32>, vector<2x10xf32>, vector<2x10xf32> -> vector<2x120xf32>
    %cst_29 = arith.constant 0.000000e+00 : f32
    %217 = vector.broadcast %cst_29 : f32 to vector<2x120xf32>
    %218 = arith.maximumf %216, %217 : vector<2x120xf32>
    %219 = arith.maximumf %73, %78 : vector<2x240xf32>
    %220 = vector.extract_strided_slice %219 {offsets = [0, 0], sizes = [2, 10], strides = [1, 1]} : vector<2x240xf32> to vector<2x10xf32>
    %221 = vector.extract_strided_slice %219 {offsets = [0, 10], sizes = [2, 10], strides = [1, 1]} : vector<2x240xf32> to vector<2x10xf32>
    %222 = arith.maximumf %220, %221 : vector<2x10xf32>
    %223 = vector.extract_strided_slice %219 {offsets = [0, 20], sizes = [2, 10], strides = [1, 1]} : vector<2x240xf32> to vector<2x10xf32>
    %224 = vector.extract_strided_slice %219 {offsets = [0, 30], sizes = [2, 10], strides = [1, 1]} : vector<2x240xf32> to vector<2x10xf32>
    %225 = arith.maximumf %223, %224 : vector<2x10xf32>
    %226 = vector.extract_strided_slice %219 {offsets = [0, 40], sizes = [2, 10], strides = [1, 1]} : vector<2x240xf32> to vector<2x10xf32>
    %227 = vector.extract_strided_slice %219 {offsets = [0, 50], sizes = [2, 10], strides = [1, 1]} : vector<2x240xf32> to vector<2x10xf32>
    %228 = arith.maximumf %226, %227 : vector<2x10xf32>
    %229 = vector.extract_strided_slice %219 {offsets = [0, 60], sizes = [2, 10], strides = [1, 1]} : vector<2x240xf32> to vector<2x10xf32>
    %230 = vector.extract_strided_slice %219 {offsets = [0, 70], sizes = [2, 10], strides = [1, 1]} : vector<2x240xf32> to vector<2x10xf32>
    %231 = arith.maximumf %229, %230 : vector<2x10xf32>
    %232 = vector.extract_strided_slice %219 {offsets = [0, 80], sizes = [2, 10], strides = [1, 1]} : vector<2x240xf32> to vector<2x10xf32>
    %233 = vector.extract_strided_slice %219 {offsets = [0, 90], sizes = [2, 10], strides = [1, 1]} : vector<2x240xf32> to vector<2x10xf32>
    %234 = arith.maximumf %232, %233 : vector<2x10xf32>
    %235 = vector.extract_strided_slice %219 {offsets = [0, 100], sizes = [2, 10], strides = [1, 1]} : vector<2x240xf32> to vector<2x10xf32>
    %236 = vector.extract_strided_slice %219 {offsets = [0, 110], sizes = [2, 10], strides = [1, 1]} : vector<2x240xf32> to vector<2x10xf32>
    %237 = arith.maximumf %235, %236 : vector<2x10xf32>
    %238 = vector.extract_strided_slice %219 {offsets = [0, 120], sizes = [2, 10], strides = [1, 1]} : vector<2x240xf32> to vector<2x10xf32>
    %239 = vector.extract_strided_slice %219 {offsets = [0, 130], sizes = [2, 10], strides = [1, 1]} : vector<2x240xf32> to vector<2x10xf32>
    %240 = arith.maximumf %238, %239 : vector<2x10xf32>
    %241 = vector.extract_strided_slice %219 {offsets = [0, 140], sizes = [2, 10], strides = [1, 1]} : vector<2x240xf32> to vector<2x10xf32>
    %242 = vector.extract_strided_slice %219 {offsets = [0, 150], sizes = [2, 10], strides = [1, 1]} : vector<2x240xf32> to vector<2x10xf32>
    %243 = arith.maximumf %241, %242 : vector<2x10xf32>
    %244 = vector.extract_strided_slice %219 {offsets = [0, 160], sizes = [2, 10], strides = [1, 1]} : vector<2x240xf32> to vector<2x10xf32>
    %245 = vector.extract_strided_slice %219 {offsets = [0, 170], sizes = [2, 10], strides = [1, 1]} : vector<2x240xf32> to vector<2x10xf32>
    %246 = arith.maximumf %244, %245 : vector<2x10xf32>
    %247 = vector.extract_strided_slice %219 {offsets = [0, 180], sizes = [2, 10], strides = [1, 1]} : vector<2x240xf32> to vector<2x10xf32>
    %248 = vector.extract_strided_slice %219 {offsets = [0, 190], sizes = [2, 10], strides = [1, 1]} : vector<2x240xf32> to vector<2x10xf32>
    %249 = arith.maximumf %247, %248 : vector<2x10xf32>
    %250 = vector.extract_strided_slice %219 {offsets = [0, 200], sizes = [2, 10], strides = [1, 1]} : vector<2x240xf32> to vector<2x10xf32>
    %251 = vector.extract_strided_slice %219 {offsets = [0, 210], sizes = [2, 10], strides = [1, 1]} : vector<2x240xf32> to vector<2x10xf32>
    %252 = arith.maximumf %250, %251 : vector<2x10xf32>
    %253 = vector.extract_strided_slice %219 {offsets = [0, 220], sizes = [2, 10], strides = [1, 1]} : vector<2x240xf32> to vector<2x10xf32>
    %254 = vector.extract_strided_slice %219 {offsets = [0, 230], sizes = [2, 10], strides = [1, 1]} : vector<2x240xf32> to vector<2x10xf32>
    %255 = arith.maximumf %253, %254 : vector<2x10xf32>
    %256 = tpu.concatenate %222, %225, %228, %231, %234, %237, %240, %243, %246, %249, %252, %255 in 1 : vector<2x10xf32>, vector<2x10xf32>, vector<2x10xf32>, vector<2x10xf32>, vector<2x10xf32>, vector<2x10xf32>, vector<2x10xf32>, vector<2x10xf32>, vector<2x10xf32>, vector<2x10xf32>, vector<2x10xf32>, vector<2x10xf32> -> vector<2x120xf32>
    %cst_30 = arith.constant 0.000000e+00 : f32
    %257 = vector.broadcast %cst_30 : f32 to vector<2x120xf32>
    %258 = arith.maximumf %256, %257 : vector<2x120xf32>
    %259 = arith.maximumf %83, %88 : vector<2x240xf32>
    %260 = vector.extract_strided_slice %259 {offsets = [0, 0], sizes = [2, 10], strides = [1, 1]} : vector<2x240xf32> to vector<2x10xf32>
    %261 = vector.extract_strided_slice %259 {offsets = [0, 10], sizes = [2, 10], strides = [1, 1]} : vector<2x240xf32> to vector<2x10xf32>
    %262 = arith.maximumf %260, %261 : vector<2x10xf32>
    %263 = vector.extract_strided_slice %259 {offsets = [0, 20], sizes = [2, 10], strides = [1, 1]} : vector<2x240xf32> to vector<2x10xf32>
    %264 = vector.extract_strided_slice %259 {offsets = [0, 30], sizes = [2, 10], strides = [1, 1]} : vector<2x240xf32> to vector<2x10xf32>
    %265 = arith.maximumf %263, %264 : vector<2x10xf32>
    %266 = vector.extract_strided_slice %259 {offsets = [0, 40], sizes = [2, 10], strides = [1, 1]} : vector<2x240xf32> to vector<2x10xf32>
    %267 = vector.extract_strided_slice %259 {offsets = [0, 50], sizes = [2, 10], strides = [1, 1]} : vector<2x240xf32> to vector<2x10xf32>
    %268 = arith.maximumf %266, %267 : vector<2x10xf32>
    %269 = vector.extract_strided_slice %259 {offsets = [0, 60], sizes = [2, 10], strides = [1, 1]} : vector<2x240xf32> to vector<2x10xf32>
    %270 = vector.extract_strided_slice %259 {offsets = [0, 70], sizes = [2, 10], strides = [1, 1]} : vector<2x240xf32> to vector<2x10xf32>
    %271 = arith.maximumf %269, %270 : vector<2x10xf32>
    %272 = vector.extract_strided_slice %259 {offsets = [0, 80], sizes = [2, 10], strides = [1, 1]} : vector<2x240xf32> to vector<2x10xf32>
    %273 = vector.extract_strided_slice %259 {offsets = [0, 90], sizes = [2, 10], strides = [1, 1]} : vector<2x240xf32> to vector<2x10xf32>
    %274 = arith.maximumf %272, %273 : vector<2x10xf32>
    %275 = vector.extract_strided_slice %259 {offsets = [0, 100], sizes = [2, 10], strides = [1, 1]} : vector<2x240xf32> to vector<2x10xf32>
    %276 = vector.extract_strided_slice %259 {offsets = [0, 110], sizes = [2, 10], strides = [1, 1]} : vector<2x240xf32> to vector<2x10xf32>
    %277 = arith.maximumf %275, %276 : vector<2x10xf32>
    %278 = vector.extract_strided_slice %259 {offsets = [0, 120], sizes = [2, 10], strides = [1, 1]} : vector<2x240xf32> to vector<2x10xf32>
    %279 = vector.extract_strided_slice %259 {offsets = [0, 130], sizes = [2, 10], strides = [1, 1]} : vector<2x240xf32> to vector<2x10xf32>
    %280 = arith.maximumf %278, %279 : vector<2x10xf32>
    %281 = vector.extract_strided_slice %259 {offsets = [0, 140], sizes = [2, 10], strides = [1, 1]} : vector<2x240xf32> to vector<2x10xf32>
    %282 = vector.extract_strided_slice %259 {offsets = [0, 150], sizes = [2, 10], strides = [1, 1]} : vector<2x240xf32> to vector<2x10xf32>
    %283 = arith.maximumf %281, %282 : vector<2x10xf32>
    %284 = vector.extract_strided_slice %259 {offsets = [0, 160], sizes = [2, 10], strides = [1, 1]} : vector<2x240xf32> to vector<2x10xf32>
    %285 = vector.extract_strided_slice %259 {offsets = [0, 170], sizes = [2, 10], strides = [1, 1]} : vector<2x240xf32> to vector<2x10xf32>
    %286 = arith.maximumf %284, %285 : vector<2x10xf32>
    %287 = vector.extract_strided_slice %259 {offsets = [0, 180], sizes = [2, 10], strides = [1, 1]} : vector<2x240xf32> to vector<2x10xf32>
    %288 = vector.extract_strided_slice %259 {offsets = [0, 190], sizes = [2, 10], strides = [1, 1]} : vector<2x240xf32> to vector<2x10xf32>
    %289 = arith.maximumf %287, %288 : vector<2x10xf32>
    %290 = vector.extract_strided_slice %259 {offsets = [0, 200], sizes = [2, 10], strides = [1, 1]} : vector<2x240xf32> to vector<2x10xf32>
    %291 = vector.extract_strided_slice %259 {offsets = [0, 210], sizes = [2, 10], strides = [1, 1]} : vector<2x240xf32> to vector<2x10xf32>
    %292 = arith.maximumf %290, %291 : vector<2x10xf32>
    %293 = vector.extract_strided_slice %259 {offsets = [0, 220], sizes = [2, 10], strides = [1, 1]} : vector<2x240xf32> to vector<2x10xf32>
    %294 = vector.extract_strided_slice %259 {offsets = [0, 230], sizes = [2, 10], strides = [1, 1]} : vector<2x240xf32> to vector<2x10xf32>
    %295 = arith.maximumf %293, %294 : vector<2x10xf32>
    %296 = tpu.concatenate %262, %265, %268, %271, %274, %277, %280, %283, %286, %289, %292, %295 in 1 : vector<2x10xf32>, vector<2x10xf32>, vector<2x10xf32>, vector<2x10xf32>, vector<2x10xf32>, vector<2x10xf32>, vector<2x10xf32>, vector<2x10xf32>, vector<2x10xf32>, vector<2x10xf32>, vector<2x10xf32>, vector<2x10xf32> -> vector<2x120xf32>
    %cst_31 = arith.constant 0.000000e+00 : f32
    %297 = vector.broadcast %cst_31 : f32 to vector<2x120xf32>
    %298 = arith.maximumf %296, %297 : vector<2x120xf32>
    %299 = arith.maximumf %93, %98 : vector<2x240xf32>
    %300 = vector.extract_strided_slice %299 {offsets = [0, 0], sizes = [2, 10], strides = [1, 1]} : vector<2x240xf32> to vector<2x10xf32>
    %301 = vector.extract_strided_slice %299 {offsets = [0, 10], sizes = [2, 10], strides = [1, 1]} : vector<2x240xf32> to vector<2x10xf32>
    %302 = arith.maximumf %300, %301 : vector<2x10xf32>
    %303 = vector.extract_strided_slice %299 {offsets = [0, 20], sizes = [2, 10], strides = [1, 1]} : vector<2x240xf32> to vector<2x10xf32>
    %304 = vector.extract_strided_slice %299 {offsets = [0, 30], sizes = [2, 10], strides = [1, 1]} : vector<2x240xf32> to vector<2x10xf32>
    %305 = arith.maximumf %303, %304 : vector<2x10xf32>
    %306 = vector.extract_strided_slice %299 {offsets = [0, 40], sizes = [2, 10], strides = [1, 1]} : vector<2x240xf32> to vector<2x10xf32>
    %307 = vector.extract_strided_slice %299 {offsets = [0, 50], sizes = [2, 10], strides = [1, 1]} : vector<2x240xf32> to vector<2x10xf32>
    %308 = arith.maximumf %306, %307 : vector<2x10xf32>
    %309 = vector.extract_strided_slice %299 {offsets = [0, 60], sizes = [2, 10], strides = [1, 1]} : vector<2x240xf32> to vector<2x10xf32>
    %310 = vector.extract_strided_slice %299 {offsets = [0, 70], sizes = [2, 10], strides = [1, 1]} : vector<2x240xf32> to vector<2x10xf32>
    %311 = arith.maximumf %309, %310 : vector<2x10xf32>
    %312 = vector.extract_strided_slice %299 {offsets = [0, 80], sizes = [2, 10], strides = [1, 1]} : vector<2x240xf32> to vector<2x10xf32>
    %313 = vector.extract_strided_slice %299 {offsets = [0, 90], sizes = [2, 10], strides = [1, 1]} : vector<2x240xf32> to vector<2x10xf32>
    %314 = arith.maximumf %312, %313 : vector<2x10xf32>
    %315 = vector.extract_strided_slice %299 {offsets = [0, 100], sizes = [2, 10], strides = [1, 1]} : vector<2x240xf32> to vector<2x10xf32>
    %316 = vector.extract_strided_slice %299 {offsets = [0, 110], sizes = [2, 10], strides = [1, 1]} : vector<2x240xf32> to vector<2x10xf32>
    %317 = arith.maximumf %315, %316 : vector<2x10xf32>
    %318 = vector.extract_strided_slice %299 {offsets = [0, 120], sizes = [2, 10], strides = [1, 1]} : vector<2x240xf32> to vector<2x10xf32>
    %319 = vector.extract_strided_slice %299 {offsets = [0, 130], sizes = [2, 10], strides = [1, 1]} : vector<2x240xf32> to vector<2x10xf32>
    %320 = arith.maximumf %318, %319 : vector<2x10xf32>
    %321 = vector.extract_strided_slice %299 {offsets = [0, 140], sizes = [2, 10], strides = [1, 1]} : vector<2x240xf32> to vector<2x10xf32>
    %322 = vector.extract_strided_slice %299 {offsets = [0, 150], sizes = [2, 10], strides = [1, 1]} : vector<2x240xf32> to vector<2x10xf32>
    %323 = arith.maximumf %321, %322 : vector<2x10xf32>
    %324 = vector.extract_strided_slice %299 {offsets = [0, 160], sizes = [2, 10], strides = [1, 1]} : vector<2x240xf32> to vector<2x10xf32>
    %325 = vector.extract_strided_slice %299 {offsets = [0, 170], sizes = [2, 10], strides = [1, 1]} : vector<2x240xf32> to vector<2x10xf32>
    %326 = arith.maximumf %324, %325 : vector<2x10xf32>
    %327 = vector.extract_strided_slice %299 {offsets = [0, 180], sizes = [2, 10], strides = [1, 1]} : vector<2x240xf32> to vector<2x10xf32>
    %328 = vector.extract_strided_slice %299 {offsets = [0, 190], sizes = [2, 10], strides = [1, 1]} : vector<2x240xf32> to vector<2x10xf32>
    %329 = arith.maximumf %327, %328 : vector<2x10xf32>
    %330 = vector.extract_strided_slice %299 {offsets = [0, 200], sizes = [2, 10], strides = [1, 1]} : vector<2x240xf32> to vector<2x10xf32>
    %331 = vector.extract_strided_slice %299 {offsets = [0, 210], sizes = [2, 10], strides = [1, 1]} : vector<2x240xf32> to vector<2x10xf32>
    %332 = arith.maximumf %330, %331 : vector<2x10xf32>
    %333 = vector.extract_strided_slice %299 {offsets = [0, 220], sizes = [2, 10], strides = [1, 1]} : vector<2x240xf32> to vector<2x10xf32>
    %334 = vector.extract_strided_slice %299 {offsets = [0, 230], sizes = [2, 10], strides = [1, 1]} : vector<2x240xf32> to vector<2x10xf32>
    %335 = arith.maximumf %333, %334 : vector<2x10xf32>
    %336 = tpu.concatenate %302, %305, %308, %311, %314, %317, %320, %323, %326, %329, %332, %335 in 1 : vector<2x10xf32>, vector<2x10xf32>, vector<2x10xf32>, vector<2x10xf32>, vector<2x10xf32>, vector<2x10xf32>, vector<2x10xf32>, vector<2x10xf32>, vector<2x10xf32>, vector<2x10xf32>, vector<2x10xf32>, vector<2x10xf32> -> vector<2x120xf32>
    %cst_32 = arith.constant 0.000000e+00 : f32
    %337 = vector.broadcast %cst_32 : f32 to vector<2x120xf32>
    %338 = arith.maximumf %336, %337 : vector<2x120xf32>
    %339 = arith.maximumf %103, %108 : vector<2x240xf32>
    %340 = vector.extract_strided_slice %339 {offsets = [0, 0], sizes = [2, 10], strides = [1, 1]} : vector<2x240xf32> to vector<2x10xf32>
    %341 = vector.extract_strided_slice %339 {offsets = [0, 10], sizes = [2, 10], strides = [1, 1]} : vector<2x240xf32> to vector<2x10xf32>
    %342 = arith.maximumf %340, %341 : vector<2x10xf32>
    %343 = vector.extract_strided_slice %339 {offsets = [0, 20], sizes = [2, 10], strides = [1, 1]} : vector<2x240xf32> to vector<2x10xf32>
    %344 = vector.extract_strided_slice %339 {offsets = [0, 30], sizes = [2, 10], strides = [1, 1]} : vector<2x240xf32> to vector<2x10xf32>
    %345 = arith.maximumf %343, %344 : vector<2x10xf32>
    %346 = vector.extract_strided_slice %339 {offsets = [0, 40], sizes = [2, 10], strides = [1, 1]} : vector<2x240xf32> to vector<2x10xf32>
    %347 = vector.extract_strided_slice %339 {offsets = [0, 50], sizes = [2, 10], strides = [1, 1]} : vector<2x240xf32> to vector<2x10xf32>
    %348 = arith.maximumf %346, %347 : vector<2x10xf32>
    %349 = vector.extract_strided_slice %339 {offsets = [0, 60], sizes = [2, 10], strides = [1, 1]} : vector<2x240xf32> to vector<2x10xf32>
    %350 = vector.extract_strided_slice %339 {offsets = [0, 70], sizes = [2, 10], strides = [1, 1]} : vector<2x240xf32> to vector<2x10xf32>
    %351 = arith.maximumf %349, %350 : vector<2x10xf32>
    %352 = vector.extract_strided_slice %339 {offsets = [0, 80], sizes = [2, 10], strides = [1, 1]} : vector<2x240xf32> to vector<2x10xf32>
    %353 = vector.extract_strided_slice %339 {offsets = [0, 90], sizes = [2, 10], strides = [1, 1]} : vector<2x240xf32> to vector<2x10xf32>
    %354 = arith.maximumf %352, %353 : vector<2x10xf32>
    %355 = vector.extract_strided_slice %339 {offsets = [0, 100], sizes = [2, 10], strides = [1, 1]} : vector<2x240xf32> to vector<2x10xf32>
    %356 = vector.extract_strided_slice %339 {offsets = [0, 110], sizes = [2, 10], strides = [1, 1]} : vector<2x240xf32> to vector<2x10xf32>
    %357 = arith.maximumf %355, %356 : vector<2x10xf32>
    %358 = vector.extract_strided_slice %339 {offsets = [0, 120], sizes = [2, 10], strides = [1, 1]} : vector<2x240xf32> to vector<2x10xf32>
    %359 = vector.extract_strided_slice %339 {offsets = [0, 130], sizes = [2, 10], strides = [1, 1]} : vector<2x240xf32> to vector<2x10xf32>
    %360 = arith.maximumf %358, %359 : vector<2x10xf32>
    %361 = vector.extract_strided_slice %339 {offsets = [0, 140], sizes = [2, 10], strides = [1, 1]} : vector<2x240xf32> to vector<2x10xf32>
    %362 = vector.extract_strided_slice %339 {offsets = [0, 150], sizes = [2, 10], strides = [1, 1]} : vector<2x240xf32> to vector<2x10xf32>
    %363 = arith.maximumf %361, %362 : vector<2x10xf32>
    %364 = vector.extract_strided_slice %339 {offsets = [0, 160], sizes = [2, 10], strides = [1, 1]} : vector<2x240xf32> to vector<2x10xf32>
    %365 = vector.extract_strided_slice %339 {offsets = [0, 170], sizes = [2, 10], strides = [1, 1]} : vector<2x240xf32> to vector<2x10xf32>
    %366 = arith.maximumf %364, %365 : vector<2x10xf32>
    %367 = vector.extract_strided_slice %339 {offsets = [0, 180], sizes = [2, 10], strides = [1, 1]} : vector<2x240xf32> to vector<2x10xf32>
    %368 = vector.extract_strided_slice %339 {offsets = [0, 190], sizes = [2, 10], strides = [1, 1]} : vector<2x240xf32> to vector<2x10xf32>
    %369 = arith.maximumf %367, %368 : vector<2x10xf32>
    %370 = vector.extract_strided_slice %339 {offsets = [0, 200], sizes = [2, 10], strides = [1, 1]} : vector<2x240xf32> to vector<2x10xf32>
    %371 = vector.extract_strided_slice %339 {offsets = [0, 210], sizes = [2, 10], strides = [1, 1]} : vector<2x240xf32> to vector<2x10xf32>
    %372 = arith.maximumf %370, %371 : vector<2x10xf32>
    %373 = vector.extract_strided_slice %339 {offsets = [0, 220], sizes = [2, 10], strides = [1, 1]} : vector<2x240xf32> to vector<2x10xf32>
    %374 = vector.extract_strided_slice %339 {offsets = [0, 230], sizes = [2, 10], strides = [1, 1]} : vector<2x240xf32> to vector<2x10xf32>
    %375 = arith.maximumf %373, %374 : vector<2x10xf32>
    %376 = tpu.concatenate %342, %345, %348, %351, %354, %357, %360, %363, %366, %369, %372, %375 in 1 : vector<2x10xf32>, vector<2x10xf32>, vector<2x10xf32>, vector<2x10xf32>, vector<2x10xf32>, vector<2x10xf32>, vector<2x10xf32>, vector<2x10xf32>, vector<2x10xf32>, vector<2x10xf32>, vector<2x10xf32>, vector<2x10xf32> -> vector<2x120xf32>
    %cst_33 = arith.constant 0.000000e+00 : f32
    %377 = vector.broadcast %cst_33 : f32 to vector<2x120xf32>
    %378 = arith.maximumf %376, %377 : vector<2x120xf32>
    %379 = arith.maximumf %113, %118 : vector<2x240xf32>
    %380 = vector.extract_strided_slice %379 {offsets = [0, 0], sizes = [2, 10], strides = [1, 1]} : vector<2x240xf32> to vector<2x10xf32>
    %381 = vector.extract_strided_slice %379 {offsets = [0, 10], sizes = [2, 10], strides = [1, 1]} : vector<2x240xf32> to vector<2x10xf32>
    %382 = arith.maximumf %380, %381 : vector<2x10xf32>
    %383 = vector.extract_strided_slice %379 {offsets = [0, 20], sizes = [2, 10], strides = [1, 1]} : vector<2x240xf32> to vector<2x10xf32>
    %384 = vector.extract_strided_slice %379 {offsets = [0, 30], sizes = [2, 10], strides = [1, 1]} : vector<2x240xf32> to vector<2x10xf32>
    %385 = arith.maximumf %383, %384 : vector<2x10xf32>
    %386 = vector.extract_strided_slice %379 {offsets = [0, 40], sizes = [2, 10], strides = [1, 1]} : vector<2x240xf32> to vector<2x10xf32>
    %387 = vector.extract_strided_slice %379 {offsets = [0, 50], sizes = [2, 10], strides = [1, 1]} : vector<2x240xf32> to vector<2x10xf32>
    %388 = arith.maximumf %386, %387 : vector<2x10xf32>
    %389 = vector.extract_strided_slice %379 {offsets = [0, 60], sizes = [2, 10], strides = [1, 1]} : vector<2x240xf32> to vector<2x10xf32>
    %390 = vector.extract_strided_slice %379 {offsets = [0, 70], sizes = [2, 10], strides = [1, 1]} : vector<2x240xf32> to vector<2x10xf32>
    %391 = arith.maximumf %389, %390 : vector<2x10xf32>
    %392 = vector.extract_strided_slice %379 {offsets = [0, 80], sizes = [2, 10], strides = [1, 1]} : vector<2x240xf32> to vector<2x10xf32>
    %393 = vector.extract_strided_slice %379 {offsets = [0, 90], sizes = [2, 10], strides = [1, 1]} : vector<2x240xf32> to vector<2x10xf32>
    %394 = arith.maximumf %392, %393 : vector<2x10xf32>
    %395 = vector.extract_strided_slice %379 {offsets = [0, 100], sizes = [2, 10], strides = [1, 1]} : vector<2x240xf32> to vector<2x10xf32>
    %396 = vector.extract_strided_slice %379 {offsets = [0, 110], sizes = [2, 10], strides = [1, 1]} : vector<2x240xf32> to vector<2x10xf32>
    %397 = arith.maximumf %395, %396 : vector<2x10xf32>
    %398 = vector.extract_strided_slice %379 {offsets = [0, 120], sizes = [2, 10], strides = [1, 1]} : vector<2x240xf32> to vector<2x10xf32>
    %399 = vector.extract_strided_slice %379 {offsets = [0, 130], sizes = [2, 10], strides = [1, 1]} : vector<2x240xf32> to vector<2x10xf32>
    %400 = arith.maximumf %398, %399 : vector<2x10xf32>
    %401 = vector.extract_strided_slice %379 {offsets = [0, 140], sizes = [2, 10], strides = [1, 1]} : vector<2x240xf32> to vector<2x10xf32>
    %402 = vector.extract_strided_slice %379 {offsets = [0, 150], sizes = [2, 10], strides = [1, 1]} : vector<2x240xf32> to vector<2x10xf32>
    %403 = arith.maximumf %401, %402 : vector<2x10xf32>
    %404 = vector.extract_strided_slice %379 {offsets = [0, 160], sizes = [2, 10], strides = [1, 1]} : vector<2x240xf32> to vector<2x10xf32>
    %405 = vector.extract_strided_slice %379 {offsets = [0, 170], sizes = [2, 10], strides = [1, 1]} : vector<2x240xf32> to vector<2x10xf32>
    %406 = arith.maximumf %404, %405 : vector<2x10xf32>
    %407 = vector.extract_strided_slice %379 {offsets = [0, 180], sizes = [2, 10], strides = [1, 1]} : vector<2x240xf32> to vector<2x10xf32>
    %408 = vector.extract_strided_slice %379 {offsets = [0, 190], sizes = [2, 10], strides = [1, 1]} : vector<2x240xf32> to vector<2x10xf32>
    %409 = arith.maximumf %407, %408 : vector<2x10xf32>
    %410 = vector.extract_strided_slice %379 {offsets = [0, 200], sizes = [2, 10], strides = [1, 1]} : vector<2x240xf32> to vector<2x10xf32>
    %411 = vector.extract_strided_slice %379 {offsets = [0, 210], sizes = [2, 10], strides = [1, 1]} : vector<2x240xf32> to vector<2x10xf32>
    %412 = arith.maximumf %410, %411 : vector<2x10xf32>
    %413 = vector.extract_strided_slice %379 {offsets = [0, 220], sizes = [2, 10], strides = [1, 1]} : vector<2x240xf32> to vector<2x10xf32>
    %414 = vector.extract_strided_slice %379 {offsets = [0, 230], sizes = [2, 10], strides = [1, 1]} : vector<2x240xf32> to vector<2x10xf32>
    %415 = arith.maximumf %413, %414 : vector<2x10xf32>
    %416 = tpu.concatenate %382, %385, %388, %391, %394, %397, %400, %403, %406, %409, %412, %415 in 1 : vector<2x10xf32>, vector<2x10xf32>, vector<2x10xf32>, vector<2x10xf32>, vector<2x10xf32>, vector<2x10xf32>, vector<2x10xf32>, vector<2x10xf32>, vector<2x10xf32>, vector<2x10xf32>, vector<2x10xf32>, vector<2x10xf32> -> vector<2x120xf32>
    %cst_34 = arith.constant 0.000000e+00 : f32
    %417 = vector.broadcast %cst_34 : f32 to vector<2x120xf32>
    %418 = arith.maximumf %416, %417 : vector<2x120xf32>
    %419 = arith.maximumf %123, %128 : vector<2x240xf32>
    %420 = vector.extract_strided_slice %419 {offsets = [0, 0], sizes = [2, 10], strides = [1, 1]} : vector<2x240xf32> to vector<2x10xf32>
    %421 = vector.extract_strided_slice %419 {offsets = [0, 10], sizes = [2, 10], strides = [1, 1]} : vector<2x240xf32> to vector<2x10xf32>
    %422 = arith.maximumf %420, %421 : vector<2x10xf32>
    %423 = vector.extract_strided_slice %419 {offsets = [0, 20], sizes = [2, 10], strides = [1, 1]} : vector<2x240xf32> to vector<2x10xf32>
    %424 = vector.extract_strided_slice %419 {offsets = [0, 30], sizes = [2, 10], strides = [1, 1]} : vector<2x240xf32> to vector<2x10xf32>
    %425 = arith.maximumf %423, %424 : vector<2x10xf32>
    %426 = vector.extract_strided_slice %419 {offsets = [0, 40], sizes = [2, 10], strides = [1, 1]} : vector<2x240xf32> to vector<2x10xf32>
    %427 = vector.extract_strided_slice %419 {offsets = [0, 50], sizes = [2, 10], strides = [1, 1]} : vector<2x240xf32> to vector<2x10xf32>
    %428 = arith.maximumf %426, %427 : vector<2x10xf32>
    %429 = vector.extract_strided_slice %419 {offsets = [0, 60], sizes = [2, 10], strides = [1, 1]} : vector<2x240xf32> to vector<2x10xf32>
    %430 = vector.extract_strided_slice %419 {offsets = [0, 70], sizes = [2, 10], strides = [1, 1]} : vector<2x240xf32> to vector<2x10xf32>
    %431 = arith.maximumf %429, %430 : vector<2x10xf32>
    %432 = vector.extract_strided_slice %419 {offsets = [0, 80], sizes = [2, 10], strides = [1, 1]} : vector<2x240xf32> to vector<2x10xf32>
    %433 = vector.extract_strided_slice %419 {offsets = [0, 90], sizes = [2, 10], strides = [1, 1]} : vector<2x240xf32> to vector<2x10xf32>
    %434 = arith.maximumf %432, %433 : vector<2x10xf32>
    %435 = vector.extract_strided_slice %419 {offsets = [0, 100], sizes = [2, 10], strides = [1, 1]} : vector<2x240xf32> to vector<2x10xf32>
    %436 = vector.extract_strided_slice %419 {offsets = [0, 110], sizes = [2, 10], strides = [1, 1]} : vector<2x240xf32> to vector<2x10xf32>
    %437 = arith.maximumf %435, %436 : vector<2x10xf32>
    %438 = vector.extract_strided_slice %419 {offsets = [0, 120], sizes = [2, 10], strides = [1, 1]} : vector<2x240xf32> to vector<2x10xf32>
    %439 = vector.extract_strided_slice %419 {offsets = [0, 130], sizes = [2, 10], strides = [1, 1]} : vector<2x240xf32> to vector<2x10xf32>
    %440 = arith.maximumf %438, %439 : vector<2x10xf32>
    %441 = vector.extract_strided_slice %419 {offsets = [0, 140], sizes = [2, 10], strides = [1, 1]} : vector<2x240xf32> to vector<2x10xf32>
    %442 = vector.extract_strided_slice %419 {offsets = [0, 150], sizes = [2, 10], strides = [1, 1]} : vector<2x240xf32> to vector<2x10xf32>
    %443 = arith.maximumf %441, %442 : vector<2x10xf32>
    %444 = vector.extract_strided_slice %419 {offsets = [0, 160], sizes = [2, 10], strides = [1, 1]} : vector<2x240xf32> to vector<2x10xf32>
    %445 = vector.extract_strided_slice %419 {offsets = [0, 170], sizes = [2, 10], strides = [1, 1]} : vector<2x240xf32> to vector<2x10xf32>
    %446 = arith.maximumf %444, %445 : vector<2x10xf32>
    %447 = vector.extract_strided_slice %419 {offsets = [0, 180], sizes = [2, 10], strides = [1, 1]} : vector<2x240xf32> to vector<2x10xf32>
    %448 = vector.extract_strided_slice %419 {offsets = [0, 190], sizes = [2, 10], strides = [1, 1]} : vector<2x240xf32> to vector<2x10xf32>
    %449 = arith.maximumf %447, %448 : vector<2x10xf32>
    %450 = vector.extract_strided_slice %419 {offsets = [0, 200], sizes = [2, 10], strides = [1, 1]} : vector<2x240xf32> to vector<2x10xf32>
    %451 = vector.extract_strided_slice %419 {offsets = [0, 210], sizes = [2, 10], strides = [1, 1]} : vector<2x240xf32> to vector<2x10xf32>
    %452 = arith.maximumf %450, %451 : vector<2x10xf32>
    %453 = vector.extract_strided_slice %419 {offsets = [0, 220], sizes = [2, 10], strides = [1, 1]} : vector<2x240xf32> to vector<2x10xf32>
    %454 = vector.extract_strided_slice %419 {offsets = [0, 230], sizes = [2, 10], strides = [1, 1]} : vector<2x240xf32> to vector<2x10xf32>
    %455 = arith.maximumf %453, %454 : vector<2x10xf32>
    %456 = tpu.concatenate %422, %425, %428, %431, %434, %437, %440, %443, %446, %449, %452, %455 in 1 : vector<2x10xf32>, vector<2x10xf32>, vector<2x10xf32>, vector<2x10xf32>, vector<2x10xf32>, vector<2x10xf32>, vector<2x10xf32>, vector<2x10xf32>, vector<2x10xf32>, vector<2x10xf32>, vector<2x10xf32>, vector<2x10xf32> -> vector<2x120xf32>
    %cst_35 = arith.constant 0.000000e+00 : f32
    %457 = vector.broadcast %cst_35 : f32 to vector<2x120xf32>
    %458 = arith.maximumf %456, %457 : vector<2x120xf32>
    %459 = arith.maximumf %133, %138 : vector<2x240xf32>
    %460 = vector.extract_strided_slice %459 {offsets = [0, 0], sizes = [2, 10], strides = [1, 1]} : vector<2x240xf32> to vector<2x10xf32>
    %461 = vector.extract_strided_slice %459 {offsets = [0, 10], sizes = [2, 10], strides = [1, 1]} : vector<2x240xf32> to vector<2x10xf32>
    %462 = arith.maximumf %460, %461 : vector<2x10xf32>
    %463 = vector.extract_strided_slice %459 {offsets = [0, 20], sizes = [2, 10], strides = [1, 1]} : vector<2x240xf32> to vector<2x10xf32>
    %464 = vector.extract_strided_slice %459 {offsets = [0, 30], sizes = [2, 10], strides = [1, 1]} : vector<2x240xf32> to vector<2x10xf32>
    %465 = arith.maximumf %463, %464 : vector<2x10xf32>
    %466 = vector.extract_strided_slice %459 {offsets = [0, 40], sizes = [2, 10], strides = [1, 1]} : vector<2x240xf32> to vector<2x10xf32>
    %467 = vector.extract_strided_slice %459 {offsets = [0, 50], sizes = [2, 10], strides = [1, 1]} : vector<2x240xf32> to vector<2x10xf32>
    %468 = arith.maximumf %466, %467 : vector<2x10xf32>
    %469 = vector.extract_strided_slice %459 {offsets = [0, 60], sizes = [2, 10], strides = [1, 1]} : vector<2x240xf32> to vector<2x10xf32>
    %470 = vector.extract_strided_slice %459 {offsets = [0, 70], sizes = [2, 10], strides = [1, 1]} : vector<2x240xf32> to vector<2x10xf32>
    %471 = arith.maximumf %469, %470 : vector<2x10xf32>
    %472 = vector.extract_strided_slice %459 {offsets = [0, 80], sizes = [2, 10], strides = [1, 1]} : vector<2x240xf32> to vector<2x10xf32>
    %473 = vector.extract_strided_slice %459 {offsets = [0, 90], sizes = [2, 10], strides = [1, 1]} : vector<2x240xf32> to vector<2x10xf32>
    %474 = arith.maximumf %472, %473 : vector<2x10xf32>
    %475 = vector.extract_strided_slice %459 {offsets = [0, 100], sizes = [2, 10], strides = [1, 1]} : vector<2x240xf32> to vector<2x10xf32>
    %476 = vector.extract_strided_slice %459 {offsets = [0, 110], sizes = [2, 10], strides = [1, 1]} : vector<2x240xf32> to vector<2x10xf32>
    %477 = arith.maximumf %475, %476 : vector<2x10xf32>
    %478 = vector.extract_strided_slice %459 {offsets = [0, 120], sizes = [2, 10], strides = [1, 1]} : vector<2x240xf32> to vector<2x10xf32>
    %479 = vector.extract_strided_slice %459 {offsets = [0, 130], sizes = [2, 10], strides = [1, 1]} : vector<2x240xf32> to vector<2x10xf32>
    %480 = arith.maximumf %478, %479 : vector<2x10xf32>
    %481 = vector.extract_strided_slice %459 {offsets = [0, 140], sizes = [2, 10], strides = [1, 1]} : vector<2x240xf32> to vector<2x10xf32>
    %482 = vector.extract_strided_slice %459 {offsets = [0, 150], sizes = [2, 10], strides = [1, 1]} : vector<2x240xf32> to vector<2x10xf32>
    %483 = arith.maximumf %481, %482 : vector<2x10xf32>
    %484 = vector.extract_strided_slice %459 {offsets = [0, 160], sizes = [2, 10], strides = [1, 1]} : vector<2x240xf32> to vector<2x10xf32>
    %485 = vector.extract_strided_slice %459 {offsets = [0, 170], sizes = [2, 10], strides = [1, 1]} : vector<2x240xf32> to vector<2x10xf32>
    %486 = arith.maximumf %484, %485 : vector<2x10xf32>
    %487 = vector.extract_strided_slice %459 {offsets = [0, 180], sizes = [2, 10], strides = [1, 1]} : vector<2x240xf32> to vector<2x10xf32>
    %488 = vector.extract_strided_slice %459 {offsets = [0, 190], sizes = [2, 10], strides = [1, 1]} : vector<2x240xf32> to vector<2x10xf32>
    %489 = arith.maximumf %487, %488 : vector<2x10xf32>
    %490 = vector.extract_strided_slice %459 {offsets = [0, 200], sizes = [2, 10], strides = [1, 1]} : vector<2x240xf32> to vector<2x10xf32>
    %491 = vector.extract_strided_slice %459 {offsets = [0, 210], sizes = [2, 10], strides = [1, 1]} : vector<2x240xf32> to vector<2x10xf32>
    %492 = arith.maximumf %490, %491 : vector<2x10xf32>
    %493 = vector.extract_strided_slice %459 {offsets = [0, 220], sizes = [2, 10], strides = [1, 1]} : vector<2x240xf32> to vector<2x10xf32>
    %494 = vector.extract_strided_slice %459 {offsets = [0, 230], sizes = [2, 10], strides = [1, 1]} : vector<2x240xf32> to vector<2x10xf32>
    %495 = arith.maximumf %493, %494 : vector<2x10xf32>
    %496 = tpu.concatenate %462, %465, %468, %471, %474, %477, %480, %483, %486, %489, %492, %495 in 1 : vector<2x10xf32>, vector<2x10xf32>, vector<2x10xf32>, vector<2x10xf32>, vector<2x10xf32>, vector<2x10xf32>, vector<2x10xf32>, vector<2x10xf32>, vector<2x10xf32>, vector<2x10xf32>, vector<2x10xf32>, vector<2x10xf32> -> vector<2x120xf32>
    %cst_36 = arith.constant 0.000000e+00 : f32
    %497 = vector.broadcast %cst_36 : f32 to vector<2x120xf32>
    %498 = arith.maximumf %496, %497 : vector<2x120xf32>
    %499 = arith.maximumf %143, %148 : vector<2x240xf32>
    %500 = vector.extract_strided_slice %499 {offsets = [0, 0], sizes = [2, 10], strides = [1, 1]} : vector<2x240xf32> to vector<2x10xf32>
    %501 = vector.extract_strided_slice %499 {offsets = [0, 10], sizes = [2, 10], strides = [1, 1]} : vector<2x240xf32> to vector<2x10xf32>
    %502 = arith.maximumf %500, %501 : vector<2x10xf32>
    %503 = vector.extract_strided_slice %499 {offsets = [0, 20], sizes = [2, 10], strides = [1, 1]} : vector<2x240xf32> to vector<2x10xf32>
    %504 = vector.extract_strided_slice %499 {offsets = [0, 30], sizes = [2, 10], strides = [1, 1]} : vector<2x240xf32> to vector<2x10xf32>
    %505 = arith.maximumf %503, %504 : vector<2x10xf32>
    %506 = vector.extract_strided_slice %499 {offsets = [0, 40], sizes = [2, 10], strides = [1, 1]} : vector<2x240xf32> to vector<2x10xf32>
    %507 = vector.extract_strided_slice %499 {offsets = [0, 50], sizes = [2, 10], strides = [1, 1]} : vector<2x240xf32> to vector<2x10xf32>
    %508 = arith.maximumf %506, %507 : vector<2x10xf32>
    %509 = vector.extract_strided_slice %499 {offsets = [0, 60], sizes = [2, 10], strides = [1, 1]} : vector<2x240xf32> to vector<2x10xf32>
    %510 = vector.extract_strided_slice %499 {offsets = [0, 70], sizes = [2, 10], strides = [1, 1]} : vector<2x240xf32> to vector<2x10xf32>
    %511 = arith.maximumf %509, %510 : vector<2x10xf32>
    %512 = vector.extract_strided_slice %499 {offsets = [0, 80], sizes = [2, 10], strides = [1, 1]} : vector<2x240xf32> to vector<2x10xf32>
    %513 = vector.extract_strided_slice %499 {offsets = [0, 90], sizes = [2, 10], strides = [1, 1]} : vector<2x240xf32> to vector<2x10xf32>
    %514 = arith.maximumf %512, %513 : vector<2x10xf32>
    %515 = vector.extract_strided_slice %499 {offsets = [0, 100], sizes = [2, 10], strides = [1, 1]} : vector<2x240xf32> to vector<2x10xf32>
    %516 = vector.extract_strided_slice %499 {offsets = [0, 110], sizes = [2, 10], strides = [1, 1]} : vector<2x240xf32> to vector<2x10xf32>
    %517 = arith.maximumf %515, %516 : vector<2x10xf32>
    %518 = vector.extract_strided_slice %499 {offsets = [0, 120], sizes = [2, 10], strides = [1, 1]} : vector<2x240xf32> to vector<2x10xf32>
    %519 = vector.extract_strided_slice %499 {offsets = [0, 130], sizes = [2, 10], strides = [1, 1]} : vector<2x240xf32> to vector<2x10xf32>
    %520 = arith.maximumf %518, %519 : vector<2x10xf32>
    %521 = vector.extract_strided_slice %499 {offsets = [0, 140], sizes = [2, 10], strides = [1, 1]} : vector<2x240xf32> to vector<2x10xf32>
    %522 = vector.extract_strided_slice %499 {offsets = [0, 150], sizes = [2, 10], strides = [1, 1]} : vector<2x240xf32> to vector<2x10xf32>
    %523 = arith.maximumf %521, %522 : vector<2x10xf32>
    %524 = vector.extract_strided_slice %499 {offsets = [0, 160], sizes = [2, 10], strides = [1, 1]} : vector<2x240xf32> to vector<2x10xf32>
    %525 = vector.extract_strided_slice %499 {offsets = [0, 170], sizes = [2, 10], strides = [1, 1]} : vector<2x240xf32> to vector<2x10xf32>
    %526 = arith.maximumf %524, %525 : vector<2x10xf32>
    %527 = vector.extract_strided_slice %499 {offsets = [0, 180], sizes = [2, 10], strides = [1, 1]} : vector<2x240xf32> to vector<2x10xf32>
    %528 = vector.extract_strided_slice %499 {offsets = [0, 190], sizes = [2, 10], strides = [1, 1]} : vector<2x240xf32> to vector<2x10xf32>
    %529 = arith.maximumf %527, %528 : vector<2x10xf32>
    %530 = vector.extract_strided_slice %499 {offsets = [0, 200], sizes = [2, 10], strides = [1, 1]} : vector<2x240xf32> to vector<2x10xf32>
    %531 = vector.extract_strided_slice %499 {offsets = [0, 210], sizes = [2, 10], strides = [1, 1]} : vector<2x240xf32> to vector<2x10xf32>
    %532 = arith.maximumf %530, %531 : vector<2x10xf32>
    %533 = vector.extract_strided_slice %499 {offsets = [0, 220], sizes = [2, 10], strides = [1, 1]} : vector<2x240xf32> to vector<2x10xf32>
    %534 = vector.extract_strided_slice %499 {offsets = [0, 230], sizes = [2, 10], strides = [1, 1]} : vector<2x240xf32> to vector<2x10xf32>
    %535 = arith.maximumf %533, %534 : vector<2x10xf32>
    %536 = tpu.concatenate %502, %505, %508, %511, %514, %517, %520, %523, %526, %529, %532, %535 in 1 : vector<2x10xf32>, vector<2x10xf32>, vector<2x10xf32>, vector<2x10xf32>, vector<2x10xf32>, vector<2x10xf32>, vector<2x10xf32>, vector<2x10xf32>, vector<2x10xf32>, vector<2x10xf32>, vector<2x10xf32>, vector<2x10xf32> -> vector<2x120xf32>
    %cst_37 = arith.constant 0.000000e+00 : f32
    %537 = vector.broadcast %cst_37 : f32 to vector<2x120xf32>
    %538 = arith.maximumf %536, %537 : vector<2x120xf32>
    %539 = arith.maximumf %153, %158 : vector<2x240xf32>
    %540 = vector.extract_strided_slice %539 {offsets = [0, 0], sizes = [2, 10], strides = [1, 1]} : vector<2x240xf32> to vector<2x10xf32>
    %541 = vector.extract_strided_slice %539 {offsets = [0, 10], sizes = [2, 10], strides = [1, 1]} : vector<2x240xf32> to vector<2x10xf32>
    %542 = arith.maximumf %540, %541 : vector<2x10xf32>
    %543 = vector.extract_strided_slice %539 {offsets = [0, 20], sizes = [2, 10], strides = [1, 1]} : vector<2x240xf32> to vector<2x10xf32>
    %544 = vector.extract_strided_slice %539 {offsets = [0, 30], sizes = [2, 10], strides = [1, 1]} : vector<2x240xf32> to vector<2x10xf32>
    %545 = arith.maximumf %543, %544 : vector<2x10xf32>
    %546 = vector.extract_strided_slice %539 {offsets = [0, 40], sizes = [2, 10], strides = [1, 1]} : vector<2x240xf32> to vector<2x10xf32>
    %547 = vector.extract_strided_slice %539 {offsets = [0, 50], sizes = [2, 10], strides = [1, 1]} : vector<2x240xf32> to vector<2x10xf32>
    %548 = arith.maximumf %546, %547 : vector<2x10xf32>
    %549 = vector.extract_strided_slice %539 {offsets = [0, 60], sizes = [2, 10], strides = [1, 1]} : vector<2x240xf32> to vector<2x10xf32>
    %550 = vector.extract_strided_slice %539 {offsets = [0, 70], sizes = [2, 10], strides = [1, 1]} : vector<2x240xf32> to vector<2x10xf32>
    %551 = arith.maximumf %549, %550 : vector<2x10xf32>
    %552 = vector.extract_strided_slice %539 {offsets = [0, 80], sizes = [2, 10], strides = [1, 1]} : vector<2x240xf32> to vector<2x10xf32>
    %553 = vector.extract_strided_slice %539 {offsets = [0, 90], sizes = [2, 10], strides = [1, 1]} : vector<2x240xf32> to vector<2x10xf32>
    %554 = arith.maximumf %552, %553 : vector<2x10xf32>
    %555 = vector.extract_strided_slice %539 {offsets = [0, 100], sizes = [2, 10], strides = [1, 1]} : vector<2x240xf32> to vector<2x10xf32>
    %556 = vector.extract_strided_slice %539 {offsets = [0, 110], sizes = [2, 10], strides = [1, 1]} : vector<2x240xf32> to vector<2x10xf32>
    %557 = arith.maximumf %555, %556 : vector<2x10xf32>
    %558 = vector.extract_strided_slice %539 {offsets = [0, 120], sizes = [2, 10], strides = [1, 1]} : vector<2x240xf32> to vector<2x10xf32>
    %559 = vector.extract_strided_slice %539 {offsets = [0, 130], sizes = [2, 10], strides = [1, 1]} : vector<2x240xf32> to vector<2x10xf32>
    %560 = arith.maximumf %558, %559 : vector<2x10xf32>
    %561 = vector.extract_strided_slice %539 {offsets = [0, 140], sizes = [2, 10], strides = [1, 1]} : vector<2x240xf32> to vector<2x10xf32>
    %562 = vector.extract_strided_slice %539 {offsets = [0, 150], sizes = [2, 10], strides = [1, 1]} : vector<2x240xf32> to vector<2x10xf32>
    %563 = arith.maximumf %561, %562 : vector<2x10xf32>
    %564 = vector.extract_strided_slice %539 {offsets = [0, 160], sizes = [2, 10], strides = [1, 1]} : vector<2x240xf32> to vector<2x10xf32>
    %565 = vector.extract_strided_slice %539 {offsets = [0, 170], sizes = [2, 10], strides = [1, 1]} : vector<2x240xf32> to vector<2x10xf32>
    %566 = arith.maximumf %564, %565 : vector<2x10xf32>
    %567 = vector.extract_strided_slice %539 {offsets = [0, 180], sizes = [2, 10], strides = [1, 1]} : vector<2x240xf32> to vector<2x10xf32>
    %568 = vector.extract_strided_slice %539 {offsets = [0, 190], sizes = [2, 10], strides = [1, 1]} : vector<2x240xf32> to vector<2x10xf32>
    %569 = arith.maximumf %567, %568 : vector<2x10xf32>
    %570 = vector.extract_strided_slice %539 {offsets = [0, 200], sizes = [2, 10], strides = [1, 1]} : vector<2x240xf32> to vector<2x10xf32>
    %571 = vector.extract_strided_slice %539 {offsets = [0, 210], sizes = [2, 10], strides = [1, 1]} : vector<2x240xf32> to vector<2x10xf32>
    %572 = arith.maximumf %570, %571 : vector<2x10xf32>
    %573 = vector.extract_strided_slice %539 {offsets = [0, 220], sizes = [2, 10], strides = [1, 1]} : vector<2x240xf32> to vector<2x10xf32>
    %574 = vector.extract_strided_slice %539 {offsets = [0, 230], sizes = [2, 10], strides = [1, 1]} : vector<2x240xf32> to vector<2x10xf32>
    %575 = arith.maximumf %573, %574 : vector<2x10xf32>
    %576 = tpu.concatenate %542, %545, %548, %551, %554, %557, %560, %563, %566, %569, %572, %575 in 1 : vector<2x10xf32>, vector<2x10xf32>, vector<2x10xf32>, vector<2x10xf32>, vector<2x10xf32>, vector<2x10xf32>, vector<2x10xf32>, vector<2x10xf32>, vector<2x10xf32>, vector<2x10xf32>, vector<2x10xf32>, vector<2x10xf32> -> vector<2x120xf32>
    %cst_38 = arith.constant 0.000000e+00 : f32
    %577 = vector.broadcast %cst_38 : f32 to vector<2x120xf32>
    %578 = arith.maximumf %576, %577 : vector<2x120xf32>
    %579 = arith.maximumf %163, %168 : vector<2x240xf32>
    %580 = vector.extract_strided_slice %579 {offsets = [0, 0], sizes = [2, 10], strides = [1, 1]} : vector<2x240xf32> to vector<2x10xf32>
    %581 = vector.extract_strided_slice %579 {offsets = [0, 10], sizes = [2, 10], strides = [1, 1]} : vector<2x240xf32> to vector<2x10xf32>
    %582 = arith.maximumf %580, %581 : vector<2x10xf32>
    %583 = vector.extract_strided_slice %579 {offsets = [0, 20], sizes = [2, 10], strides = [1, 1]} : vector<2x240xf32> to vector<2x10xf32>
    %584 = vector.extract_strided_slice %579 {offsets = [0, 30], sizes = [2, 10], strides = [1, 1]} : vector<2x240xf32> to vector<2x10xf32>
    %585 = arith.maximumf %583, %584 : vector<2x10xf32>
    %586 = vector.extract_strided_slice %579 {offsets = [0, 40], sizes = [2, 10], strides = [1, 1]} : vector<2x240xf32> to vector<2x10xf32>
    %587 = vector.extract_strided_slice %579 {offsets = [0, 50], sizes = [2, 10], strides = [1, 1]} : vector<2x240xf32> to vector<2x10xf32>
    %588 = arith.maximumf %586, %587 : vector<2x10xf32>
    %589 = vector.extract_strided_slice %579 {offsets = [0, 60], sizes = [2, 10], strides = [1, 1]} : vector<2x240xf32> to vector<2x10xf32>
    %590 = vector.extract_strided_slice %579 {offsets = [0, 70], sizes = [2, 10], strides = [1, 1]} : vector<2x240xf32> to vector<2x10xf32>
    %591 = arith.maximumf %589, %590 : vector<2x10xf32>
    %592 = vector.extract_strided_slice %579 {offsets = [0, 80], sizes = [2, 10], strides = [1, 1]} : vector<2x240xf32> to vector<2x10xf32>
    %593 = vector.extract_strided_slice %579 {offsets = [0, 90], sizes = [2, 10], strides = [1, 1]} : vector<2x240xf32> to vector<2x10xf32>
    %594 = arith.maximumf %592, %593 : vector<2x10xf32>
    %595 = vector.extract_strided_slice %579 {offsets = [0, 100], sizes = [2, 10], strides = [1, 1]} : vector<2x240xf32> to vector<2x10xf32>
    %596 = vector.extract_strided_slice %579 {offsets = [0, 110], sizes = [2, 10], strides = [1, 1]} : vector<2x240xf32> to vector<2x10xf32>
    %597 = arith.maximumf %595, %596 : vector<2x10xf32>
    %598 = vector.extract_strided_slice %579 {offsets = [0, 120], sizes = [2, 10], strides = [1, 1]} : vector<2x240xf32> to vector<2x10xf32>
    %599 = vector.extract_strided_slice %579 {offsets = [0, 130], sizes = [2, 10], strides = [1, 1]} : vector<2x240xf32> to vector<2x10xf32>
    %600 = arith.maximumf %598, %599 : vector<2x10xf32>
    %601 = vector.extract_strided_slice %579 {offsets = [0, 140], sizes = [2, 10], strides = [1, 1]} : vector<2x240xf32> to vector<2x10xf32>
    %602 = vector.extract_strided_slice %579 {offsets = [0, 150], sizes = [2, 10], strides = [1, 1]} : vector<2x240xf32> to vector<2x10xf32>
    %603 = arith.maximumf %601, %602 : vector<2x10xf32>
    %604 = vector.extract_strided_slice %579 {offsets = [0, 160], sizes = [2, 10], strides = [1, 1]} : vector<2x240xf32> to vector<2x10xf32>
    %605 = vector.extract_strided_slice %579 {offsets = [0, 170], sizes = [2, 10], strides = [1, 1]} : vector<2x240xf32> to vector<2x10xf32>
    %606 = arith.maximumf %604, %605 : vector<2x10xf32>
    %607 = vector.extract_strided_slice %579 {offsets = [0, 180], sizes = [2, 10], strides = [1, 1]} : vector<2x240xf32> to vector<2x10xf32>
    %608 = vector.extract_strided_slice %579 {offsets = [0, 190], sizes = [2, 10], strides = [1, 1]} : vector<2x240xf32> to vector<2x10xf32>
    %609 = arith.maximumf %607, %608 : vector<2x10xf32>
    %610 = vector.extract_strided_slice %579 {offsets = [0, 200], sizes = [2, 10], strides = [1, 1]} : vector<2x240xf32> to vector<2x10xf32>
    %611 = vector.extract_strided_slice %579 {offsets = [0, 210], sizes = [2, 10], strides = [1, 1]} : vector<2x240xf32> to vector<2x10xf32>
    %612 = arith.maximumf %610, %611 : vector<2x10xf32>
    %613 = vector.extract_strided_slice %579 {offsets = [0, 220], sizes = [2, 10], strides = [1, 1]} : vector<2x240xf32> to vector<2x10xf32>
    %614 = vector.extract_strided_slice %579 {offsets = [0, 230], sizes = [2, 10], strides = [1, 1]} : vector<2x240xf32> to vector<2x10xf32>
    %615 = arith.maximumf %613, %614 : vector<2x10xf32>
    %616 = tpu.concatenate %582, %585, %588, %591, %594, %597, %600, %603, %606, %609, %612, %615 in 1 : vector<2x10xf32>, vector<2x10xf32>, vector<2x10xf32>, vector<2x10xf32>, vector<2x10xf32>, vector<2x10xf32>, vector<2x10xf32>, vector<2x10xf32>, vector<2x10xf32>, vector<2x10xf32>, vector<2x10xf32>, vector<2x10xf32> -> vector<2x120xf32>
    %cst_39 = arith.constant 0.000000e+00 : f32
    %617 = vector.broadcast %cst_39 : f32 to vector<2x120xf32>
    %618 = arith.maximumf %616, %617 : vector<2x120xf32>
    %619 = arith.maximumf %173, %178 : vector<2x240xf32>
    %620 = vector.extract_strided_slice %619 {offsets = [0, 0], sizes = [2, 10], strides = [1, 1]} : vector<2x240xf32> to vector<2x10xf32>
    %621 = vector.extract_strided_slice %619 {offsets = [0, 10], sizes = [2, 10], strides = [1, 1]} : vector<2x240xf32> to vector<2x10xf32>
    %622 = arith.maximumf %620, %621 : vector<2x10xf32>
    %623 = vector.extract_strided_slice %619 {offsets = [0, 20], sizes = [2, 10], strides = [1, 1]} : vector<2x240xf32> to vector<2x10xf32>
    %624 = vector.extract_strided_slice %619 {offsets = [0, 30], sizes = [2, 10], strides = [1, 1]} : vector<2x240xf32> to vector<2x10xf32>
    %625 = arith.maximumf %623, %624 : vector<2x10xf32>
    %626 = vector.extract_strided_slice %619 {offsets = [0, 40], sizes = [2, 10], strides = [1, 1]} : vector<2x240xf32> to vector<2x10xf32>
    %627 = vector.extract_strided_slice %619 {offsets = [0, 50], sizes = [2, 10], strides = [1, 1]} : vector<2x240xf32> to vector<2x10xf32>
    %628 = arith.maximumf %626, %627 : vector<2x10xf32>
    %629 = vector.extract_strided_slice %619 {offsets = [0, 60], sizes = [2, 10], strides = [1, 1]} : vector<2x240xf32> to vector<2x10xf32>
    %630 = vector.extract_strided_slice %619 {offsets = [0, 70], sizes = [2, 10], strides = [1, 1]} : vector<2x240xf32> to vector<2x10xf32>
    %631 = arith.maximumf %629, %630 : vector<2x10xf32>
    %632 = vector.extract_strided_slice %619 {offsets = [0, 80], sizes = [2, 10], strides = [1, 1]} : vector<2x240xf32> to vector<2x10xf32>
    %633 = vector.extract_strided_slice %619 {offsets = [0, 90], sizes = [2, 10], strides = [1, 1]} : vector<2x240xf32> to vector<2x10xf32>
    %634 = arith.maximumf %632, %633 : vector<2x10xf32>
    %635 = vector.extract_strided_slice %619 {offsets = [0, 100], sizes = [2, 10], strides = [1, 1]} : vector<2x240xf32> to vector<2x10xf32>
    %636 = vector.extract_strided_slice %619 {offsets = [0, 110], sizes = [2, 10], strides = [1, 1]} : vector<2x240xf32> to vector<2x10xf32>
    %637 = arith.maximumf %635, %636 : vector<2x10xf32>
    %638 = vector.extract_strided_slice %619 {offsets = [0, 120], sizes = [2, 10], strides = [1, 1]} : vector<2x240xf32> to vector<2x10xf32>
    %639 = vector.extract_strided_slice %619 {offsets = [0, 130], sizes = [2, 10], strides = [1, 1]} : vector<2x240xf32> to vector<2x10xf32>
    %640 = arith.maximumf %638, %639 : vector<2x10xf32>
    %641 = vector.extract_strided_slice %619 {offsets = [0, 140], sizes = [2, 10], strides = [1, 1]} : vector<2x240xf32> to vector<2x10xf32>
    %642 = vector.extract_strided_slice %619 {offsets = [0, 150], sizes = [2, 10], strides = [1, 1]} : vector<2x240xf32> to vector<2x10xf32>
    %643 = arith.maximumf %641, %642 : vector<2x10xf32>
    %644 = vector.extract_strided_slice %619 {offsets = [0, 160], sizes = [2, 10], strides = [1, 1]} : vector<2x240xf32> to vector<2x10xf32>
    %645 = vector.extract_strided_slice %619 {offsets = [0, 170], sizes = [2, 10], strides = [1, 1]} : vector<2x240xf32> to vector<2x10xf32>
    %646 = arith.maximumf %644, %645 : vector<2x10xf32>
    %647 = vector.extract_strided_slice %619 {offsets = [0, 180], sizes = [2, 10], strides = [1, 1]} : vector<2x240xf32> to vector<2x10xf32>
    %648 = vector.extract_strided_slice %619 {offsets = [0, 190], sizes = [2, 10], strides = [1, 1]} : vector<2x240xf32> to vector<2x10xf32>
    %649 = arith.maximumf %647, %648 : vector<2x10xf32>
    %650 = vector.extract_strided_slice %619 {offsets = [0, 200], sizes = [2, 10], strides = [1, 1]} : vector<2x240xf32> to vector<2x10xf32>
    %651 = vector.extract_strided_slice %619 {offsets = [0, 210], sizes = [2, 10], strides = [1, 1]} : vector<2x240xf32> to vector<2x10xf32>
    %652 = arith.maximumf %650, %651 : vector<2x10xf32>
    %653 = vector.extract_strided_slice %619 {offsets = [0, 220], sizes = [2, 10], strides = [1, 1]} : vector<2x240xf32> to vector<2x10xf32>
    %654 = vector.extract_strided_slice %619 {offsets = [0, 230], sizes = [2, 10], strides = [1, 1]} : vector<2x240xf32> to vector<2x10xf32>
    %655 = arith.maximumf %653, %654 : vector<2x10xf32>
    %656 = tpu.concatenate %622, %625, %628, %631, %634, %637, %640, %643, %646, %649, %652, %655 in 1 : vector<2x10xf32>, vector<2x10xf32>, vector<2x10xf32>, vector<2x10xf32>, vector<2x10xf32>, vector<2x10xf32>, vector<2x10xf32>, vector<2x10xf32>, vector<2x10xf32>, vector<2x10xf32>, vector<2x10xf32>, vector<2x10xf32> -> vector<2x120xf32>
    %cst_40 = arith.constant 0.000000e+00 : f32
    %657 = vector.broadcast %cst_40 : f32 to vector<2x120xf32>
    %658 = arith.maximumf %656, %657 : vector<2x120xf32>
    %c0_41 = arith.constant 0 : index
    %c0_42 = arith.constant 0 : index
    %659 = vector.load %arg4[%c0_41, %c0_42] : memref<600x160xbf16, #tpu.memory_space<vmem>>, vector<600x160xbf16>
    %c0_43 = arith.constant 0 : index
    %c0_44 = arith.constant 0 : index
    %660 = vector.load %arg5[%c0_43, %c0_44] : memref<1x160xf32, #tpu.memory_space<vmem>>, vector<1x160xf32>
    %661 = tpu.concatenate %218, %258, %298, %338, %378 in 1 : vector<2x120xf32>, vector<2x120xf32>, vector<2x120xf32>, vector<2x120xf32>, vector<2x120xf32> -> vector<2x600xf32>
    %662 = arith.truncf %661 : vector<2x600xf32> to vector<2x600xbf16>
    %cst_45 = arith.constant dense<0.000000e+00> : vector<2x160xf32>
    %663 = tpu.matmul %662, %659, %cst_45 {dimension_numbers = #tpu.dot_dimension_numbers<[1], [0], [0], [1], [0, 0, 1, 1], [], []>} : vector<2x600xbf16>, vector<600x160xbf16>, vector<2x160xf32> -> vector<2x160xf32>
    %664 = vector.broadcast %660 : vector<1x160xf32> to vector<2x160xf32>
    %665 = arith.addf %663, %664 : vector<2x160xf32>
    %666 = tpu.concatenate %258, %298, %338, %378, %418 in 1 : vector<2x120xf32>, vector<2x120xf32>, vector<2x120xf32>, vector<2x120xf32>, vector<2x120xf32> -> vector<2x600xf32>
    %667 = arith.truncf %666 : vector<2x600xf32> to vector<2x600xbf16>
    %cst_46 = arith.constant dense<0.000000e+00> : vector<2x160xf32>
    %668 = tpu.matmul %667, %659, %cst_46 {dimension_numbers = #tpu.dot_dimension_numbers<[1], [0], [0], [1], [0, 0, 1, 1], [], []>} : vector<2x600xbf16>, vector<600x160xbf16>, vector<2x160xf32> -> vector<2x160xf32>
    %669 = vector.broadcast %660 : vector<1x160xf32> to vector<2x160xf32>
    %670 = arith.addf %668, %669 : vector<2x160xf32>
    %671 = tpu.concatenate %298, %338, %378, %418, %458 in 1 : vector<2x120xf32>, vector<2x120xf32>, vector<2x120xf32>, vector<2x120xf32>, vector<2x120xf32> -> vector<2x600xf32>
    %672 = arith.truncf %671 : vector<2x600xf32> to vector<2x600xbf16>
    %cst_47 = arith.constant dense<0.000000e+00> : vector<2x160xf32>
    %673 = tpu.matmul %672, %659, %cst_47 {dimension_numbers = #tpu.dot_dimension_numbers<[1], [0], [0], [1], [0, 0, 1, 1], [], []>} : vector<2x600xbf16>, vector<600x160xbf16>, vector<2x160xf32> -> vector<2x160xf32>
    %674 = vector.broadcast %660 : vector<1x160xf32> to vector<2x160xf32>
    %675 = arith.addf %673, %674 : vector<2x160xf32>
    %676 = tpu.concatenate %338, %378, %418, %458, %498 in 1 : vector<2x120xf32>, vector<2x120xf32>, vector<2x120xf32>, vector<2x120xf32>, vector<2x120xf32> -> vector<2x600xf32>
    %677 = arith.truncf %676 : vector<2x600xf32> to vector<2x600xbf16>
    %cst_48 = arith.constant dense<0.000000e+00> : vector<2x160xf32>
    %678 = tpu.matmul %677, %659, %cst_48 {dimension_numbers = #tpu.dot_dimension_numbers<[1], [0], [0], [1], [0, 0, 1, 1], [], []>} : vector<2x600xbf16>, vector<600x160xbf16>, vector<2x160xf32> -> vector<2x160xf32>
    %679 = vector.broadcast %660 : vector<1x160xf32> to vector<2x160xf32>
    %680 = arith.addf %678, %679 : vector<2x160xf32>
    %681 = tpu.concatenate %378, %418, %458, %498, %538 in 1 : vector<2x120xf32>, vector<2x120xf32>, vector<2x120xf32>, vector<2x120xf32>, vector<2x120xf32> -> vector<2x600xf32>
    %682 = arith.truncf %681 : vector<2x600xf32> to vector<2x600xbf16>
    %cst_49 = arith.constant dense<0.000000e+00> : vector<2x160xf32>
    %683 = tpu.matmul %682, %659, %cst_49 {dimension_numbers = #tpu.dot_dimension_numbers<[1], [0], [0], [1], [0, 0, 1, 1], [], []>} : vector<2x600xbf16>, vector<600x160xbf16>, vector<2x160xf32> -> vector<2x160xf32>
    %684 = vector.broadcast %660 : vector<1x160xf32> to vector<2x160xf32>
    %685 = arith.addf %683, %684 : vector<2x160xf32>
    %686 = tpu.concatenate %418, %458, %498, %538, %578 in 1 : vector<2x120xf32>, vector<2x120xf32>, vector<2x120xf32>, vector<2x120xf32>, vector<2x120xf32> -> vector<2x600xf32>
    %687 = arith.truncf %686 : vector<2x600xf32> to vector<2x600xbf16>
    %cst_50 = arith.constant dense<0.000000e+00> : vector<2x160xf32>
    %688 = tpu.matmul %687, %659, %cst_50 {dimension_numbers = #tpu.dot_dimension_numbers<[1], [0], [0], [1], [0, 0, 1, 1], [], []>} : vector<2x600xbf16>, vector<600x160xbf16>, vector<2x160xf32> -> vector<2x160xf32>
    %689 = vector.broadcast %660 : vector<1x160xf32> to vector<2x160xf32>
    %690 = arith.addf %688, %689 : vector<2x160xf32>
    %691 = tpu.concatenate %458, %498, %538, %578, %618 in 1 : vector<2x120xf32>, vector<2x120xf32>, vector<2x120xf32>, vector<2x120xf32>, vector<2x120xf32> -> vector<2x600xf32>
    %692 = arith.truncf %691 : vector<2x600xf32> to vector<2x600xbf16>
    %cst_51 = arith.constant dense<0.000000e+00> : vector<2x160xf32>
    %693 = tpu.matmul %692, %659, %cst_51 {dimension_numbers = #tpu.dot_dimension_numbers<[1], [0], [0], [1], [0, 0, 1, 1], [], []>} : vector<2x600xbf16>, vector<600x160xbf16>, vector<2x160xf32> -> vector<2x160xf32>
    %694 = vector.broadcast %660 : vector<1x160xf32> to vector<2x160xf32>
    %695 = arith.addf %693, %694 : vector<2x160xf32>
    %696 = tpu.concatenate %498, %538, %578, %618, %658 in 1 : vector<2x120xf32>, vector<2x120xf32>, vector<2x120xf32>, vector<2x120xf32>, vector<2x120xf32> -> vector<2x600xf32>
    %697 = arith.truncf %696 : vector<2x600xf32> to vector<2x600xbf16>
    %cst_52 = arith.constant dense<0.000000e+00> : vector<2x160xf32>
    %698 = tpu.matmul %697, %659, %cst_52 {dimension_numbers = #tpu.dot_dimension_numbers<[1], [0], [0], [1], [0, 0, 1, 1], [], []>} : vector<2x600xbf16>, vector<600x160xbf16>, vector<2x160xf32> -> vector<2x160xf32>
    %699 = vector.broadcast %660 : vector<1x160xf32> to vector<2x160xf32>
    %700 = arith.addf %698, %699 : vector<2x160xf32>
    %701 = arith.maximumf %665, %670 : vector<2x160xf32>
    %702 = vector.extract_strided_slice %701 {offsets = [0, 0], sizes = [2, 20], strides = [1, 1]} : vector<2x160xf32> to vector<2x20xf32>
    %703 = vector.extract_strided_slice %701 {offsets = [0, 20], sizes = [2, 20], strides = [1, 1]} : vector<2x160xf32> to vector<2x20xf32>
    %704 = arith.maximumf %702, %703 : vector<2x20xf32>
    %705 = vector.extract_strided_slice %701 {offsets = [0, 40], sizes = [2, 20], strides = [1, 1]} : vector<2x160xf32> to vector<2x20xf32>
    %706 = vector.extract_strided_slice %701 {offsets = [0, 60], sizes = [2, 20], strides = [1, 1]} : vector<2x160xf32> to vector<2x20xf32>
    %707 = arith.maximumf %705, %706 : vector<2x20xf32>
    %708 = vector.extract_strided_slice %701 {offsets = [0, 80], sizes = [2, 20], strides = [1, 1]} : vector<2x160xf32> to vector<2x20xf32>
    %709 = vector.extract_strided_slice %701 {offsets = [0, 100], sizes = [2, 20], strides = [1, 1]} : vector<2x160xf32> to vector<2x20xf32>
    %710 = arith.maximumf %708, %709 : vector<2x20xf32>
    %711 = vector.extract_strided_slice %701 {offsets = [0, 120], sizes = [2, 20], strides = [1, 1]} : vector<2x160xf32> to vector<2x20xf32>
    %712 = vector.extract_strided_slice %701 {offsets = [0, 140], sizes = [2, 20], strides = [1, 1]} : vector<2x160xf32> to vector<2x20xf32>
    %713 = arith.maximumf %711, %712 : vector<2x20xf32>
    %714 = tpu.concatenate %704, %707, %710, %713 in 1 : vector<2x20xf32>, vector<2x20xf32>, vector<2x20xf32>, vector<2x20xf32> -> vector<2x80xf32>
    %cst_53 = arith.constant 0.000000e+00 : f32
    %715 = vector.broadcast %cst_53 : f32 to vector<2x80xf32>
    %716 = arith.maximumf %714, %715 : vector<2x80xf32>
    %717 = arith.maximumf %675, %680 : vector<2x160xf32>
    %718 = vector.extract_strided_slice %717 {offsets = [0, 0], sizes = [2, 20], strides = [1, 1]} : vector<2x160xf32> to vector<2x20xf32>
    %719 = vector.extract_strided_slice %717 {offsets = [0, 20], sizes = [2, 20], strides = [1, 1]} : vector<2x160xf32> to vector<2x20xf32>
    %720 = arith.maximumf %718, %719 : vector<2x20xf32>
    %721 = vector.extract_strided_slice %717 {offsets = [0, 40], sizes = [2, 20], strides = [1, 1]} : vector<2x160xf32> to vector<2x20xf32>
    %722 = vector.extract_strided_slice %717 {offsets = [0, 60], sizes = [2, 20], strides = [1, 1]} : vector<2x160xf32> to vector<2x20xf32>
    %723 = arith.maximumf %721, %722 : vector<2x20xf32>
    %724 = vector.extract_strided_slice %717 {offsets = [0, 80], sizes = [2, 20], strides = [1, 1]} : vector<2x160xf32> to vector<2x20xf32>
    %725 = vector.extract_strided_slice %717 {offsets = [0, 100], sizes = [2, 20], strides = [1, 1]} : vector<2x160xf32> to vector<2x20xf32>
    %726 = arith.maximumf %724, %725 : vector<2x20xf32>
    %727 = vector.extract_strided_slice %717 {offsets = [0, 120], sizes = [2, 20], strides = [1, 1]} : vector<2x160xf32> to vector<2x20xf32>
    %728 = vector.extract_strided_slice %717 {offsets = [0, 140], sizes = [2, 20], strides = [1, 1]} : vector<2x160xf32> to vector<2x20xf32>
    %729 = arith.maximumf %727, %728 : vector<2x20xf32>
    %730 = tpu.concatenate %720, %723, %726, %729 in 1 : vector<2x20xf32>, vector<2x20xf32>, vector<2x20xf32>, vector<2x20xf32> -> vector<2x80xf32>
    %cst_54 = arith.constant 0.000000e+00 : f32
    %731 = vector.broadcast %cst_54 : f32 to vector<2x80xf32>
    %732 = arith.maximumf %730, %731 : vector<2x80xf32>
    %733 = arith.maximumf %685, %690 : vector<2x160xf32>
    %734 = vector.extract_strided_slice %733 {offsets = [0, 0], sizes = [2, 20], strides = [1, 1]} : vector<2x160xf32> to vector<2x20xf32>
    %735 = vector.extract_strided_slice %733 {offsets = [0, 20], sizes = [2, 20], strides = [1, 1]} : vector<2x160xf32> to vector<2x20xf32>
    %736 = arith.maximumf %734, %735 : vector<2x20xf32>
    %737 = vector.extract_strided_slice %733 {offsets = [0, 40], sizes = [2, 20], strides = [1, 1]} : vector<2x160xf32> to vector<2x20xf32>
    %738 = vector.extract_strided_slice %733 {offsets = [0, 60], sizes = [2, 20], strides = [1, 1]} : vector<2x160xf32> to vector<2x20xf32>
    %739 = arith.maximumf %737, %738 : vector<2x20xf32>
    %740 = vector.extract_strided_slice %733 {offsets = [0, 80], sizes = [2, 20], strides = [1, 1]} : vector<2x160xf32> to vector<2x20xf32>
    %741 = vector.extract_strided_slice %733 {offsets = [0, 100], sizes = [2, 20], strides = [1, 1]} : vector<2x160xf32> to vector<2x20xf32>
    %742 = arith.maximumf %740, %741 : vector<2x20xf32>
    %743 = vector.extract_strided_slice %733 {offsets = [0, 120], sizes = [2, 20], strides = [1, 1]} : vector<2x160xf32> to vector<2x20xf32>
    %744 = vector.extract_strided_slice %733 {offsets = [0, 140], sizes = [2, 20], strides = [1, 1]} : vector<2x160xf32> to vector<2x20xf32>
    %745 = arith.maximumf %743, %744 : vector<2x20xf32>
    %746 = tpu.concatenate %736, %739, %742, %745 in 1 : vector<2x20xf32>, vector<2x20xf32>, vector<2x20xf32>, vector<2x20xf32> -> vector<2x80xf32>
    %cst_55 = arith.constant 0.000000e+00 : f32
    %747 = vector.broadcast %cst_55 : f32 to vector<2x80xf32>
    %748 = arith.maximumf %746, %747 : vector<2x80xf32>
    %749 = arith.maximumf %695, %700 : vector<2x160xf32>
    %750 = vector.extract_strided_slice %749 {offsets = [0, 0], sizes = [2, 20], strides = [1, 1]} : vector<2x160xf32> to vector<2x20xf32>
    %751 = vector.extract_strided_slice %749 {offsets = [0, 20], sizes = [2, 20], strides = [1, 1]} : vector<2x160xf32> to vector<2x20xf32>
    %752 = arith.maximumf %750, %751 : vector<2x20xf32>
    %753 = vector.extract_strided_slice %749 {offsets = [0, 40], sizes = [2, 20], strides = [1, 1]} : vector<2x160xf32> to vector<2x20xf32>
    %754 = vector.extract_strided_slice %749 {offsets = [0, 60], sizes = [2, 20], strides = [1, 1]} : vector<2x160xf32> to vector<2x20xf32>
    %755 = arith.maximumf %753, %754 : vector<2x20xf32>
    %756 = vector.extract_strided_slice %749 {offsets = [0, 80], sizes = [2, 20], strides = [1, 1]} : vector<2x160xf32> to vector<2x20xf32>
    %757 = vector.extract_strided_slice %749 {offsets = [0, 100], sizes = [2, 20], strides = [1, 1]} : vector<2x160xf32> to vector<2x20xf32>
    %758 = arith.maximumf %756, %757 : vector<2x20xf32>
    %759 = vector.extract_strided_slice %749 {offsets = [0, 120], sizes = [2, 20], strides = [1, 1]} : vector<2x160xf32> to vector<2x20xf32>
    %760 = vector.extract_strided_slice %749 {offsets = [0, 140], sizes = [2, 20], strides = [1, 1]} : vector<2x160xf32> to vector<2x20xf32>
    %761 = arith.maximumf %759, %760 : vector<2x20xf32>
    %762 = tpu.concatenate %752, %755, %758, %761 in 1 : vector<2x20xf32>, vector<2x20xf32>, vector<2x20xf32>, vector<2x20xf32> -> vector<2x80xf32>
    %cst_56 = arith.constant 0.000000e+00 : f32
    %763 = vector.broadcast %cst_56 : f32 to vector<2x80xf32>
    %764 = arith.maximumf %762, %763 : vector<2x80xf32>
    %cst_57 = arith.constant 0.000000e+00 : f32
    %765 = vector.broadcast %cst_57 : f32 to vector<2x50xf32>
    %766 = arith.truncf %716 : vector<2x80xf32> to vector<2x80xbf16>
    %c0_58 = arith.constant 0 : index
    %c0_59 = arith.constant 0 : index
    %c0_60 = arith.constant 0 : index
    %767 = vector.load %arg6[%c0_58, %c0_59, %c0_60] : memref<4x80x50xbf16, #tpu.memory_space<vmem>>, vector<1x80x50xbf16>
    %768 = vector.shape_cast %767 : vector<1x80x50xbf16> to vector<80x50xbf16>
    %cst_61 = arith.constant dense<0.000000e+00> : vector<2x50xf32>
    %769 = tpu.matmul %766, %768, %cst_61 {dimension_numbers = #tpu.dot_dimension_numbers<[1], [0], [0], [1], [0, 0, 1, 1], [], []>} : vector<2x80xbf16>, vector<80x50xbf16>, vector<2x50xf32> -> vector<2x50xf32>
    %770 = arith.addf %765, %769 : vector<2x50xf32>
    %771 = arith.truncf %732 : vector<2x80xf32> to vector<2x80xbf16>
    %c1 = arith.constant 1 : index
    %c0_62 = arith.constant 0 : index
    %c0_63 = arith.constant 0 : index
    %772 = vector.load %arg6[%c1, %c0_62, %c0_63] : memref<4x80x50xbf16, #tpu.memory_space<vmem>>, vector<1x80x50xbf16>
    %773 = vector.shape_cast %772 : vector<1x80x50xbf16> to vector<80x50xbf16>
    %cst_64 = arith.constant dense<0.000000e+00> : vector<2x50xf32>
    %774 = tpu.matmul %771, %773, %cst_64 {dimension_numbers = #tpu.dot_dimension_numbers<[1], [0], [0], [1], [0, 0, 1, 1], [], []>} : vector<2x80xbf16>, vector<80x50xbf16>, vector<2x50xf32> -> vector<2x50xf32>
    %775 = arith.addf %770, %774 : vector<2x50xf32>
    %776 = arith.truncf %748 : vector<2x80xf32> to vector<2x80xbf16>
    %c2 = arith.constant 2 : index
    %c0_65 = arith.constant 0 : index
    %c0_66 = arith.constant 0 : index
    %777 = vector.load %arg6[%c2, %c0_65, %c0_66] : memref<4x80x50xbf16, #tpu.memory_space<vmem>>, vector<1x80x50xbf16>
    %778 = vector.shape_cast %777 : vector<1x80x50xbf16> to vector<80x50xbf16>
    %cst_67 = arith.constant dense<0.000000e+00> : vector<2x50xf32>
    %779 = tpu.matmul %776, %778, %cst_67 {dimension_numbers = #tpu.dot_dimension_numbers<[1], [0], [0], [1], [0, 0, 1, 1], [], []>} : vector<2x80xbf16>, vector<80x50xbf16>, vector<2x50xf32> -> vector<2x50xf32>
    %780 = arith.addf %775, %779 : vector<2x50xf32>
    %781 = arith.truncf %764 : vector<2x80xf32> to vector<2x80xbf16>
    %c3 = arith.constant 3 : index
    %c0_68 = arith.constant 0 : index
    %c0_69 = arith.constant 0 : index
    %782 = vector.load %arg6[%c3, %c0_68, %c0_69] : memref<4x80x50xbf16, #tpu.memory_space<vmem>>, vector<1x80x50xbf16>
    %783 = vector.shape_cast %782 : vector<1x80x50xbf16> to vector<80x50xbf16>
    %cst_70 = arith.constant dense<0.000000e+00> : vector<2x50xf32>
    %784 = tpu.matmul %781, %783, %cst_70 {dimension_numbers = #tpu.dot_dimension_numbers<[1], [0], [0], [1], [0, 0, 1, 1], [], []>} : vector<2x80xbf16>, vector<80x50xbf16>, vector<2x50xf32> -> vector<2x50xf32>
    %785 = arith.addf %780, %784 : vector<2x50xf32>
    %c0_71 = arith.constant 0 : index
    %c0_72 = arith.constant 0 : index
    %786 = vector.load %arg7[%c0_71, %c0_72] : memref<1x50xf32, #tpu.memory_space<vmem>>, vector<1x50xf32>
    %787 = vector.broadcast %786 : vector<1x50xf32> to vector<2x50xf32>
    %788 = arith.addf %785, %787 : vector<2x50xf32>
    %cst_73 = arith.constant 0.000000e+00 : f32
    %789 = vector.broadcast %cst_73 : f32 to vector<2x50xf32>
    %790 = arith.maximumf %788, %789 : vector<2x50xf32>
    %791 = arith.truncf %790 : vector<2x50xf32> to vector<2x50xbf16>
    %c0_74 = arith.constant 0 : index
    %c0_75 = arith.constant 0 : index
    %792 = vector.load %arg8[%c0_74, %c0_75] : memref<50x10xbf16, #tpu.memory_space<vmem>>, vector<50x10xbf16>
    %cst_76 = arith.constant dense<0.000000e+00> : vector<2x10xf32>
    %793 = tpu.matmul %791, %792, %cst_76 {dimension_numbers = #tpu.dot_dimension_numbers<[1], [0], [0], [1], [0, 0, 1, 1], [], []>} : vector<2x50xbf16>, vector<50x10xbf16>, vector<2x10xf32> -> vector<2x10xf32>
    %c0_77 = arith.constant 0 : index
    %c0_78 = arith.constant 0 : index
    %794 = vector.load %arg9[%c0_77, %c0_78] : memref<1x10xf32, #tpu.memory_space<vmem>>, vector<1x10xf32>
    %795 = vector.broadcast %794 : vector<1x10xf32> to vector<2x10xf32>
    %796 = arith.addf %793, %795 : vector<2x10xf32>
    %cst_79 = arith.constant dense<0xFF800000> : vector<2xf32>
    %797 = vector.multi_reduction <maximumf>, %796, %cst_79 [1] : vector<2x10xf32> to vector<2xf32>
    %798 = vector.shape_cast %797 : vector<2xf32> to vector<2x1xf32>
    %799 = vector.broadcast %798 : vector<2x1xf32> to vector<2x10xf32>
    %800 = arith.subf %796, %799 : vector<2x10xf32>
    %801 = math.exp %800 : vector<2x10xf32>
    %cst_80 = arith.constant dense<0.000000e+00> : vector<2xf32>
    %802 = vector.multi_reduction <add>, %801, %cst_80 [1] : vector<2x10xf32> to vector<2xf32>
    %803 = vector.shape_cast %802 : vector<2xf32> to vector<2x1xf32>
    %804 = math.log %803 : vector<2x1xf32>
    %805 = arith.addf %798, %804 : vector<2x1xf32>
    %806 = vector.broadcast %805 : vector<2x1xf32> to vector<2x10xf32>
    %807 = arith.subf %796, %806 : vector<2x10xf32>
    %c0_81 = arith.constant 0 : index
    %c0_82 = arith.constant 0 : index
    %808 = vector.load %arg10[%c0_81, %c0_82] : memref<2x10xf32, #tpu.memory_space<vmem>>, vector<2x10xf32>
    tpu.vector_store %arg10[%c0_81, %c0_82], %807 {strides = array<i32>} : memref<2x10xf32, #tpu.memory_space<vmem>>, vector<2x10xf32>,
    return
  }
  func.func @transform_0(%arg0: i32) -> (i32, i32, i32) {
    %c0_i32 = arith.constant 0 : i32
    %c0_i32_0 = arith.constant 0 : i32
    %c0_i32_1 = arith.constant 0 : i32
    return %arg0, %c0_i32, %c0_i32_0 : i32, i32, i32
  }
  func.func @transform_1(%arg0: i32) -> (i32, i32) {
    %c0_i32 = arith.constant 0 : i32
    %c0_i32_0 = arith.constant 0 : i32
    %c0_i32_1 = arith.constant 0 : i32
    return %c0_i32, %c0_i32_0 : i32, i32
  }
  func.func @transform_2(%arg0: i32) -> (i32, i32) {
    %c0_i32 = arith.constant 0 : i32
    %c0_i32_0 = arith.constant 0 : i32
    %c0_i32_1 = arith.constant 0 : i32
    return %c0_i32, %c0_i32_0 : i32, i32
  }
  func.func @transform_3(%arg0: i32) -> (i32, i32) {
    %c0_i32 = arith.constant 0 : i32
    %c0_i32_0 = arith.constant 0 : i32
    %c0_i32_1 = arith.constant 0 : i32
    return %c0_i32, %c0_i32_0 : i32, i32
  }
  func.func @transform_4(%arg0: i32) -> (i32, i32) {
    %c0_i32 = arith.constant 0 : i32
    %c0_i32_0 = arith.constant 0 : i32
    %c0_i32_1 = arith.constant 0 : i32
    return %c0_i32, %c0_i32_0 : i32, i32
  }
  func.func @transform_5(%arg0: i32) -> (i32, i32, i32) {
    %c0_i32 = arith.constant 0 : i32
    %c0_i32_0 = arith.constant 0 : i32
    %c0_i32_1 = arith.constant 0 : i32
    %c0_i32_2 = arith.constant 0 : i32
    return %c0_i32, %c0_i32_0, %c0_i32_1 : i32, i32, i32
  }
  func.func @transform_6(%arg0: i32) -> (i32, i32) {
    %c0_i32 = arith.constant 0 : i32
    %c0_i32_0 = arith.constant 0 : i32
    %c0_i32_1 = arith.constant 0 : i32
    return %c0_i32, %c0_i32_0 : i32, i32
  }
  func.func @transform_7(%arg0: i32) -> (i32, i32) {
    %c0_i32 = arith.constant 0 : i32
    %c0_i32_0 = arith.constant 0 : i32
    %c0_i32_1 = arith.constant 0 : i32
    return %c0_i32, %c0_i32_0 : i32, i32
  }
  func.func @transform_8(%arg0: i32) -> (i32, i32) {
    %c0_i32 = arith.constant 0 : i32
    %c0_i32_0 = arith.constant 0 : i32
    %c0_i32_1 = arith.constant 0 : i32
    return %c0_i32, %c0_i32_0 : i32, i32
  }
  func.func @transform_9(%arg0: i32) -> (i32, i32) {
    %c0_i32 = arith.constant 0 : i32
    %c0_i32_0 = arith.constant 0 : i32
    return %arg0, %c0_i32 : i32, i32
  }
}

</mosaic_0001>

<bundles_post_ra>
// kernel: cnn_forward.1
= control target key start
LH: loop header
LB: loop body
LE: loop exit
PB: predicated region body
PF: predicated region fallthrough
CT: control target
= control target key end

     0   :  { %vm251_vm0 = vcmask 1042434   ;;  %s6616_s15 = smov 84   ;;  %s6617_s16 = smov 28   ;;  %vm64_vm1 = vcmask 1041409   ;;  %vm335_vm2 = vcmask 1043459   ;;  %vm409_vm3 = vcmask 1044484   ;;  %s10640_s0 = inlined_call_operand.vmem [shape: f32[2,28,28], index: 0, kind: input, shape index: {}]   ;;  %s10641_s1 = inlined_call_operand.vmem [shape: bf16[140,240], index: 1, kind: input, shape index: {}]   ;;  %s10642_s2 = inlined_call_operand.vmem [shape: f32[1,240], index: 2, kind: input, shape index: {}]   ;;  %s10643_s3 = inlined_call_operand.vmem [shape: bf16[600,160], index: 3, kind: input, shape index: {}]   ;;  %s10644_s4 = inlined_call_operand.vmem [shape: f32[1,160], index: 4, kind: input, shape index: {}]   ;;  %s10645_s5 = inlined_call_operand.vmem [shape: bf16[4,80,50], index: 5, kind: input, shape index: {}]   ;;  %s10646_s6 = inlined_call_operand.vmem [shape: f32[1,50], index: 6, kind: input, shape index: {}]   ;;  %s10647_s7 = inlined_call_operand.vmem [shape: bf16[50,10], index: 7, kind: input, shape index: {}]   ;;  %s10648_s8 = inlined_call_operand.vmem [shape: f32[1,10], index: 8, kind: input, shape index: {}]   ;;  %s10649_s9 = inlined_call_operand.hbm [shape: f32[2,10], index: 9, kind: output, shape index: {}]  }
   0x1   :  { %v6690_v0 = vld [vmem:[%s10640_s0] sm:$0xff]  ;;  %v6746_v15 = vld [vmem:[%s10641_s1 + $0x14] ss:$8 sps:$4 sm:$0xff]   ;;  %v6754_v16 = vld [vmem:[%s10641_s1 + $0x10] ss:$8 sps:$4 sm:$0xff]   ;;  %s6618_s23 = smov 112  }
   0x2   :  { %v6695_v1 = vld [vmem:[%s10640_s0 + $0x20] sm:$0xff]  ;;  %v6698_v2 = vrot.slane %v6690_v0, 3  ;;  %v6704_v4 = vrot.slane %v6690_v0, 1  ;;  %v6707_v5 = vrot.slane %v6690_v0, 4  ;;  %v6713_v7 = vrot.slane %v6690_v0, 2  ;;  %s6619_s24 = smov 56  }
   0x3   :  { %v6701_v3 = vrot.slane %v6695_v1, 2  ;;  %v6710_v6 = vrot.slane %v6695_v1, 3  ;;  %v6716_v8 = vrot.slane %v6695_v1, 1  ;;  %v6727_v11 = vld [vmem:[%s10641_s1 + $0x4] ss:$8 sps:$4 sm:$0xff]   ;;  %vm495_vm4 = vcmask 1045509  }
   0x4   :  { %v254_v10 = vsel %vm251_vm0, %v6695_v1, %v6704_v4  ;;  %v6734_v12 = vld [vmem:[%s10641_s1] ss:$8 sps:$4 sm:$0xff]   ;;  %294 = vmatprep.subr.bf16.mxu1 %v6727_v11  ;;  %210 = vmatprep.subr.bf16.mxu0 %v6727_v11  ;;  %v6761_v17 = vld [vmem:[%s10641_s1 + $0x24] ss:$8 sps:$4 sm:$0xff]   ;;  %v68_v18 = vsel %vm64_vm1, %v6695_v1, %v6704_v4  ;;  %v338_v23 = vsel %vm335_vm2, %v6695_v1, %v6704_v4  ;;  %v6797_v25 = vld [vmem:[%s10641_s1 + $0x34] ss:$8 sps:$4 sm:$0xff]  }
   0x5   :  { %v262_v9 = vsel %vm251_vm0, %v6701_v3, %v6698_v2  ;;  %255 = vrot.lane.b32.xlu0 %v254_v10, %s6617_s16  ;;  %v266_v13 = vsel %vm251_vm0, %v6710_v6, %v6707_v5  ;;  %v258_v14 = vsel %vm251_vm0, %v6716_v8, %v6713_v7  ;;  %295 = vmatpush1.bf16.msra.mxu1 %v6734_v12  ;;  %v6776_v20 = vld [vmem:[%s10641_s1 + $0x20] ss:$8 sps:$4 sm:$0xff]   ;;  %v6804_v26 = vld [vmem:[%s10641_s1 + $0x30] ss:$8 sps:$4 sm:$0xff]   ;;  %v6811_v28 = vld [vmem:[%s10641_s1 + $0x44] ss:$8 sps:$4 sm:$0xff]  }
   0x6   :  { %263 = vrot.lane.b32.xlu1 %v262_v9, %s6616_s15  ;;  %211 = vmatpush1.bf16.msra.mxu0 %v6734_v12  ;;  %v74_v19 = vsel %vm64_vm1, %v6716_v8, %v6713_v7  ;;  %v80_v21 = vsel %vm64_vm1, %v6701_v3, %v6698_v2  ;;  %v86_v22 = vsel %vm64_vm1, %v6710_v6, %v6707_v5  ;;  %v6821_v30 = vld [vmem:[%s10641_s1 + $0x40] ss:$8 sps:$4 sm:$0xff]   ;;  %v6828_v31 = vld [vmem:[%s10641_s1 + $0x54] ss:$8 sps:$4 sm:$0xff]   ;;  %v6843_v34 = vld [vmem:[%s10641_s1 + $0x50] ss:$8 sps:$4 sm:$0xff]  }
   0x7   :  { %296 = vmatprep.subr.bf16.mxu1 %v6746_v15  ;;  %212 = vmatprep.subr.bf16.mxu0 %v6746_v15  ;;  %v412_v24 = vsel %vm409_vm3, %v6695_v1, %v6704_v4  ;;  %v416_v29 = vsel %vm409_vm3, %v6716_v8, %v6713_v7  ;;  %v420_v32 = vsel %vm409_vm3, %v6701_v3, %v6698_v2  ;;  %vm573_vm5 = vcmask 1046534   ;;  %v6850_v35 = vld [vmem:[%s10641_s1 + $0x64] ss:$8 sps:$4 sm:$0xff]   ;;  %v6879_v42 = vld [vmem:[%s10641_s1 + $0x60] ss:$8 sps:$4 sm:$0xff]  }
   0x8   :  { %v5576_v27 = vpack.i.bf16 %v338_v23, %v412_v24  ;;  %v424_v33 = vsel %vm409_vm3, %v6710_v6, %v6707_v5  ;;  %v342_v36 = vsel %vm335_vm2, %v6716_v8, %v6713_v7  ;;  %v35_v37 = vld [vmem:[%s10640_s0 + $0x8] sm:$0xff]  ;;  %v346_v39 = vsel %vm335_vm2, %v6701_v3, %v6698_v2  ;;  %v6886_v43 = vld [vmem:[%s10641_s1 + $0x74] ss:$8 sps:$4 sm:$0xff]   ;;  %v6903_v48 = vld [vmem:[%s10641_s1 + $0x70] ss:$8 sps:$4 sm:$0xff]  }
   0x9   :  { %259 = vrot.lane.b32.xlu0 %v258_v14, %s6619_s24  ;;  %297 = vmatpush1.bf16.msra.mxu1 %v6754_v16  ;;  %v6863_v38 = vld [vmem:[%s10640_s0 + $0x28] sm:$0xff]  ;;  %v498_v40 = vsel %vm495_vm4, %v6695_v1, %v6704_v4  ;;  %v576_v41 = vsel %vm573_vm5, %v6695_v1, %v6704_v4  ;;  %v350_v45 = vsel %vm335_vm2, %v6710_v6, %v6707_v5  ;;  %v6893_v46 = vrot.slane %v35_v37, 3 }
   0xa   :  { %267 = vrot.lane.b32.xlu1 %v266_v13, %s6618_s23  ;;  %213 = vmatpush1.bf16.msra.mxu0 %v6754_v16  ;;  %v5581_v44 = vpack.i.bf16 %v498_v40, %v576_v41  ;;  %v6896_v47 = vrot.slane %v6863_v38, 2  ;;  %v6312_v49 = vld [vmem:[%s10641_s1 + $0x80] ss:$8 sps:$4 sm:$0x3f]   ;;  %v580_v51 = vsel %vm573_vm5, %v6716_v8, %v6713_v7  ;;  %v6923_v53 = vrot.slane %v35_v37, 4 }
   0xb   :  { %298 = vmatprep.subr.bf16.mxu1 %v6761_v17  ;;  %214 = vmatprep.subr.bf16.mxu0 %v6761_v17  ;;  %v6913_v50 = vld [vmem:[%s10641_s1 + $0x84] ss:$8 sps:$4 sm:$0x3f]   ;;  %v6926_v54 = vrot.slane %v6863_v38, 3  ;;  %vm203_vm6 = vcmask 1045504   ;;  %v502_v57 = vsel %vm495_vm4, %v6716_v8, %v6713_v7  ;;  %v6951_v58 = vrot.slane %v35_v37, 1 }
   0xc   :  { %v586_v52 = vsel %vm573_vm5, %v6896_v47, %v6893_v46  ;;  %v6935_v55 = vsel %vm203_vm6, %v6312_v49, 0  ;;  %v6953_v59 = vrot.slane %v35_v37, 2  ;;  %v6956_v60 = vrot.slane %v6863_v38, 1 }
   0xd   :  { %69 = vrot.lane.b32.xlu0 %v68_v18, %s6617_s16  ;;  %299 = vmatpush1.bf16.msra.mxu1 %v6776_v20  ;;  %v590_v56 = vsel %vm573_vm5, %v6926_v54, %v6923_v53  ;;  %v506_v61 = vsel %vm495_vm4, %v6701_v3, %v6698_v2  ;;  %v514_v62 = vsel %vm495_vm4, %v6926_v54, %v6923_v53  ;;  %vm661_vm7 = vcmask 1047559  }
   0xe   :  { %75 = vrot.lane.b32.xlu1 %v74_v19, %s6619_s24  ;;  %215 = vmatpush1.bf16.msra.mxu0 %v6776_v20  ;;  %v5586_v63 = vpack.i.bf16 %v6863_v38, %v6951_v58  ;;  %v5591_v5 = vpack.i.bf16 %v6956_v60, %v6953_v59  ;;  %v5596_v2 = vpack.i.bf16 %v6896_v47, %v6893_v46 }
   0xf   :  { %300 = vmatprep.subr.bf16.mxu1 %v6797_v25  ;;  %216 = vmatprep.subr.bf16.mxu0 %v6797_v25  ;;  %v5601_v3 = vpack.i.bf16 %v6926_v54, %v6923_v53  ;;  %v664_v6 = vsel %vm661_vm7, %v6695_v1, %v6704_v4  ;;  %v670_v7 = vsel %vm661_vm7, %v6956_v60, %v6953_v59 }
  0x10   :  { %v674_v8 = vsel %vm661_vm7, %v6896_v47, %v6893_v46  ;;  %v678_v9 = vsel %vm661_vm7, %v6926_v54, %v6923_v53  ;;  %v906_v4 = vsel %vm251_vm0, %v6863_v38, %v6951_v58  ;;  %v910_v10 = vsel %vm251_vm0, %v6956_v60, %v6953_v59 }
  0x11   :  { %81 = vrot.lane.b32.xlu0 %v80_v21, %s6616_s15  ;;  %301 = vmatpush1.bf16.msra.mxu1 %v6804_v26 }
  0x12   :  { %87 = vrot.lane.b32.xlu1 %v86_v22, %s6618_s23  ;;  %217 = vmatpush1.bf16.msra.mxu0 %v6804_v26 }
  0x13   :  { %302 = vmatprep.subr.bf16.mxu1 %v6811_v28  ;;  %218 = vmatprep.subr.bf16.mxu0 %v6811_v28 }
  0x15   :  { %5577 = vrot.lane.b32.xlu0 %v5576_v27, %s6617_s16  ;;  %303 = vmatpush1.bf16.msra.mxu1 %v6821_v30 }
  0x16   :  { %417 = vrot.lane.b32.xlu1 %v416_v29, %s6619_s24  ;;  %219 = vmatpush1.bf16.msra.mxu0 %v6821_v30 }
  0x17   :  { %304 = vmatprep.subr.bf16.mxu1 %v6828_v31  ;;  %220 = vmatprep.subr.bf16.mxu0 %v6828_v31 }
  0x19   :  { %421 = vrot.lane.b32.xlu0 %v420_v32, %s6616_s15  ;;  %305 = vmatpush1.bf16.msra.mxu1 %v6843_v34 }
  0x1a   :  { %425 = vrot.lane.b32.xlu1 %v424_v33, %s6618_s23  ;;  %221 = vmatpush1.bf16.msra.mxu0 %v6843_v34 }
  0x1b   :  { %306 = vmatprep.subr.bf16.mxu1 %v6850_v35  ;;  %222 = vmatprep.subr.bf16.mxu0 %v6850_v35 }
  0x1d   :  { %343 = vrot.lane.b32.xlu0 %v342_v36, %s6619_s24  ;;  %307 = vmatpush1.bf16.msra.mxu1 %v6879_v42 }
  0x1e   :  { %347 = vrot.lane.b32.xlu1 %v346_v39, %s6616_s15  ;;  %223 = vmatpush1.bf16.msra.mxu0 %v6879_v42 }
  0x1f   :  { %308 = vmatprep.subr.bf16.mxu1 %v6886_v43  ;;  %224 = vmatprep.subr.bf16.mxu0 %v6886_v43 }
  0x21   :  { %351 = vrot.lane.b32.xlu0 %v350_v45, %s6618_s23  ;;  %309 = vmatpush1.bf16.msra.mxu1 %v6903_v48 }
  0x22   :  { %5582 = vrot.lane.b32.xlu1 %v5581_v44, %s6617_s16  ;;  %225 = vmatpush1.bf16.msra.mxu0 %v6903_v48 }
  0x23   :  { %5179 = vmatprep.subr.msk.bf16.mxu1 %vm203_vm6, %v6913_v50  ;;  %5177 = vmatprep.subr.msk.bf16.mxu0 %vm203_vm6, %v6913_v50 }
  0x25   :  { %581 = vrot.lane.b32.xlu0 %v580_v51, %s6619_s24  ;;  %311 = vmatpush1.bf16.msra.mxu1 %v6935_v55 }
  0x26   :  { %587 = vrot.lane.b32.xlu1 %v586_v52, %s6616_s15  ;;  %227 = vmatpush1.bf16.msra.mxu0 %v6935_v55 }
  0x27   :  { %454 = vmatprep.subr.bf16.mxu1 %v6727_v11  ;;  %368 = vmatprep.subr.bf16.mxu0 %v6727_v11 }
  0x29   :  { %591 = vrot.lane.b32.xlu0 %v590_v56, %s6618_s23 }
  0x2a   :  { %503 = vrot.lane.b32.xlu1 %v502_v57, %s6619_s24 }
  0x2d   :  { %507 = vrot.lane.b32.xlu0 %v506_v61, %s6616_s15 }
  0x2e   :  { %515 = vrot.lane.b32.xlu1 %v514_v62, %s6618_s23 }
  0x31   :  { %5587 = vrot.lane.b32.xlu0 %v5586_v63, %s6617_s16 }
  0x32   :  { %5592 = vrot.lane.b32.xlu1 %v5591_v5, %s6619_s24 }
  0x35   :  { %5597 = vrot.lane.b32.xlu0 %v5596_v2, %s6616_s15 }
  0x36   :  { %5602 = vrot.lane.b32.xlu1 %v5601_v3, %s6618_s23 }
  0x39   :  { %665 = vrot.lane.b32.xlu0 %v664_v6, %s6617_s16 }
  0x3a   :  { %671 = vrot.lane.b32.xlu1 %v670_v7, %s6619_s24 }
  0x3d   :  { %675 = vrot.lane.b32.xlu0 %v674_v8, %s6616_s15 }
  0x3e   :  { %679 = vrot.lane.b32.xlu1 %v678_v9, %s6618_s23 }
  0x3f   :  { %14 = vsyncpa [#allocation3], 0  ;;  %v914_v13 = vsel %vm251_vm0, %v6896_v47, %v6893_v46  ;;  %v918_v14 = vsel %vm251_vm0, %v6926_v54, %v6923_v53  ;;  %v838_v18 = vsel %vm64_vm1, %v6863_v38, %v6951_v58  ;;  %v842_v19 = vsel %vm64_vm1, %v6956_v60, %v6953_v59  ;;  %s6620_s10 = smov 118   ;;  %s6622_s26 = smov 98  }
  0x40   :  { %v846_v21 = vsel %vm64_vm1, %v6896_v47, %v6893_v46  ;;  %v850_v22 = vsel %vm64_vm1, %v6926_v54, %v6923_v53  ;;  %v989_v23 = vsel %vm335_vm2, %v6863_v38, %v6951_v58  ;;  %v1062_v24 = vsel %vm409_vm3, %v6863_v38, %v6951_v58  ;;  %s6623_s27 = smov 108   ;;  %s6624_s28 = smov 88  }
  0x41   :  { %907 = vrot.lane.b32.xlu0 %v906_v4, %s6617_s16  ;;  %v5606_v27 = vpack.i.bf16 %v989_v23, %v1062_v24  ;;  %v1066_v29 = vsel %vm409_vm3, %v6956_v60, %v6953_v59  ;;  %v1070_v32 = vsel %vm409_vm3, %v6896_v47, %v6893_v46  ;;  %v1074_v33 = vsel %vm409_vm3, %v6926_v54, %v6923_v53  ;;  %s6625_s29 = smov 78   ;;  %s6626_s30 = smov 58  }
  0x42   :  { %911 = vrot.lane.b32.xlu1 %v910_v10, %s6619_s24  ;;  %v7048_v36 = vrot.slane %v6695_v1, 7  ;;  %v993_v37 = vsel %vm335_vm2, %v6956_v60, %v6953_v59  ;;  %v997_v39 = vsel %vm335_vm2, %v6896_v47, %v6893_v46  ;;  %v1001_v40 = vsel %vm335_vm2, %v6926_v54, %v6923_v53  ;;  %s6627_s11 = smov 48   ;;  %s6628_s12 = smov 38  }
  0x43   :  { %vm90_vm8 = vcmask 228352   ;;  %vm92_vm9 = vcmask 457728   ;;  %vm94_vm10 = vcmask 687104   ;;  %vm10736_vm11 = vcmask 916480   ;;  %s6629_s13 = smov 18   ;;  %s6631_s17 = smov 104  }
  0x44   :  { %v252_v1 = vsel %vm251_vm0, %v7048_v36, %v6690_v0  ;;  %v65_v54 = vsel %vm64_vm1, %v7048_v36, %v6690_v0  ;;  %vm199_vm12 = vcmask 97280   ;;  %vm2182_vm13 = vcmask 80896   ;;  %s6632_s20 = smov 96  }
  0x45   :  { %915 = vrot.lane.b32.xlu0 %v914_v13, %s6616_s15  ;;  %vm2184_vm14 = vcmask 162816   ;;  %vm2186_vm15 = vcmask 244736  }
  0x46   :  { %919 = vrot.lane.b32.xlu1 %v918_v14, %s6618_s23 }
  0x49   :  { %839 = vrot.lane.b32.xlu0 %v838_v18, %s6617_s16 }
  0x4a   :  { %843 = vrot.lane.b32.xlu1 %v842_v19, %s6619_s24 }
  0x4d   :  { %847 = vrot.lane.b32.xlu0 %v846_v21, %s6616_s15 }
  0x4e   :  { %851 = vrot.lane.b32.xlu1 %v850_v22, %s6618_s23 }
  0x51   :  { %5607 = vrot.lane.b32.xlu0 %v5606_v27, %s6617_s16 }
  0x52   :  { %1067 = vrot.lane.b32.xlu1 %v1066_v29, %s6619_s24 }
  0x55   :  { %1071 = vrot.lane.b32.xlu0 %v1070_v32, %s6616_s15  ;;  %v410_v32 = vsel %vm409_vm3, %v7048_v36, %v6690_v0 }
  0x56   :  { %1075 = vrot.lane.b32.xlu1 %v1074_v33, %s6618_s23 }
  0x59   :  { %994 = vrot.lane.b32.xlu0 %v993_v37, %s6619_s24 }
  0x5a   :  { %998 = vrot.lane.b32.xlu1 %v997_v39, %s6616_s15  ;;  %v1147_v39 = vsel %vm495_vm4, %v6863_v38, %v6951_v58 }
  0x5d   :  { %1002 = vrot.lane.b32.xlu0 %v1001_v40, %s6618_s23  ;;  %v1224_v40 = vsel %vm573_vm5, %v6863_v38, %v6951_v58 }
  0x77   :  { %v256_v44 = vpop.permute.xlu0 %255 }
  0x78   :  { %v264_v41 = vpop.permute.xlu1 %263  ;;  %v270_v45 = vsel %vm90_vm8, %v252_v1, %v256_v44  ;;  %v5611_v44 = vpack.i.bf16 %v1147_v39, %v1224_v40  ;;  %v1151_v1 = vsel %vm495_vm4, %v6956_v60, %v6953_v59 }
  0x7a   :  { %5612 = vrot.lane.b32.xlu1 %v5611_v44, %s6617_s16 }
  0x7b   :  { %v260_v51 = vpop.permute.xlu0 %259 }
  0x7c   :  { %v268_v49 = vpop.permute.xlu1 %267  ;;  %v271_v56 = vsel %vm92_vm9, %v270_v45, %v260_v51  ;;  %v36_v45 = vld [vmem:[%s10640_s0 + $0x10] sm:$0xff]  ;;  %v1228_v51 = vsel %vm573_vm5, %v6956_v60, %v6953_v59 }
  0x7d   :  { %v275_v52 = vpack.c.bf16 %v268_v49, %v268_v49  ;;  %v272_v53 = vsel %vm94_vm10, %v271_v56, %v264_v41 }
  0x7e   :  { %v273_v57 = vsel %vm10736_vm11, %v272_v53, %v268_v49  ;;  %v7104_v49 = vld [vmem:[%s10640_s0 + $0x30] sm:$0xff] }
  0x7f   :  { %v284_v61 = vshrl.u32 %v275_v52, 16  ;;  %v286_v62 = vshll.u32 %v275_v52, 16  ;;  %v274_v63 = vpack.c.bf16 %v273_v57, %v273_v57  ;;  %v70_v5 = vpop.permute.xlu0 %69  ;;  %v7111_v52 = vrot.slane %v36_v45, 3 }
  0x80   :  { %v76_v2 = vpop.permute.xlu1 %75  ;;  %v91_v3 = vsel %vm90_vm8, %v65_v54, %v70_v5  ;;  %v5616_v57 = vpack.i.bf16 %v1151_v1, %v1228_v51  ;;  %v7122_v5 = vrot.slane %v7104_v49, 3 }
  0x81   :  { %v288_v6 = vrot.slane %v286_v62, 1  ;;  %v279_v7 = vshll.u32 %v274_v63, 16  ;;  %v93_v9 = vsel %vm92_vm9, %v91_v3, %v76_v2  ;;  %v277_v13 = vshrl.u32 %v274_v63, 16 }
  0x82   :  { %v7117_v62 = vrot.slane %v7104_v49, 2  ;;  %v7119_v63 = vrot.slane %v36_v45, 4  ;;  %5617 = vrot.lane.b32.xlu0 %v5616_v57, %s6619_s24  ;;  %v1155_v3 = vsel %vm495_vm4, %v6896_v47, %v6893_v46 }
  0x83   :  { %v289_v8 = vor.u32 %v288_v6, %v284_v61  ;;  %v82_v4 = vpop.permute.xlu0 %81  ;;  %v281_v14 = vrot.slane %v279_v7, 1 }
  0x84   :  { %v88_v10 = vpop.permute.xlu1 %87  ;;  %v95_v18 = vsel %vm94_vm10, %v93_v9, %v82_v4  ;;  %v1234_v7 = vsel %vm573_vm5, %v7117_v62, %v7111_v52  ;;  %v1163_v9 = vsel %vm495_vm4, %v7122_v5, %v7119_v63  ;;  %v1238_v47 = vsel %vm573_vm5, %v7122_v5, %v7119_v63 }
  0x85   :  { %5180 = vmatprep.mubr.msk.bf16.mxu1 %vm199_vm12, %v289_v8  ;;  %v99_v19 = vpack.c.bf16 %v88_v10, %v88_v10  ;;  %v97_v21 = vsel %vm10736_vm11, %v95_v18, %v88_v10  ;;  %v282_v22 = vor.u32 %v281_v14, %v277_v13  ;;  %v5621_v46 = vpack.i.bf16 %v1155_v3, %v1234_v7 }
  0x86   :  { %v98_v23 = vpack.c.bf16 %v97_v21, %v97_v21  ;;  %v5626_v18 = vpack.i.bf16 %v1163_v9, %v1238_v47  ;;  %v1321_v3 = vsel %vm661_vm7, %v7117_v62, %v7111_v52 }
  0x87   :  { %5178 = vmatprep.mubr.msk.bf16.mxu0 %vm199_vm12, %v99_v19  ;;  %327 = vmatmul.mubr.bf16.vlgmr.msra.gmra.mrb[0].mxu1 %v282_v22  ;;  %v7078_v24 = vpop.permute.xlu0 %5577 }
  0x88   :  { %v418_v27 = vpop.permute.xlu1 %417  ;;  %455 = vmatpush1.bf16.msra.mxu1 %v6734_v12  ;;  %243 = vmatmul.mubr.bf16.vlgmr.msra.gmra.mrb[0].mxu0 %v98_v23  ;;  %v5579_v29 = vunpack.i.l.bf16 %v7078_v24  ;;  %v5580_v19 = vunpack.i.h.bf16 %v7078_v24  ;;  %v336_v23 = vsel %vm335_vm2, %v7048_v36, %v6690_v0  ;;  %v7165_v24 = vrot.slane %v36_v45, 1 }
  0x89   :  { %369 = vmatpush1.bf16.msra.mxu0 %v6734_v12  ;;  %456 = vmatprep.subr.bf16.mxu1 %v6746_v15 }
  0x8a   :  { %370 = vmatprep.subr.bf16.mxu0 %v6746_v15  ;;  %v428_v56 = vsel %vm90_vm8, %v410_v32, %v5579_v29  ;;  %5622 = vrot.lane.b32.xlu1 %v5621_v46, %s6616_s15  ;;  %v7167_v29 = vrot.slane %v36_v45, 2  ;;  %v7170_v32 = vrot.slane %v7104_v49, 1  ;;  %v5631_v39 = vpack.i.bf16 %v7104_v49, %v7165_v24 }
  0x8b   :  { %v422_v33 = vpop.permute.xlu0 %421  ;;  %v429_v6 = vsel %vm92_vm9, %v428_v56, %v418_v27  ;;  %5627 = vrot.lane.b32.xlu0 %v5626_v18, %s6618_s23  ;;  %v1311_v45 = vsel %vm661_vm7, %v6863_v38, %v6951_v58  ;;  %v1553_v51 = vsel %vm251_vm0, %v7104_v49, %v7165_v24 }
  0x8c   :  { %v426_v37 = vpop.permute.xlu1 %425  ;;  %457 = vmatpush1.bf16.msra.mxu1 %v6754_v16  ;;  %v430_v10 = vsel %vm94_vm10, %v429_v6, %v422_v33  ;;  %v354_v33 = vsel %vm90_vm8, %v336_v23, %v5580_v19  ;;  %v5636_v40 = vpack.i.bf16 %v7170_v32, %v7167_v29  ;;  %v1317_v38 = vsel %vm661_vm7, %v7170_v32, %v7167_v29 }
  0x8d   :  { %v433_v41 = vpack.c.bf16 %v426_v37, %v426_v37  ;;  %371 = vmatpush1.bf16.msra.mxu0 %v6754_v16  ;;  %458 = vmatprep.subr.bf16.mxu1 %v6761_v17  ;;  %v431_v22 = vsel %vm10736_vm11, %v430_v10, %v426_v37  ;;  %v1557_v58 = vsel %vm251_vm0, %v7170_v32, %v7167_v29 }
  0x8e   :  { %372 = vmatprep.subr.bf16.mxu0 %v6761_v17  ;;  %v432_v0 = vpack.c.bf16 %v431_v22, %v431_v22  ;;  %5632 = vrot.lane.b32.xlu1 %v5631_v39, %s6617_s16  ;;  %v1561_v6 = vsel %vm251_vm0, %v7117_v62, %v7111_v52  ;;  %v5656_v9 = vpack.i.bf16 %v1557_v58, %v1317_v38 }
  0x8f   :  { %v443_v53 = vshrl.u32 %v433_v41, 16  ;;  %v446_v54 = vshll.u32 %v433_v41, 16  ;;  %v344_v61 = vpop.permute.xlu0 %343  ;;  %v5641_v41 = vpack.i.bf16 %v7117_v62, %v7111_v52  ;;  %5637 = vrot.lane.b32.xlu0 %v5636_v40, %s6619_s24  ;;  %v1325_v10 = vsel %vm661_vm7, %v7122_v5, %v7119_v63 }
  0x90   :  { %459 = vmatpush1.bf16.msra.mxu1 %v6776_v20  ;;  %v348_v2 = vpop.permute.xlu1 %347  ;;  %v355_v44 = vsel %vm92_vm9, %v354_v33, %v344_v61  ;;  %v435_v56 = vshrl.u32 %v432_v0, 16  ;;  %v438_v57 = vshll.u32 %v432_v0, 16  ;;  %v5661_v18 = vpack.i.bf16 %v1561_v6, %v1321_v3 }
  0x91   :  { %v445_v59 = vrot.slane %v443_v53, 1  ;;  %v448_v60 = vrot.slane %v446_v54, 2  ;;  %373 = vmatpush1.bf16.msra.mxu0 %v6776_v20  ;;  %460 = vmatprep.subr.bf16.mxu1 %v6797_v25  ;;  %v5646_v54 = vpack.i.bf16 %v7122_v5, %v7119_v63  ;;  %v356_v61 = vsel %vm94_vm10, %v355_v44, %v348_v2 }
  0x92   :  { %374 = vmatprep.subr.bf16.mxu0 %v6797_v25  ;;  %5642 = vrot.lane.b32.xlu1 %v5641_v41, %s6616_s15  ;;  %v437_v2 = vrot.slane %v435_v56, 1  ;;  %v440_v46 = vrot.slane %v438_v57, 2 }
  0x93   :  { %v449_v8 = vor.u32 %v448_v60, %v445_v59  ;;  %v7139_v4 = vpop.permute.xlu0 %351  ;;  %v5651_v60 = vpack.i.bf16 %v1553_v51, %v1311_v45  ;;  %5647 = vrot.lane.b32.xlu0 %v5646_v54, %s6618_s23 }
  0x94   :  { %461 = vmatpush1.bf16.msra.mxu1 %v6804_v26  ;;  %v359_v13 = vpack.c.bf16 %v7139_v4, %v7139_v4  ;;  %v7149_v14 = vpop.permute.xlu1 %5582  ;;  %v357_v47 = vsel %vm10736_vm11, %v356_v61, %v7139_v4  ;;  %v441_v0 = vor.u32 %v440_v46, %v437_v2  ;;  %v7333_v2 = vld [vmem:[%s10641_s1 + $0x4] ss:$8 sps:$4 sm:$0xff]   ;;  %v7340_v46 = vld [vmem:[%s10641_s1] ss:$8 sps:$4 sm:$0xff]  }
  0x95   :  { %5184 = vmatprep.mubr.msk.bf16.mxu1 %vm199_vm12, %v449_v8  ;;  %375 = vmatpush1.bf16.msra.mxu0 %v6804_v26  ;;  %v358_v19 = vpack.c.bf16 %v357_v47, %v357_v47  ;;  %v5585_v45 = vunpack.i.h.bf16 %v7149_v14  ;;  %v7347_v47 = vld [vmem:[%s10641_s1 + $0x14] ss:$8 sps:$4 sm:$0xff]  }
  0x96   :  { %462 = vmatprep.subr.bf16.mxu1 %v6811_v28  ;;  %376 = vmatprep.subr.bf16.mxu0 %v6811_v28  ;;  %v363_v21 = vrot.slane %v359_v13, 1  ;;  %v1565_v13 = vsel %vm251_vm0, %v7122_v5, %v7119_v63 }
  0x97   :  { %v7160_v27 = vpop.permute.xlu0 %581  ;;  %5652 = vrot.lane.b32.xlu1 %v5651_v60, %s6617_s16  ;;  %5657 = vrot.lane.b32.xlu0 %v5656_v9, %s6619_s24  ;;  %v5666_v23 = vpack.i.bf16 %v1565_v13, %v1325_v10  ;;  %v362_v39 = vrot.slane %v358_v19, 1  ;;  %v7356_v19 = vld [vmem:[%s10641_s1 + $0x10] ss:$8 sps:$4 sm:$0xff]  }
  0x98   :  { %463 = vmatpush1.bf16.msra.mxu1 %v6821_v30  ;;  %5182 = vmatprep.mubr.msk.bf16.mxu0 %vm199_vm12, %v363_v21  ;;  %v7176_v37 = vpop.permute.xlu1 %587 }
  0x99   :  { %377 = vmatpush1.bf16.msra.mxu0 %v6821_v30  ;;  %464 = vmatprep.subr.bf16.mxu1 %v6828_v31 }
  0x9a   :  { %378 = vmatprep.subr.bf16.mxu0 %v6828_v31 }
  0x9b   :  { %v7189_v1 = vpop.permute.xlu0 %591  ;;  %5662 = vrot.lane.b32.xlu1 %v5661_v18, %s6616_s15  ;;  %5667 = vrot.lane.b32.xlu0 %v5666_v23, %s6618_s23 }
  0x9c   :  { %465 = vmatpush1.bf16.msra.mxu1 %v6843_v34  ;;  %v599_v53 = vpack.c.bf16 %v7189_v1, %v7189_v1  ;;  %v7211_v59 = vpop.permute.xlu1 %503 }
  0x9d   :  { %379 = vmatpush1.bf16.msra.mxu0 %v6843_v34  ;;  %466 = vmatprep.subr.bf16.mxu1 %v6850_v35 }
  0x9e   :  { %380 = vmatprep.subr.bf16.mxu0 %v6850_v35  ;;  %v609_v7 = vshrl.u32 %v599_v53, 16  ;;  %v612_v8 = vshll.u32 %v599_v53, 16 }
  0xa0   :  { %467 = vmatpush1.bf16.msra.mxu1 %v6879_v42  ;;  %v611_v4 = vrot.slane %v609_v7, 2  ;;  %v614_v21 = vrot.slane %v612_v8, 3  ;;  %v7239_v22 = vpop.permute.xlu1 %515 }
  0xa1   :  { %381 = vmatpush1.bf16.msra.mxu0 %v6879_v42  ;;  %468 = vmatprep.subr.bf16.mxu1 %v6886_v43  ;;  %v523_v33 = vpack.c.bf16 %v7239_v22, %v7239_v22 }
  0xa2   :  { %382 = vmatprep.subr.bf16.mxu0 %v6886_v43  ;;  %v615_v40 = vor.u32 %v614_v21, %v611_v4  ;;  %v7363_v4 = vld [vmem:[%s10641_s1 + $0x24] ss:$8 sps:$4 sm:$0xff]  }
  0xa3   :  { %v527_v41 = vrot.slane %v523_v33, 2 }
  0xa4   :  { %469 = vmatpush1.bf16.msra.mxu1 %v6903_v48  ;;  %v7273_v44 = vpop.permute.xlu1 %5592 }
  0xa5   :  { %383 = vmatpush1.bf16.msra.mxu0 %v6903_v48  ;;  %5183 = vmatprep.subr.msk.bf16.mxu1 %vm203_vm6, %v6913_v50  ;;  %v5595_v21 = vunpack.i.h.bf16 %v7273_v44 }
  0xa6   :  { %5181 = vmatprep.subr.msk.bf16.mxu0 %vm203_vm6, %v6913_v50 }
  0xa8   :  { %471 = vmatpush1.bf16.msra.mxu1 %v6935_v55  ;;  %v7288_v51 = vpop.permute.xlu1 %5602 }
  0xa9   :  { %385 = vmatpush1.bf16.msra.mxu0 %v6935_v55  ;;  %620 = vmatprep.subr.bf16.mxu1 %v6727_v11 }
  0xaa   :  { %532 = vmatprep.subr.bf16.mxu0 %v6727_v11  ;;  %v5584_v11 = vunpack.i.l.bf16 %v7149_v14  ;;  %v5605_v14 = vunpack.i.h.bf16 %v7288_v51 }
  0xab   :  { %487 = vmatmul.mubr.bf16.vlgmr.msra.gmra.mrb[4].mxu1 %v441_v0 }
  0xac   :  { %401 = vmatmul.mubr.bf16.vlgmr.msra.gmra.mrb[4].mxu0 %v362_v39  ;;  %621 = vmatpush1.bf16.msra.mxu1 %v6734_v12  ;;  %v7376_v39 = vld [vmem:[%s10641_s1 + $0x20] ss:$8 sps:$4 sm:$0xff]  }
  0xad   :  { %533 = vmatpush1.bf16.msra.mxu0 %v6734_v12  ;;  %622 = vmatprep.subr.bf16.mxu1 %v6746_v15  ;;  %v7264_v12 = vld [vmem:[%s10640_s0] sm:$0xff] }
  0xae   :  { %534 = vmatprep.subr.bf16.mxu0 %v6746_v15  ;;  %5188 = vmatprep.mubr.msk.bf16.mxu1 %vm199_vm12, %v615_v40  ;;  %v574_v15 = vsel %vm573_vm5, %v7048_v36, %v7264_v12 }
  0xaf   :  { %5186 = vmatprep.mubr.msk.bf16.mxu0 %vm199_vm12, %v527_v41 }
  0xb0   :  { %623 = vmatpush1.bf16.msra.mxu1 %v6754_v16 }
  0xb1   :  { %535 = vmatpush1.bf16.msra.mxu0 %v6754_v16  ;;  %624 = vmatprep.subr.bf16.mxu1 %v6761_v17  ;;  %v594_v16 = vsel %vm90_vm8, %v574_v15, %v5584_v11  ;;  %v7383_v11 = vld [vmem:[%s10641_s1 + $0x34] ss:$8 sps:$4 sm:$0xff]  }
  0xb2   :  { %536 = vmatprep.subr.bf16.mxu0 %v6761_v17  ;;  %v595_v17 = vsel %vm92_vm9, %v594_v16, %v7160_v27  ;;  %v5604_v27 = vunpack.i.l.bf16 %v7288_v51  ;;  %v1489_v51 = vsel %vm64_vm1, %v7170_v32, %v7167_v29 }
  0xb4   :  { %625 = vmatpush1.bf16.msra.mxu1 %v6776_v20 }
  0xb5   :  { %537 = vmatpush1.bf16.msra.mxu0 %v6776_v20  ;;  %626 = vmatprep.subr.bf16.mxu1 %v6797_v25  ;;  %v596_v20 = vsel %vm94_vm10, %v595_v17, %v7176_v37 }
  0xb6   :  { %538 = vmatprep.subr.bf16.mxu0 %v6797_v25  ;;  %v496_v25 = vsel %vm495_vm4, %v7048_v36, %v7264_v12 }
  0xb8   :  { %627 = vmatpush1.bf16.msra.mxu1 %v6804_v26 }
  0xb9   :  { %539 = vmatpush1.bf16.msra.mxu0 %v6804_v26  ;;  %628 = vmatprep.subr.bf16.mxu1 %v6811_v28  ;;  %v597_v26 = vsel %vm10736_vm11, %v596_v20, %v7189_v1  ;;  %v7304_v1 = vpop.permute.xlu1 %671  ;;  %v662_v20 = vsel %vm661_vm7, %v7048_v36, %v7264_v12 }
  0xba   :  { %540 = vmatprep.subr.bf16.mxu0 %v6811_v28  ;;  %v518_v28 = vsel %vm90_vm8, %v496_v25, %v5585_v45  ;;  %v598_v37 = vpack.c.bf16 %v597_v26, %v597_v26  ;;  %v7404_v25 = vld [vmem:[%s10641_s1 + $0x44] ss:$8 sps:$4 sm:$0xff]  }
  0xbb   :  { %v519_v56 = vsel %vm92_vm9, %v518_v28, %v7211_v59 }
  0xbc   :  { %629 = vmatpush1.bf16.msra.mxu1 %v6821_v30  ;;  %v601_v54 = vshrl.u32 %v598_v37, 16  ;;  %v604_v57 = vshll.u32 %v598_v37, 16 }
  0xbd   :  { %541 = vmatpush1.bf16.msra.mxu0 %v6821_v30  ;;  %630 = vmatprep.subr.bf16.mxu1 %v6828_v31  ;;  %v508_v30 = vpop.permute.xlu0 %507  ;;  %v7318_v58 = vpop.permute.xlu1 %679 }
  0xbe   :  { %542 = vmatprep.subr.bf16.mxu0 %v6828_v31  ;;  %v773_v31 = vpack.c.bf16 %v5605_v14, %v5604_v27  ;;  %v520_v53 = vsel %vm94_vm10, %v519_v56, %v508_v30  ;;  %v603_v61 = vrot.slane %v601_v54, 2  ;;  %v606_v59 = vrot.slane %v604_v57, 3  ;;  %v7420_v56 = vld [vmem:[%s10641_s1 + $0x40] ss:$8 sps:$4 sm:$0xff]  }
  0xbf   :  { %v1485_v30 = vsel %vm64_vm1, %v7104_v49, %v7165_v24 }
  0xc0   :  { %631 = vmatpush1.bf16.msra.mxu1 %v6843_v34  ;;  %v786_v38 = vshll.u32 %v773_v31, 16  ;;  %v607_v6 = vor.u32 %v606_v59, %v603_v61 }
  0xc1   :  { %543 = vmatpush1.bf16.msra.mxu0 %v6843_v34  ;;  %632 = vmatprep.subr.bf16.mxu1 %v6850_v35  ;;  %v521_v34 = vsel %vm10736_vm11, %v520_v53, %v7239_v22  ;;  %v5588_v10 = vpop.permute.xlu0 %5587  ;;  %v5594_v22 = vunpack.i.l.bf16 %v7273_v44  ;;  %v7392_v44 = vld [vmem:[%s10641_s1 + $0x30] ss:$8 sps:$4 sm:$0xff]   ;;  %v7407_v28 = vpop.permute.xlu1 %911 }
  0xc2   :  { %544 = vmatprep.subr.bf16.mxu0 %v6850_v35  ;;  %v783_v35 = vshrl.u32 %v773_v31, 16  ;;  %v788_v3 = vrot.slane %v786_v38, 4  ;;  %v5590_v13 = vunpack.i.h.bf16 %v5588_v10  ;;  %v5589_v18 = vunpack.i.l.bf16 %v5588_v10  ;;  %v7439_v31 = vld [vmem:[%s10641_s1 + $0x54] ss:$8 sps:$4 sm:$0xff]  }
  0xc4   :  { %633 = vmatpush1.bf16.msra.mxu1 %v6879_v42  ;;  %v785_v60 = vrot.slane %v783_v35, 3  ;;  %v765_v23 = vsel %vm90_vm8, %v7048_v36, %v5590_v13  ;;  %v764_v0 = vsel %vm90_vm8, %v7264_v12, %v5589_v18  ;;  %v1717_v35 = vsel %vm409_vm3, %v7117_v62, %v7111_v52  ;;  %v7482_v13 = vld [vmem:[%s10641_s1 + $0x60] ss:$8 sps:$4 sm:$0xff]  }
  0xc5   :  { %545 = vmatpush1.bf16.msra.mxu0 %v6879_v42  ;;  %634 = vmatprep.subr.bf16.mxu1 %v6886_v43  ;;  %v522_v42 = vpack.c.bf16 %v521_v34, %v521_v34  ;;  %v5598_v33 = vpop.permute.xlu0 %5597  ;;  %v766_v15 = vsel %vm92_vm9, %v764_v0, %v5594_v22  ;;  %v767_v16 = vsel %vm92_vm9, %v765_v23, %v5595_v21  ;;  %v7451_v59 = vpop.permute.xlu1 %919  ;;  %v7490_v21 = vld [vmem:[%s10641_s1 + $0x74] ss:$8 sps:$4 sm:$0xff]  }
  0xc6   :  { %546 = vmatprep.subr.bf16.mxu0 %v6886_v43  ;;  %v687_v43 = vpack.c.bf16 %v7318_v58, %v7318_v58  ;;  %v789_v9 = vor.u32 %v788_v3, %v785_v60  ;;  %v5600_v40 = vunpack.i.h.bf16 %v5598_v33  ;;  %v5599_v41 = vunpack.i.l.bf16 %v5598_v33  ;;  %v7463_v3 = vld [vmem:[%s10641_s1 + $0x50] ss:$8 sps:$4 sm:$0xff]  }
  0xc7   :  { %v526_v7 = vrot.slane %v522_v42, 2  ;;  %v1493_v34 = vsel %vm64_vm1, %v7117_v62, %v7111_v52  ;;  %v1721_v60 = vsel %vm409_vm3, %v7122_v5, %v7119_v63  ;;  %v927_v10 = vpack.c.bf16 %v7451_v59, %v7451_v59 }
  0xc8   :  { %635 = vmatpush1.bf16.msra.mxu1 %v6903_v48  ;;  %v691_v8 = vrot.slane %v687_v43, 3  ;;  %v768_v17 = vsel %vm94_vm10, %v766_v15, %v5599_v41  ;;  %v769_v45 = vsel %vm94_vm10, %v767_v16, %v5600_v40  ;;  %v5681_v42 = vpack.i.bf16 %v1717_v35, %v1493_v34  ;;  %v37_v35 = vld [vmem:[%s10640_s0 + $0x18] sm:$0xf] }
  0xc9   :  { %547 = vmatpush1.bf16.msra.mxu0 %v6903_v48  ;;  %5187 = vmatprep.subr.msk.bf16.mxu1 %vm203_vm6, %v6913_v50  ;;  %v666_v26 = vpop.permute.xlu0 %665  ;;  %v770_v37 = vsel %vm10736_vm11, %v768_v17, %v5604_v27  ;;  %v771_v36 = vsel %vm10736_vm11, %v769_v45, %v5605_v14  ;;  %v1709_v27 = vsel %vm409_vm3, %v7104_v49, %v7165_v24  ;;  %v7495_v23 = vpop.permute.xlu1 %843  ;;  %v938_v40 = vshll.u32 %v927_v10, 16 }
  0xca   :  { %5185 = vmatprep.subr.msk.bf16.mxu0 %vm203_vm6, %v6913_v50  ;;  %v682_v12 = vsel %vm90_vm8, %v662_v20, %v666_v26  ;;  %v1713_v14 = vsel %vm409_vm3, %v7170_v32, %v7167_v29  ;;  %v5671_v53 = vpack.i.bf16 %v1709_v27, %v1485_v30  ;;  %v772_v54 = vpack.c.bf16 %v771_v36, %v770_v37  ;;  %v6470_v26 = vld [vmem:[%s10640_s0 + $0x28] sm:$0xff] }
  0xcb   :  { %v5676_v57 = vpack.i.bf16 %v1713_v14, %v1489_v51  ;;  %v683_v38 = vsel %vm92_vm9, %v682_v12, %v7304_v1  ;;  %v1497_v43 = vsel %vm64_vm1, %v7122_v5, %v7119_v63  ;;  %v936_v16 = vshrl.u32 %v927_v10, 16  ;;  %v7527_v12 = vld [vmem:[%s10640_s0 + $0x8] sm:$0xff] }
  0xcc   :  { %637 = vmatpush1.bf16.msra.mxu1 %v6935_v55  ;;  %5672 = vrot.lane.b32.xlu1 %v5671_v53, %s6617_s16  ;;  %v5686_v1 = vpack.i.bf16 %v1721_v60, %v1497_v43  ;;  %v940_v17 = vrot.slane %v938_v40, 1  ;;  %v7516_v37 = vrot.slane %v6470_v26, 7  ;;  %v1636_v34 = vsel %vm335_vm2, %v7104_v49, %v7165_v24 }
  0xcd   :  { %549 = vmatpush1.bf16.msra.mxu0 %v6935_v55  ;;  %794 = vmatprep.subr.bf16.mxu1 %v7333_v2  ;;  %v676_v61 = vpop.permute.xlu0 %675  ;;  %v7504_v45 = vpop.permute.xlu1 %851 }
  0xce   :  { %696 = vmatprep.subr.bf16.mxu0 %v7333_v2  ;;  %5677 = vrot.lane.b32.xlu0 %v5676_v57, %s6619_s24  ;;  %v904_v30 = vsel %vm251_vm0, %v7516_v37, %v7527_v12  ;;  %v836_v60 = vsel %vm64_vm1, %v7516_v37, %v7527_v12 }
  0xcf   :  { %653 = vmatmul.mubr.bf16.vlgmr.msra.gmra.mrb[8].mxu1 %v607_v6  ;;  %v7471_v6 = vld [vmem:[%s10641_s1 + $0x64] ss:$8 sps:$4 sm:$0xff]  }
  0xd0   :  { %565 = vmatmul.mubr.bf16.vlgmr.msra.gmra.mrb[8].mxu0 %v526_v7  ;;  %795 = vmatpush1.bf16.msra.mxu1 %v7340_v46  ;;  %v684_v7 = vsel %vm94_vm10, %v683_v38, %v676_v61  ;;  %v41_v38 = vld [vmem:[%s10640_s0 + $0x38] sm:$0xf] }
  0xd1   :  { %697 = vmatpush1.bf16.msra.mxu0 %v7340_v46  ;;  %796 = vmatprep.subr.bf16.mxu1 %v7347_v47  ;;  %v908_v18 = vpop.permute.xlu0 %907  ;;  %v685_v22 = vsel %vm10736_vm11, %v684_v7, %v7318_v58  ;;  %v7548_v57 = vpop.permute.xlu1 %1067 }
  0xd2   :  { %698 = vmatprep.subr.bf16.mxu0 %v7347_v47  ;;  %5190 = vmatprep.mubr.msk.bf16.mxu0 %vm199_vm12, %v691_v8  ;;  %v775_v8 = vshrl.u32 %v772_v54, 16  ;;  %v686_v41 = vpack.c.bf16 %v685_v22, %v685_v22  ;;  %v922_v51 = vsel %vm90_vm8, %v904_v30, %v908_v18  ;;  %v1648_v22 = vsel %vm335_vm2, %v7122_v5, %v7119_v63 }
  0xd3   :  { %5192 = vmatprep.mubr.msk.bf16.mxu1 %vm199_vm12, %v789_v9  ;;  %v778_v9 = vshll.u32 %v772_v54, 16  ;;  %5682 = vrot.lane.b32.xlu1 %v5681_v42, %s6616_s15  ;;  %v923_v14 = vsel %vm92_vm9, %v922_v51, %v7407_v28  ;;  %v1871_v28 = vsel %vm573_vm5, %v7104_v49, %v7165_v24  ;;  %v1640_v49 = vsel %vm335_vm2, %v7170_v32, %v7167_v29 }
  0xd4   :  { %797 = vmatpush1.bf16.msra.mxu1 %v7356_v19  ;;  %5687 = vrot.lane.b32.xlu0 %v5686_v1, %s6618_s23  ;;  %v777_v0 = vrot.slane %v775_v8, 3  ;;  %v690_v20 = vrot.slane %v686_v41, 3  ;;  %v5691_v43 = vpack.i.bf16 %v1871_v28, %v1636_v34  ;;  %v1875_v1 = vsel %vm573_vm5, %v7170_v32, %v7167_v29 }
  0xd5   :  { %699 = vmatpush1.bf16.msra.mxu0 %v7356_v19  ;;  %798 = vmatprep.subr.bf16.mxu1 %v7363_v4  ;;  %v780_v33 = vrot.slane %v778_v9, 4  ;;  %v916_v15 = vpop.permute.xlu0 %915  ;;  %v5696_v7 = vpack.i.bf16 %v1875_v1, %v1640_v49  ;;  %v1644_v8 = vsel %vm335_vm2, %v7117_v62, %v7111_v52  ;;  %v7586_v9 = vrot.slane %v41_v38, 2  ;;  %v7588_v18 = vpop.permute.xlu1 %1075 }
  0xd6   :  { %700 = vmatprep.subr.bf16.mxu0 %v7363_v4  ;;  %v924_v54 = vsel %vm94_vm10, %v923_v14, %v916_v15  ;;  %v1083_v5 = vpack.c.bf16 %v7588_v18, %v7588_v18  ;;  %v7636_v14 = vld [vmem:[%s10641_s1 + $0x84] ss:$8 sps:$4 sm:$0x3f]   ;;  %v1060_v49 = vsel %vm409_vm3, %v7516_v37, %v7527_v12 }
  0xd7   :  { %v781_v58 = vor.u32 %v780_v33, %v777_v0  ;;  %v925_v61 = vsel %vm10736_vm11, %v924_v54, %v7451_v59  ;;  %v7579_v59 = vrot.slane %v37_v35, 3  ;;  %5692 = vrot.lane.b32.xlu1 %v5691_v43, %s6617_s16  ;;  %v7593_v0 = vrot.slane %v37_v35, 4 }
  0xd8   :  { %799 = vmatpush1.bf16.msra.mxu1 %v7376_v39  ;;  %v926_v10 = vpack.c.bf16 %v925_v61, %v925_v61  ;;  %v7595_v33 = vrot.slane %v41_v38, 3  ;;  %5697 = vrot.lane.b32.xlu0 %v5696_v7, %s6619_s24  ;;  %v1096_v26 = vshll.u32 %v1083_v5, 16 }
  0xd9   :  { %701 = vmatpush1.bf16.msra.mxu0 %v7376_v39  ;;  %800 = vmatprep.subr.bf16.mxu1 %v7383_v11  ;;  %v840_v36 = vpop.permute.xlu0 %839  ;;  %v1881_v41 = vsel %vm573_vm5, %v7586_v9, %v7579_v59 }
  0xda   :  { %702 = vmatprep.subr.bf16.mxu0 %v7383_v11  ;;  %v854_v40 = vsel %vm90_vm8, %v836_v60, %v840_v36  ;;  %v5701_v15 = vpack.i.bf16 %v1881_v41, %v1644_v8  ;;  %v1885_v63 = vsel %vm573_vm5, %v7595_v33, %v7593_v0  ;;  %v929_v36 = vshrl.u32 %v926_v10, 16 }
  0xdb   :  { %v1098_v34 = vrot.slane %v1096_v26, 2 }
  0xdc   :  { %801 = vmatpush1.bf16.msra.mxu1 %v7392_v44  ;;  %5702 = vrot.lane.b32.xlu1 %v5701_v15, %s6616_s15 }
  0xdd   :  { %703 = vmatpush1.bf16.msra.mxu0 %v7392_v44  ;;  %802 = vmatprep.subr.bf16.mxu1 %v7404_v25  ;;  %v848_v27 = vpop.permute.xlu0 %847 }
  0xde   :  { %704 = vmatprep.subr.bf16.mxu0 %v7404_v25 }
  0xe0   :  { %803 = vmatpush1.bf16.msra.mxu1 %v7420_v56 }
  0xe1   :  { %705 = vmatpush1.bf16.msra.mxu0 %v7420_v56  ;;  %804 = vmatprep.subr.bf16.mxu1 %v7439_v31  ;;  %v7542_v53 = vpop.permute.xlu0 %5607 }
  0xe2   :  { %706 = vmatprep.subr.bf16.mxu0 %v7439_v31  ;;  %v5609_v43 = vunpack.i.l.bf16 %v7542_v53  ;;  %v5610_v8 = vunpack.i.h.bf16 %v7542_v53 }
  0xe4   :  { %805 = vmatpush1.bf16.msra.mxu1 %v7463_v3  ;;  %v1078_v60 = vsel %vm90_vm8, %v1060_v49, %v5609_v43  ;;  %v1222_v43 = vsel %vm573_vm5, %v7516_v37, %v7527_v12 }
  0xe5   :  { %707 = vmatpush1.bf16.msra.mxu0 %v7463_v3  ;;  %806 = vmatprep.subr.bf16.mxu1 %v7471_v6  ;;  %v7566_v42 = vpop.permute.xlu0 %1071  ;;  %v1079_v7 = vsel %vm92_vm9, %v1078_v60, %v7548_v57 }
  0xe6   :  { %708 = vmatprep.subr.bf16.mxu0 %v7471_v6 }
  0xe8   :  { %807 = vmatpush1.bf16.msra.mxu1 %v7482_v13 }
  0xe9   :  { %709 = vmatpush1.bf16.msra.mxu0 %v7482_v13  ;;  %808 = vmatprep.subr.bf16.mxu1 %v7490_v21 }
  0xea   :  { %710 = vmatprep.subr.bf16.mxu0 %v7490_v21 }
  0xec   :  { %809 = vmatpush1.bf16.msra.mxu1 %v6903_v48 }
  0xed   :  { %711 = vmatpush1.bf16.msra.mxu0 %v6903_v48  ;;  %5191 = vmatprep.subr.msk.bf16.mxu1 %vm203_vm6, %v6913_v50  ;;  %v859_v48 = vpack.c.bf16 %v7504_v45, %v7504_v45 }
  0xee   :  { %5189 = vmatprep.subr.msk.bf16.mxu0 %vm203_vm6, %v6913_v50  ;;  %v941_v50 = vor.u32 %v940_v17, %v936_v16  ;;  %v5706_v16 = vpack.i.bf16 %v1885_v63, %v1648_v22  ;;  %v931_v17 = vshll.u32 %v926_v10, 16  ;;  %v1080_v10 = vsel %vm94_vm10, %v1079_v7, %v7566_v42  ;;  %v999_v63 = vpop.permute.xlu1 %998 }
  0xef   :  { %v987_v22 = vsel %vm335_vm2, %v7516_v37, %v7527_v12  ;;  %v1081_v57 = vsel %vm10736_vm11, %v1080_v10, %v7588_v18 }
  0xf0   :  { %811 = vmatpush1.bf16.msra.mxu1 %v6935_v55  ;;  %5707 = vrot.lane.b32.xlu0 %v5706_v16, %s6618_s23  ;;  %v933_v30 = vrot.slane %v931_v17, 1  ;;  %v1005_v53 = vsel %vm90_vm8, %v987_v22, %v5610_v8  ;;  %v1082_v41 = vpack.c.bf16 %v1081_v57, %v1081_v57  ;;  %v1145_v57 = vsel %vm495_vm4, %v7516_v37, %v7527_v12 }
  0xf1   :  { %713 = vmatpush1.bf16.msra.mxu0 %v6935_v55  ;;  %946 = vmatprep.subr.bf16.mxu1 %v7333_v2 }
  0xf2   :  { %863 = vmatprep.subr.bf16.mxu0 %v7333_v2  ;;  %v934_v28 = vor.u32 %v933_v30, %v929_v36  ;;  %v1085_v16 = vshrl.u32 %v1082_v41, 16  ;;  %v1088_v17 = vshll.u32 %v1082_v41, 16 }
  0xf3   :  { %827 = vmatmul.mubr.bf16.vlgmr.msra.gmra.mrb[12].mxu1 %v781_v58  ;;  %v7611_v58 = vpop.permute.xlu0 %994 }
  0xf4   :  { %729 = vmatmul.mubr.bf16.vlgmr.msra.gmra.mrb[12].mxu0 %v690_v20  ;;  %947 = vmatpush1.bf16.msra.mxu1 %v7340_v46  ;;  %v855_v20 = vsel %vm92_vm9, %v854_v40, %v7495_v23  ;;  %v7625_v23 = vld [vmem:[%s10641_s1 + $0x70] ss:$8 sps:$4 sm:$0xff]   ;;  %v1006_v15 = vsel %vm92_vm9, %v1005_v53, %v7611_v58  ;;  %v1090_v26 = vrot.slane %v1088_v17, 2 }
  0xf5   :  { %864 = vmatpush1.bf16.msra.mxu0 %v7340_v46  ;;  %948 = vmatprep.subr.bf16.mxu1 %v7347_v47  ;;  %v1007_v18 = vsel %vm94_vm10, %v1006_v15, %v999_v63  ;;  %v101_v15 = vlaneseq }
  0xf6   :  { %865 = vmatprep.subr.bf16.mxu0 %v7347_v47  ;;  %5194 = vmatprep.mubr.msk.bf16.mxu0 %vm199_vm12, %v859_v48  ;;  %v856_v48 = vsel %vm94_vm10, %v855_v20, %v848_v27 }
  0xf7   :  { %5196 = vmatprep.mubr.msk.bf16.mxu1 %vm199_vm12, %v941_v50  ;;  %v1093_v50 = vshrl.u32 %v1083_v5, 16  ;;  %v7628_v51 = vpop.permute.xlu0 %1002  ;;  %v857_v27 = vsel %vm10736_vm11, %v856_v48, %v7504_v45 }
  0xf8   :  { %949 = vmatpush1.bf16.msra.mxu1 %v7356_v19  ;;  %v1010_v35 = vpack.c.bf16 %v7628_v51, %v7628_v51  ;;  %v858_v38 = vpack.c.bf16 %v857_v27, %v857_v27  ;;  %v1008_v58 = vsel %vm10736_vm11, %v1007_v18, %v7628_v51 }
  0xf9   :  { %866 = vmatpush1.bf16.msra.mxu0 %v7356_v19  ;;  %950 = vmatprep.subr.bf16.mxu1 %v7363_v4  ;;  %v1095_v54 = vrot.slane %v1093_v50, 1  ;;  %v1087_v50 = vrot.slane %v1085_v16, 1  ;;  %v1009_v30 = vpack.c.bf16 %v1008_v58, %v1008_v58 }
  0xfa   :  { %867 = vmatprep.subr.bf16.mxu0 %v7363_v4  ;;  %v1014_v61 = vrot.slane %v1010_v35, 1 }
  0xfb   :  { %v1099_v45 = vor.u32 %v1098_v34, %v1095_v54  ;;  %v7666_v1 = vpop.permute.xlu0 %5617  ;;  %v1091_v54 = vor.u32 %v1090_v26, %v1087_v50 }
  0xfc   :  { %951 = vmatpush1.bf16.msra.mxu1 %v7376_v39  ;;  %v5619_v49 = vunpack.i.l.bf16 %v7666_v1  ;;  %v5620_v63 = vunpack.i.h.bf16 %v7666_v1  ;;  %v7763_v1 = vshrl.u32 %v101_v15, 7 }
  0xfd   :  { %868 = vmatpush1.bf16.msra.mxu0 %v7376_v39  ;;  %952 = vmatprep.subr.bf16.mxu1 %v7383_v11 }
  0xfe   :  { %869 = vmatprep.subr.bf16.mxu0 %v7383_v11  ;;  %10772 = vst [vmem:[#allocation5_spill] sm:$0xff] %v7763_v1 }
  0xff   :  { %v5628_v40 = vpop.permute.xlu0 %5627 }
 0x100   :  { %953 = vmatpush1.bf16.msra.mxu1 %v7392_v44  ;;  %v7688_v42 = vunpack.i.l.bf16 %v5628_v40  ;;  %v7705_v36 = vunpack.i.h.bf16 %v5628_v40 }
 0x101   :  { %870 = vmatpush1.bf16.msra.mxu0 %v7392_v44  ;;  %954 = vmatprep.subr.bf16.mxu1 %v7404_v25 }
 0x102   :  { %871 = vmatprep.subr.bf16.mxu0 %v7404_v25  ;;  %v1247_v5 = vpack.c.bf16 %v7688_v42, %v7688_v42  ;;  %v1172_v34 = vpack.c.bf16 %v7705_v36, %v7705_v36 }
 0x103   :  { %v7735_v8 = vpop.permute.xlu0 %5637 }
 0x104   :  { %955 = vmatpush1.bf16.msra.mxu1 %v7420_v56  ;;  %v1257_v20 = vshrl.u32 %v1247_v5, 16  ;;  %v1260_v48 = vshll.u32 %v1247_v5, 16 }
 0x105   :  { %872 = vmatpush1.bf16.msra.mxu0 %v7420_v56  ;;  %956 = vmatprep.subr.bf16.mxu1 %v7439_v31 }
 0x106   :  { %873 = vmatprep.subr.bf16.mxu0 %v7439_v31  ;;  %v1259_v51 = vrot.slane %v1257_v20, 2  ;;  %v1262_v27 = vrot.slane %v1260_v48, 3 }
 0x107   :  { %v7749_v41 = vpop.permute.xlu0 %5647 }
 0x108   :  { %957 = vmatpush1.bf16.msra.mxu1 %v7463_v3  ;;  %v1263_v35 = vor.u32 %v1262_v27, %v1259_v51  ;;  %v5650_v17 = vunpack.i.h.bf16 %v7749_v41  ;;  %v5649_v58 = vunpack.i.l.bf16 %v7749_v41 }
 0x109   :  { %874 = vmatpush1.bf16.msra.mxu0 %v7463_v3  ;;  %958 = vmatprep.subr.bf16.mxu1 %v7471_v6 }
 0x10a   :  { %875 = vmatprep.subr.bf16.mxu0 %v7471_v6  ;;  %v1420_v26 = vpack.c.bf16 %v5650_v17, %v5649_v58 }
 0x10b   :  { %v7761_v20 = vpop.permute.xlu0 %5657 }
 0x10c   :  { %959 = vmatpush1.bf16.msra.mxu1 %v7482_v13 }
 0x10d   :  { %876 = vmatpush1.bf16.msra.mxu0 %v7482_v13  ;;  %960 = vmatprep.subr.bf16.mxu1 %v7490_v21 }
 0x10e   :  { %877 = vmatprep.subr.bf16.mxu0 %v7490_v21 }
 0x110   :  { %961 = vmatpush1.bf16.msra.mxu1 %v7625_v23 }
 0x111   :  { %878 = vmatpush1.bf16.msra.mxu0 %v7625_v23  ;;  %5195 = vmatprep.subr.msk.bf16.mxu1 %vm203_vm6, %v7636_v14 }
 0x112   :  { %5193 = vmatprep.subr.msk.bf16.mxu0 %vm203_vm6, %v7636_v14 }
 0x114   :  { %963 = vmatpush1.bf16.msra.mxu1 %v6935_v55 }
 0x115   :  { %880 = vmatpush1.bf16.msra.mxu0 %v6935_v55  ;;  %1104 = vmatprep.subr.bf16.mxu1 %v7333_v2 }
 0x116   :  { %1019 = vmatprep.subr.bf16.mxu0 %v7333_v2 }
 0x117   :  { %979 = vmatmul.mubr.bf16.vlgmr.msra.gmra.mrb[16].mxu1 %v934_v28  ;;  %v1013_v28 = vrot.slane %v1009_v30, 1  ;;  %v10651_v30 = vsub.s32 0, %v7763_v1 }
 0x118   :  { %896 = vmatmul.mubr.bf16.vlgmr.msra.gmra.mrb[16].mxu0 %v858_v38  ;;  %1105 = vmatpush1.bf16.msra.mxu1 %v7340_v46  ;;  %v1176_v38 = vrot.slane %v1172_v34, 2  ;;  %v10650_v34 = vsub.s32 1, %v7763_v1 }
 0x119   :  { %1106 = vmatprep.subr.bf16.mxu1 %v7347_v47  ;;  %1020 = vmatpush1.bf16.msra.mxu0 %v7340_v46 }
 0x11a   :  { %1021 = vmatprep.subr.bf16.mxu0 %v7347_v47  ;;  %5200 = vmatprep.mubr.msk.bf16.mxu1 %vm199_vm12, %v1099_v45  ;;  %v5613_v45 = vpop.permute.xlu1 %5612 }
 0x11b   :  { %5198 = vmatprep.mubr.msk.bf16.mxu0 %vm199_vm12, %v1014_v61  ;;  %v5614_v61 = vunpack.i.l.bf16 %v5613_v45  ;;  %v5615_v40 = vunpack.i.h.bf16 %v5613_v45  ;;  %v1433_v45 = vshll.u32 %v1420_v26, 16 }
 0x11c   :  { %1107 = vmatpush1.bf16.msra.mxu1 %v7356_v19 }
 0x11d   :  { %1108 = vmatprep.subr.bf16.mxu1 %v7363_v4  ;;  %1022 = vmatpush1.bf16.msra.mxu0 %v7356_v19  ;;  %v1242_v7 = vsel %vm90_vm8, %v1222_v43, %v5614_v61  ;;  %v1167_v18 = vsel %vm90_vm8, %v1145_v57, %v5615_v40  ;;  %v1435_v40 = vrot.slane %v1433_v45, 4 }
 0x11e   :  { %1023 = vmatprep.subr.bf16.mxu0 %v7363_v4  ;;  %v5623_v60 = vpop.permute.xlu1 %5622  ;;  %v1243_v22 = vsel %vm92_vm9, %v1242_v7, %v5619_v49  ;;  %v1168_v48 = vsel %vm92_vm9, %v1167_v18, %v5620_v63 }
 0x11f   :  { %v5624_v10 = vunpack.i.l.bf16 %v5623_v60  ;;  %v5625_v16 = vunpack.i.h.bf16 %v5623_v60 }
 0x120   :  { %1109 = vmatpush1.bf16.msra.mxu1 %v7376_v39 }
 0x121   :  { %1110 = vmatprep.subr.bf16.mxu1 %v7383_v11  ;;  %1024 = vmatpush1.bf16.msra.mxu0 %v7376_v39  ;;  %v1244_v53 = vsel %vm94_vm10, %v1243_v22, %v5624_v10 }
 0x122   :  { %1025 = vmatprep.subr.bf16.mxu0 %v7383_v11  ;;  %v1245_v5 = vsel %vm10736_vm11, %v1244_v53, %v7688_v42  ;;  %v1169_v42 = vsel %vm94_vm10, %v1168_v48, %v5625_v16 }
 0x123   :  { %v1246_v50 = vpack.c.bf16 %v1245_v5, %v1245_v5 }
 0x124   :  { %1111 = vmatpush1.bf16.msra.mxu1 %v7392_v44 }
 0x125   :  { %1112 = vmatprep.subr.bf16.mxu1 %v7404_v25  ;;  %1026 = vmatpush1.bf16.msra.mxu0 %v7392_v44  ;;  %v1249_v51 = vshrl.u32 %v1246_v50, 16  ;;  %v1252_v27 = vshll.u32 %v1246_v50, 16 }
 0x126   :  { %1027 = vmatprep.subr.bf16.mxu0 %v7404_v25 }
 0x127   :  { %v1251_v43 = vrot.slane %v1249_v51, 2  ;;  %v1254_v49 = vrot.slane %v1252_v27, 3 }
 0x128   :  { %1113 = vmatpush1.bf16.msra.mxu1 %v7420_v56 }
 0x129   :  { %1114 = vmatprep.subr.bf16.mxu1 %v7439_v31  ;;  %1028 = vmatpush1.bf16.msra.mxu0 %v7420_v56  ;;  %v1255_v63 = vor.u32 %v1254_v49, %v1251_v43  ;;  %v5633_v43 = vpop.permute.xlu1 %5632 }
 0x12a   :  { %1029 = vmatprep.subr.bf16.mxu0 %v7439_v31 }
 0x12c   :  { %1115 = vmatpush1.bf16.msra.mxu1 %v7463_v3 }
 0x12d   :  { %1116 = vmatprep.subr.bf16.mxu1 %v7471_v6  ;;  %1030 = vmatpush1.bf16.msra.mxu0 %v7463_v3 }
 0x12e   :  { %1031 = vmatprep.subr.bf16.mxu0 %v7471_v6 }
 0x130   :  { %1117 = vmatpush1.bf16.msra.mxu1 %v7482_v13 }
 0x131   :  { %1118 = vmatprep.subr.bf16.mxu1 %v7490_v21  ;;  %1032 = vmatpush1.bf16.msra.mxu0 %v7482_v13 }
 0x132   :  { %1033 = vmatprep.subr.bf16.mxu0 %v7490_v21 }
 0x134   :  { %1119 = vmatpush1.bf16.msra.mxu1 %v7625_v23 }
 0x135   :  { %5199 = vmatprep.subr.msk.bf16.mxu1 %vm203_vm6, %v7636_v14  ;;  %1034 = vmatpush1.bf16.msra.mxu0 %v7625_v23 }
 0x136   :  { %5197 = vmatprep.subr.msk.bf16.mxu0 %vm203_vm6, %v7636_v14 }
 0x138   :  { %1121 = vmatpush1.bf16.msra.mxu1 %v6935_v55 }
 0x139   :  { %1268 = vmatprep.subr.bf16.mxu1 %v7333_v2  ;;  %1036 = vmatpush1.bf16.msra.mxu0 %v6935_v55 }
 0x13a   :  { %1181 = vmatprep.subr.bf16.mxu0 %v7333_v2 }
 0x13b   :  { %1137 = vmatmul.mubr.bf16.vlgmr.msra.gmra.mrb[20].mxu1 %v1091_v54  ;;  %v60_v54 = vld [vmem:[%s10642_s2] sm:$0x3]  ;;  %s6630_s2 = smov 120  }
 0x13c   :  { %1269 = vmatpush1.bf16.msra.mxu1 %v7340_v46  ;;  %1052 = vmatmul.mubr.bf16.vlgmr.msra.gmra.mrb[20].mxu0 %v1013_v28  ;;  %v7781_v28 = vpop.permute.xlu0 %5667  ;;  %v7790_v61 = vrot.slane %v60_v54, %v10651_v30 }
 0x13d   :  { %1270 = vmatprep.subr.bf16.mxu1 %v7347_v47  ;;  %1182 = vmatpush1.bf16.msra.mxu0 %v7340_v46  ;;  %v7793_v60 = vunpack.i.l.bf16 %v7781_v28 }
 0x13e   :  { %1183 = vmatprep.subr.bf16.mxu0 %v7347_v47  ;;  %5204 = vmatprep.mubr.msk.bf16.mxu1 %vm199_vm12, %v1263_v35  ;;  %v1170_v35 = vsel %vm10736_vm11, %v1169_v42, %v7705_v36  ;;  %v7797_v36 = vrot.slane %v60_v54, %v10650_v34 }
 0x13f   :  { %5202 = vmatprep.mubr.msk.bf16.mxu0 %vm199_vm12, %v1176_v38  ;;  %v1430_v38 = vshrl.u32 %v1420_v26, 16  ;;  %v1171_v7 = vpack.c.bf16 %v1170_v35, %v1170_v35  ;;  %v1334_v18 = vpack.c.bf16 %v7793_v60, %v7793_v60 }
 0x140   :  { %1271 = vmatpush1.bf16.msra.mxu1 %v7356_v19 }
 0x141   :  { %1272 = vmatprep.subr.bf16.mxu1 %v7363_v4  ;;  %1184 = vmatpush1.bf16.msra.mxu0 %v7356_v19  ;;  %v1432_v22 = vrot.slane %v1430_v38, 3  ;;  %v1175_v42 = vrot.slane %v1171_v7, 2  ;;  %v1338_v49 = vrot.slane %v1334_v18, 3  ;;  %v5635_v7 = vunpack.i.h.bf16 %v5633_v43 }
 0x142   :  { %1185 = vmatprep.subr.bf16.mxu0 %v7363_v4 }
 0x143   :  { %v1436_v38 = vor.u32 %v1435_v40, %v1432_v22  ;;  %v5643_v22 = vpop.permute.xlu1 %5642  ;;  %v5640_v40 = vunpack.i.h.bf16 %v7735_v8 }
 0x144   :  { %1273 = vmatpush1.bf16.msra.mxu1 %v7376_v39  ;;  %v5644_v18 = vunpack.i.l.bf16 %v5643_v22 }
 0x145   :  { %1274 = vmatprep.subr.bf16.mxu1 %v7383_v11  ;;  %1186 = vmatpush1.bf16.msra.mxu0 %v7376_v39 }
 0x146   :  { %1187 = vmatprep.subr.bf16.mxu0 %v7383_v11 }
 0x148   :  { %1275 = vmatpush1.bf16.msra.mxu1 %v7392_v44 }
 0x149   :  { %1276 = vmatprep.subr.bf16.mxu1 %v7404_v25  ;;  %1188 = vmatpush1.bf16.msra.mxu0 %v7392_v44 }
 0x14a   :  { %1189 = vmatprep.subr.bf16.mxu0 %v7404_v25 }
 0x14c   :  { %1277 = vmatpush1.bf16.msra.mxu1 %v7420_v56 }
 0x14d   :  { %1278 = vmatprep.subr.bf16.mxu1 %v7439_v31  ;;  %1190 = vmatpush1.bf16.msra.mxu0 %v7420_v56 }
 0x14e   :  { %1191 = vmatprep.subr.bf16.mxu0 %v7439_v31 }
 0x150   :  { %1279 = vmatpush1.bf16.msra.mxu1 %v7463_v3 }
 0x151   :  { %1280 = vmatprep.subr.bf16.mxu1 %v7471_v6  ;;  %1192 = vmatpush1.bf16.msra.mxu0 %v7463_v3 }
 0x152   :  { %1193 = vmatprep.subr.bf16.mxu0 %v7471_v6 }
 0x154   :  { %1281 = vmatpush1.bf16.msra.mxu1 %v7482_v13 }
 0x155   :  { %1282 = vmatprep.subr.bf16.mxu1 %v7490_v21  ;;  %1194 = vmatpush1.bf16.msra.mxu0 %v7482_v13 }
 0x156   :  { %1195 = vmatprep.subr.bf16.mxu0 %v7490_v21 }
 0x158   :  { %1283 = vmatpush1.bf16.msra.mxu1 %v7625_v23 }
 0x159   :  { %5203 = vmatprep.subr.msk.bf16.mxu1 %vm203_vm6, %v7636_v14  ;;  %1196 = vmatpush1.bf16.msra.mxu0 %v7625_v23 }
 0x15a   :  { %v328_v10 = vpop.f32.mrb[0].mxu1  ;;  %5201 = vmatprep.subr.msk.bf16.mxu0 %vm203_vm6, %v7636_v14 }
 0x15b   :  { %v329_v57 = vadd.f32 %v328_v10, %v7790_v61  ;;  %v244_v53 = vpop.f32.mrb[0].mxu0  ;;  %v330_v15 = vpop.f32.mrb[1].mxu1  ;;  %v5634_v10 = vunpack.i.l.bf16 %v5633_v43 }
 0x15c   :  { %v245_v5 = vadd.f32 %v244_v53, %v7790_v61  ;;  %v331_v16 = vadd.f32 %v330_v15, %v7797_v36  ;;  %v246_v48 = vpop.f32.mrb[1].mxu0  ;;  %v332_v50 = vpop.f32.mrb[2].mxu1  ;;  %1285 = vmatpush1.bf16.msra.mxu1 %v6935_v55  ;;  %v1412_v53 = vsel %vm90_vm8, %v7516_v37, %v5635_v7 }
 0x15d   :  { %v247_v26 = vadd.f32 %v246_v48, %v7797_v36  ;;  %v333_v51 = vpop.f32.mrb[3].mxu1  ;;  %v248_v27 = vpop.f32.mrb[2].mxu0  ;;  %1441 = vmatprep.subr.bf16.mxu1 %v7333_v2  ;;  %1198 = vmatpush1.bf16.msra.mxu0 %v6935_v55  ;;  %v1411_v15 = vsel %vm90_vm8, %v7527_v12, %v5634_v10 }
 0x15e   :  { %v7814_v54 = vmax.f32 %v245_v5, %v329_v57  ;;  %v249_v35 = vpop.f32.mrb[3].mxu0  ;;  %1343 = vmatprep.subr.bf16.mxu0 %v7333_v2  ;;  %v5639_v57 = vunpack.i.l.bf16 %v7735_v8  ;;  %v7838_v5 = vpop.permute.xlu1 %5652  ;;  %v1414_v8 = vsel %vm92_vm9, %v1412_v53, %v5640_v40  ;;  %v5659_v51 = vunpack.i.l.bf16 %v7761_v20 }
 0x15f   :  { %v7817_v45 = vmax.f32 %v247_v26, %v331_v16  ;;  %1301 = vmatmul.mubr.bf16.vlgmr.msra.gmra.mrb[24].mxu1 %v1255_v63  ;;  %v5645_v63 = vunpack.i.h.bf16 %v5643_v22  ;;  %v5654_v48 = vunpack.i.l.bf16 %v7838_v5  ;;  %v1309_v26 = vsel %vm661_vm7, %v7516_v37, %v7527_v12  ;;  %v7879_v7 = vpop.permute.xlu0 %5677 }
 0x160   :  { %1442 = vmatpush1.bf16.msra.mxu1 %v7340_v46  ;;  %1214 = vmatmul.mubr.bf16.vlgmr.msra.gmra.mrb[24].mxu0 %v1175_v42  ;;  %v1413_v16 = vsel %vm92_vm9, %v1411_v15, %v5639_v57  ;;  %v7869_v12 = vunpack.i.h.bf16 %v7781_v28 }
 0x161   :  { %1443 = vmatprep.subr.bf16.mxu1 %v7347_v47  ;;  %1344 = vmatpush1.bf16.msra.mxu0 %v7340_v46  ;;  %v1415_v50 = vsel %vm94_vm10, %v1413_v16, %v5644_v18  ;;  %v1416_v42 = vsel %vm94_vm10, %v1414_v8, %v5645_v63  ;;  %v1329_v43 = vsel %vm90_vm8, %v1309_v26, %v5654_v48 }
 0x162   :  { %1345 = vmatprep.subr.bf16.mxu0 %v7347_v47  ;;  %5208 = vmatprep.mubr.msk.bf16.mxu1 %vm199_vm12, %v1436_v38  ;;  %v7854_v27 = vpop.permute.xlu1 %5662  ;;  %v1417_v35 = vsel %vm10736_vm11, %v1415_v50, %v5649_v58  ;;  %v1418_v38 = vsel %vm10736_vm11, %v1416_v42, %v5650_v17  ;;  %v1330_v58 = vsel %vm92_vm9, %v1329_v43, %v5659_v51 }
 0x163   :  { %5206 = vmatprep.mubr.msk.bf16.mxu0 %vm199_vm12, %v1338_v49  ;;  %v5664_v37 = vunpack.i.l.bf16 %v7854_v27  ;;  %v1419_v49 = vpack.c.bf16 %v1418_v38, %v1417_v35  ;;  %v1574_v17 = vpack.c.bf16 %v7869_v12, %v7869_v12  ;;  %v7888_v63 = vpop.permute.xlu0 %5687 }
 0x164   :  { %1444 = vmatpush1.bf16.msra.mxu1 %v7356_v19  ;;  %v7897_v26 = vunpack.i.l.bf16 %v7888_v63 }
 0x165   :  { %1445 = vmatprep.subr.bf16.mxu1 %v7363_v4  ;;  %1346 = vmatpush1.bf16.msra.mxu0 %v7356_v19  ;;  %v1331_v41 = vsel %vm94_vm10, %v1330_v58, %v5664_v37  ;;  %v1422_v28 = vshrl.u32 %v1419_v49, 16  ;;  %v1425_v10 = vshll.u32 %v1419_v49, 16  ;;  %v1585_v40 = vshll.u32 %v1574_v17, 16 }
 0x166   :  { %1347 = vmatprep.subr.bf16.mxu0 %v7363_v4  ;;  %v1332_v22 = vsel %vm10736_vm11, %v1331_v41, %v7793_v60  ;;  %v1583_v8 = vshrl.u32 %v1574_v17, 16 }
 0x167   :  { %v1424_v57 = vrot.slane %v1422_v28, 3  ;;  %v1427_v53 = vrot.slane %v1425_v10, 4  ;;  %v1333_v15 = vpack.c.bf16 %v1332_v22, %v1332_v22  ;;  %v1587_v16 = vrot.slane %v1585_v40, 1  ;;  %v7913_v40 = vld [vmem:[%s10640_s0 + $0x30] sm:$0xff] }
 0x168   :  { %1446 = vmatpush1.bf16.msra.mxu1 %v7376_v39 }
 0x169   :  { %1447 = vmatprep.subr.bf16.mxu1 %v7383_v11  ;;  %1348 = vmatpush1.bf16.msra.mxu0 %v7376_v39  ;;  %v1428_v42 = vor.u32 %v1427_v53, %v1424_v57  ;;  %v1337_v37 = vrot.slane %v1333_v15, 3  ;;  %v1588_v10 = vor.u32 %v1587_v16, %v1583_v8  ;;  %v7916_v57 = vrot.slane %v7913_v40, 7  ;;  %v7929_v15 = vld [vmem:[%s10640_s0 + $0x10] sm:$0xff] }
 0x16a   :  { %1349 = vmatprep.subr.bf16.mxu0 %v7383_v11  ;;  %v1506_v53 = vpack.c.bf16 %v7897_v26, %v7897_v26  ;;  %v7970_v16 = vunpack.i.h.bf16 %v7888_v63 }
 0x16c   :  { %1448 = vmatpush1.bf16.msra.mxu1 %v7392_v44 }
 0x16d   :  { %1449 = vmatprep.subr.bf16.mxu1 %v7404_v25  ;;  %1350 = vmatpush1.bf16.msra.mxu0 %v7392_v44 }
 0x16e   :  { %1351 = vmatprep.subr.bf16.mxu0 %v7404_v25 }
 0x170   :  { %1450 = vmatpush1.bf16.msra.mxu1 %v7420_v56 }
 0x171   :  { %1451 = vmatprep.subr.bf16.mxu1 %v7439_v31  ;;  %1352 = vmatpush1.bf16.msra.mxu0 %v7420_v56 }
 0x172   :  { %1353 = vmatprep.subr.bf16.mxu0 %v7439_v31 }
 0x174   :  { %1452 = vmatpush1.bf16.msra.mxu1 %v7463_v3 }
 0x175   :  { %1453 = vmatprep.subr.bf16.mxu1 %v7471_v6  ;;  %1354 = vmatpush1.bf16.msra.mxu0 %v7463_v3 }
 0x176   :  { %1355 = vmatprep.subr.bf16.mxu0 %v7471_v6 }
 0x178   :  { %1454 = vmatpush1.bf16.msra.mxu1 %v7482_v13 }
 0x179   :  { %1455 = vmatprep.subr.bf16.mxu1 %v7490_v21  ;;  %1356 = vmatpush1.bf16.msra.mxu0 %v7482_v13 }
 0x17a   :  { %1357 = vmatprep.subr.bf16.mxu0 %v7490_v21 }
 0x17c   :  { %1456 = vmatpush1.bf16.msra.mxu1 %v7625_v23 }
 0x17d   :  { %5207 = vmatprep.subr.msk.bf16.mxu1 %vm203_vm6, %v7636_v14  ;;  %1358 = vmatpush1.bf16.msra.mxu0 %v7625_v23 }
 0x17e   :  { %v488_v18 = vpop.f32.mrb[4].mxu1  ;;  %5205 = vmatprep.subr.msk.bf16.mxu0 %vm203_vm6, %v7636_v14 }
 0x17f   :  { %v489_v60 = vadd.f32 %v488_v18, %v7790_v61  ;;  %v402_v48 = vpop.f32.mrb[4].mxu0  ;;  %v490_v50 = vpop.f32.mrb[5].mxu1  ;;  %v1551_v18 = vsel %vm251_vm0, %v7916_v57, %v7929_v15  ;;  %vm2188_vm0 = vcmask 326656  }
 0x180   :  { %v403_v51 = vadd.f32 %v402_v48, %v7790_v61  ;;  %v491_v35 = vadd.f32 %v490_v50, %v7797_v36  ;;  %v404_v38 = vpop.f32.mrb[5].mxu0  ;;  %v492_v43 = vpop.f32.mrb[6].mxu1  ;;  %1458 = vmatpush1.bf16.msra.mxu1 %v6935_v55  ;;  %v1730_v50 = vpack.c.bf16 %v7970_v16, %v7970_v16 }
 0x181   :  { %v405_v49 = vadd.f32 %v404_v38, %v7797_v36  ;;  %v406_v58 = vpop.f32.mrb[6].mxu0  ;;  %v493_v41 = vpop.f32.mrb[7].mxu1  ;;  %1593 = vmatprep.subr.bf16.mxu1 %v7333_v2  ;;  %1360 = vmatpush1.bf16.msra.mxu0 %v6935_v55 }
 0x182   :  { %v7905_v17 = vmax.f32 %v403_v51, %v489_v60  ;;  %v407_v28 = vpop.f32.mrb[7].mxu0  ;;  %1510 = vmatprep.subr.bf16.mxu0 %v7333_v2  ;;  %v5655_v2 = vunpack.i.h.bf16 %v7838_v5  ;;  %v5665_v5 = vunpack.i.h.bf16 %v7854_v27  ;;  %v7964_v27 = vpop.permute.xlu0 %5697  ;;  %v1740_v51 = vshrl.u32 %v1730_v50, 16 }
 0x183   :  { %v7908_v22 = vmax.f32 %v405_v49, %v491_v35  ;;  %1474 = vmatmul.mubr.bf16.vlgmr.msra.gmra.mrb[28].mxu1 %v1428_v42  ;;  %v1743_v35 = vshll.u32 %v1730_v50, 16  ;;  %v8041_v50 = vld [vmem:[%s10641_s1 + $0x10] ss:$8 sps:$4 sm:$0xff]  }
 0x184   :  { %1594 = vmatpush1.bf16.msra.mxu1 %v7340_v46  ;;  %1376 = vmatmul.mubr.bf16.vlgmr.msra.gmra.mrb[28].mxu0 %v1337_v37  ;;  %v1742_v41 = vrot.slane %v1740_v51, 1  ;;  %v8060_v51 = vld [vmem:[%s10641_s1 + $0x20] ss:$8 sps:$4 sm:$0xff]  }
 0x185   :  { %1595 = vmatprep.subr.bf16.mxu1 %v7347_v47  ;;  %1511 = vmatpush1.bf16.msra.mxu0 %v7340_v46  ;;  %v5660_v46 = vunpack.i.h.bf16 %v7761_v20  ;;  %v1745_v28 = vrot.slane %v1743_v35, 2  ;;  %v8066_v35 = vld [vmem:[%s10641_s1 + $0x34] ss:$8 sps:$4 sm:$0xff]  }
 0x186   :  { %1512 = vmatprep.subr.bf16.mxu0 %v7347_v47  ;;  %5212 = vmatprep.mubr.msk.bf16.mxu1 %vm199_vm12, %v1588_v10  ;;  %v1569_v47 = vsel %vm90_vm8, %v1551_v18, %v5655_v2  ;;  %v7982_v63 = vpop.permute.xlu0 %5707 }
 0x187   :  { %5210 = vmatprep.mubr.msk.bf16.mxu0 %vm199_vm12, %v1506_v53  ;;  %v1570_v8 = vsel %vm92_vm9, %v1569_v47, %v5660_v46  ;;  %v7989_v38 = vunpack.i.l.bf16 %v7982_v63 }
 0x188   :  { %1596 = vmatpush1.bf16.msra.mxu1 %v7356_v19  ;;  %v1571_v20 = vsel %vm94_vm10, %v1570_v8, %v5665_v5 }
 0x189   :  { %1597 = vmatprep.subr.bf16.mxu1 %v7363_v4  ;;  %1513 = vmatpush1.bf16.msra.mxu0 %v7356_v19  ;;  %v7951_v19 = vpop.permute.xlu1 %5672  ;;  %v1657_v10 = vpack.c.bf16 %v7989_v38, %v7989_v38 }
 0x18a   :  { %1514 = vmatprep.subr.bf16.mxu0 %v7363_v4  ;;  %v1572_v4 = vsel %vm10736_vm11, %v1571_v20, %v7869_v12  ;;  %v8009_v20 = vld [vmem:[%s10641_s1 + $0x4] ss:$8 sps:$4 sm:$0xff]  }
 0x18c   :  { %1598 = vmatpush1.bf16.msra.mxu1 %v7376_v39 }
 0x18d   :  { %1599 = vmatprep.subr.bf16.mxu1 %v7383_v11  ;;  %1515 = vmatpush1.bf16.msra.mxu0 %v7376_v39  ;;  %v5674_v39 = vunpack.i.l.bf16 %v7951_v19  ;;  %v7967_v12 = vpop.permute.xlu1 %5682 }
 0x18e   :  { %1516 = vmatprep.subr.bf16.mxu0 %v7383_v11  ;;  %v1483_v11 = vsel %vm64_vm1, %v7916_v57, %v7929_v15  ;;  %vm2190_vm1 = vcmask 408576  }
 0x190   :  { %1600 = vmatpush1.bf16.msra.mxu1 %v7392_v44 }
 0x191   :  { %1601 = vmatprep.subr.bf16.mxu1 %v7404_v25  ;;  %1517 = vmatpush1.bf16.msra.mxu0 %v7392_v44  ;;  %v1573_v44 = vpack.c.bf16 %v1572_v4, %v1572_v4 }
 0x192   :  { %1518 = vmatprep.subr.bf16.mxu0 %v7404_v25  ;;  %v5679_v25 = vunpack.i.l.bf16 %v7879_v7 }
 0x193   :  { %v1578_v60 = vshll.u32 %v1573_v44, 16  ;;  %v1576_v42 = vshrl.u32 %v1573_v44, 16  ;;  %v1746_v44 = vor.u32 %v1745_v28, %v1742_v41  ;;  %v5699_v41 = vunpack.i.l.bf16 %v7964_v27 }
 0x194   :  { %1602 = vmatpush1.bf16.msra.mxu1 %v7420_v56 }
 0x195   :  { %1603 = vmatprep.subr.bf16.mxu1 %v7439_v31  ;;  %1519 = vmatpush1.bf16.msra.mxu0 %v7420_v56  ;;  %v1501_v56 = vsel %vm90_vm8, %v1483_v11, %v5674_v39 }
 0x196   :  { %1520 = vmatprep.subr.bf16.mxu0 %v7439_v31  ;;  %v5684_v31 = vunpack.i.l.bf16 %v7967_v12  ;;  %v1502_v48 = vsel %vm92_vm9, %v1501_v56, %v5679_v25  ;;  %v1661_v25 = vrot.slane %v1657_v10, 1 }
 0x198   :  { %1604 = vmatpush1.bf16.msra.mxu1 %v7463_v3 }
 0x199   :  { %1605 = vmatprep.subr.bf16.mxu1 %v7471_v6  ;;  %1521 = vmatpush1.bf16.msra.mxu0 %v7463_v3  ;;  %v1580_v3 = vrot.slane %v1578_v60, 1  ;;  %v8023_v60 = vld [vmem:[%s10641_s1] ss:$8 sps:$4 sm:$0xff]  }
 0x19a   :  { %1522 = vmatprep.subr.bf16.mxu0 %v7471_v6  ;;  %v1503_v6 = vsel %vm94_vm10, %v1502_v48, %v5684_v31  ;;  %v8029_v31 = vld [vmem:[%s10641_s1 + $0x14] ss:$8 sps:$4 sm:$0xff]   ;;  %v5675_v48 = vunpack.i.h.bf16 %v7951_v19  ;;  %v5680_v19 = vunpack.i.h.bf16 %v7879_v7  ;;  %v5685_v7 = vunpack.i.h.bf16 %v7967_v12  ;;  %v8086_v12 = vld [vmem:[%s10641_s1 + $0x44] ss:$8 sps:$4 sm:$0xff]  }
 0x19b   :  { %v1581_v37 = vor.u32 %v1580_v3, %v1576_v42  ;;  %v1707_v42 = vsel %vm409_vm3, %v7916_v57, %v7929_v15  ;;  %v8050_v3 = vld [vmem:[%s10641_s1 + $0x24] ss:$8 sps:$4 sm:$0xff]   ;;  %vm2192_vm3 = vcmask 490496  }
 0x19c   :  { %1606 = vmatpush1.bf16.msra.mxu1 %v7482_v13 }
 0x19d   :  { %1607 = vmatprep.subr.bf16.mxu1 %v7490_v21  ;;  %1523 = vmatpush1.bf16.msra.mxu0 %v7482_v13  ;;  %v1504_v13 = vsel %vm10736_vm11, %v1503_v6, %v7897_v26  ;;  %v1725_v6 = vsel %vm90_vm8, %v1707_v42, %v5675_v48  ;;  %v8145_v48 = vld [vmem:[%s10641_s1 + $0x74] ss:$8 sps:$4 sm:$0xff]  }
 0x19e   :  { %1524 = vmatprep.subr.bf16.mxu0 %v7490_v21  ;;  %v1505_v46 = vpack.c.bf16 %v1504_v13, %v1504_v13  ;;  %v8071_v13 = vpop.permute.xlu1 %5692 }
 0x1a0   :  { %1608 = vmatpush1.bf16.msra.mxu1 %v7625_v23 }
 0x1a1   :  { %5211 = vmatprep.subr.msk.bf16.mxu1 %vm203_vm6, %v7636_v14  ;;  %1525 = vmatpush1.bf16.msra.mxu0 %v7625_v23 }
 0x1a2   :  { %v654_v43 = vpop.f32.mrb[8].mxu1  ;;  %5209 = vmatprep.subr.msk.bf16.mxu0 %vm203_vm6, %v7636_v14  ;;  %v8095_v28 = vpop.permute.xlu1 %5702 }
 0x1a3   :  { %v655_v21 = vadd.f32 %v654_v43, %v7790_v61  ;;  %v566_v49 = vpop.f32.mrb[8].mxu0  ;;  %v656_v58 = vpop.f32.mrb[9].mxu1  ;;  %v1726_v43 = vsel %vm92_vm9, %v1725_v6, %v5680_v19 }
 0x1a4   :  { %v567_v53 = vadd.f32 %v566_v49, %v7790_v61  ;;  %v657_v2 = vadd.f32 %v656_v58, %v7797_v36  ;;  %v568_v18 = vpop.f32.mrb[9].mxu0  ;;  %v658_v26 = vpop.f32.mrb[10].mxu1  ;;  %1610 = vmatpush1.bf16.msra.mxu1 %v6935_v55  ;;  %v1727_v49 = vsel %vm94_vm10, %v1726_v43, %v5685_v7  ;;  %v1634_v58 = vsel %vm335_vm2, %v7916_v57, %v7929_v15 }
 0x1a5   :  { %v569_v47 = vadd.f32 %v568_v18, %v7797_v36  ;;  %v570_v5 = vpop.f32.mrb[10].mxu0  ;;  %v659_v8 = vpop.f32.mrb[11].mxu1  ;;  %1751 = vmatprep.subr.bf16.mxu1 %v8009_v20  ;;  %1527 = vmatpush1.bf16.msra.mxu0 %v6935_v55  ;;  %v1728_v10 = vsel %vm10736_vm11, %v1727_v49, %v7970_v16  ;;  %v8109_v18 = vld [vmem:[%s10641_s1 + $0x54] ss:$8 sps:$4 sm:$0xff]   ;;  %v8114_v16 = vunpack.i.h.bf16 %v7982_v63  ;;  %v5704_v26 = vunpack.i.l.bf16 %v8095_v28 }
 0x1a6   :  { %v8013_v4 = vmax.f32 %v567_v53, %v655_v21  ;;  %v571_v39 = vpop.f32.mrb[11].mxu0  ;;  %1666 = vmatprep.subr.bf16.mxu0 %v8009_v20  ;;  %v5694_v21 = vunpack.i.l.bf16 %v8071_v13  ;;  %v8102_v53 = vld [vmem:[%s10641_s1 + $0x40] ss:$8 sps:$4 sm:$0xff]   ;;  %v8122_v5 = vld [vmem:[%s10641_s1 + $0x50] ss:$8 sps:$4 sm:$0xff]   ;;  %vm2164_vm2 = vcmask 556032  }
 0x1a7   :  { %v8016_v11 = vmax.f32 %v569_v47, %v657_v2  ;;  %1626 = vmatmul.mubr.bf16.vlgmr.msra.gmra.mrb[32].mxu1 %v1581_v37  ;;  %v8078_v37 = vld [vmem:[%s10641_s1 + $0x30] ss:$8 sps:$4 sm:$0xff]   ;;  %v8128_v8 = vld [vmem:[%s10641_s1 + $0x64] ss:$8 sps:$4 sm:$0xff]   ;;  %v1894_v63 = vpack.c.bf16 %v8114_v16, %v8114_v16 }
 0x1a8   :  { %v5711_v56 = vpack.i.bf16 %v8013_v4, %v7905_v17  ;;  %1752 = vmatpush1.bf16.msra.mxu1 %v8023_v60  ;;  %1543 = vmatmul.mubr.bf16.vlgmr.msra.gmra.mrb[32].mxu0 %v1505_v46  ;;  %v1652_v2 = vsel %vm90_vm8, %v1634_v58, %v5694_v21  ;;  %v1729_v46 = vpack.c.bf16 %v1728_v10, %v1728_v10 }
 0x1a9   :  { %1753 = vmatprep.subr.bf16.mxu1 %v8029_v31  ;;  %1667 = vmatpush1.bf16.msra.mxu0 %v8023_v60  ;;  %v1653_v47 = vsel %vm92_vm9, %v1652_v2, %v5699_v41  ;;  %v1904_v42 = vshrl.u32 %v1894_v63, 16  ;;  %v1907_v19 = vshll.u32 %v1894_v63, 16 }
 0x1aa   :  { %5712 = vrot.lane.b32.xlu1 %v5711_v56, %s6620_s10  ;;  %1668 = vmatprep.subr.bf16.mxu0 %v8029_v31  ;;  %v1654_v39 = vsel %vm94_vm10, %v1653_v47, %v5704_v26  ;;  %v8139_v56 = vld [vmem:[%s10641_s1 + $0x60] ss:$8 sps:$4 sm:$0xff]  }
 0x1ab   :  { %5216 = vmatprep.mubr.msk.bf16.mxu1 %vm199_vm12, %v1746_v44  ;;  %5214 = vmatprep.mubr.msk.bf16.mxu0 %vm199_vm12, %v1661_v25  ;;  %v1732_v44 = vshrl.u32 %v1729_v46, 16  ;;  %v1735_v25 = vshll.u32 %v1729_v46, 16  ;;  %v1655_v6 = vsel %vm10736_vm11, %v1654_v39, %v7989_v38  ;;  %v1906_v49 = vrot.slane %v1904_v42, 2 }
 0x1ac   :  { %1754 = vmatpush1.bf16.msra.mxu1 %v8041_v50  ;;  %v1656_v21 = vpack.c.bf16 %v1655_v6, %v1655_v6  ;;  %v1909_v58 = vrot.slane %v1907_v19, 3  ;;  %v6491_v6 = vld [vmem:[%s10640_s0 + $0x18] sm:$0xf] }
 0x1ad   :  { %1755 = vmatprep.subr.bf16.mxu1 %v8050_v3  ;;  %1669 = vmatpush1.bf16.msra.mxu0 %v8041_v50  ;;  %v1734_v7 = vrot.slane %v1732_v44, 1  ;;  %v1737_v43 = vrot.slane %v1735_v25, 2 }
 0x1ae   :  { %1670 = vmatprep.subr.bf16.mxu0 %v8050_v3  ;;  %v1660_v44 = vrot.slane %v1656_v21, 1 }
 0x1af   :  { %v1738_v26 = vor.u32 %v1737_v43, %v1734_v7  ;;  %v2033_v7 = vrot.slane %v6491_v6, 1 }
 0x1b0   :  { %1756 = vmatpush1.bf16.msra.mxu1 %v8060_v51 }
 0x1b1   :  { %1757 = vmatprep.subr.bf16.mxu1 %v8066_v35  ;;  %1671 = vmatpush1.bf16.msra.mxu0 %v8060_v51 }
 0x1b2   :  { %1672 = vmatprep.subr.bf16.mxu0 %v8066_v35 }
 0x1b4   :  { %1758 = vmatpush1.bf16.msra.mxu1 %v8078_v37 }
 0x1b5   :  { %1759 = vmatprep.subr.bf16.mxu1 %v8086_v12  ;;  %1673 = vmatpush1.bf16.msra.mxu0 %v8078_v37 }
 0x1b6   :  { %1674 = vmatprep.subr.bf16.mxu0 %v8086_v12 }
 0x1b8   :  { %1760 = vmatpush1.bf16.msra.mxu1 %v8102_v53 }
 0x1b9   :  { %1761 = vmatprep.subr.bf16.mxu1 %v8109_v18  ;;  %1675 = vmatpush1.bf16.msra.mxu0 %v8102_v53 }
 0x1ba   :  { %1676 = vmatprep.subr.bf16.mxu0 %v8109_v18 }
 0x1bc   :  { %1762 = vmatpush1.bf16.msra.mxu1 %v8122_v5 }
 0x1bd   :  { %1763 = vmatprep.subr.bf16.mxu1 %v8128_v8  ;;  %1677 = vmatpush1.bf16.msra.mxu0 %v8122_v5 }
 0x1be   :  { %1678 = vmatprep.subr.bf16.mxu0 %v8128_v8 }
 0x1c0   :  { %1764 = vmatpush1.bf16.msra.mxu1 %v8139_v56 }
 0x1c1   :  { %1765 = vmatprep.subr.bf16.mxu1 %v8145_v48  ;;  %1679 = vmatpush1.bf16.msra.mxu0 %v8139_v56 }
 0x1c2   :  { %1680 = vmatprep.subr.bf16.mxu0 %v8145_v48 }
 0x1c4   :  { %1766 = vmatpush1.bf16.msra.mxu1 %v7625_v23 }
 0x1c5   :  { %5215 = vmatprep.subr.msk.bf16.mxu1 %vm203_vm6, %v7636_v14  ;;  %1681 = vmatpush1.bf16.msra.mxu0 %v7625_v23 }
 0x1c6   :  { %v828_v41 = vpop.f32.mrb[12].mxu1  ;;  %5213 = vmatprep.subr.msk.bf16.mxu0 %vm203_vm6, %v7636_v14  ;;  %v1910_v14 = vor.u32 %v1909_v58, %v1906_v49  ;;  %v1798_v58 = vsel %vm495_vm4, %v7170_v32, %v7167_v29  ;;  %v1802_v29 = vsel %vm495_vm4, %v7117_v62, %v7111_v52  ;;  %v5695_v32 = vunpack.i.h.bf16 %v8071_v13 }
 0x1c7   :  { %v730_v10 = vpop.f32.mrb[12].mxu0  ;;  %v829_v38 = vadd.f32 %v828_v41, %v7790_v61  ;;  %v830_v2 = vpop.f32.mrb[13].mxu1  ;;  %v1794_v41 = vsel %vm495_vm4, %v7913_v40, %v7165_v24  ;;  %v5736_v52 = vpack.i.bf16 %v7579_v59, %v1802_v29  ;;  %v5700_v62 = vunpack.i.h.bf16 %v7964_v27 }
 0x1c8   :  { %v731_v46 = vadd.f32 %v730_v10, %v7790_v61  ;;  %v732_v47 = vpop.f32.mrb[13].mxu0  ;;  %v831_v63 = vadd.f32 %v830_v2, %v7797_v36  ;;  %v832_v39 = vpop.f32.mrb[14].mxu1  ;;  %1768 = vmatpush1.bf16.msra.mxu1 %v6935_v55  ;;  %v1962_v10 = vrot.slane %v6491_v6, 2  ;;  %v5721_v2 = vpack.i.bf16 %v2033_v7, %v1794_v41 }
 0x1c9   :  { %v733_v23 = vadd.f32 %v732_v47, %v7797_v36  ;;  %v734_v25 = vpop.f32.mrb[14].mxu0  ;;  %v833_v42 = vpop.f32.mrb[15].mxu1  ;;  %1915 = vmatprep.subr.bf16.mxu1 %v8009_v20  ;;  %1683 = vmatpush1.bf16.msra.mxu0 %v6935_v55  ;;  %v1869_v47 = vsel %vm573_vm5, %v7916_v57, %v7929_v15  ;;  %v6492_v39 = vld [vmem:[%s10640_s0 + $0x38] sm:$0xf]  ;;  %v1972_v27 = vsel %vm661_vm7, %v7595_v33, %v7593_v0  ;;  %vm10737_vm5 = vcmask 654336  }
 0x1ca   :  { %v8165_v19 = vmax.f32 %v731_v46, %v829_v38  ;;  %v735_v43 = vpop.f32.mrb[15].mxu0  ;;  %1828 = vmatprep.subr.bf16.mxu0 %v8009_v20  ;;  %v1810_v46 = vsel %vm495_vm4, %v7595_v33, %v7593_v0  ;;  %v5705_v25 = vunpack.i.h.bf16 %v8095_v28  ;;  %v1968_v6 = vsel %vm661_vm7, %v7586_v9, %v7579_v59 }
 0x1cb   :  { %v8171_v21 = vmax.f32 %v733_v23, %v831_v63  ;;  %1784 = vmatmul.mubr.bf16.vlgmr.msra.gmra.mrb[36].mxu1 %v1738_v26  ;;  %v5731_v26 = vpack.i.bf16 %v1962_v10, %v1798_v58  ;;  %v5741_v13 = vpack.i.bf16 %v7593_v0, %v1810_v46  ;;  %v1958_v63 = vsel %vm661_vm7, %v7913_v40, %v7165_v24 }
 0x1cc   :  { %v5716_v49 = vpack.i.bf16 %v7908_v22, %v8165_v19  ;;  %1916 = vmatpush1.bf16.msra.mxu1 %v8023_v60  ;;  %1699 = vmatmul.mubr.bf16.vlgmr.msra.gmra.mrb[36].mxu0 %v1660_v44  ;;  %v1963_v44 = vrot.slane %v6492_v39, 1  ;;  %v1889_v23 = vsel %vm90_vm8, %v1869_v47, %v5695_v32  ;;  %v5746_v24 = vpack.i.bf16 %v1958_v63, %v6492_v39 }
 0x1cd   :  { %v5726_v38 = vpack.i.bf16 %v8171_v21, %v8016_v11  ;;  %1917 = vmatprep.subr.bf16.mxu1 %v8029_v31  ;;  %5220 = vmatprep.mubr.msk.bf16.mxu1 %vm199_vm12, %v1910_v14  ;;  %v1890_v40 = vsel %vm92_vm9, %v1889_v23, %v5700_v62  ;;  %v5761_v14 = vpack.i.bf16 %v1972_v27, %v7595_v33 }
 0x1ce   :  { %5717 = vrot.lane.b32.xlu0 %v5716_v49, %s6620_s10  ;;  %1829 = vmatpush1.bf16.msra.mxu0 %v8023_v60  ;;  %v1964_v42 = vsel %vm661_vm7, %v1963_v44, %v1962_v10  ;;  %v1891_v0 = vsel %vm94_vm10, %v1890_v40, %v5705_v25  ;;  %v5756_v7 = vpack.i.bf16 %v1968_v6, %v7586_v9  ;;  %v8259_v10 = vld [vmem:[%s10641_s1 + $0x70] ss:$8 sps:$4 sm:$0xff]   ;;  %v8265_v49 = vld [vmem:[%s10641_s1 + $0x84] ss:$8 sps:$4 sm:$0x3f]   ;;  %s6621_s1 = smov 68  }
 0x1cf   :  { %5727 = vrot.lane.b32.xlu1 %v5726_v38, %s6620_s10  ;;  %1830 = vmatprep.subr.bf16.mxu0 %v8029_v31  ;;  %v5751_v28 = vpack.i.bf16 %v1964_v42, %v1963_v44  ;;  %v1892_v33 = vsel %vm10736_vm11, %v1891_v0, %v8114_v16 }
 0x1d0   :  { %1918 = vmatpush1.bf16.msra.mxu1 %v8041_v50  ;;  %v1893_v43 = vpack.c.bf16 %v1892_v33, %v1892_v33 }
 0x1d1   :  { %1919 = vmatprep.subr.bf16.mxu1 %v8050_v3 }
 0x1d2   :  { %5722 = vrot.lane.b32.xlu0 %v5721_v2, %s6617_s16  ;;  %1831 = vmatpush1.bf16.msra.mxu0 %v8041_v50  ;;  %v1896_v59 = vshrl.u32 %v1893_v43, 16  ;;  %v1899_v16 = vshll.u32 %v1893_v43, 16 }
 0x1d3   :  { %5732 = vrot.lane.b32.xlu1 %v5731_v26, %s6619_s24  ;;  %1832 = vmatprep.subr.bf16.mxu0 %v8050_v3 }
 0x1d4   :  { %1920 = vmatpush1.bf16.msra.mxu1 %v8060_v51  ;;  %v1898_v9 = vrot.slane %v1896_v59, 2  ;;  %v1901_v41 = vrot.slane %v1899_v16, 3 }
 0x1d5   :  { %1921 = vmatprep.subr.bf16.mxu1 %v8066_v35 }
 0x1d6   :  { %5737 = vrot.lane.b32.xlu0 %v5736_v52, %s6616_s15  ;;  %1833 = vmatpush1.bf16.msra.mxu0 %v8060_v51  ;;  %v1902_v26 = vor.u32 %v1901_v41, %v1898_v9 }
 0x1d7   :  { %5742 = vrot.lane.b32.xlu1 %v5741_v13, %s6618_s23  ;;  %1834 = vmatprep.subr.bf16.mxu0 %v8066_v35 }
 0x1d8   :  { %1922 = vmatpush1.bf16.msra.mxu1 %v8078_v37 }
 0x1d9   :  { %1923 = vmatprep.subr.bf16.mxu1 %v8086_v12 }
 0x1da   :  { %5747 = vrot.lane.b32.xlu0 %v5746_v24, %s6617_s16  ;;  %1835 = vmatpush1.bf16.msra.mxu0 %v8078_v37 }
 0x1db   :  { %5762 = vrot.lane.b32.xlu1 %v5761_v14, %s6618_s23  ;;  %1836 = vmatprep.subr.bf16.mxu0 %v8086_v12 }
 0x1dc   :  { %1924 = vmatpush1.bf16.msra.mxu1 %v8102_v53 }
 0x1dd   :  { %1925 = vmatprep.subr.bf16.mxu1 %v8109_v18 }
 0x1de   :  { %5752 = vrot.lane.b32.xlu0 %v5751_v28, %s6619_s24  ;;  %1837 = vmatpush1.bf16.msra.mxu0 %v8102_v53 }
 0x1df   :  { %1838 = vmatprep.subr.bf16.mxu0 %v8109_v18 }
 0x1e0   :  { %1926 = vmatpush1.bf16.msra.mxu1 %v8122_v5 }
 0x1e1   :  { %1927 = vmatprep.subr.bf16.mxu1 %v8128_v8 }
 0x1e2   :  { %5757 = vrot.lane.b32.xlu0 %v5756_v7, %s6616_s15  ;;  %1839 = vmatpush1.bf16.msra.mxu0 %v8122_v5 }
 0x1e3   :  { %1840 = vmatprep.subr.bf16.mxu0 %v8128_v8 }
 0x1e4   :  { %1928 = vmatpush1.bf16.msra.mxu1 %v8139_v56 }
 0x1e5   :  { %1929 = vmatprep.subr.bf16.mxu1 %v8145_v48 }
 0x1e6   :  { %1841 = vmatpush1.bf16.msra.mxu0 %v8139_v56 }
 0x1e7   :  { %1842 = vmatprep.subr.bf16.mxu0 %v8145_v48 }
 0x1e8   :  { %1930 = vmatpush1.bf16.msra.mxu1 %v8259_v10 }
 0x1e9   :  { %5219 = vmatprep.subr.msk.bf16.mxu1 %vm203_vm6, %v8265_v49 }
 0x1ea   :  { %v980_v58 = vpop.f32.mrb[16].mxu1  ;;  %1843 = vmatpush1.bf16.msra.mxu0 %v8259_v10 }
 0x1eb   :  { %v897_v38 = vpop.f32.mrb[16].mxu0  ;;  %v981_v2 = vadd.f32 %v980_v58, %v7790_v61  ;;  %v982_v29 = vpop.f32.mrb[17].mxu1  ;;  %5217 = vmatprep.subr.msk.bf16.mxu0 %vm203_vm6, %v8265_v49 }
 0x1ec   :  { %v898_v32 = vadd.f32 %v897_v38, %v7790_v61  ;;  %1932 = vmatpush1.bf16.msra.mxu1 %v6935_v55  ;;  %v899_v46 = vpop.f32.mrb[17].mxu0  ;;  %v983_v47 = vadd.f32 %v982_v29, %v7797_v36  ;;  %v984_v52 = vpop.f32.mrb[18].mxu1 }
 0x1ed   :  { %v900_v62 = vadd.f32 %v899_v46, %v7797_v36  ;;  %v901_v13 = vpop.f32.mrb[18].mxu0  ;;  %v985_v63 = vpop.f32.mrb[19].mxu1  ;;  %2088 = vmatprep.subr.bf16.mxu1 %v8009_v20 }
 0x1ee   :  { %v8278_v39 = vmax.f32 %v898_v32, %v981_v2  ;;  %v902_v44 = vpop.f32.mrb[19].mxu0  ;;  %1845 = vmatpush1.bf16.msra.mxu0 %v6935_v55  ;;  %v1792_v13 = vsel %vm495_vm4, %v7916_v57, %v7929_v15  ;;  %vm2194_vm4 = vcmask 572416  }
 0x1ef   :  { %1948 = vmatmul.mubr.bf16.vlgmr.msra.gmra.mrb[40].mxu1 %v1902_v26  ;;  %v8281_v23 = vmax.f32 %v900_v62, %v983_v47  ;;  %1990 = vmatprep.subr.bf16.mxu0 %v8009_v20 }
 0x1f0   :  { %v5766_v27 = vpack.i.bf16 %v8278_v39, %v7817_v45  ;;  %2089 = vmatpush1.bf16.msra.mxu1 %v8023_v60 }
 0x1f1   :  { %2090 = vmatprep.subr.bf16.mxu1 %v8029_v31 }
 0x1f2   :  { %5767 = vrot.lane.b32.xlu0 %v5766_v27, %s6620_s10 }
 0x1f4   :  { %2091 = vmatpush1.bf16.msra.mxu1 %v8041_v50 }
 0x1f5   :  { %2092 = vmatprep.subr.bf16.mxu1 %v8050_v3 }
 0x1f8   :  { %2093 = vmatpush1.bf16.msra.mxu1 %v8060_v51 }
 0x1f9   :  { %2094 = vmatprep.subr.bf16.mxu1 %v8066_v35 }
 0x1fc   :  { %2095 = vmatpush1.bf16.msra.mxu1 %v8078_v37 }
 0x1fd   :  { %2096 = vmatprep.subr.bf16.mxu1 %v8086_v12 }
 0x200   :  { %2097 = vmatpush1.bf16.msra.mxu1 %v8102_v53 }
 0x201   :  { %2098 = vmatprep.subr.bf16.mxu1 %v8109_v18 }
 0x204   :  { %2099 = vmatpush1.bf16.msra.mxu1 %v8122_v5 }
 0x205   :  { %2100 = vmatprep.subr.bf16.mxu1 %v8128_v8 }
 0x208   :  { %2101 = vmatpush1.bf16.msra.mxu1 %v8139_v56 }
 0x209   :  { %2102 = vmatprep.subr.bf16.mxu1 %v8145_v48 }
 0x20c   :  { %2103 = vmatpush1.bf16.msra.mxu1 %v8259_v10 }
 0x20d   :  { %5223 = vmatprep.subr.msk.bf16.mxu1 %vm203_vm6, %v8265_v49 }
 0x20e   :  { %v1138_v20 = vpop.f32.mrb[20].mxu1 }
 0x20f   :  { %v1053_v25 = vpop.f32.mrb[20].mxu0  ;;  %v1139_v24 = vadd.f32 %v1138_v20, %v7790_v61  ;;  %v1140_v40 = vpop.f32.mrb[21].mxu1 }
 0x210   :  { %v1054_v42 = vadd.f32 %v1053_v25, %v7790_v61  ;;  %2105 = vmatpush1.bf16.msra.mxu1 %v6935_v55  ;;  %v1055_v14 = vpop.f32.mrb[21].mxu0  ;;  %v1141_v0 = vadd.f32 %v1140_v40, %v7797_v36  ;;  %v1142_v28 = vpop.f32.mrb[22].mxu1 }
 0x211   :  { %v1056_v6 = vadd.f32 %v1055_v14, %v7797_v36  ;;  %v1057_v33 = vpop.f32.mrb[22].mxu0  ;;  %v1143_v7 = vpop.f32.mrb[23].mxu1 }
 0x212   :  { %v8309_v43 = vmax.f32 %v1054_v42, %v1139_v24  ;;  %v1058_v59 = vpop.f32.mrb[23].mxu0 }
 0x213   :  { %v8311_v16 = vmax.f32 %v1056_v6, %v1141_v0 }
 0x21c   :  { %v5713_v9 = vpop.permute.xlu1 %5712 }
 0x21d   :  { %v5714_v41 = vunpack.i.l.bf16 %v5713_v9  ;;  %v5715_v44 = vunpack.i.h.bf16 %v5713_v9 }
 0x21f   :  { %v8314_v58 = vmax.f32 %v7905_v17, %v5714_v41  ;;  %v8347_v28 = vmax.f32 %v8013_v4, %v5715_v44 }
 0x221   :  { %v5771_v38 = vpack.i.bf16 %v8314_v58, %v7814_v54 }
 0x223   :  { %5772 = vrot.lane.b32.xlu1 %v5771_v38, %s6620_s10 }
 0x240   :  { %v8319_v2 = vpop.permute.xlu0 %5717 }
 0x241   :  { %v5720_v26 = vunpack.i.h.bf16 %v8319_v2  ;;  %v8322_v29 = vpop.permute.xlu1 %5727 }
 0x242   :  { %v5729_v32 = vunpack.i.l.bf16 %v8322_v29 }
 0x243   :  { %v2217_v46 = vmax.f32 %v7908_v22, %v5720_v26  ;;  %v2216_v47 = vmax.f32 %v7905_v17, %v5720_v26 }
 0x244   :  { %v8328_v52 = vmax.f32 %v8013_v4, %v5729_v32  ;;  %v8331_v62 = vmax.f32 %v8016_v11, %v5729_v32  ;;  %v5723_v63 = vpop.permute.xlu0 %5722  ;;  %v5781_v11 = vpack.i.bf16 %v8281_v23, %v8309_v43  ;;  %v8358_v4 = vpack.i.bf16 %v8347_v28, %v8314_v58 }
 0x245   :  { %v5724_v27 = vunpack.i.l.bf16 %v5723_v63  ;;  %v5733_v20 = vpop.permute.xlu1 %5732  ;;  %v5776_v25 = vpack.i.bf16 %v2217_v46, %v2216_v47  ;;  %v5725_v42 = vunpack.i.h.bf16 %v5723_v63  ;;  %v1215_v47 = vpop.f32.mrb[24].mxu0 }
 0x246   :  { %v5734_v24 = vunpack.i.l.bf16 %v5733_v20  ;;  %v5811_v22 = vpack.i.bf16 %v8331_v62, %v8328_v52  ;;  %v8343_v40 = vpack.i.bf16 %v8331_v62, %v2217_v46  ;;  %v5735_v59 = vunpack.i.h.bf16 %v5733_v20  ;;  %v1302_v20 = vpop.f32.mrb[24].mxu1 }
 0x247   :  { %v1814_v17 = vsel %vm90_vm8, %v1792_v13, %v5724_v27  ;;  %5777 = vrot.lane.b32.xlu0 %v5776_v25, %s6621_s1  ;;  %v2058_v41 = vsel %vm90_vm8, %v7929_v15, %v5725_v42  ;;  %v1216_v27 = vadd.f32 %v1215_v47, %v7790_v61  ;;  %v1217_v42 = vpop.f32.mrb[25].mxu0 }
 0x248   :  { %v1815_v14 = vsel %vm92_vm9, %v1814_v17, %v5734_v24  ;;  %v5738_v0 = vpop.permute.xlu0 %5737 }
 0x249   :  { %v5739_v6 = vunpack.i.l.bf16 %v5738_v0  ;;  %v5743_v33 = vpop.permute.xlu1 %5742 }
 0x24a   :  { %v5744_v7 = vunpack.i.l.bf16 %v5743_v33  ;;  %v5745_v38 = vunpack.i.h.bf16 %v5743_v33  ;;  %v5740_v33 = vunpack.i.h.bf16 %v5738_v0 }
 0x24b   :  { %v1816_v9 = vsel %vm94_vm10, %v1815_v14, %v5739_v6  ;;  %5782 = vrot.lane.b32.xlu0 %v5781_v11, %s6620_s10  ;;  %v1303_v11 = vadd.f32 %v1302_v20, %v7790_v61  ;;  %v1304_v14 = vpop.f32.mrb[25].mxu1  ;;  %v2060_v6 = vsel %vm92_vm9, %v2058_v41, %v5735_v59 }
 0x24c   :  { %v1817_v26 = vsel %vm10736_vm11, %v1816_v9, %v5744_v7  ;;  %v1819_v32 = vpack.c.bf16 %v5744_v7, %v5744_v7  ;;  %v8354_v46 = vpop.permute.xlu0 %5747  ;;  %v1218_v9 = vadd.f32 %v1217_v42, %v7797_v36  ;;  %v1306_v47 = vpop.f32.mrb[26].mxu1  ;;  %v1305_v0 = vadd.f32 %v1304_v14, %v7797_v36 }
 0x24d   :  { %v1818_v13 = vpack.c.bf16 %v1817_v26, %v1817_v26  ;;  %v5749_v63 = vunpack.i.l.bf16 %v8354_v46  ;;  %v5763_v44 = vpop.permute.xlu1 %5762  ;;  %v1219_v26 = vpop.f32.mrb[26].mxu0  ;;  %v8374_v34 = vmax.f32 %v1216_v27, %v1303_v11  ;;  %v2062_v27 = vsel %vm94_vm10, %v2060_v6, %v5740_v33 }
 0x24e   :  { %v1823_v25 = vrot.slane %v1819_v32, 2  ;;  %v8362_v24 = vunpack.i.h.bf16 %v5763_v44  ;;  %v5764_v17 = vunpack.i.l.bf16 %v5763_v44  ;;  %v1220_v59 = vpop.f32.mrb[27].mxu0  ;;  %v1307_v42 = vpop.f32.mrb[27].mxu1  ;;  %v8381_v30 = vmax.f32 %v1218_v9, %v1305_v0 }
 0x24f   :  { %5797 = vrot.lane.b32.xlu0 %v8358_v4, %s6622_s26  ;;  %v1822_v7 = vrot.slane %v1818_v13, 2  ;;  %v2059_v41 = vsel %vm90_vm8, %v7916_v57, %v5749_v63 }
 0x250   :  { %5218 = vmatprep.mubr.msk.bf16.mxu0 %vm199_vm12, %v1823_v25  ;;  %v8370_v32 = vpop.permute.xlu0 %5752  ;;  %v1981_v44 = vpack.c.bf16 %v8362_v24, %v8362_v24  ;;  %v2067_v20 = vpack.c.bf16 %v5764_v17, %v5745_v38 }
 0x251   :  { %1861 = vmatmul.mubr.bf16.vlgmr.msra.gmra.mrb[40].mxu0 %v1822_v7  ;;  %v5754_v13 = vunpack.i.l.bf16 %v8370_v32 }
 0x252   :  { %1991 = vmatpush1.bf16.msra.mxu0 %v8023_v60  ;;  %v1985_v25 = vrot.slane %v1981_v44, 3  ;;  %v2077_v26 = vshrl.u32 %v2067_v20, 16  ;;  %v2080_v47 = vshll.u32 %v2067_v20, 16  ;;  %v2064_v44 = vsel %vm10736_vm11, %v2062_v27, %v5745_v38 }
 0x253   :  { %5832 = vrot.lane.b32.xlu0 %v8343_v40, %s6617_s16  ;;  %1992 = vmatprep.subr.bf16.mxu0 %v8029_v31  ;;  %v2061_v11 = vsel %vm92_vm9, %v2059_v41, %v5754_v13 }
 0x254   :  { %v5758_v63 = vpop.permute.xlu0 %5757  ;;  %v2079_v14 = vrot.slane %v2077_v26, 3  ;;  %v2082_v7 = vrot.slane %v2080_v47, 4  ;;  %5222 = vmatprep.mubr.msk.bf16.mxu0 %vm199_vm12, %v1985_v25 }
 0x255   :  { %v5759_v60 = vunpack.i.l.bf16 %v5758_v63 }
 0x256   :  { %1993 = vmatpush1.bf16.msra.mxu0 %v8041_v50  ;;  %v2083_v9 = vor.u32 %v2082_v7, %v2079_v14  ;;  %v1475_v20 = vpop.f32.mrb[28].mxu1  ;;  %v5750_v7 = vunpack.i.h.bf16 %v8354_v46 }
 0x257   :  { %1994 = vmatprep.subr.bf16.mxu0 %v8050_v3  ;;  %v2063_v6 = vsel %vm94_vm10, %v2061_v11, %v5759_v60  ;;  %v1377_v33 = vpop.f32.mrb[28].mxu0  ;;  %v1476_v31 = vadd.f32 %v1475_v20, %v7790_v61  ;;  %v1477_v0 = vpop.f32.mrb[29].mxu1  ;;  %v5755_v20 = vunpack.i.h.bf16 %v8370_v32 }
 0x258   :  { %v2065_v59 = vsel %vm10736_vm11, %v2063_v6, %v5764_v17  ;;  %5224 = vmatprep.mubr.msk.bf16.mxu1 %vm199_vm12, %v2083_v9  ;;  %v1378_v41 = vadd.f32 %v1377_v33, %v7790_v61  ;;  %v1379_v13 = vpop.f32.mrb[29].mxu0  ;;  %v1478_v38 = vadd.f32 %v1477_v0, %v7797_v36  ;;  %v1479_v50 = vpop.f32.mrb[30].mxu1  ;;  %v5760_v6 = vunpack.i.h.bf16 %v5758_v63 }
 0x259   :  { %v2066_v42 = vpack.c.bf16 %v2065_v59, %v2064_v44  ;;  %v1380_v25 = vadd.f32 %v1379_v13, %v7797_v36  ;;  %v1381_v3 = vpop.f32.mrb[30].mxu0  ;;  %v1480_v26 = vpop.f32.mrb[31].mxu1  ;;  %v1956_v44 = vsel %vm661_vm7, %v7916_v57, %v7929_v15  ;;  %v5719_v0 = vunpack.i.l.bf16 %v8319_v2 }
 0x25a   :  { %1995 = vmatpush1.bf16.msra.mxu0 %v8060_v51  ;;  %v8400_v47 = vmax.f32 %v1378_v41, %v1476_v31  ;;  %v1382_v27 = vpop.f32.mrb[31].mxu0  ;;  %vm10734_vm7 = vcmask 818176   ;;  %vm10679_vm12 = vcmask 785408  }
 0x25b   :  { %1996 = vmatprep.subr.bf16.mxu0 %v8066_v35  ;;  %v2069_v17 = vshrl.u32 %v2066_v42, 16  ;;  %v2072_v11 = vshll.u32 %v2066_v42, 16  ;;  %v8403_v14 = vmax.f32 %v1380_v25, %v1478_v38  ;;  %v1976_v35 = vsel %vm90_vm8, %v1956_v44, %v5750_v7 }
 0x25c   :  { %v1977_v46 = vsel %vm92_vm9, %v1976_v35, %v5755_v20  ;;  %v8440_v13 = vmax.f32 %v8165_v19, %v5719_v0  ;;  %v6319_v0 = vld [vmem:[%s10643_s3 + $0x24] ss:$8 sps:$4 sm:$0xff]   ;;  %vm10733_vm8 = vcmask 900096   ;;  %vm10738_vm9 = vcmask 982016  }
 0x25d   :  { %v2071_v60 = vrot.slane %v2069_v17, 3  ;;  %v2074_v9 = vrot.slane %v2072_v11, 4  ;;  %v1978_v57 = vsel %vm94_vm10, %v1977_v46, %v5760_v6  ;;  %vm10680_vm10 = vcmask 850944  }
 0x25e   :  { %1997 = vmatpush1.bf16.msra.mxu0 %v8078_v37  ;;  %v1979_v15 = vsel %vm10736_vm11, %v1978_v57, %v8362_v24 }
 0x25f   :  { %1998 = vmatprep.subr.bf16.mxu0 %v8086_v12  ;;  %v2075_v51 = vor.u32 %v2074_v9, %v2071_v60  ;;  %v1980_v37 = vpack.c.bf16 %v1979_v15, %v1979_v15 }
 0x261   :  { %2121 = vmatmul.mubr.bf16.vlgmr.msra.gmra.mrb[44].mxu1 %v2075_v51  ;;  %v1984_v12 = vrot.slane %v1980_v37, 3  ;;  %v5730_v51 = vunpack.i.h.bf16 %v8322_v29 }
 0x262   :  { %1999 = vmatpush1.bf16.msra.mxu0 %v8102_v53 }
 0x263   :  { %2000 = vmatprep.subr.bf16.mxu0 %v8109_v18  ;;  %v2345_v46 = vmax.f32 %v8171_v21, %v5730_v51 }
 0x264   :  { %v5768_v29 = vpop.permute.xlu0 %5767 }
 0x265   :  { %v5769_v57 = vunpack.i.l.bf16 %v5768_v29 }
 0x266   :  { %2001 = vmatpush1.bf16.msra.mxu0 %v8122_v5 }
 0x267   :  { %2002 = vmatprep.subr.bf16.mxu0 %v8128_v8  ;;  %v2140_v21 = vmax.f32 %v7814_v54, %v5769_v57 }
 0x26a   :  { %2003 = vmatpush1.bf16.msra.mxu0 %v8139_v56 }
 0x26b   :  { %2004 = vmatprep.subr.bf16.mxu0 %v8145_v48 }
 0x26e   :  { %2005 = vmatpush1.bf16.msra.mxu0 %v8259_v10 }
 0x26f   :  { %5221 = vmatprep.subr.msk.bf16.mxu0 %vm203_vm6, %v8265_v49  ;;  %vm10735_vm6 = vcmask 736256  }
 0x272   :  { %2007 = vmatpush1.bf16.msra.mxu0 %v6935_v55 }
 0x275   :  { %2023 = vmatmul.mubr.bf16.vlgmr.msra.gmra.mrb[44].mxu0 %v1984_v12 }
 0x27a   :  { %v1627_v53 = vpop.f32.mrb[32].mxu1 }
 0x27b   :  { %v1544_v18 = vpop.f32.mrb[32].mxu0  ;;  %v1628_v5 = vadd.f32 %v1627_v53, %v7790_v61  ;;  %v1629_v8 = vpop.f32.mrb[33].mxu1 }
 0x27c   :  { %v1545_v24 = vadd.f32 %v1544_v18, %v7790_v61  ;;  %v1546_v56 = vpop.f32.mrb[33].mxu0  ;;  %v1630_v48 = vadd.f32 %v1629_v8, %v7797_v36  ;;  %v1631_v32 = vpop.f32.mrb[34].mxu1 }
 0x27d   :  { %v1547_v10 = vadd.f32 %v1546_v56, %v7797_v36  ;;  %v1548_v63 = vpop.f32.mrb[34].mxu0  ;;  %v1632_v33 = vpop.f32.mrb[35].mxu1 }
 0x27e   :  { %v8431_v49 = vmax.f32 %v1545_v24, %v1628_v5  ;;  %v1549_v31 = vpop.f32.mrb[35].mxu0  ;;  %v5770_v24 = vunpack.i.h.bf16 %v5768_v29  ;;  %v6313_v63 = vld [vmem:[%s10643_s3 + $0x4] ss:$8 sps:$4 sm:$0xff]   ;;  %v6316_v33 = vld [vmem:[%s10643_s3 + $0x14] ss:$8 sps:$4 sm:$0xff]  }
 0x27f   :  { %v8433_v55 = vmax.f32 %v1547_v10, %v1630_v48  ;;  %3410 = vmatprep.subr.bf16.mxu0 %v6313_v63  ;;  %3558 = vmatprep.subr.bf16.mxu1 %v6313_v63  ;;  %v6318_v31 = vld [vmem:[%s10643_s3 + $0x10] ss:$8 sps:$4 sm:$0xff]  }
 0x280   :  { %v8511_v56 = vmax.f32 %v8278_v39, %v5770_v24 }
 0x295   :  { %v8436_v59 = vpop.permute.xlu1 %5772 }
 0x296   :  { %v5774_v41 = vunpack.i.l.bf16 %v8436_v59 }
 0x298   :  { %v8443_v38 = vmax.f32 %v7814_v54, %v5774_v41  ;;  %v5836_v54 = vpack.i.bf16 %v8440_v13, %v8347_v28  ;;  %v6321_v41 = vld [vmem:[%s10643_s3 + $0x20] ss:$8 sps:$4 sm:$0xff]  }
 0x29a   :  { %v5841_v50 = vpack.i.bf16 %v8443_v38, %v8440_v13  ;;  %v5786_v42 = vpack.i.bf16 %v8443_v38, %v8311_v16 }
 0x29c   :  { %5842 = vrot.lane.b32.xlu0 %v5841_v50, %s6623_s27  ;;  %5787 = vrot.lane.b32.xlu1 %v5786_v42, %s6620_s10  ;;  %v6322_v42 = vld [vmem:[%s10643_s3 + $0x34] ss:$8 sps:$4 sm:$0xff]  }
 0x29e   :  { %v1785_v2 = vpop.f32.mrb[36].mxu1 }
 0x29f   :  { %v1700_v25 = vpop.f32.mrb[36].mxu0  ;;  %v1786_v3 = vadd.f32 %v1785_v2, %v7790_v61  ;;  %v1787_v26 = vpop.f32.mrb[37].mxu1  ;;  %v6324_v2 = vld [vmem:[%s10643_s3 + $0x30] ss:$8 sps:$4 sm:$0xff]  }
 0x2a0   :  { %5852 = vrot.lane.b32.xlu0 %v5841_v50, %s6624_s28  ;;  %5792 = vrot.lane.b32.xlu1 %v8358_v4, %s6623_s27  ;;  %v1701_v27 = vadd.f32 %v1700_v25, %v7790_v61  ;;  %v1702_v17 = vpop.f32.mrb[37].mxu0  ;;  %v1788_v11 = vadd.f32 %v1787_v26, %v7797_v36  ;;  %v1789_v7 = vpop.f32.mrb[38].mxu1  ;;  %v6327_v26 = vld [vmem:[%s10643_s3 + $0x40] ss:$8 sps:$4 sm:$0xff]  }
 0x2a1   :  { %v1703_v60 = vadd.f32 %v1702_v17, %v7797_v36  ;;  %v1790_v9 = vpop.f32.mrb[39].mxu1  ;;  %v1704_v44 = vpop.f32.mrb[38].mxu0 }
 0x2a2   :  { %v8459_v20 = vmax.f32 %v1701_v27, %v1786_v3  ;;  %v1705_v35 = vpop.f32.mrb[39].mxu0  ;;  %v6325_v3 = vld [vmem:[%s10643_s3 + $0x44] ss:$8 sps:$4 sm:$0xff]   ;;  %v6328_v9 = vld [vmem:[%s10643_s3 + $0x54] ss:$8 sps:$4 sm:$0xff]  }
 0x2a3   :  { %v8461_v6 = vmax.f32 %v1703_v60, %v1788_v11  ;;  %v6330_v44 = vld [vmem:[%s10643_s3 + $0x50] ss:$8 sps:$4 sm:$0xff]  }
 0x2a4   :  { %5857 = vrot.lane.b32.xlu0 %v5841_v50, %s6625_s29  ;;  %5802 = vrot.lane.b32.xlu1 %v8358_v4, %s6624_s28 }
 0x2a8   :  { %2370 = vrot.lane.b32.xlu0 %v2345_v46, %s6626_s30  ;;  %5807 = vrot.lane.b32.xlu1 %v8358_v4, %s6625_s29  ;;  %v2141_v4 = vmax.f32 %v7817_v45, %v5769_v57 }
 0x2aa   :  { %v5871_v52 = vpack.i.bf16 %v2141_v4, %v2140_v21  ;;  %v6336_v21 = vld [vmem:[%s10643_s3 + $0x70] ss:$8 sps:$4 sm:$0xff]  }
 0x2ac   :  { %2373 = vrot.lane.b32.xlu0 %v2345_v46, %s6627_s11  ;;  %5812 = vrot.lane.b32.xlu1 %v5811_v22, %s6621_s1  ;;  %v2344_v22 = vmax.f32 %v8165_v19, %v5730_v51  ;;  %v6331_v51 = vld [vmem:[%s10643_s3 + $0x64] ss:$8 sps:$4 sm:$0xff]  }
 0x2b0   :  { %2376 = vrot.lane.b32.xlu0 %v2345_v46, %s6628_s12  ;;  %5817 = vrot.lane.b32.xlu1 %v8343_v40, %s6626_s30 }
 0x2b4   :  { %5867 = vrot.lane.b32.xlu0 %v8343_v40, %s6629_s13  ;;  %5822 = vrot.lane.b32.xlu1 %v8343_v40, %s6627_s11 }
 0x2b8   :  { %5827 = vrot.lane.b32.xlu1 %v8343_v40, %s6628_s12  ;;  %5872 = vrot.lane.b32.xlu0 %v5871_v52, %s6621_s1  ;;  %v5861_v40 = vpack.i.bf16 %v2345_v46, %v2344_v22  ;;  %v6340_v22 = vld [vmem:[%s10643_s3 + $0x94] ss:$8 sps:$4 sm:$0xff]  }
 0x2b9   :  { %v8487_v62 = vpop.permute.xlu0 %5777 }
 0x2bc   :  { %5837 = vrot.lane.b32.xlu1 %v5836_v54, %s6620_s10  ;;  %2179 = vrot.lane.b32.xlu0 %v2141_v4, %s6629_s13  ;;  %v6339_v54 = vld [vmem:[%s10643_s3 + $0x80] ss:$8 sps:$4 sm:$0xff]  }
 0x2bd   :  { %v5783_v45 = vpop.permute.xlu0 %5782 }
 0x2be   :  { %v5785_v15 = vunpack.i.h.bf16 %v5783_v45  ;;  %v5784_v19 = vunpack.i.l.bf16 %v5783_v45 }
 0x2c0   :  { %v8495_v37 = vmax.f32 %v8281_v23, %v5785_v15  ;;  %5847 = vrot.lane.b32.xlu1 %v5841_v50, %s6622_s26  ;;  %v8508_v23 = vmax.f32 %v8309_v43, %v5784_v19  ;;  %v2408_v48 = vmax.f32 %v8278_v39, %v5785_v15  ;;  %v6315_v39 = vld [vmem:[%s10643_s3] ss:$8 sps:$4 sm:$0xff]  }
 0x2c1   :  { %3411 = vmatpush1.bf16.msra.mxu0 %v6315_v39  ;;  %3559 = vmatpush1.bf16.msra.mxu1 %v6315_v39  ;;  %v8544_v50 = vpop.permute.xlu0 %5797 }
 0x2c2   :  { %v5876_v12 = vpack.i.bf16 %v8495_v37, %v2141_v4  ;;  %v8499_v53 = vpop.f32.mrb[40].mxu1  ;;  %v5901_v32 = vpack.i.bf16 %v8508_v23, %v8511_v56  ;;  %v5896_v10 = vpack.i.bf16 %v8495_v37, %v2408_v48  ;;  %3412 = vmatprep.subr.bf16.mxu0 %v6316_v33  ;;  %3560 = vmatprep.subr.bf16.mxu1 %v6316_v33  ;;  %v6337_v4 = vld [vmem:[%s10643_s3 + $0x84] ss:$8 sps:$4 sm:$0xff]  }
 0x2c3   :  { %v8501_v18 = vpop.f32.mrb[41].mxu1 }
 0x2c4   :  { %5862 = vrot.lane.b32.xlu1 %v5861_v40, %s6621_s1  ;;  %5877 = vrot.lane.b32.xlu0 %v5876_v12, %s6626_s30  ;;  %v1953_v5 = vpop.f32.mrb[42].mxu1  ;;  %v6342_v40 = vld [vmem:[%s10643_s3 + $0x90] ss:$8 sps:$4 sm:$0xff]   ;;  %v1952_v33 = vadd.f32 %v8501_v18, %v7797_v36 }
 0x2c5   :  { %v1954_v8 = vpop.f32.mrb[43].mxu1  ;;  %3413 = vmatpush1.bf16.msra.mxu0 %v6318_v31  ;;  %3561 = vmatpush1.bf16.msra.mxu1 %v6318_v31  ;;  %v8552_v25 = vpop.permute.xlu0 %5832 }
 0x2c6   :  { %3414 = vmatprep.subr.bf16.mxu0 %v6319_v0  ;;  %3562 = vmatprep.subr.bf16.mxu1 %v6319_v0  ;;  %v5775_v8 = vunpack.i.h.bf16 %v8436_v59  ;;  %v6346_v59 = vld [vmem:[%s10643_s3 + $0xb4] ss:$8 sps:$4 sm:$0xff]  }
 0x2c8   :  { %2379 = vrot.lane.b32.xlu1 %v2345_v46, %s6617_s16  ;;  %5882 = vrot.lane.b32.xlu0 %v5876_v12, %s6627_s11 }
 0x2c9   :  { %3415 = vmatpush1.bf16.msra.mxu0 %v6321_v41  ;;  %3563 = vmatpush1.bf16.msra.mxu1 %v6321_v41 }
 0x2ca   :  { %3416 = vmatprep.subr.bf16.mxu0 %v6322_v42  ;;  %3564 = vmatprep.subr.bf16.mxu1 %v6322_v42 }
 0x2cc   :  { %2382 = vrot.lane.b32.xlu1 %v2345_v46, %s6629_s13  ;;  %5887 = vrot.lane.b32.xlu0 %v5876_v12, %s6628_s12  ;;  %v6334_v46 = vld [vmem:[%s10643_s3 + $0x74] ss:$8 sps:$4 sm:$0xff]  }
 0x2cd   :  { %3417 = vmatpush1.bf16.msra.mxu0 %v6324_v2  ;;  %3565 = vmatpush1.bf16.msra.mxu1 %v6324_v2 }
 0x2ce   :  { %3418 = vmatprep.subr.bf16.mxu0 %v6325_v3  ;;  %3566 = vmatprep.subr.bf16.mxu1 %v6325_v3 }
 0x2d0   :  { %5902 = vrot.lane.b32.xlu1 %v5901_v32, %s6620_s10  ;;  %5892 = vrot.lane.b32.xlu0 %v5876_v12, %s6617_s16  ;;  %v6343_v12 = vld [vmem:[%s10643_s3 + $0xa4] ss:$8 sps:$4 sm:$0xff]  }
 0x2d1   :  { %3419 = vmatpush1.bf16.msra.mxu0 %v6327_v26  ;;  %3567 = vmatpush1.bf16.msra.mxu1 %v6327_v26 }
 0x2d2   :  { %3420 = vmatprep.subr.bf16.mxu0 %v6328_v9  ;;  %3568 = vmatprep.subr.bf16.mxu1 %v6328_v9 }
 0x2d4   :  { %5907 = vrot.lane.b32.xlu1 %v5901_v32, %s6623_s27  ;;  %5897 = vrot.lane.b32.xlu0 %v5896_v10, %s6621_s1  ;;  %v1950_v10 = vadd.f32 %v8499_v53, %v7790_v61  ;;  %v2257_v53 = vsel %vm2182_vm13, %v8314_v58, %v5775_v8  ;;  %v5799_v58 = vunpack.i.l.bf16 %v8544_v50 }
 0x2d5   :  { %3421 = vmatpush1.bf16.msra.mxu0 %v6330_v44  ;;  %3569 = vmatpush1.bf16.msra.mxu1 %v6330_v44  ;;  %v8662_v44 = vld [vmem:[%s10643_s3 + $0xc4] ss:$8 sps:$4 sm:$0xff]  }
 0x2d6   :  { %3422 = vmatprep.subr.bf16.mxu0 %v6331_v51  ;;  %3570 = vmatprep.subr.bf16.mxu1 %v6331_v51 }
 0x2d8   :  { %5912 = vrot.lane.b32.xlu1 %v5901_v32, %s6622_s26 }
 0x2dc   :  { %5917 = vrot.lane.b32.xlu1 %v5901_v32, %s6624_s28 }
 0x2e0   :  { %5922 = vrot.lane.b32.xlu1 %v5901_v32, %s6625_s29  ;;  %v6345_v32 = vld [vmem:[%s10643_s3 + $0xa0] ss:$8 sps:$4 sm:$0xff]  }
 0x30e   :  { %v8560_v27 = vpop.permute.xlu1 %5787  ;;  %v8563_v11 = vpop.permute.xlu0 %5842 }
 0x30f   :  { %v5789_v17 = vunpack.i.l.bf16 %v8560_v27 }
 0x311   :  { %v2472_v7 = vmax.f32 %v8309_v43, %v5789_v17  ;;  %v8567_v60 = vmax.f32 %v8311_v16, %v5789_v17  ;;  %v6333_v16 = vld [vmem:[%s10643_s3 + $0x60] ss:$8 sps:$4 sm:$0xff]   ;;  %v8653_v17 = vld [vmem:[%s10643_s3 + $0xb0] ss:$8 sps:$4 sm:$0xff]  }
 0x312   :  { %v8578_v35 = vpop.permute.xlu1 %5792  ;;  %v8592_v57 = vpop.permute.xlu0 %5852  ;;  %3423 = vmatpush1.bf16.msra.mxu0 %v6333_v16  ;;  %3571 = vmatpush1.bf16.msra.mxu1 %v6333_v16  ;;  %v5779_v16 = vunpack.i.l.bf16 %v8487_v62 }
 0x313   :  { %2501 = vrot.lane.b32.xlu0 %v8567_v60, %s6627_s11  ;;  %v5926_v43 = vpack.i.bf16 %v8567_v60, %v2472_v7  ;;  %3424 = vmatprep.subr.bf16.mxu0 %v6334_v46  ;;  %v5794_v24 = vunpack.i.l.bf16 %v8578_v35 }
 0x314   :  { %3572 = vmatprep.subr.bf16.mxu1 %v6334_v46 }
 0x315   :  { %5927 = vrot.lane.b32.xlu1 %v5926_v43, %s6621_s1  ;;  %v2258_v2 = vsel %vm2184_vm14, %v2257_v53, %v5794_v24  ;;  %v5780_v43 = vunpack.i.h.bf16 %v8487_v62  ;;  %v8682_v62 = vld [vmem:[%s10643_s3 + $0xd4] ss:$8 sps:$4 sm:$0xff]  }
 0x316   :  { %v8590_v29 = vpop.permute.xlu1 %5802  ;;  %3425 = vmatpush1.bf16.msra.mxu0 %v6336_v21  ;;  %v8607_v45 = vpop.permute.xlu0 %5857  ;;  %3573 = vmatpush1.bf16.msra.mxu1 %v6336_v21  ;;  %v2259_v46 = vsel %vm2186_vm15, %v2258_v2, %v5799_v58 }
 0x317   :  { %3426 = vmatprep.subr.bf16.mxu0 %v6337_v4  ;;  %3574 = vmatprep.subr.bf16.mxu1 %v6337_v4  ;;  %v5804_v3 = vunpack.i.l.bf16 %v8590_v29  ;;  %v8674_v4 = vld [vmem:[%s10643_s3 + $0xc0] ss:$8 sps:$4 sm:$0xff]   ;;  %v5805_v2 = vunpack.i.h.bf16 %v8590_v29 }
 0x319   :  { %2498 = vrot.lane.b32.xlu1 %v8567_v60, %s6626_s30  ;;  %v2260_v21 = vsel %vm2188_vm0, %v2259_v46, %v5804_v3 }
 0x31a   :  { %v8602_v52 = vpop.permute.xlu1 %5807  ;;  %3427 = vmatpush1.bf16.msra.mxu0 %v6339_v54  ;;  %3575 = vmatpush1.bf16.msra.mxu1 %v6339_v54  ;;  %v8625_v19 = vpop.permute.xlu0 %2370 }
 0x31b   :  { %3428 = vmatprep.subr.bf16.mxu0 %v6340_v22  ;;  %3576 = vmatprep.subr.bf16.mxu1 %v6340_v22  ;;  %v5809_v7 = vunpack.i.l.bf16 %v8602_v52 }
 0x31d   :  { %2504 = vrot.lane.b32.xlu1 %v8567_v60, %s6628_s12  ;;  %v2261_v54 = vsel %vm2190_vm1, %v2260_v21, %v5809_v7 }
 0x31e   :  { %v8614_v15 = vpop.permute.xlu1 %5812  ;;  %3429 = vmatpush1.bf16.msra.mxu0 %v6342_v40  ;;  %3577 = vmatpush1.bf16.msra.mxu1 %v6342_v40  ;;  %v8657_v9 = vpop.permute.xlu0 %2373 }
 0x31f   :  { %3430 = vmatprep.subr.bf16.mxu0 %v6343_v12  ;;  %3578 = vmatprep.subr.bf16.mxu1 %v6343_v12  ;;  %v2240_v12 = vsel %vm2164_vm2, %v5779_v16, %v5780_v43  ;;  %v5814_v53 = vunpack.i.l.bf16 %v8614_v15  ;;  %v5854_v43 = vunpack.i.l.bf16 %v8592_v57 }
 0x322   :  { %v8622_v5 = vpop.permute.xlu1 %5817  ;;  %3431 = vmatpush1.bf16.msra.mxu0 %v6345_v32  ;;  %3579 = vmatpush1.bf16.msra.mxu1 %v6345_v32  ;;  %v8687_v8 = vpop.permute.xlu0 %2376 }
 0x323   :  { %3432 = vmatprep.subr.bf16.mxu0 %v6346_v59  ;;  %3580 = vmatprep.subr.bf16.mxu1 %v6346_v59  ;;  %v5819_v22 = vunpack.i.l.bf16 %v8622_v5 }
 0x324   :  { %v1862_v48 = vpop.f32.mrb[40].mxu0 }
 0x325   :  { %v1863_v63 = vadd.f32 %v1862_v48, %v7790_v61  ;;  %v1864_v39 = vpop.f32.mrb[41].mxu0 }
 0x326   :  { %v1865_v31 = vadd.f32 %v1864_v39, %v7797_v36  ;;  %v8640_v0 = vpop.permute.xlu1 %5822  ;;  %v1866_v42 = vpop.f32.mrb[42].mxu0  ;;  %3433 = vmatpush1.bf16.msra.mxu0 %v8653_v17  ;;  %3581 = vmatpush1.bf16.msra.mxu1 %v8653_v17  ;;  %v2262_v39 = vsel %vm2192_vm3, %v2261_v54, %v2240_v12 }
 0x327   :  { %v8644_v41 = vmax.f32 %v1863_v63, %v1950_v10  ;;  %v1867_v18 = vpop.f32.mrb[43].mxu0  ;;  %3434 = vmatprep.subr.bf16.mxu0 %v8662_v44  ;;  %3582 = vmatprep.subr.bf16.mxu1 %v8662_v44  ;;  %v5824_v24 = vunpack.i.l.bf16 %v8640_v0  ;;  %v5800_v10 = vunpack.i.h.bf16 %v8544_v50  ;;  %v5795_v63 = vunpack.i.h.bf16 %v8578_v35 }
 0x328   :  { %v8648_v26 = vmax.f32 %v1865_v31, %v1952_v33  ;;  %v8698_v33 = vld [vmem:[%s10643_s3 + $0xd0] ss:$8 sps:$4 sm:$0xff]   ;;  %v5815_v31 = vunpack.i.h.bf16 %v8614_v15  ;;  %v5844_v42 = vunpack.i.l.bf16 %v8563_v11  ;;  %v2263_v3 = vsel %vm2194_vm4, %v2262_v39, %v5819_v22  ;;  %v5868_v22 = vpop.permute.xlu0 %5867 }
 0x329   :  { %10773 = vst [vmem:[#allocation6_spill] sm:$0xff] %v8644_v41 }
 0x32a   :  { %10774 = vst [vmem:[#allocation7_spill] sm:$0xff] %v8648_v26  ;;  %v8664_v51 = vpop.permute.xlu1 %5827  ;;  %3435 = vmatpush1.bf16.msra.mxu0 %v8674_v4  ;;  %3583 = vmatpush1.bf16.msra.mxu1 %v8674_v4  ;;  %v2304_v54 = vsel %vm2164_vm2, %v5814_v53, %v5815_v31  ;;  %v5825_v31 = vunpack.i.h.bf16 %v8640_v0  ;;  %v5835_v0 = vunpack.i.h.bf16 %v8552_v25 }
 0x32b   :  { %v5829_v59 = vunpack.i.l.bf16 %v8664_v51  ;;  %3436 = vmatprep.subr.bf16.mxu0 %v8682_v62  ;;  %3584 = vmatprep.subr.bf16.mxu1 %v8682_v62 }
 0x32e   :  { %v5838_v40 = vpop.permute.xlu1 %5837  ;;  %3437 = vmatpush1.bf16.msra.mxu0 %v8698_v33  ;;  %3585 = vmatpush1.bf16.msra.mxu1 %v8698_v33 }
 0x32f   :  { %v5840_v48 = vunpack.i.h.bf16 %v5838_v40  ;;  %v5839_v32 = vunpack.i.l.bf16 %v5838_v40 }
 0x331   :  { %v2385_v50 = vsel %vm2182_vm13, %v8440_v13, %v5840_v48  ;;  %v2321_v35 = vsel %vm2182_vm13, %v8347_v28, %v5839_v32  ;;  %v5810_v13 = vunpack.i.h.bf16 %v8602_v52  ;;  %v2264_v28 = vsel %vm10737_vm5, %v2263_v3, %v5824_v24 }
 0x332   :  { %v2322_v18 = vsel %vm2184_vm14, %v2321_v35, %v5795_v63  ;;  %v8712_v58 = vpop.permute.xlu1 %5847  ;;  %v2265_v29 = vsel %vm10735_vm6, %v2264_v28, %v5829_v59  ;;  %v2386_v46 = vsel %vm2184_vm14, %v2385_v50, %v5844_v42  ;;  %v5834_v52 = vunpack.i.l.bf16 %v8552_v25  ;;  %v8738_v59 = vld [vmem:[%s10643_s3 + $0xe4] ss:$8 sps:$4 sm:$0xff]   ;;  %v8765_v25 = vld [vmem:[%s10643_s3 + $0xf4] ss:$8 sps:$4 sm:$0xff]  }
 0x333   :  { %v2323_v15 = vsel %vm2186_vm15, %v2322_v18, %v5800_v10  ;;  %v5849_v7 = vunpack.i.l.bf16 %v8712_v58  ;;  %v5859_v48 = vunpack.i.l.bf16 %v8607_v45  ;;  %v5820_v32 = vunpack.i.h.bf16 %v8622_v5  ;;  %v8745_v5 = vld [vmem:[%s10643_s3 + $0xe0] ss:$8 sps:$4 sm:$0xff]   ;;  %3438 = vmatprep.subr.bf16.mxu0 %v8738_v59  ;;  %3586 = vmatprep.subr.bf16.mxu1 %v8738_v59 }
 0x334   :  { %v2324_v16 = vsel %vm2188_vm0, %v2323_v15, %v5805_v2  ;;  %v8723_v21 = vpop.f32.mrb[44].mxu1  ;;  %v2266_v53 = vsel %vm10734_vm7, %v2265_v29, %v5834_v52  ;;  %v5869_v2 = vunpack.i.l.bf16 %v5868_v22  ;;  %v5830_v3 = vunpack.i.h.bf16 %v8664_v51  ;;  %3439 = vmatpush1.bf16.msra.mxu0 %v8745_v5  ;;  %3587 = vmatpush1.bf16.msra.mxu1 %v8745_v5 }
 0x335   :  { %v2325_v40 = vsel %vm2190_vm1, %v2324_v16, %v5810_v13  ;;  %v2387_v12 = vsel %vm2186_vm15, %v2386_v46, %v5849_v7  ;;  %v2124_v24 = vpop.f32.mrb[45].mxu1  ;;  %v5870_v51 = vunpack.i.h.bf16 %v5868_v22  ;;  %v8773_v22 = vld [vmem:[%s10643_s3 + $0xf0] ss:$8 sps:$4 sm:$0xff]   ;;  %3440 = vmatprep.subr.bf16.mxu0 %v8765_v25  ;;  %3588 = vmatprep.subr.bf16.mxu1 %v8765_v25 }
 0x336   :  { %v2326_v10 = vsel %vm2192_vm3, %v2325_v40, %v2304_v54  ;;  %v2388_v63 = vsel %vm2188_vm0, %v2387_v12, %v5854_v43  ;;  %v5863_v39 = vpop.permute.xlu1 %5862  ;;  %v2126_v42 = vpop.f32.mrb[46].mxu1  ;;  %v8759_v16 = vsel %vm10733_vm8, %v2266_v53, %v5869_v2  ;;  %v5941_v53 = vpack.i.bf16 %v8567_v60, %v8495_v37 }
 0x337   :  { %v5865_v50 = vunpack.i.h.bf16 %v5863_v39  ;;  %v5864_v35 = vunpack.i.l.bf16 %v5863_v39  ;;  %v2327_v18 = vsel %vm2194_vm4, %v2326_v10, %v5820_v32  ;;  %v2127_v13 = vpop.f32.mrb[47].mxu1  ;;  %v2389_v15 = vsel %vm2190_vm1, %v2388_v63, %v5859_v48 }
 0x338   :  { %v2328_v7 = vsel %vm10737_vm5, %v2327_v18, %v5825_v31  ;;  %3441 = vmatpush1.bf16.msra.mxu0 %v8773_v22  ;;  %3589 = vmatpush1.bf16.msra.mxu1 %v8773_v22  ;;  %v2125_v2 = vadd.f32 %v2124_v24, %v7797_v36 }
 0x339   :  { %v2368_v28 = vsel %vm2164_vm2, %v5864_v35, %v5865_v50  ;;  %v2329_v46 = vsel %vm10735_vm6, %v2328_v7, %v5830_v3  ;;  %v8804_v50 = vld [vmem:[%s10643_s3 + $0x104] ss:$8 sps:$4 sm:$0xff]   ;;  %v2123_v35 = vadd.f32 %v8723_v21, %v7790_v61 }
 0x33a   :  { %v2390_v43 = vsel %vm2192_vm3, %v2389_v15, %v2368_v28  ;;  %v2380_v29 = vpop.permute.xlu1 %2379  ;;  %v2330_v54 = vsel %vm10734_vm7, %v2329_v46, %v5835_v0  ;;  %3451 = vmatprep.subr.bf16.mxu0 %v8804_v50  ;;  %3599 = vmatprep.subr.bf16.mxu1 %v8804_v50  ;;  %v5873_v15 = vpop.permute.xlu0 %5872 }
 0x33b   :  { %v2391_v52 = vsel %vm2194_vm4, %v2390_v43, %v8625_v19  ;;  %v2331_v12 = vsel %vm10733_vm8, %v2330_v54, %v5870_v51  ;;  %v2268_v19 = vmax.f32 %v8759_v16, 0.0 }
 0x33c   :  { %v2392_v40 = vsel %vm10737_vm5, %v2391_v52, %v8657_v9  ;;  %v8783_v32 = vmax.f32 %v2331_v12, 0.0  ;;  %v5845_v52 = vunpack.i.h.bf16 %v8563_v11 }
 0x33d   :  { %v2393_v48 = vsel %vm10735_vm6, %v2392_v40, %v8687_v8  ;;  %v5850_v40 = vunpack.i.h.bf16 %v8712_v58 }
 0x33e   :  { %v2394_v10 = vsel %vm10734_vm7, %v2393_v48, %v2380_v29  ;;  %v2383_v9 = vpop.permute.xlu1 %2382  ;;  %v5931_v39 = vpack.i.bf16 %v8783_v32, %v2268_v19  ;;  %v8819_v51 = vpop.permute.xlu0 %2179 }
 0x33f   :  { %v2395_v63 = vsel %vm10733_vm8, %v2394_v10, %v2383_v9 }
 0x340   :  { %v8792_v31 = vmax.f32 %v2395_v63, 0.0  ;;  %5932 = vrot.lane.b32.xlu1 %v5931_v39, %s6630_s2  ;;  %v5855_v63 = vunpack.i.h.bf16 %v8592_v57 }
 0x342   :  { %v5936_v8 = vpack.i.bf16 %v8792_v31, %v8783_v32  ;;  %v5903_v7 = vpop.permute.xlu1 %5902  ;;  %v8821_v43 = vpop.permute.xlu0 %5877 }
 0x344   :  { %5937 = vrot.lane.b32.xlu0 %v5936_v8, %s6618_s23  ;;  %5942 = vrot.lane.b32.xlu1 %v5941_v53, %s6629_s13 }
 0x346   :  { %v5908_v24 = vpop.permute.xlu1 %5907  ;;  %v8823_v29 = vpop.permute.xlu0 %5882 }
 0x347   :  { %v5909_v39 = vunpack.i.l.bf16 %v5908_v24 }
 0x348   :  { %v2024_v42 = vpop.f32.mrb[44].mxu0  ;;  %2507 = vrot.lane.b32.xlu0 %v8567_v60, %s6617_s16 }
 0x349   :  { %v2025_v37 = vadd.f32 %v2024_v42, %v7790_v61  ;;  %v2026_v3 = vpop.f32.mrb[45].mxu0  ;;  %v5790_v61 = vunpack.i.h.bf16 %v8560_v27  ;;  %v5904_v27 = vunpack.i.l.bf16 %v5903_v7  ;;  %v5874_v42 = vunpack.i.l.bf16 %v5873_v15 }
 0x34a   :  { %v2027_v18 = vadd.f32 %v2026_v3, %v7797_v36  ;;  %v2028_v13 = vpop.f32.mrb[46].mxu0  ;;  %v5913_v60 = vpop.permute.xlu1 %5912 }
 0x34b   :  { %v8815_v0 = vmax.f32 %v2025_v37, %v2123_v35  ;;  %v2029_v28 = vpop.f32.mrb[47].mxu0  ;;  %v8826_v46 = vpop.permute.xlu0 %5887  ;;  %v2183_v54 = vsel %vm2182_vm13, %v8443_v38, %v5790_v61  ;;  %v5914_v11 = vunpack.i.l.bf16 %v5913_v60  ;;  %v5860_v35 = vunpack.i.h.bf16 %v8607_v45 }
 0x34c   :  { %v8817_v21 = vmax.f32 %v2027_v18, %v2125_v2  ;;  %v2185_v10 = vsel %vm2184_vm14, %v2183_v54, %v5845_v52  ;;  %v5875_v38 = vunpack.i.h.bf16 %v5873_v15  ;;  %v2449_v37 = vsel %vm2182_vm13, %v8511_v56, %v5904_v27 }
 0x34d   :  { %10775 = vst [vmem:[#allocation8_spill] sm:$0xff] %v8815_v0  ;;  %v2187_v9 = vsel %vm2186_vm15, %v2185_v10, %v5850_v40  ;;  %v2450_v57 = vsel %vm2184_vm14, %v2449_v37, %v5909_v39  ;;  %v5879_v45 = vunpack.i.l.bf16 %v8821_v43  ;;  %v5905_v54 = vunpack.i.h.bf16 %v5903_v7 }
 0x34e   :  { %10776 = vst [vmem:[#allocation9_spill] sm:$0xff] %v8817_v21  ;;  %v5918_v36 = vpop.permute.xlu1 %5917  ;;  %v2189_v53 = vsel %vm2188_vm0, %v2187_v9, %v5855_v63  ;;  %v2451_v61 = vsel %vm2186_vm15, %v2450_v57, %v5914_v11  ;;  %v2165_v52 = vsel %vm2164_vm2, %v5874_v42, %v5875_v38  ;;  %v5884_v56 = vunpack.i.l.bf16 %v8823_v29 }
 0x34f   :  { %v8832_v12 = vpop.permute.xlu0 %5892  ;;  %v5919_v2 = vunpack.i.l.bf16 %v5918_v36  ;;  %v2191_v18 = vsel %vm2190_vm1, %v2189_v53, %v5860_v35  ;;  %v5910_v9 = vunpack.i.h.bf16 %v5908_v24  ;;  %v5889_v27 = vunpack.i.l.bf16 %v8826_v46 }
 0x350   :  { %v2193_v10 = vsel %vm2192_vm3, %v2191_v18, %v2165_v52  ;;  %v5915_v39 = vunpack.i.h.bf16 %v5913_v60  ;;  %v5894_v35 = vunpack.i.l.bf16 %v8832_v12  ;;  %v5920_v7 = vunpack.i.h.bf16 %v5918_v36 }
 0x351   :  { %v2452_v15 = vsel %vm2188_vm0, %v2451_v61, %v5919_v2  ;;  %v2195_v42 = vsel %vm2194_vm4, %v2193_v10, %v5879_v45  ;;  %v5880_v37 = vunpack.i.h.bf16 %v8821_v43  ;;  %v5890_v10 = vunpack.i.h.bf16 %v8826_v46 }
 0x352   :  { %v5923_v48 = vpop.permute.xlu1 %5922 }
 0x353   :  { %v5898_v58 = vpop.permute.xlu0 %5897  ;;  %v5924_v3 = vunpack.i.l.bf16 %v5923_v48  ;;  %v5925_v2 = vunpack.i.h.bf16 %v5923_v48 }
 0x354   :  { %v5900_v13 = vunpack.i.h.bf16 %v5898_v58  ;;  %v5899_v28 = vunpack.i.l.bf16 %v5898_v58  ;;  %v2513_v58 = vsel %vm2182_vm13, %v8508_v23, %v5905_v54 }
 0x355   :  { %v2453_v63 = vsel %vm2190_vm1, %v2452_v15, %v5924_v3  ;;  %v2197_v3 = vsel %vm10737_vm5, %v2195_v42, %v5884_v56  ;;  %v2514_v60 = vsel %vm2184_vm14, %v2513_v58, %v5910_v9 }
 0x356   :  { %v2432_v38 = vsel %vm2164_vm2, %v5899_v28, %v5900_v13  ;;  %v2515_v18 = vsel %vm2186_vm15, %v2514_v60, %v5915_v39  ;;  %v5885_v28 = vunpack.i.h.bf16 %v8823_v29  ;;  %v8897_v60 = vld [vmem:[%s10643_s3 + $0x100] ss:$8 sps:$4 sm:$0xff]  }
 0x357   :  { %v2454_v24 = vsel %vm2192_vm3, %v2453_v63, %v2432_v38  ;;  %v2516_v23 = vsel %vm2188_vm0, %v2515_v18, %v5920_v7 }
 0x358   :  { %v2455_v48 = vsel %vm2194_vm4, %v2454_v24, %v5880_v37  ;;  %v2517_v43 = vsel %vm2190_vm1, %v2516_v23, %v5925_v2 }
 0x359   :  { %v2456_v15 = vsel %vm10737_vm5, %v2455_v48, %v5885_v28 }
 0x35a   :  { %v2457_v29 = vsel %vm10735_vm6, %v2456_v15, %v5890_v10  ;;  %v5961_v15 = vpack.i.bf16 %v8403_v14, %v8381_v30  ;;  %v8952_v10 = vld [vmem:[%s10643_s3 + $0x134] ss:$8 sps:$4 sm:$0xff]  }
 0x385   :  { %v2502_v61 = vpop.permute.xlu0 %2501 }
 0x387   :  { %v5928_v8 = vpop.permute.xlu1 %5927 }
 0x388   :  { %v5930_v53 = vunpack.i.h.bf16 %v5928_v8  ;;  %v5929_v11 = vunpack.i.l.bf16 %v5928_v8  ;;  %v2199_v8 = vsel %vm10735_vm6, %v2197_v3, %v5889_v27 }
 0x389   :  { %v2201_v13 = vsel %vm10734_vm7, %v2199_v8, %v5894_v35 }
 0x38a   :  { %v2496_v36 = vsel %vm2164_vm2, %v5929_v11, %v5930_v53  ;;  %v2203_v45 = vsel %vm10733_vm8, %v2201_v13, %v8819_v51  ;;  %v5895_v53 = vunpack.i.h.bf16 %v8832_v12  ;;  %v8905_v13 = vld [vmem:[%s10643_s3 + $0x114] ss:$8 sps:$4 sm:$0xff]  }
 0x38b   :  { %v2499_v40 = vpop.permute.xlu1 %2498  ;;  %v2518_v52 = vsel %vm2192_vm3, %v2517_v43, %v2496_v36  ;;  %v2204_v27 = vmax.f32 %v2203_v45, 0.0  ;;  %v8919_v43 = vld [vmem:[%s10643_s3 + $0x110] ss:$8 sps:$4 sm:$0xff]   ;;  %v5956_v45 = vpack.i.bf16 %v8400_v47, %v8374_v34 }
 0x38c   :  { %v2519_v63 = vsel %vm2194_vm4, %v2518_v52, %v2499_v40  ;;  %v2458_v58 = vsel %vm10734_vm7, %v2457_v29, %v5895_v53  ;;  %v8931_v52 = vld [vmem:[%s10643_s3 + $0x124] ss:$8 sps:$4 sm:$0xff]   ;;  %v8989_v29 = vld [vmem:[%s10643_s3 + $0x150] ss:$8 sps:$4 sm:$0xff]  }
 0x38d   :  { %v2520_v38 = vsel %vm10737_vm5, %v2519_v63, %v2502_v61  ;;  %v8975_v63 = vld [vmem:[%s10643_s3 + $0x140] ss:$8 sps:$4 sm:$0xff]   ;;  %v8996_v53 = vld [vmem:[%s10643_s3 + $0x164] ss:$8 sps:$4 sm:$0xff]  }
 0x38f   :  { %v2505_v57 = vpop.permute.xlu1 %2504 }
 0x390   :  { %v2521_v42 = vsel %vm10735_vm6, %v2520_v38, %v2505_v57  ;;  %v9010_v38 = vld [vmem:[%s10643_s3 + $0x174] ss:$8 sps:$4 sm:$0xff]  }
 0x3b2   :  { %v5933_v54 = vpop.permute.xlu1 %5932 }
 0x3b3   :  { %v5935_v56 = vunpack.i.h.bf16 %v5933_v54  ;;  %v5934_v9 = vunpack.i.l.bf16 %v5933_v54  ;;  %v8943_v54 = vld [vmem:[%s10643_s3 + $0x120] ss:$8 sps:$4 sm:$0xff]  }
 0x3b5   :  { %v3546_v46 = vsel %vm10738_vm9, %v2268_v19, %v5935_v56  ;;  %v3002_v40 = vsel %vm10738_vm9, %v2204_v27, %v5934_v9  ;;  %v8982_v27 = vld [vmem:[%s10643_s3 + $0x154] ss:$8 sps:$4 sm:$0xff]  }
 0x3b6   :  { %v8875_v39 = vpop.permute.xlu0 %5937  ;;  %v5943_v11 = vpop.permute.xlu1 %5942  ;;  %v3550_v8 = vpack.c.bf16 %v3546_v46, %v3546_v46  ;;  %v3008_v18 = vpack.c.bf16 %v3002_v40, %v3002_v40  ;;  %v9017_v46 = vld [vmem:[%s10643_s3 + $0x170] ss:$8 sps:$4 sm:$0xff]   ;;  %v9024_v40 = vld [vmem:[%s10643_s3 + $0x184] ss:$8 sps:$4 sm:$0xff]  }
 0x3b7   :  { %v10653_v51 = vunpack.i.h.bf16 %v8875_v39  ;;  %v10652_v35 = vunpack.i.l.bf16 %v8875_v39  ;;  %v5944_v7 = vunpack.i.l.bf16 %v5943_v11  ;;  %v5945_v24 = vunpack.i.h.bf16 %v5943_v11  ;;  %v9003_v11 = vld [vmem:[%s10643_s3 + $0x160] ss:$8 sps:$4 sm:$0xff]  }
 0x3b9   :  { %v3003_v12 = vsel %vm10736_vm11, %v5934_v9, %v10652_v35  ;;  %v3547_v2 = vsel %vm10736_vm11, %v5935_v56, %v10653_v51  ;;  %v2459_v16 = vsel %vm10733_vm8, %v2458_v58, %v5944_v7  ;;  %v8961_v56 = vld [vmem:[%s10643_s3 + $0x130] ss:$8 sps:$4 sm:$0xff]   ;;  %v8968_v9 = vld [vmem:[%s10643_s3 + $0x144] ss:$8 sps:$4 sm:$0xff]   ;;  %v9031_v7 = vld [vmem:[%s10643_s3 + $0x180] ss:$8 sps:$4 sm:$0xff]  }
 0x3ba   :  { %v2508_v37 = vpop.permute.xlu0 %2507  ;;  %v3009_v19 = vpack.c.bf16 %v3003_v12, %v3003_v12  ;;  %v3551_v3 = vpack.c.bf16 %v3547_v2, %v3547_v2  ;;  %v8899_v36 = vmax.f32 %v2459_v16, 0.0  ;;  %v9045_v58 = vld [vmem:[%s10643_s3 + $0x190] ss:$8 sps:$4 sm:$0xff]   ;;  %v9052_v12 = vld [vmem:[%s10643_s3 + $0x1a4] ss:$8 sps:$4 sm:$0xff]  }
 0x3bb   :  { %v2522_v57 = vsel %vm10734_vm7, %v2521_v42, %v2508_v37  ;;  %v9038_v42 = vld [vmem:[%s10643_s3 + $0x194] ss:$8 sps:$4 sm:$0xff]   ;;  %v9059_v2 = vld [vmem:[%s10643_s3 + $0x1a0] ss:$8 sps:$4 sm:$0xff]   ;;  %v9073_v16 = vld [vmem:[%s10643_s3 + $0x1b0] ss:$8 sps:$4 sm:$0xff]  }
 0x3bc   :  { %10777 = vst [vmem:[#allocation10_spill] sm:$0xff] %v8899_v36  ;;  %v2523_v23 = vsel %vm10733_vm8, %v2522_v57, %v5945_v24  ;;  %3442 = vmatprep.mubr.bf16.mxu0 %v3009_v19  ;;  %3590 = vmatprep.mubr.bf16.mxu1 %v3551_v3  ;;  %v8912_v28 = vpack.i.bf16 %v8899_v36, %v8792_v31  ;;  %v9066_v24 = vld [vmem:[%s10643_s3 + $0x1b4] ss:$8 sps:$4 sm:$0xff]   ;;  %v9080_v37 = vld [vmem:[%s10643_s3 + $0x1c4] ss:$8 sps:$4 sm:$0xff]  }
 0x3bd   :  { %v8908_v48 = vmax.f32 %v2523_v23, 0.0  ;;  %3443 = vmatmul.mubr.bf16.vlgmr.msra.gmra.mrb[48].mxu0 %v3008_v18  ;;  %3591 = vmatmul.mubr.bf16.vlgmr.msra.gmra.mrb[48].mxu1 %v3550_v8  ;;  %10778 = vst [vmem:[#allocation11_spill] sm:$0xff] %v9080_v37  ;;  %v9087_v19 = vld [vmem:[%s10643_s3 + $0x1c0] ss:$8 sps:$4 sm:$0xff]   ;;  %v9094_v3 = vld [vmem:[%s10643_s3 + $0x1d4] ss:$8 sps:$4 sm:$0xff]  }
 0x3be   :  { %3452 = vmatpush1.bf16.msra.mxu0 %v8897_v60  ;;  %3600 = vmatpush1.bf16.msra.mxu1 %v8897_v60  ;;  %10779 = vst [vmem:[#allocation12_spill] sm:$0xff] %v9087_v19  ;;  %10780 = vst [vmem:[#allocation13_spill] sm:$0xff] %v9094_v3  ;;  %v9101_v8 = vld [vmem:[%s10643_s3 + $0x1d0] ss:$8 sps:$4 sm:$0xff]   ;;  %v9108_v18 = vld [vmem:[%s10643_s3 + $0x1e4] ss:$8 sps:$4 sm:$0xff]  }
 0x3bf   :  { %5947 = vrot.lane.b32.xlu0 %v8912_v28, %s6631_s17  ;;  %v8925_v61 = vpack.i.bf16 %v8908_v48, %v8899_v36  ;;  %3453 = vmatprep.subr.bf16.mxu0 %v8905_v13  ;;  %10781 = vst [vmem:[#allocation14_spill] sm:$0xff] %v9101_v8  ;;  %10782 = vst [vmem:[#allocation15_spill] sm:$0xff] %v9108_v18  ;;  %v9115_v57 = vld [vmem:[%s10643_s3 + $0x1e0] ss:$8 sps:$4 sm:$0xff]   ;;  %v9122_v23 = vld [vmem:[%s10643_s3 + $0x1f4] ss:$8 sps:$4 sm:$0xff]  }
 0x3c0   :  { %3601 = vmatprep.subr.bf16.mxu1 %v8905_v13  ;;  %10783 = vst [vmem:[#allocation16_spill] sm:$0xff] %v9115_v57  ;;  %10784 = vst [vmem:[#allocation17_spill] sm:$0xff] %v9122_v23 }
 0x3c1   :  { %5952 = vrot.lane.b32.xlu1 %v8925_v61, %s6632_s20 }
 0x3c2   :  { %3454 = vmatpush1.bf16.msra.mxu0 %v8919_v43  ;;  %3602 = vmatpush1.bf16.msra.mxu1 %v8919_v43 }
 0x3c3   :  { %5957 = vrot.lane.b32.xlu0 %v5956_v45, %s6620_s10  ;;  %3455 = vmatprep.subr.bf16.mxu0 %v8931_v52  ;;  %v9129_v45 = vld [vmem:[%s10643_s3 + $0x1f0] ss:$8 sps:$4 sm:$0xff]  }
 0x3c4   :  { %3603 = vmatprep.subr.bf16.mxu1 %v8931_v52  ;;  %10785 = vst [vmem:[#allocation18_spill] sm:$0xff] %v9129_v45 }
 0x3c5   :  { %5962 = vrot.lane.b32.xlu1 %v5961_v15, %s6620_s10  ;;  %v9136_v15 = vld [vmem:[%s10643_s3 + $0x204] ss:$8 sps:$4 sm:$0xff]  }
 0x3c6   :  { %3456 = vmatpush1.bf16.msra.mxu0 %v8943_v54  ;;  %3604 = vmatpush1.bf16.msra.mxu1 %v8943_v54  ;;  %10786 = vst [vmem:[#allocation19_spill] sm:$0xff] %v9136_v15 }
 0x3c7   :  { %3457 = vmatprep.subr.bf16.mxu0 %v8952_v10  ;;  %3605 = vmatprep.subr.bf16.mxu1 %v8952_v10 }
 0x3ca   :  { %3458 = vmatpush1.bf16.msra.mxu0 %v8961_v56  ;;  %3606 = vmatpush1.bf16.msra.mxu1 %v8961_v56 }
 0x3cb   :  { %3459 = vmatprep.subr.bf16.mxu0 %v8968_v9  ;;  %3607 = vmatprep.subr.bf16.mxu1 %v8968_v9 }
 0x3ce   :  { %3460 = vmatpush1.bf16.msra.mxu0 %v8975_v63  ;;  %3608 = vmatpush1.bf16.msra.mxu1 %v8975_v63 }
 0x3cf   :  { %3461 = vmatprep.subr.bf16.mxu0 %v8982_v27  ;;  %3609 = vmatprep.subr.bf16.mxu1 %v8982_v27 }
 0x3d2   :  { %3462 = vmatpush1.bf16.msra.mxu0 %v8989_v29  ;;  %3610 = vmatpush1.bf16.msra.mxu1 %v8989_v29 }
 0x3d3   :  { %3463 = vmatprep.subr.bf16.mxu0 %v8996_v53  ;;  %3611 = vmatprep.subr.bf16.mxu1 %v8996_v53 }
 0x3d6   :  { %3464 = vmatpush1.bf16.msra.mxu0 %v9003_v11  ;;  %3612 = vmatpush1.bf16.msra.mxu1 %v9003_v11 }
 0x3d7   :  { %3465 = vmatprep.subr.bf16.mxu0 %v9010_v38  ;;  %3613 = vmatprep.subr.bf16.mxu1 %v9010_v38 }
 0x3da   :  { %3466 = vmatpush1.bf16.msra.mxu0 %v9017_v46  ;;  %3614 = vmatpush1.bf16.msra.mxu1 %v9017_v46 }
 0x3db   :  { %3467 = vmatprep.subr.bf16.mxu0 %v9024_v40  ;;  %3615 = vmatprep.subr.bf16.mxu1 %v9024_v40 }
 0x3de   :  { %3468 = vmatpush1.bf16.msra.mxu0 %v9031_v7  ;;  %3616 = vmatpush1.bf16.msra.mxu1 %v9031_v7 }
 0x3df   :  { %3469 = vmatprep.subr.bf16.mxu0 %v9038_v42  ;;  %3617 = vmatprep.subr.bf16.mxu1 %v9038_v42 }
 0x3e2   :  { %3470 = vmatpush1.bf16.msra.mxu0 %v9045_v58  ;;  %3618 = vmatpush1.bf16.msra.mxu1 %v9045_v58 }
 0x3e3   :  { %3471 = vmatprep.subr.bf16.mxu0 %v9052_v12  ;;  %3619 = vmatprep.subr.bf16.mxu1 %v9052_v12 }
 0x3e6   :  { %3472 = vmatpush1.bf16.msra.mxu0 %v9059_v2  ;;  %3620 = vmatpush1.bf16.msra.mxu1 %v9059_v2 }
 0x3e7   :  { %3473 = vmatprep.subr.bf16.mxu0 %v9066_v24  ;;  %3621 = vmatprep.subr.bf16.mxu1 %v9066_v24 }
 0x3ea   :  { %3474 = vmatpush1.bf16.msra.mxu0 %v9073_v16  ;;  %3622 = vmatpush1.bf16.msra.mxu1 %v9073_v16 }
 0x3eb   :  { %3475 = vmatprep.subr.bf16.mxu0 %v9080_v37  ;;  %3623 = vmatprep.subr.bf16.mxu1 %v9080_v37 }
 0x3ee   :  { %3476 = vmatpush1.bf16.msra.mxu0 %v9087_v19  ;;  %3624 = vmatpush1.bf16.msra.mxu1 %v9087_v19 }
 0x3ef   :  { %3477 = vmatprep.subr.bf16.mxu0 %v9094_v3  ;;  %3625 = vmatprep.subr.bf16.mxu1 %v9094_v3 }
 0x3f2   :  { %3478 = vmatpush1.bf16.msra.mxu0 %v9101_v8  ;;  %3626 = vmatpush1.bf16.msra.mxu1 %v9101_v8 }
 0x3f3   :  { %3479 = vmatprep.subr.bf16.mxu0 %v9108_v18  ;;  %3627 = vmatprep.subr.bf16.mxu1 %v9108_v18  ;;  %v10788_v18 = vunpack.i.l.bf16 %v8875_v39 }
 0x3f6   :  { %3480 = vmatpush1.bf16.msra.mxu0 %v9115_v57  ;;  %3628 = vmatpush1.bf16.msra.mxu1 %v9115_v57  ;;  %v10787_v57 = vunpack.i.h.bf16 %v8875_v39  ;;  %v9165_v39 = vld [vmem:[%s10643_s3 + $0x200] ss:$8 sps:$4 sm:$0xff]  }
 0x3f7   :  { %3481 = vmatprep.subr.bf16.mxu0 %v9122_v23  ;;  %3629 = vmatprep.subr.bf16.mxu1 %v9122_v23 }
 0x3fa   :  { %3482 = vmatpush1.bf16.msra.mxu0 %v9129_v45  ;;  %3630 = vmatpush1.bf16.msra.mxu1 %v9129_v45 }
 0x3fb   :  { %3492 = vmatprep.subr.bf16.mxu0 %v9136_v15  ;;  %3640 = vmatprep.subr.bf16.mxu1 %v9136_v15 }
 0x431   :  { %v5948_v35 = vpop.permute.xlu0 %5947 }
 0x432   :  { %v5950_v51 = vunpack.i.h.bf16 %v5948_v35  ;;  %v5949_v21 = vunpack.i.l.bf16 %v5948_v35 }
 0x433   :  { %v5953_v26 = vpop.permute.xlu1 %5952 }
 0x434   :  { %v9142_v0 = vunpack.i.h.bf16 %v5953_v26  ;;  %v9144_v41 = vunpack.i.l.bf16 %v5953_v26  ;;  %v3548_v45 = vsel %vm10680_vm10, %v10787_v57, %v5950_v51  ;;  %v3005_v15 = vsel %vm10680_vm10, %v10788_v18, %v5949_v21 }
 0x435   :  { %v5958_v36 = vpop.permute.xlu0 %5957  ;;  %v3552_v18 = vpack.c.bf16 %v3548_v45, %v3548_v45  ;;  %v3010_v57 = vpack.c.bf16 %v3005_v15, %v3005_v15  ;;  %v10681_v15 = vmov 0   ;;  %vm3399_vm10 = vcmask 719872  }
 0x436   :  { %v5960_v1 = vunpack.i.h.bf16 %v5958_v36  ;;  %v5959_v23 = vunpack.i.l.bf16 %v5958_v36  ;;  %v3007_v35 = vsel %vm10679_vm12, %v5949_v21, %v9144_v41  ;;  %v3549_v8 = vsel %vm10679_vm12, %v5950_v51, %v9142_v0  ;;  %v9172_v51 = vld [vmem:[%s10643_s3 + $0x214] ss:$8 sps:$4 sm:$0xff]  }
 0x437   :  { %v5963_v36 = vpop.permute.xlu1 %5962  ;;  %v3011_v19 = vpack.c.bf16 %v3007_v35, %v3007_v35  ;;  %v3553_v37 = vpack.c.bf16 %v3549_v8, %v3549_v8  ;;  %v9179_v8 = vld [vmem:[%s10643_s3 + $0x210] ss:$8 sps:$4 sm:$0xff]   ;;  %vm3403_vm12 = vcmask 1043456  }
 0x438   :  { %v9157_v26 = vmax.f32 %v8400_v47, %v5960_v1  ;;  %v9160_v3 = vmax.f32 %v8374_v34, %v5959_v23  ;;  %v5964_v21 = vunpack.i.l.bf16 %v5963_v36  ;;  %v5965_v23 = vunpack.i.h.bf16 %v5963_v36 }
 0x439   :  { %3483 = vmatprep.mubr.bf16.mxu0 %v3011_v19  ;;  %3631 = vmatprep.mubr.bf16.mxu1 %v3553_v37  ;;  %v9189_v19 = vld [vmem:[%s10643_s3 + $0x224] ss:$8 sps:$4 sm:$0xff]  }
 0x43a   :  { %v5971_v1 = vpack.i.bf16 %v9157_v26, %v9160_v3  ;;  %3484 = vmatmul.mubr.bf16.vlgmr.msra.gmra.mrb[48].mxu0 %v3010_v57  ;;  %3632 = vmatmul.mubr.bf16.vlgmr.msra.gmra.mrb[48].mxu1 %v3552_v18  ;;  %v2536_v37 = vmax.f32 %v8374_v34, %v5964_v21  ;;  %v2537_v45 = vmax.f32 %v8381_v30, %v5964_v21  ;;  %v9199_v34 = vld [vmem:[%s10643_s3 + $0x220] ss:$8 sps:$4 sm:$0xff]   ;;  %v9208_v30 = vld [vmem:[%s10643_s3 + $0x234] ss:$8 sps:$4 sm:$0xff]   ;;  %v9217_v57 = vld [vmem:[%s10643_s3 + $0x230] ss:$8 sps:$4 sm:$0xff]  }
 0x43b   :  { %3493 = vmatpush1.bf16.msra.mxu0 %v9165_v39  ;;  %3641 = vmatpush1.bf16.msra.mxu1 %v9165_v39  ;;  %v2600_v35 = vmax.f32 %v8400_v47, %v5965_v23  ;;  %v2601_v36 = vmax.f32 %v8403_v14, %v5965_v23  ;;  %v9226_v47 = vld [vmem:[%s10643_s3 + $0x244] ss:$8 sps:$4 sm:$0xff]   ;;  %v2983_v14 = vld [vmem:[%s10643_s3 + $0x250] sm:$0xff] }
 0x43c   :  { %5972 = vrot.lane.b32.xlu1 %v5971_v1, %s6623_s27  ;;  %5967 = vrot.lane.b32.xlu0 %v5971_v1, %s6620_s10  ;;  %v5991_v18 = vpack.i.bf16 %v2537_v45, %v2536_v37  ;;  %v5299_v23 = vcombine.low %v2983_v14, %v2983_v14 }
 0x43d   :  { %3494 = vmatprep.subr.bf16.mxu0 %v9172_v51  ;;  %3642 = vmatprep.subr.bf16.mxu1 %v9172_v51  ;;  %v5996_v21 = vpack.i.bf16 %v2601_v36, %v2600_v35  ;;  %v6001_v37 = vpack.i.bf16 %v2601_v36, %v2537_v45  ;;  %v9242_v35 = vcombine.high %v2983_v14, %v2983_v14  ;;  %v9300_v14 = vld [vmem:[%s10643_s3 + $0x24] ss:$8 sps:$4 sm:$0xff]  }
 0x43e   :  { %3524 = vmatprep.mubr.bf16.mxu0 %v10681_v15  ;;  %3672 = vmatprep.mubr.bf16.mxu1 %v10681_v15  ;;  %v9250_v45 = vsel %vm3403_vm12, %v5299_v23, 0  ;;  %v3554_v36 = vpack.c.bf16 %v9142_v0, %v9142_v0  ;;  %v9286_v0 = vld [vmem:[%s10643_s3 + $0x14] ss:$8 sps:$4 sm:$0xff]   ;;  %10795 = vst [vmem:[#allocation26_spill] sm:$0xff] %v9300_v14  ;;  %v9321_v23 = vld [vmem:[%s10643_s3 + $0x30] ss:$8 sps:$4 sm:$0xff]  }
 0x43f   :  { %3495 = vmatpush1.bf16.msra.mxu0 %v9179_v8  ;;  %3643 = vmatpush1.bf16.msra.mxu1 %v9179_v8  ;;  %10789 = vst [vmem:[#allocation20_spill] sm:$0xff] %v9242_v35  ;;  %10790 = vst [vmem:[#allocation21_spill] sm:$0xff] %v9250_v45  ;;  %v9342_v15 = vld [vmem:[%s10643_s3 + $0x54] ss:$8 sps:$4 sm:$0xff]  }
 0x440   :  { %5982 = vrot.lane.b32.xlu1 %v5971_v1, %s6624_s28  ;;  %5977 = vrot.lane.b32.xlu0 %v5971_v1, %s6622_s26  ;;  %10793 = vst [vmem:[#allocation24_spill] sm:$0xff] %v9286_v0  ;;  %10798 = vst [vmem:[#allocation29_spill] sm:$0xff] %v9321_v23 }
 0x441   :  { %3496 = vmatprep.subr.bf16.mxu0 %v9189_v19  ;;  %3644 = vmatprep.subr.bf16.mxu1 %v9189_v19  ;;  %10801 = vst [vmem:[#allocation32_spill] sm:$0xff] %v9342_v15 }
 0x443   :  { %3497 = vmatpush1.bf16.msra.mxu0 %v9199_v34  ;;  %3645 = vmatpush1.bf16.msra.mxu1 %v9199_v34 }
 0x444   :  { %5992 = vrot.lane.b32.xlu1 %v5991_v18, %s6621_s1  ;;  %5987 = vrot.lane.b32.xlu0 %v5971_v1, %s6625_s29  ;;  %v9236_v1 = vld [vmem:[%s10643_s3 + $0x240] ss:$8 sps:$4 sm:$0xff]   ;;  %v9268_v18 = vld [vmem:[%s10643_s3 + $0x4] ss:$8 sps:$4 sm:$0xff]  }
 0x445   :  { %3498 = vmatprep.subr.bf16.mxu0 %v9208_v30  ;;  %3646 = vmatprep.subr.bf16.mxu1 %v9208_v30  ;;  %10791 = vst [vmem:[#allocation22_spill] sm:$0xff] %v9268_v18 }
 0x447   :  { %3499 = vmatpush1.bf16.msra.mxu0 %v9217_v57  ;;  %3647 = vmatpush1.bf16.msra.mxu1 %v9217_v57 }
 0x448   :  { %6002 = vrot.lane.b32.xlu1 %v6001_v37, %s6626_s30  ;;  %5997 = vrot.lane.b32.xlu0 %v5996_v21, %s6621_s1  ;;  %v9307_v21 = vld [vmem:[%s10643_s3 + $0x20] ss:$8 sps:$4 sm:$0xff]  }
 0x449   :  { %3500 = vmatprep.subr.bf16.mxu0 %v9226_v47  ;;  %3648 = vmatprep.subr.bf16.mxu1 %v9226_v47  ;;  %10796 = vst [vmem:[#allocation27_spill] sm:$0xff] %v9307_v21 }
 0x44b   :  { %3501 = vmatpush1.bf16.msra.mxu0 %v9236_v1  ;;  %3649 = vmatpush1.bf16.msra.mxu1 %v9236_v1 }
 0x44c   :  { %6012 = vrot.lane.b32.xlu1 %v8912_v28, %s6630_s2  ;;  %6007 = vrot.lane.b32.xlu0 %v6001_v37, %s6627_s11  ;;  %v3012_v28 = vpack.c.bf16 %v9144_v41, %v9144_v41  ;;  %v9277_v41 = vld [vmem:[%s10643_s3] ss:$8 sps:$4 sm:$0xff]  }
 0x44d   :  { %5301 = vmatprep.subr.msk.bf16.mxu0 %vm3403_vm12, %v9242_v35  ;;  %5303 = vmatprep.subr.msk.bf16.mxu1 %vm3403_vm12, %v9242_v35  ;;  %10792 = vst [vmem:[#allocation23_spill] sm:$0xff] %v9277_v41 }
 0x44f   :  { %3503 = vmatpush1.bf16.msra.mxu0 %v9250_v45  ;;  %3651 = vmatpush1.bf16.msra.mxu1 %v9250_v45 }
 0x450   :  { %6017 = vrot.lane.b32.xlu1 %v6001_v37, %s6628_s12  ;;  %6022 = vrot.lane.b32.xlu0 %v8925_v61, %s6618_s23  ;;  %v9293_v61 = vld [vmem:[%s10643_s3 + $0x10] ss:$8 sps:$4 sm:$0xff]  }
 0x451   :  { %3706 = vmatprep.subr.bf16.mxu0 %v9268_v18  ;;  %3854 = vmatprep.subr.bf16.mxu1 %v9268_v18  ;;  %10794 = vst [vmem:[#allocation25_spill] sm:$0xff] %v9293_v61 }
 0x452   :  { %5302 = vmatmul.mubr.msk.bf16.vlgmr.msra.gmra.mrb[48].mxu0 %vm3399_vm10, %v3012_v28  ;;  %5304 = vmatmul.mubr.msk.bf16.vlgmr.msra.gmra.mrb[48].mxu1 %vm3399_vm10, %v3554_v36  ;;  %v9328_v36 = vld [vmem:[%s10643_s3 + $0x44] ss:$8 sps:$4 sm:$0xff]   ;;  %v9335_v28 = vld [vmem:[%s10643_s3 + $0x40] ss:$8 sps:$4 sm:$0xff]  }
 0x453   :  { %3707 = vmatpush1.bf16.msra.mxu0 %v9277_v41  ;;  %3855 = vmatpush1.bf16.msra.mxu1 %v9277_v41  ;;  %10799 = vst [vmem:[#allocation30_spill] sm:$0xff] %v9328_v36  ;;  %10800 = vst [vmem:[#allocation31_spill] sm:$0xff] %v9335_v28 }
 0x454   :  { %6032 = vrot.lane.b32.xlu1 %v6001_v37, %s6629_s13  ;;  %6027 = vrot.lane.b32.xlu0 %v6001_v37, %s6617_s16  ;;  %v9314_v37 = vld [vmem:[%s10643_s3 + $0x34] ss:$8 sps:$4 sm:$0xff]  }
 0x455   :  { %3708 = vmatprep.subr.bf16.mxu0 %v9286_v0  ;;  %3856 = vmatprep.subr.bf16.mxu1 %v9286_v0  ;;  %10797 = vst [vmem:[#allocation28_spill] sm:$0xff] %v9314_v37 }
 0x457   :  { %3709 = vmatpush1.bf16.msra.mxu0 %v9293_v61  ;;  %3857 = vmatpush1.bf16.msra.mxu1 %v9293_v61 }
 0x458   :  { %3710 = vmatprep.subr.bf16.mxu0 %v9300_v14  ;;  %3858 = vmatprep.subr.bf16.mxu1 %v9300_v14 }
 0x45b   :  { %3711 = vmatpush1.bf16.msra.mxu0 %v9307_v21  ;;  %3859 = vmatpush1.bf16.msra.mxu1 %v9307_v21 }
 0x45c   :  { %3712 = vmatprep.subr.bf16.mxu0 %v9314_v37  ;;  %3860 = vmatprep.subr.bf16.mxu1 %v9314_v37 }
 0x45f   :  { %3713 = vmatpush1.bf16.msra.mxu0 %v9321_v23  ;;  %3861 = vmatpush1.bf16.msra.mxu1 %v9321_v23 }
 0x460   :  { %3714 = vmatprep.subr.bf16.mxu0 %v9328_v36  ;;  %3862 = vmatprep.subr.bf16.mxu1 %v9328_v36  ;;  %v9349_v36 = vld [vmem:[%s10643_s3 + $0x50] ss:$8 sps:$4 sm:$0xff]  }
 0x461   :  { %10802 = vst [vmem:[#allocation33_spill] sm:$0xff] %v9349_v36 }
 0x463   :  { %3715 = vmatpush1.bf16.msra.mxu0 %v9335_v28  ;;  %3863 = vmatpush1.bf16.msra.mxu1 %v9335_v28  ;;  %v9356_v28 = vld [vmem:[%s10643_s3 + $0x64] ss:$8 sps:$4 sm:$0xff]  }
 0x464   :  { %3716 = vmatprep.subr.bf16.mxu0 %v9342_v15  ;;  %3864 = vmatprep.subr.bf16.mxu1 %v9342_v15  ;;  %10803 = vst [vmem:[#allocation34_spill] sm:$0xff] %v9356_v28  ;;  %v9363_v15 = vld [vmem:[%s10643_s3 + $0x60] ss:$8 sps:$4 sm:$0xff]  }
 0x465   :  { %10804 = vst [vmem:[#allocation35_spill] sm:$0xff] %v9363_v15 }
 0x467   :  { %3717 = vmatpush1.bf16.msra.mxu0 %v9349_v36  ;;  %3865 = vmatpush1.bf16.msra.mxu1 %v9349_v36  ;;  %v9370_v36 = vld [vmem:[%s10643_s3 + $0x74] ss:$8 sps:$4 sm:$0xff]  }
 0x468   :  { %3718 = vmatprep.subr.bf16.mxu0 %v9356_v28  ;;  %3866 = vmatprep.subr.bf16.mxu1 %v9356_v28  ;;  %10805 = vst [vmem:[#allocation36_spill] sm:$0xff] %v9370_v36  ;;  %v9377_v28 = vld [vmem:[%s10643_s3 + $0x70] ss:$8 sps:$4 sm:$0xff]  }
 0x469   :  { %10806 = vst [vmem:[#allocation37_spill] sm:$0xff] %v9377_v28 }
 0x46b   :  { %3719 = vmatpush1.bf16.msra.mxu0 %v9363_v15  ;;  %3867 = vmatpush1.bf16.msra.mxu1 %v9363_v15  ;;  %v9384_v15 = vld [vmem:[%s10643_s3 + $0x84] ss:$8 sps:$4 sm:$0xff]  }
 0x46c   :  { %3720 = vmatprep.subr.bf16.mxu0 %v9370_v36  ;;  %3868 = vmatprep.subr.bf16.mxu1 %v9370_v36  ;;  %10807 = vst [vmem:[#allocation38_spill] sm:$0xff] %v9384_v15  ;;  %v9391_v36 = vld [vmem:[%s10643_s3 + $0x80] ss:$8 sps:$4 sm:$0xff]  }
 0x46d   :  { %10808 = vst [vmem:[#allocation39_spill] sm:$0xff] %v9391_v36 }
 0x46f   :  { %3721 = vmatpush1.bf16.msra.mxu0 %v9377_v28  ;;  %3869 = vmatpush1.bf16.msra.mxu1 %v9377_v28  ;;  %v9398_v28 = vld [vmem:[%s10643_s3 + $0x94] ss:$8 sps:$4 sm:$0xff]  }
 0x470   :  { %3722 = vmatprep.subr.bf16.mxu0 %v9384_v15  ;;  %3870 = vmatprep.subr.bf16.mxu1 %v9384_v15  ;;  %10809 = vst [vmem:[#allocation40_spill] sm:$0xff] %v9398_v28  ;;  %v9405_v15 = vld [vmem:[%s10643_s3 + $0x90] ss:$8 sps:$4 sm:$0xff]  }
 0x471   :  { %10810 = vst [vmem:[#allocation41_spill] sm:$0xff] %v9405_v15 }
 0x473   :  { %3723 = vmatpush1.bf16.msra.mxu0 %v9391_v36  ;;  %3871 = vmatpush1.bf16.msra.mxu1 %v9391_v36  ;;  %v9412_v36 = vld [vmem:[%s10643_s3 + $0xa4] ss:$8 sps:$4 sm:$0xff]  }
 0x474   :  { %3724 = vmatprep.subr.bf16.mxu0 %v9398_v28  ;;  %3872 = vmatprep.subr.bf16.mxu1 %v9398_v28  ;;  %10811 = vst [vmem:[#allocation42_spill] sm:$0xff] %v9412_v36  ;;  %v9419_v28 = vld [vmem:[%s10643_s3 + $0xa0] ss:$8 sps:$4 sm:$0xff]  }
 0x475   :  { %10812 = vst [vmem:[#allocation43_spill] sm:$0xff] %v9419_v28 }
 0x477   :  { %3725 = vmatpush1.bf16.msra.mxu0 %v9405_v15  ;;  %3873 = vmatpush1.bf16.msra.mxu1 %v9405_v15  ;;  %v9426_v15 = vld [vmem:[%s10643_s3 + $0xb4] ss:$8 sps:$4 sm:$0xff]  }
 0x478   :  { %3726 = vmatprep.subr.bf16.mxu0 %v9412_v36  ;;  %3874 = vmatprep.subr.bf16.mxu1 %v9412_v36  ;;  %10813 = vst [vmem:[#allocation44_spill] sm:$0xff] %v9426_v15 }
 0x47b   :  { %3727 = vmatpush1.bf16.msra.mxu0 %v9419_v28  ;;  %3875 = vmatpush1.bf16.msra.mxu1 %v9419_v28 }
 0x47c   :  { %3728 = vmatprep.subr.bf16.mxu0 %v9426_v15  ;;  %3876 = vmatprep.subr.bf16.mxu1 %v9426_v15 }
 0x47f   :  { %3729 = vmatpush1.bf16.msra.mxu0 %v8653_v17  ;;  %3877 = vmatpush1.bf16.msra.mxu1 %v8653_v17 }
 0x480   :  { %3730 = vmatprep.subr.bf16.mxu0 %v8662_v44  ;;  %3878 = vmatprep.subr.bf16.mxu1 %v8662_v44 }
 0x483   :  { %3731 = vmatpush1.bf16.msra.mxu0 %v8674_v4  ;;  %3879 = vmatpush1.bf16.msra.mxu1 %v8674_v4 }
 0x484   :  { %3732 = vmatprep.subr.bf16.mxu0 %v8682_v62  ;;  %3880 = vmatprep.subr.bf16.mxu1 %v8682_v62 }
 0x487   :  { %3733 = vmatpush1.bf16.msra.mxu0 %v8698_v33  ;;  %3881 = vmatpush1.bf16.msra.mxu1 %v8698_v33 }
 0x488   :  { %3734 = vmatprep.subr.bf16.mxu0 %v8738_v59  ;;  %3882 = vmatprep.subr.bf16.mxu1 %v8738_v59 }
 0x48b   :  { %3735 = vmatpush1.bf16.msra.mxu0 %v8745_v5  ;;  %3883 = vmatpush1.bf16.msra.mxu1 %v8745_v5 }
 0x48c   :  { %3736 = vmatprep.subr.bf16.mxu0 %v8765_v25  ;;  %3884 = vmatprep.subr.bf16.mxu1 %v8765_v25 }
 0x48f   :  { %3737 = vmatpush1.bf16.msra.mxu0 %v8773_v22  ;;  %3885 = vmatpush1.bf16.msra.mxu1 %v8773_v22 }
 0x490   :  { %3747 = vmatprep.subr.bf16.mxu0 %v8804_v50  ;;  %3895 = vmatprep.subr.bf16.mxu1 %v8804_v50 }
 0x4ae   :  { %v5973_v17 = vpop.permute.xlu1 %5972  ;;  %v5968_v44 = vpop.permute.xlu0 %5967 }
 0x4af   :  { %v5970_v4 = vunpack.i.h.bf16 %v5968_v44  ;;  %v5969_v62 = vunpack.i.l.bf16 %v5968_v44  ;;  %v5975_v15 = vunpack.i.h.bf16 %v5973_v17  ;;  %v5974_v5 = vunpack.i.l.bf16 %v5973_v17 }
 0x4b1   :  { %v2641_v28 = vsel %vm2182_vm13, %v9157_v26, %v5970_v4  ;;  %v2577_v25 = vsel %vm2182_vm13, %v9160_v3, %v5969_v62 }
 0x4b2   :  { %v5983_v33 = vpop.permute.xlu1 %5982  ;;  %v5978_v59 = vpop.permute.xlu0 %5977  ;;  %v2578_v14 = vsel %vm2184_vm14, %v2577_v25, %v5974_v5  ;;  %v2642_v44 = vsel %vm2184_vm14, %v2641_v28, %v5975_v15 }
 0x4b3   :  { %v5980_v36 = vunpack.i.h.bf16 %v5978_v59  ;;  %v5979_v37 = vunpack.i.l.bf16 %v5978_v59  ;;  %v5985_v21 = vunpack.i.h.bf16 %v5983_v33  ;;  %v5984_v50 = vunpack.i.l.bf16 %v5983_v33 }
 0x4b5   :  { %v2643_v61 = vsel %vm2186_vm15, %v2642_v44, %v5980_v36  ;;  %v2579_v4 = vsel %vm2186_vm15, %v2578_v14, %v5979_v37 }
 0x4b6   :  { %v5993_v22 = vpop.permute.xlu1 %5992  ;;  %v5988_v23 = vpop.permute.xlu0 %5987  ;;  %v2644_v59 = vsel %vm2188_vm0, %v2643_v61, %v5985_v21  ;;  %v2580_v15 = vsel %vm2188_vm0, %v2579_v4, %v5984_v50 }
 0x4b7   :  { %v5995_v0 = vunpack.i.h.bf16 %v5993_v22  ;;  %v5994_v17 = vunpack.i.l.bf16 %v5993_v22  ;;  %v5990_v41 = vunpack.i.h.bf16 %v5988_v23  ;;  %v5989_v3 = vunpack.i.l.bf16 %v5988_v23 }
 0x4b9   :  { %v2560_v5 = vsel %vm2164_vm2, %v5994_v17, %v5995_v0  ;;  %v2645_v36 = vsel %vm2190_vm1, %v2644_v59, %v5990_v41  ;;  %v2581_v22 = vsel %vm2190_vm1, %v2580_v15, %v5989_v3 }
 0x4ba   :  { %v6003_v18 = vpop.permute.xlu1 %6002  ;;  %v5998_v26 = vpop.permute.xlu0 %5997 }
 0x4bb   :  { %v6000_v62 = vunpack.i.h.bf16 %v5998_v26  ;;  %v5999_v45 = vunpack.i.l.bf16 %v5998_v26  ;;  %v6005_v23 = vunpack.i.h.bf16 %v6003_v18  ;;  %v6004_v26 = vunpack.i.l.bf16 %v6003_v18 }
 0x4bd   :  { %v2624_v33 = vsel %vm2164_vm2, %v5999_v45, %v6000_v62  ;;  %v2582_v45 = vsel %vm2192_vm3, %v2581_v22, %v2560_v5 }
 0x4be   :  { %v6013_v28 = vpop.permute.xlu1 %6012  ;;  %v6008_v25 = vpop.permute.xlu0 %6007  ;;  %v2646_v44 = vsel %vm2192_vm3, %v2645_v36, %v2624_v33  ;;  %v2583_v18 = vsel %vm2194_vm4, %v2582_v45, %v6004_v26 }
 0x4bf   :  { %v6015_v14 = vunpack.i.h.bf16 %v6013_v28  ;;  %v6014_v37 = vunpack.i.l.bf16 %v6013_v28  ;;  %v6010_v35 = vunpack.i.h.bf16 %v6008_v25  ;;  %v6009_v61 = vunpack.i.l.bf16 %v6008_v25 }
 0x4c0   :  { %v2647_v0 = vsel %vm2194_vm4, %v2646_v44, %v6005_v23 }
 0x4c1   :  { %v3842_v41 = vsel %vm10738_vm9, %v8792_v31, %v6015_v14  ;;  %v3694_v17 = vsel %vm10738_vm9, %v8783_v32, %v6014_v37  ;;  %v2584_v33 = vsel %vm10737_vm5, %v2583_v18, %v6009_v61  ;;  %v2648_v5 = vsel %vm10737_vm5, %v2647_v0, %v6010_v35 }
 0x4c2   :  { %v6018_v21 = vpop.permute.xlu1 %6017  ;;  %v9467_v50 = vpop.permute.xlu0 %6022  ;;  %v3846_v31 = vpack.c.bf16 %v3842_v41, %v3842_v41  ;;  %v3698_v36 = vpack.c.bf16 %v3694_v17, %v3694_v17 }
 0x4c3   :  { %v6025_v4 = vunpack.i.h.bf16 %v9467_v50  ;;  %v6024_v3 = vunpack.i.l.bf16 %v9467_v50  ;;  %v6020_v62 = vunpack.i.h.bf16 %v6018_v21  ;;  %v6019_v59 = vunpack.i.l.bf16 %v6018_v21 }
 0x4c5   :  { %v3695_v15 = vsel %vm10736_vm11, %v6014_v37, %v6024_v3  ;;  %v3843_v32 = vsel %vm10736_vm11, %v6015_v14, %v6025_v4  ;;  %v2585_v35 = vsel %vm10735_vm6, %v2584_v33, %v6019_v59  ;;  %v2649_v0 = vsel %vm10735_vm6, %v2648_v5, %v6020_v62 }
 0x4c6   :  { %v6033_v28 = vpop.permute.xlu1 %6032  ;;  %v6028_v25 = vpop.permute.xlu0 %6027  ;;  %v3699_v22 = vpack.c.bf16 %v3695_v15, %v3695_v15  ;;  %v3847_v44 = vpack.c.bf16 %v3843_v32, %v3843_v32  ;;  %vm10830_vm6 = vcmask 785408  }
 0x4c7   :  { %v6035_v23 = vunpack.i.h.bf16 %v6033_v28  ;;  %v6034_v26 = vunpack.i.l.bf16 %v6033_v28  ;;  %v6030_v45 = vunpack.i.h.bf16 %v6028_v25  ;;  %v6029_v61 = vunpack.i.l.bf16 %v6028_v25  ;;  %vm10831_vm11 = vmmov %vm10830_vm6 }
 0x4c8   :  { %3738 = vmatprep.mubr.bf16.mxu0 %v3699_v22  ;;  %3886 = vmatprep.mubr.bf16.mxu1 %v3847_v44 }
 0x4c9   :  { %v2586_v37 = vsel %vm10734_vm7, %v2585_v35, %v6029_v61  ;;  %v2650_v14 = vsel %vm10734_vm7, %v2649_v0, %v6030_v45  ;;  %3739 = vmatmul.mubr.bf16.vlgmr.msra.gmra.mrb[52].mxu0 %v3698_v36  ;;  %3887 = vmatmul.mubr.bf16.vlgmr.msra.gmra.mrb[52].mxu1 %v3846_v31 }
 0x4ca   :  { %v2587_v21 = vsel %vm10733_vm8, %v2586_v37, %v6034_v26  ;;  %v2651_v41 = vsel %vm10733_vm8, %v2650_v14, %v6035_v23  ;;  %3748 = vmatpush1.bf16.msra.mxu0 %v8897_v60  ;;  %3896 = vmatpush1.bf16.msra.mxu1 %v8897_v60  ;;  %v6046_v60 = vpack.i.bf16 %v8459_v20, %v8431_v49  ;;  %vm10828_vm8 = vcmask 850944  }
 0x4cb   :  { %v9492_v17 = vmax.f32 %v2587_v21, 0.0  ;;  %v9494_v18 = vmax.f32 %v2651_v41, 0.0  ;;  %3749 = vmatprep.subr.bf16.mxu0 %v8905_v13  ;;  %3897 = vmatprep.subr.bf16.mxu1 %v8905_v13  ;;  %v6051_v13 = vpack.i.bf16 %v8461_v6, %v8433_v55  ;;  %vm10829_vm7 = vmmov %vm10828_vm8 }
 0x4cd   :  { %v9500_v62 = vpack.i.bf16 %v9494_v18, %v9492_v17  ;;  %v9504_v59 = vpack.i.bf16 %v9492_v17, %v8908_v48 }
 0x4ce   :  { %3750 = vmatpush1.bf16.msra.mxu0 %v8919_v43  ;;  %3898 = vmatpush1.bf16.msra.mxu1 %v8919_v43  ;;  %v10814_v43 = vld [vmem:[#allocation11_spill] sm:$0xff] }
 0x4cf   :  { %6042 = vrot.lane.b32.xlu1 %v9500_v62, %s6632_s20  ;;  %6037 = vrot.lane.b32.xlu0 %v9504_v59, %s6631_s17 }
 0x4d0   :  { %3751 = vmatprep.subr.bf16.mxu0 %v8931_v52  ;;  %3899 = vmatprep.subr.bf16.mxu1 %v8931_v52  ;;  %v10815_v52 = vld [vmem:[#allocation12_spill] sm:$0xff] }
 0x4d2   :  { %3752 = vmatpush1.bf16.msra.mxu0 %v8943_v54  ;;  %3900 = vmatpush1.bf16.msra.mxu1 %v8943_v54  ;;  %v10816_v54 = vld [vmem:[#allocation13_spill] sm:$0xff] }
 0x4d3   :  { %6052 = vrot.lane.b32.xlu1 %v6051_v13, %s6620_s10  ;;  %6047 = vrot.lane.b32.xlu0 %v6046_v60, %s6620_s10 }
 0x4d4   :  { %3753 = vmatprep.subr.bf16.mxu0 %v8952_v10  ;;  %3901 = vmatprep.subr.bf16.mxu1 %v8952_v10  ;;  %v10817_v10 = vld [vmem:[#allocation14_spill] sm:$0xff] }
 0x4d6   :  { %3754 = vmatpush1.bf16.msra.mxu0 %v8961_v56  ;;  %3902 = vmatpush1.bf16.msra.mxu1 %v8961_v56  ;;  %v10818_v56 = vld [vmem:[#allocation15_spill] sm:$0xff] }
 0x4d7   :  { %3755 = vmatprep.subr.bf16.mxu0 %v8968_v9  ;;  %3903 = vmatprep.subr.bf16.mxu1 %v8968_v9  ;;  %v10819_v9 = vld [vmem:[#allocation16_spill] sm:$0xff] }
 0x4da   :  { %3756 = vmatpush1.bf16.msra.mxu0 %v8975_v63  ;;  %3904 = vmatpush1.bf16.msra.mxu1 %v8975_v63  ;;  %v10820_v63 = vld [vmem:[#allocation17_spill] sm:$0xff] }
 0x4db   :  { %3757 = vmatprep.subr.bf16.mxu0 %v8982_v27  ;;  %3905 = vmatprep.subr.bf16.mxu1 %v8982_v27  ;;  %v10821_v27 = vld [vmem:[#allocation18_spill] sm:$0xff] }
 0x4de   :  { %3758 = vmatpush1.bf16.msra.mxu0 %v8989_v29  ;;  %3906 = vmatpush1.bf16.msra.mxu1 %v8989_v29  ;;  %v10822_v29 = vld [vmem:[#allocation19_spill] sm:$0xff] }
 0x4df   :  { %3759 = vmatprep.subr.bf16.mxu0 %v8996_v53  ;;  %3907 = vmatprep.subr.bf16.mxu1 %v8996_v53  ;;  %v2984_v53 = vld [vmem:[%s10644_s4] sm:$0x3] }
 0x4e2   :  { %3760 = vmatpush1.bf16.msra.mxu0 %v9003_v11  ;;  %3908 = vmatpush1.bf16.msra.mxu1 %v9003_v11  ;;  %v10823_v11 = vld [vmem:[#allocation5_spill] sm:$0xff] }
 0x4e3   :  { %3761 = vmatprep.subr.bf16.mxu0 %v9010_v38  ;;  %3909 = vmatprep.subr.bf16.mxu1 %v9010_v38  ;;  %v10824_v38 = vsub.s32 0, %v10823_v11 }
 0x4e6   :  { %3762 = vmatpush1.bf16.msra.mxu0 %v9017_v46  ;;  %3910 = vmatpush1.bf16.msra.mxu1 %v9017_v46  ;;  %v9581_v46 = vrot.slane %v2984_v53, %v10824_v38  ;;  %v10843_v38 = vld [vmem:[#allocation30_spill] sm:$0xff] }
 0x4e7   :  { %3763 = vmatprep.subr.bf16.mxu0 %v9024_v40  ;;  %3911 = vmatprep.subr.bf16.mxu1 %v9024_v40  ;;  %v10826_v40 = vsub.s32 1, %v10823_v11  ;;  %v10842_v11 = vld [vmem:[#allocation29_spill] sm:$0xff] }
 0x4e8   :  { %10825 = vst [vmem:[#allocation11_spill] sm:$0xff] %v9581_v46 }
 0x4ea   :  { %3764 = vmatpush1.bf16.msra.mxu0 %v9031_v7  ;;  %3912 = vmatpush1.bf16.msra.mxu1 %v9031_v7  ;;  %v9585_v7 = vrot.slane %v2984_v53, %v10826_v40  ;;  %v10841_v53 = vld [vmem:[#allocation28_spill] sm:$0xff]  ;;  %v10844_v40 = vld [vmem:[#allocation31_spill] sm:$0xff] }
 0x4eb   :  { %3765 = vmatprep.subr.bf16.mxu0 %v9038_v42  ;;  %3913 = vmatprep.subr.bf16.mxu1 %v9038_v42 }
 0x4ec   :  { %10827 = vst [vmem:[#allocation12_spill] sm:$0xff] %v9585_v7 }
 0x4ee   :  { %3766 = vmatpush1.bf16.msra.mxu0 %v9045_v58  ;;  %3914 = vmatpush1.bf16.msra.mxu1 %v9045_v58 }
 0x4ef   :  { %3767 = vmatprep.subr.bf16.mxu0 %v9052_v12  ;;  %3915 = vmatprep.subr.bf16.mxu1 %v9052_v12 }
 0x4f2   :  { %3768 = vmatpush1.bf16.msra.mxu0 %v9059_v2  ;;  %3916 = vmatpush1.bf16.msra.mxu1 %v9059_v2 }
 0x4f3   :  { %3769 = vmatprep.subr.bf16.mxu0 %v9066_v24  ;;  %3917 = vmatprep.subr.bf16.mxu1 %v9066_v24 }
 0x4f6   :  { %3770 = vmatpush1.bf16.msra.mxu0 %v9073_v16  ;;  %3918 = vmatpush1.bf16.msra.mxu1 %v9073_v16 }
 0x4f7   :  { %3771 = vmatprep.subr.bf16.mxu0 %v10814_v43  ;;  %3919 = vmatprep.subr.bf16.mxu1 %v10814_v43 }
 0x4fa   :  { %3772 = vmatpush1.bf16.msra.mxu0 %v10815_v52  ;;  %3920 = vmatpush1.bf16.msra.mxu1 %v10815_v52 }
 0x4fb   :  { %3773 = vmatprep.subr.bf16.mxu0 %v10816_v54  ;;  %3921 = vmatprep.subr.bf16.mxu1 %v10816_v54 }
 0x4fe   :  { %3774 = vmatpush1.bf16.msra.mxu0 %v10817_v10  ;;  %3922 = vmatpush1.bf16.msra.mxu1 %v10817_v10 }
 0x4ff   :  { %3775 = vmatprep.subr.bf16.mxu0 %v10818_v56  ;;  %3923 = vmatprep.subr.bf16.mxu1 %v10818_v56 }
 0x502   :  { %3776 = vmatpush1.bf16.msra.mxu0 %v10819_v9  ;;  %3924 = vmatpush1.bf16.msra.mxu1 %v10819_v9 }
 0x503   :  { %3777 = vmatprep.subr.bf16.mxu0 %v10820_v63  ;;  %3925 = vmatprep.subr.bf16.mxu1 %v10820_v63 }
 0x506   :  { %3778 = vmatpush1.bf16.msra.mxu0 %v10821_v27  ;;  %3926 = vmatpush1.bf16.msra.mxu1 %v10821_v27  ;;  %v10832_v27 = vmov 0  }
 0x507   :  { %3788 = vmatprep.subr.bf16.mxu0 %v10822_v29  ;;  %3936 = vmatprep.subr.bf16.mxu1 %v10822_v29 }
 0x525   :  { %v3526_v42 = vpop.f32.mrb[48].mxu0  ;;  %v3674_v58 = vpop.f32.mrb[48].mxu1 }
 0x526   :  { %v5475_v12 = vadd.f32 %v3526_v42, %v9581_v46  ;;  %v5477_v2 = vadd.f32 %v3674_v58, %v9581_v46  ;;  %v3528_v24 = vpop.f32.mrb[49].mxu0  ;;  %v3676_v16 = vpop.f32.mrb[49].mxu1  ;;  %v10845_v42 = vld [vmem:[#allocation32_spill] sm:$0xff]  ;;  %v10846_v58 = vld [vmem:[#allocation33_spill] sm:$0xff] }
 0x527   :  { %v5476_v33 = vadd.f32 %v3528_v24, %v9585_v7  ;;  %v5478_v5 = vadd.f32 %v3676_v16, %v9585_v7  ;;  %v3530_v15 = vpop.f32.mrb[50].mxu0  ;;  %v3678_v32 = vpop.f32.mrb[50].mxu1  ;;  %v10849_v24 = vld [vmem:[#allocation36_spill] sm:$0xff]  ;;  %v10850_v16 = vld [vmem:[#allocation37_spill] sm:$0xff] }
 0x528   :  { %v9591_v31 = vmax.f32 %v5475_v12, %v5477_v2  ;;  %v3531_v36 = vpop.f32.mrb[51].mxu0  ;;  %v3679_v28 = vpop.f32.mrb[51].mxu1  ;;  %v10847_v12 = vld [vmem:[#allocation34_spill] sm:$0xff]  ;;  %v10848_v2 = vld [vmem:[#allocation35_spill] sm:$0xff]  ;;  %v10853_v15 = vld [vmem:[#allocation40_spill] sm:$0xff] }
 0x529   :  { %v9593_v25 = vmax.f32 %v5476_v33, %v5478_v5  ;;  %v10851_v33 = vld [vmem:[#allocation38_spill] sm:$0xff]  ;;  %v10852_v5 = vld [vmem:[#allocation39_spill] sm:$0xff]  ;;  %v10854_v32 = vld [vmem:[#allocation41_spill] sm:$0xff] }
 0x52a   :  { %v10855_v36 = vld [vmem:[#allocation42_spill] sm:$0xff]  ;;  %v10856_v28 = vld [vmem:[#allocation43_spill] sm:$0xff] }
 0x541   :  { %v6043_v22 = vpop.permute.xlu1 %6042  ;;  %v6038_v44 = vpop.permute.xlu0 %6037 }
 0x542   :  { %v9595_v23 = vunpack.i.h.bf16 %v6043_v22  ;;  %v9597_v26 = vunpack.i.l.bf16 %v6043_v22  ;;  %v6040_v45 = vunpack.i.h.bf16 %v6038_v44  ;;  %v6039_v61 = vunpack.i.l.bf16 %v6038_v44  ;;  %v10857_v22 = vld [vmem:[#allocation44_spill] sm:$0xff] }
 0x543   :  { %v9718_v44 = vld [vmem:[%s10643_s3 + $0xb0] ss:$8 sps:$4 sm:$0xff]  }
 0x544   :  { %v3844_v35 = vsel %vm10828_vm8, %v6025_v4, %v6040_v45  ;;  %v3696_v0 = vsel %vm10829_vm7, %v6024_v3, %v6039_v61  ;;  %v3697_v14 = vsel %vm10830_vm6, %v6039_v61, %v9597_v26  ;;  %v3845_v21 = vsel %vm10831_vm11, %v6040_v45, %v9595_v23  ;;  %v9739_v45 = vld [vmem:[%s10643_s3 + $0xd4] ss:$8 sps:$4 sm:$0xff]   ;;  %v9746_v61 = vld [vmem:[%s10643_s3 + $0xd0] ss:$8 sps:$4 sm:$0xff]  }
 0x545   :  { %v6048_v37 = vpop.permute.xlu0 %6047  ;;  %v3848_v41 = vpack.c.bf16 %v3844_v35, %v3844_v35  ;;  %v3700_v60 = vpack.c.bf16 %v3696_v0, %v3696_v0  ;;  %v6053_v52 = vpop.permute.xlu1 %6052  ;;  %v3701_v54 = vpack.c.bf16 %v3697_v14, %v3697_v14  ;;  %v3849_v10 = vpack.c.bf16 %v3845_v21, %v3845_v21  ;;  %v9753_v35 = vld [vmem:[%s10643_s3 + $0xe4] ss:$8 sps:$4 sm:$0xff]   ;;  %v9760_v0 = vld [vmem:[%s10643_s3 + $0xe0] ss:$8 sps:$4 sm:$0xff]   ;;  %v9774_v14 = vld [vmem:[%s10643_s3 + $0xf0] ss:$8 sps:$4 sm:$0xff]  }
 0x546   :  { %v6050_v13 = vunpack.i.h.bf16 %v6048_v37  ;;  %v6049_v43 = vunpack.i.l.bf16 %v6048_v37  ;;  %v6054_v3 = vunpack.i.l.bf16 %v6053_v52  ;;  %v6055_v9 = vunpack.i.h.bf16 %v6053_v52  ;;  %v9767_v37 = vld [vmem:[%s10643_s3 + $0xf4] ss:$8 sps:$4 sm:$0xff]   ;;  %v9781_v21 = vld [vmem:[%s10643_s3 + $0x104] ss:$8 sps:$4 sm:$0xff]  }
 0x547   :  { %3779 = vmatprep.mubr.bf16.mxu0 %v3701_v54  ;;  %3927 = vmatprep.mubr.bf16.mxu1 %v3849_v10  ;;  %vm10859_vm11 = vcmask 916480   ;;  %vm10861_vm7 = vcmask 736256  }
 0x548   :  { %v9610_v4 = vmax.f32 %v8459_v20, %v6050_v13  ;;  %v9613_v50 = vmax.f32 %v8431_v49, %v6049_v43  ;;  %3780 = vmatmul.mubr.bf16.vlgmr.msra.gmra.mrb[52].mxu0 %v3700_v60  ;;  %3928 = vmatmul.mubr.bf16.vlgmr.msra.gmra.mrb[52].mxu1 %v3848_v41  ;;  %v2664_v63 = vmax.f32 %v8431_v49, %v6054_v3  ;;  %vm10860_vm6 = vmmov %vm10859_vm11 }
 0x549   :  { %3789 = vmatpush1.bf16.msra.mxu0 %v9165_v39  ;;  %3937 = vmatpush1.bf16.msra.mxu1 %v9165_v39  ;;  %v2665_v39 = vmax.f32 %v8433_v55, %v6054_v3  ;;  %v2728_v49 = vmax.f32 %v8459_v20, %v6055_v9  ;;  %vm10862_vm8 = vmmov %vm10861_vm7 }
 0x54a   :  { %v6061_v56 = vpack.i.bf16 %v9610_v4, %v9613_v50  ;;  %3790 = vmatprep.subr.bf16.mxu0 %v9172_v51  ;;  %3938 = vmatprep.subr.bf16.mxu1 %v9172_v51  ;;  %v2729_v51 = vmax.f32 %v8461_v6, %v6055_v9  ;;  %v10833_v6 = vld [vmem:[#allocation20_spill] sm:$0xff] }
 0x54b   :  { %3820 = vmatprep.mubr.bf16.mxu0 %v10832_v27  ;;  %3968 = vmatprep.mubr.bf16.mxu1 %v10832_v27  ;;  %v6081_v29 = vpack.i.bf16 %v2665_v39, %v2664_v63 }
 0x54c   :  { %6062 = vrot.lane.b32.xlu1 %v6061_v56, %s6623_s27  ;;  %6057 = vrot.lane.b32.xlu0 %v6061_v56, %s6620_s10  ;;  %v6086_v55 = vpack.i.bf16 %v2729_v51, %v2728_v49  ;;  %v6091_v20 = vpack.i.bf16 %v2729_v51, %v2665_v39 }
 0x54d   :  { %3791 = vmatpush1.bf16.msra.mxu0 %v9179_v8  ;;  %3939 = vmatpush1.bf16.msra.mxu1 %v9179_v8  ;;  %v10834_v8 = vld [vmem:[#allocation21_spill] sm:$0xff] }
 0x54e   :  { %3792 = vmatprep.subr.bf16.mxu0 %v9189_v19  ;;  %3940 = vmatprep.subr.bf16.mxu1 %v9189_v19  ;;  %v3850_v19 = vpack.c.bf16 %v9595_v23, %v9595_v23  ;;  %v9725_v23 = vld [vmem:[%s10643_s3 + $0xc4] ss:$8 sps:$4 sm:$0xff]  }
 0x550   :  { %6072 = vrot.lane.b32.xlu1 %v6061_v56, %s6624_s28  ;;  %6067 = vrot.lane.b32.xlu0 %v6061_v56, %s6622_s26 }
 0x551   :  { %3793 = vmatpush1.bf16.msra.mxu0 %v9199_v34  ;;  %3941 = vmatpush1.bf16.msra.mxu1 %v9199_v34  ;;  %v3702_v34 = vpack.c.bf16 %v9597_v26, %v9597_v26  ;;  %v9732_v26 = vld [vmem:[%s10643_s3 + $0xc0] ss:$8 sps:$4 sm:$0xff]  }
 0x552   :  { %3794 = vmatprep.subr.bf16.mxu0 %v9208_v30  ;;  %3942 = vmatprep.subr.bf16.mxu1 %v9208_v30  ;;  %v10835_v30 = vld [vmem:[#allocation22_spill] sm:$0xff] }
 0x554   :  { %6082 = vrot.lane.b32.xlu1 %v6081_v29, %s6621_s1  ;;  %6077 = vrot.lane.b32.xlu0 %v6061_v56, %s6625_s29 }
 0x555   :  { %3795 = vmatpush1.bf16.msra.mxu0 %v9217_v57  ;;  %3943 = vmatpush1.bf16.msra.mxu1 %v9217_v57  ;;  %v10836_v57 = vld [vmem:[#allocation23_spill] sm:$0xff] }
 0x556   :  { %3796 = vmatprep.subr.bf16.mxu0 %v9226_v47  ;;  %3944 = vmatprep.subr.bf16.mxu1 %v9226_v47  ;;  %v10837_v47 = vld [vmem:[#allocation24_spill] sm:$0xff] }
 0x558   :  { %6092 = vrot.lane.b32.xlu1 %v6091_v20, %s6626_s30  ;;  %6087 = vrot.lane.b32.xlu0 %v6086_v55, %s6621_s1 }
 0x559   :  { %3797 = vmatpush1.bf16.msra.mxu0 %v9236_v1  ;;  %3945 = vmatpush1.bf16.msra.mxu1 %v9236_v1  ;;  %v10838_v1 = vld [vmem:[#allocation25_spill] sm:$0xff] }
 0x55a   :  { %5305 = vmatprep.subr.msk.bf16.mxu0 %vm3403_vm12, %v10833_v6  ;;  %5307 = vmatprep.subr.msk.bf16.mxu1 %vm3403_vm12, %v10833_v6 }
 0x55c   :  { %6102 = vrot.lane.b32.xlu1 %v9504_v59, %s6630_s2  ;;  %6097 = vrot.lane.b32.xlu0 %v6091_v20, %s6627_s11  ;;  %v10840_v59 = vld [vmem:[#allocation27_spill] sm:$0xff] }
 0x55d   :  { %3799 = vmatpush1.bf16.msra.mxu0 %v10834_v8  ;;  %3947 = vmatpush1.bf16.msra.mxu1 %v10834_v8 }
 0x55e   :  { %4002 = vmatprep.subr.bf16.mxu0 %v10835_v30  ;;  %4150 = vmatprep.subr.bf16.mxu1 %v10835_v30 }
 0x560   :  { %6107 = vrot.lane.b32.xlu1 %v6091_v20, %s6628_s12  ;;  %6112 = vrot.lane.b32.xlu0 %v9500_v62, %s6618_s23  ;;  %v10839_v62 = vld [vmem:[#allocation26_spill] sm:$0xff] }
 0x561   :  { %5306 = vmatmul.mubr.msk.bf16.vlgmr.msra.gmra.mrb[52].mxu0 %vm3399_vm10, %v3702_v34  ;;  %5308 = vmatmul.mubr.msk.bf16.vlgmr.msra.gmra.mrb[52].mxu1 %vm3399_vm10, %v3850_v19 }
 0x562   :  { %4003 = vmatpush1.bf16.msra.mxu0 %v10836_v57  ;;  %4151 = vmatpush1.bf16.msra.mxu1 %v10836_v57 }
 0x563   :  { %4004 = vmatprep.subr.bf16.mxu0 %v10837_v47  ;;  %4152 = vmatprep.subr.bf16.mxu1 %v10837_v47 }
 0x564   :  { %6122 = vrot.lane.b32.xlu1 %v6091_v20, %s6629_s13  ;;  %6117 = vrot.lane.b32.xlu0 %v6091_v20, %s6617_s16 }
 0x566   :  { %4005 = vmatpush1.bf16.msra.mxu0 %v10838_v1  ;;  %4153 = vmatpush1.bf16.msra.mxu1 %v10838_v1 }
 0x567   :  { %4006 = vmatprep.subr.bf16.mxu0 %v10839_v62  ;;  %4154 = vmatprep.subr.bf16.mxu1 %v10839_v62 }
 0x56a   :  { %4007 = vmatpush1.bf16.msra.mxu0 %v10840_v59  ;;  %4155 = vmatpush1.bf16.msra.mxu1 %v10840_v59 }
 0x56b   :  { %4008 = vmatprep.subr.bf16.mxu0 %v10841_v53  ;;  %4156 = vmatprep.subr.bf16.mxu1 %v10841_v53 }
 0x56e   :  { %4009 = vmatpush1.bf16.msra.mxu0 %v10842_v11  ;;  %4157 = vmatpush1.bf16.msra.mxu1 %v10842_v11 }
 0x56f   :  { %4010 = vmatprep.subr.bf16.mxu0 %v10843_v38  ;;  %4158 = vmatprep.subr.bf16.mxu1 %v10843_v38 }
 0x572   :  { %4011 = vmatpush1.bf16.msra.mxu0 %v10844_v40  ;;  %4159 = vmatpush1.bf16.msra.mxu1 %v10844_v40 }
 0x573   :  { %4012 = vmatprep.subr.bf16.mxu0 %v10845_v42  ;;  %4160 = vmatprep.subr.bf16.mxu1 %v10845_v42 }
 0x576   :  { %4013 = vmatpush1.bf16.msra.mxu0 %v10846_v58  ;;  %4161 = vmatpush1.bf16.msra.mxu1 %v10846_v58 }
 0x577   :  { %4014 = vmatprep.subr.bf16.mxu0 %v10847_v12  ;;  %4162 = vmatprep.subr.bf16.mxu1 %v10847_v12 }
 0x57a   :  { %4015 = vmatpush1.bf16.msra.mxu0 %v10848_v2  ;;  %4163 = vmatpush1.bf16.msra.mxu1 %v10848_v2 }
 0x57b   :  { %4016 = vmatprep.subr.bf16.mxu0 %v10849_v24  ;;  %4164 = vmatprep.subr.bf16.mxu1 %v10849_v24 }
 0x57e   :  { %4017 = vmatpush1.bf16.msra.mxu0 %v10850_v16  ;;  %4165 = vmatpush1.bf16.msra.mxu1 %v10850_v16 }
 0x57f   :  { %4018 = vmatprep.subr.bf16.mxu0 %v10851_v33  ;;  %4166 = vmatprep.subr.bf16.mxu1 %v10851_v33 }
 0x582   :  { %4019 = vmatpush1.bf16.msra.mxu0 %v10852_v5  ;;  %4167 = vmatpush1.bf16.msra.mxu1 %v10852_v5 }
 0x583   :  { %4020 = vmatprep.subr.bf16.mxu0 %v10853_v15  ;;  %4168 = vmatprep.subr.bf16.mxu1 %v10853_v15 }
 0x586   :  { %4021 = vmatpush1.bf16.msra.mxu0 %v10854_v32  ;;  %4169 = vmatpush1.bf16.msra.mxu1 %v10854_v32 }
 0x587   :  { %4022 = vmatprep.subr.bf16.mxu0 %v10855_v36  ;;  %4170 = vmatprep.subr.bf16.mxu1 %v10855_v36 }
 0x58a   :  { %4023 = vmatpush1.bf16.msra.mxu0 %v10856_v28  ;;  %4171 = vmatpush1.bf16.msra.mxu1 %v10856_v28 }
 0x58b   :  { %4024 = vmatprep.subr.bf16.mxu0 %v10857_v22  ;;  %4172 = vmatprep.subr.bf16.mxu1 %v10857_v22 }
 0x58e   :  { %4025 = vmatpush1.bf16.msra.mxu0 %v9718_v44  ;;  %4173 = vmatpush1.bf16.msra.mxu1 %v9718_v44 }
 0x58f   :  { %4026 = vmatprep.subr.bf16.mxu0 %v9725_v23  ;;  %4174 = vmatprep.subr.bf16.mxu1 %v9725_v23 }
 0x592   :  { %4027 = vmatpush1.bf16.msra.mxu0 %v9732_v26  ;;  %4175 = vmatpush1.bf16.msra.mxu1 %v9732_v26 }
 0x593   :  { %4028 = vmatprep.subr.bf16.mxu0 %v9739_v45  ;;  %4176 = vmatprep.subr.bf16.mxu1 %v9739_v45 }
 0x596   :  { %4029 = vmatpush1.bf16.msra.mxu0 %v9746_v61  ;;  %4177 = vmatpush1.bf16.msra.mxu1 %v9746_v61 }
 0x597   :  { %4030 = vmatprep.subr.bf16.mxu0 %v9753_v35  ;;  %4178 = vmatprep.subr.bf16.mxu1 %v9753_v35 }
 0x59a   :  { %4031 = vmatpush1.bf16.msra.mxu0 %v9760_v0  ;;  %4179 = vmatpush1.bf16.msra.mxu1 %v9760_v0 }
 0x59b   :  { %4032 = vmatprep.subr.bf16.mxu0 %v9767_v37  ;;  %4180 = vmatprep.subr.bf16.mxu1 %v9767_v37 }
 0x59e   :  { %4033 = vmatpush1.bf16.msra.mxu0 %v9774_v14  ;;  %4181 = vmatpush1.bf16.msra.mxu1 %v9774_v14 }
 0x59f   :  { %4043 = vmatprep.subr.bf16.mxu0 %v9781_v21  ;;  %4191 = vmatprep.subr.bf16.mxu1 %v9781_v21 }
 0x5be   :  { %v6063_v41 = vpop.permute.xlu1 %6062  ;;  %v6058_v60 = vpop.permute.xlu0 %6057 }
 0x5bf   :  { %v6060_v13 = vunpack.i.h.bf16 %v6058_v60  ;;  %v6059_v43 = vunpack.i.l.bf16 %v6058_v60  ;;  %v6065_v10 = vunpack.i.h.bf16 %v6063_v41  ;;  %v6064_v3 = vunpack.i.l.bf16 %v6063_v41 }
 0x5c1   :  { %v2769_v56 = vsel %vm2182_vm13, %v9610_v4, %v6060_v13  ;;  %v2705_v9 = vsel %vm2182_vm13, %v9613_v50, %v6059_v43 }
 0x5c2   :  { %v6073_v52 = vpop.permute.xlu1 %6072  ;;  %v6068_v54 = vpop.permute.xlu0 %6067  ;;  %v2706_v20 = vsel %vm2184_vm14, %v2705_v9, %v6064_v3  ;;  %v2770_v19 = vsel %vm2184_vm14, %v2769_v56, %v6065_v10 }
 0x5c3   :  { %v6070_v63 = vunpack.i.h.bf16 %v6068_v54  ;;  %v6069_v51 = vunpack.i.l.bf16 %v6068_v54  ;;  %v6075_v29 = vunpack.i.h.bf16 %v6073_v52  ;;  %v6074_v55 = vunpack.i.l.bf16 %v6073_v52  ;;  %v10858_v52 = vld [vmem:[#allocation10_spill] sm:$0xff] }
 0x5c5   :  { %v2771_v34 = vsel %vm2186_vm15, %v2770_v19, %v6070_v63  ;;  %v2707_v62 = vsel %vm2186_vm15, %v2706_v20, %v6069_v51 }
 0x5c6   :  { %v6083_v39 = vpop.permute.xlu1 %6082  ;;  %v6078_v49 = vpop.permute.xlu0 %6077  ;;  %v2772_v11 = vsel %vm2188_vm0, %v2771_v34, %v6075_v29  ;;  %v2708_v42 = vsel %vm2188_vm0, %v2707_v62, %v6074_v55 }
 0x5c7   :  { %v6085_v30 = vunpack.i.h.bf16 %v6083_v39  ;;  %v6084_v57 = vunpack.i.l.bf16 %v6083_v39  ;;  %v6080_v47 = vunpack.i.h.bf16 %v6078_v49  ;;  %v6079_v50 = vunpack.i.l.bf16 %v6078_v49 }
 0x5c9   :  { %v2688_v40 = vsel %vm2164_vm2, %v6084_v57, %v6085_v30  ;;  %v2773_v58 = vsel %vm2190_vm1, %v2772_v11, %v6080_v47  ;;  %v2709_v24 = vsel %vm2190_vm1, %v2708_v42, %v6079_v50 }
 0x5ca   :  { %v6093_v1 = vpop.permute.xlu1 %6092  ;;  %v6088_v4 = vpop.permute.xlu0 %6087  ;;  %v2710_v22 = vsel %vm2192_vm3, %v2709_v24, %v2688_v40  ;;  %v9830_v40 = vld [vmem:[%s10643_s3 + $0x100] ss:$8 sps:$4 sm:$0xff]  }
 0x5cb   :  { %v6090_v59 = vunpack.i.h.bf16 %v6088_v4  ;;  %v6089_v53 = vunpack.i.l.bf16 %v6088_v4  ;;  %v6095_v15 = vunpack.i.h.bf16 %v6093_v1  ;;  %v6094_v32 = vunpack.i.l.bf16 %v6093_v1 }
 0x5cd   :  { %v2752_v38 = vsel %vm2164_vm2, %v6089_v53, %v6090_v59  ;;  %v2711_v56 = vsel %vm2194_vm4, %v2710_v22, %v6094_v32 }
 0x5ce   :  { %v6103_v12 = vpop.permute.xlu1 %6102  ;;  %v6098_v2 = vpop.permute.xlu0 %6097  ;;  %v2774_v16 = vsel %vm2192_vm3, %v2773_v58, %v2752_v38 }
 0x5cf   :  { %v6105_v33 = vunpack.i.h.bf16 %v6103_v12  ;;  %v6104_v5 = vunpack.i.l.bf16 %v6103_v12  ;;  %v6100_v36 = vunpack.i.h.bf16 %v6098_v2  ;;  %v6099_v28 = vunpack.i.l.bf16 %v6098_v2  ;;  %v9838_v12 = vld [vmem:[%s10643_s3 + $0x114] ss:$8 sps:$4 sm:$0xff]  }
 0x5d0   :  { %v2775_v41 = vsel %vm2194_vm4, %v2774_v16, %v6095_v15  ;;  %v9852_v16 = vld [vmem:[%s10643_s3 + $0x110] ss:$8 sps:$4 sm:$0xff]  }
 0x5d1   :  { %v4138_v43 = vsel %vm10738_vm9, %v8908_v48, %v6105_v33  ;;  %v3990_v54 = vsel %vm10738_vm9, %v10858_v52, %v6104_v5  ;;  %v2712_v39 = vsel %vm10737_vm5, %v2711_v56, %v6099_v28  ;;  %v2776_v49 = vsel %vm10737_vm5, %v2775_v41, %v6100_v36  ;;  %v10868_v15 = vld [vmem:[#allocation8_spill] sm:$0xff]  ;;  %v10869_v36 = vld [vmem:[#allocation7_spill] sm:$0xff]  ;;  %v10870_v28 = vld [vmem:[#allocation9_spill] sm:$0xff] }
 0x5d2   :  { %v6108_v60 = vpop.permute.xlu1 %6107  ;;  %v9802_v13 = vpop.permute.xlu0 %6112  ;;  %v4142_v29 = vpack.c.bf16 %v4138_v43, %v4138_v43  ;;  %v3994_v55 = vpack.c.bf16 %v3990_v54, %v3990_v54  ;;  %v6141_v22 = vpack.i.bf16 %v10870_v28, %v10869_v36  ;;  %v9874_v41 = vld [vmem:[%s10643_s3 + $0x120] ss:$8 sps:$4 sm:$0xff]   ;;  %v9890_v43 = vld [vmem:[%s10643_s3 + $0x130] ss:$8 sps:$4 sm:$0xff]   ;;  %v9897_v52 = vld [vmem:[%s10643_s3 + $0x144] ss:$8 sps:$4 sm:$0xff]  }
 0x5d3   :  { %v10741_v10 = vunpack.i.h.bf16 %v9802_v13  ;;  %v10740_v3 = vunpack.i.l.bf16 %v9802_v13  ;;  %v6110_v9 = vunpack.i.h.bf16 %v6108_v60  ;;  %v6109_v63 = vunpack.i.l.bf16 %v6108_v60  ;;  %v9883_v60 = vld [vmem:[%s10643_s3 + $0x134] ss:$8 sps:$4 sm:$0xff]   ;;  %v9904_v54 = vld [vmem:[%s10643_s3 + $0x140] ss:$8 sps:$4 sm:$0xff]  }
 0x5d4   :  { %v9911_v56 = vld [vmem:[%s10643_s3 + $0x154] ss:$8 sps:$4 sm:$0xff]  }
 0x5d5   :  { %v3991_v51 = vsel %vm10859_vm11, %v6104_v5, %v10740_v3  ;;  %v4139_v48 = vsel %vm10860_vm6, %v6105_v33, %v10741_v10  ;;  %v2713_v62 = vsel %vm10861_vm7, %v2712_v39, %v6109_v63  ;;  %v2777_v50 = vsel %vm10862_vm8, %v2776_v49, %v6110_v9  ;;  %v9863_v33 = vld [vmem:[%s10643_s3 + $0x124] ss:$8 sps:$4 sm:$0xff]   ;;  %v9918_v9 = vld [vmem:[%s10643_s3 + $0x150] ss:$8 sps:$4 sm:$0xff]   ;;  %v9932_v39 = vld [vmem:[%s10643_s3 + $0x160] ss:$8 sps:$4 sm:$0xff]  }
 0x5d6   :  { %v6123_v20 = vpop.permute.xlu1 %6122  ;;  %v6118_v19 = vpop.permute.xlu0 %6117  ;;  %v3995_v34 = vpack.c.bf16 %v3991_v51, %v3991_v51  ;;  %v4143_v30 = vpack.c.bf16 %v4139_v48, %v4139_v48  ;;  %vm10863_vm11 = vcmask 818176   ;;  %vm10865_vm6 = vcmask 900096   ;;  %v10867_v5 = vld [vmem:[#allocation6_spill] sm:$0xff]  ;;  %v9939_v49 = vld [vmem:[%s10643_s3 + $0x174] ss:$8 sps:$4 sm:$0xff]  }
 0x5d7   :  { %v6125_v57 = vunpack.i.h.bf16 %v6123_v20  ;;  %v6124_v47 = vunpack.i.l.bf16 %v6123_v20  ;;  %v6120_v1 = vunpack.i.h.bf16 %v6118_v19  ;;  %v6119_v4 = vunpack.i.l.bf16 %v6118_v19  ;;  %vm10864_vm5 = vmmov %vm10863_vm11  ;;  %v9925_v63 = vld [vmem:[%s10643_s3 + $0x164] ss:$8 sps:$4 sm:$0xff]   ;;  %v9946_v51 = vld [vmem:[%s10643_s3 + $0x170] ss:$8 sps:$4 sm:$0xff]  }
 0x5d8   :  { %4034 = vmatprep.mubr.bf16.mxu0 %v3995_v34  ;;  %4182 = vmatprep.mubr.bf16.mxu1 %v4143_v30  ;;  %vm10866_vm9 = vmmov %vm10865_vm6  ;;  %v6136_v32 = vpack.i.bf16 %v10868_v15, %v10867_v5  ;;  %v9953_v48 = vld [vmem:[%s10643_s3 + $0x184] ss:$8 sps:$4 sm:$0xff]   ;;  %v9974_v20 = vld [vmem:[%s10643_s3 + $0x190] ss:$8 sps:$4 sm:$0xff]   ;;  %vm10888_vm7 = vcmask 785408  }
 0x5d9   :  { %v2714_v59 = vsel %vm10863_vm11, %v2713_v62, %v6119_v4  ;;  %v2778_v53 = vsel %vm10864_vm5, %v2777_v50, %v6120_v1  ;;  %4035 = vmatmul.mubr.bf16.vlgmr.msra.gmra.mrb[56].mxu0 %v3994_v55  ;;  %4183 = vmatmul.mubr.bf16.vlgmr.msra.gmra.mrb[56].mxu1 %v4142_v29  ;;  %v9960_v29 = vld [vmem:[%s10643_s3 + $0x180] ss:$8 sps:$4 sm:$0xff]   ;;  %v9967_v55 = vld [vmem:[%s10643_s3 + $0x194] ss:$8 sps:$4 sm:$0xff]   ;;  %v9981_v19 = vld [vmem:[%s10643_s3 + $0x1a4] ss:$8 sps:$4 sm:$0xff]  }
 0x5da   :  { %v2715_v11 = vsel %vm10865_vm6, %v2714_v59, %v6124_v47  ;;  %v9825_v38 = vsel %vm10866_vm9, %v2778_v53, %v6125_v57  ;;  %4044 = vmatpush1.bf16.msra.mxu0 %v9830_v40  ;;  %4192 = vmatpush1.bf16.msra.mxu1 %v9830_v40  ;;  %10871 = vst [vmem:[#allocation13_spill] sm:$0xff] %v9981_v19  ;;  %v9988_v34 = vld [vmem:[%s10643_s3 + $0x1a0] ss:$8 sps:$4 sm:$0xff]   ;;  %v9995_v30 = vld [vmem:[%s10643_s3 + $0x1b4] ss:$8 sps:$4 sm:$0xff]   ;;  %vm10885_vm5 = vcmask 850944   ;;  %vm10889_vm8 = vmmov %vm10888_vm7 }
 0x5db   :  { %v2716_v42 = vmax.f32 %v2715_v11, 0.0  ;;  %v10739_v58 = vmax.f32 %v9825_v38, 0.0  ;;  %4045 = vmatprep.subr.bf16.mxu0 %v9838_v12  ;;  %4193 = vmatprep.subr.bf16.mxu1 %v9838_v12  ;;  %10872 = vst [vmem:[#allocation14_spill] sm:$0xff] %v9988_v34  ;;  %10873 = vst [vmem:[#allocation15_spill] sm:$0xff] %v9995_v30  ;;  %v10002_v57 = vld [vmem:[%s10643_s3 + $0x1b0] ss:$8 sps:$4 sm:$0xff]  }
 0x5dc   :  { %10874 = vst [vmem:[#allocation16_spill] sm:$0xff] %v10002_v57  ;;  %v10009_v47 = vld [vmem:[%s10643_s3 + $0x1c4] ss:$8 sps:$4 sm:$0xff]   ;;  %v10016_v1 = vld [vmem:[%s10643_s3 + $0x1c0] ss:$8 sps:$4 sm:$0xff]   ;;  %vm10887_vm9 = vmmov %vm10885_vm5  ;;  %vm10892_vm11 = vcmask 654336  }
 0x5dd   :  { %v9844_v2 = vpack.i.bf16 %v10739_v58, %v2716_v42  ;;  %v9847_v24 = vpack.i.bf16 %v2716_v42, %v9494_v18  ;;  %10875 = vst [vmem:[#allocation17_spill] sm:$0xff] %v10009_v47  ;;  %10876 = vst [vmem:[#allocation18_spill] sm:$0xff] %v10016_v1  ;;  %v10023_v4 = vld [vmem:[%s10643_s3 + $0x1d4] ss:$8 sps:$4 sm:$0xff]   ;;  %v10030_v62 = vld [vmem:[%s10643_s3 + $0x1d0] ss:$8 sps:$4 sm:$0xff]  }
 0x5de   :  { %4046 = vmatpush1.bf16.msra.mxu0 %v9852_v16  ;;  %4194 = vmatpush1.bf16.msra.mxu1 %v9852_v16  ;;  %10877 = vst [vmem:[#allocation19_spill] sm:$0xff] %v10023_v4  ;;  %10878 = vst [vmem:[#allocation5_spill] sm:$0xff] %v10030_v62  ;;  %v10037_v50 = vld [vmem:[%s10643_s3 + $0x1e4] ss:$8 sps:$4 sm:$0xff]   ;;  %v10044_v59 = vld [vmem:[%s10643_s3 + $0x1e0] ss:$8 sps:$4 sm:$0xff]  }
 0x5df   :  { %6132 = vrot.lane.b32.xlu1 %v9844_v2, %s6632_s20  ;;  %6127 = vrot.lane.b32.xlu0 %v9847_v24, %s6631_s17  ;;  %10879 = vst [vmem:[#allocation20_spill] sm:$0xff] %v10037_v50  ;;  %10880 = vst [vmem:[#allocation21_spill] sm:$0xff] %v10044_v59  ;;  %v10051_v53 = vld [vmem:[%s10643_s3 + $0x1f4] ss:$8 sps:$4 sm:$0xff]   ;;  %v10058_v11 = vld [vmem:[%s10643_s3 + $0x1f0] ss:$8 sps:$4 sm:$0xff]  }
 0x5e0   :  { %4047 = vmatprep.subr.bf16.mxu0 %v9863_v33  ;;  %4195 = vmatprep.subr.bf16.mxu1 %v9863_v33  ;;  %10881 = vst [vmem:[#allocation22_spill] sm:$0xff] %v10051_v53  ;;  %10882 = vst [vmem:[#allocation23_spill] sm:$0xff] %v10058_v11  ;;  %v10065_v42 = vld [vmem:[%s10643_s3 + $0x204] ss:$8 sps:$4 sm:$0xff]  }
 0x5e1   :  { %10883 = vst [vmem:[#allocation24_spill] sm:$0xff] %v10065_v42  ;;  %vm10893_vm6 = vmmov %vm10892_vm11 }
 0x5e2   :  { %4048 = vmatpush1.bf16.msra.mxu0 %v9874_v41  ;;  %4196 = vmatpush1.bf16.msra.mxu1 %v9874_v41 }
 0x5e3   :  { %6142 = vrot.lane.b32.xlu1 %v6141_v22, %s6620_s10  ;;  %6137 = vrot.lane.b32.xlu0 %v6136_v32, %s6620_s10 }
 0x5e4   :  { %4049 = vmatprep.subr.bf16.mxu0 %v9883_v60  ;;  %4197 = vmatprep.subr.bf16.mxu1 %v9883_v60 }
 0x5e6   :  { %4050 = vmatpush1.bf16.msra.mxu0 %v9890_v43  ;;  %4198 = vmatpush1.bf16.msra.mxu1 %v9890_v43 }
 0x5e7   :  { %4051 = vmatprep.subr.bf16.mxu0 %v9897_v52  ;;  %4199 = vmatprep.subr.bf16.mxu1 %v9897_v52 }
 0x5ea   :  { %4052 = vmatpush1.bf16.msra.mxu0 %v9904_v54  ;;  %4200 = vmatpush1.bf16.msra.mxu1 %v9904_v54 }
 0x5eb   :  { %4053 = vmatprep.subr.bf16.mxu0 %v9911_v56  ;;  %4201 = vmatprep.subr.bf16.mxu1 %v9911_v56 }
 0x5ee   :  { %4054 = vmatpush1.bf16.msra.mxu0 %v9918_v9  ;;  %4202 = vmatpush1.bf16.msra.mxu1 %v9918_v9 }
 0x5ef   :  { %4055 = vmatprep.subr.bf16.mxu0 %v9925_v63  ;;  %4203 = vmatprep.subr.bf16.mxu1 %v9925_v63 }
 0x5f2   :  { %4056 = vmatpush1.bf16.msra.mxu0 %v9932_v39  ;;  %4204 = vmatpush1.bf16.msra.mxu1 %v9932_v39 }
 0x5f3   :  { %4057 = vmatprep.subr.bf16.mxu0 %v9939_v49  ;;  %4205 = vmatprep.subr.bf16.mxu1 %v9939_v49 }
 0x5f6   :  { %4058 = vmatpush1.bf16.msra.mxu0 %v9946_v51  ;;  %4206 = vmatpush1.bf16.msra.mxu1 %v9946_v51 }
 0x5f7   :  { %4059 = vmatprep.subr.bf16.mxu0 %v9953_v48  ;;  %4207 = vmatprep.subr.bf16.mxu1 %v9953_v48 }
 0x5fa   :  { %4060 = vmatpush1.bf16.msra.mxu0 %v9960_v29  ;;  %4208 = vmatpush1.bf16.msra.mxu1 %v9960_v29 }
 0x5fb   :  { %4061 = vmatprep.subr.bf16.mxu0 %v9967_v55  ;;  %4209 = vmatprep.subr.bf16.mxu1 %v9967_v55 }
 0x5fe   :  { %4062 = vmatpush1.bf16.msra.mxu0 %v9974_v20  ;;  %4210 = vmatpush1.bf16.msra.mxu1 %v9974_v20 }
 0x5ff   :  { %4063 = vmatprep.subr.bf16.mxu0 %v9981_v19  ;;  %4211 = vmatprep.subr.bf16.mxu1 %v9981_v19 }
 0x602   :  { %4064 = vmatpush1.bf16.msra.mxu0 %v9988_v34  ;;  %4212 = vmatpush1.bf16.msra.mxu1 %v9988_v34 }
 0x603   :  { %4065 = vmatprep.subr.bf16.mxu0 %v9995_v30  ;;  %4213 = vmatprep.subr.bf16.mxu1 %v9995_v30 }
 0x606   :  { %4066 = vmatpush1.bf16.msra.mxu0 %v10002_v57  ;;  %4214 = vmatpush1.bf16.msra.mxu1 %v10002_v57 }
 0x607   :  { %4067 = vmatprep.subr.bf16.mxu0 %v10009_v47  ;;  %4215 = vmatprep.subr.bf16.mxu1 %v10009_v47 }
 0x60a   :  { %4068 = vmatpush1.bf16.msra.mxu0 %v10016_v1  ;;  %4216 = vmatpush1.bf16.msra.mxu1 %v10016_v1 }
 0x60b   :  { %4069 = vmatprep.subr.bf16.mxu0 %v10023_v4  ;;  %4217 = vmatprep.subr.bf16.mxu1 %v10023_v4 }
 0x60e   :  { %4070 = vmatpush1.bf16.msra.mxu0 %v10030_v62  ;;  %4218 = vmatpush1.bf16.msra.mxu1 %v10030_v62 }
 0x60f   :  { %4071 = vmatprep.subr.bf16.mxu0 %v10037_v50  ;;  %4219 = vmatprep.subr.bf16.mxu1 %v10037_v50 }
 0x612   :  { %4072 = vmatpush1.bf16.msra.mxu0 %v10044_v59  ;;  %4220 = vmatpush1.bf16.msra.mxu1 %v10044_v59 }
 0x613   :  { %4073 = vmatprep.subr.bf16.mxu0 %v10051_v53  ;;  %4221 = vmatprep.subr.bf16.mxu1 %v10051_v53 }
 0x616   :  { %4074 = vmatpush1.bf16.msra.mxu0 %v10058_v11  ;;  %4222 = vmatpush1.bf16.msra.mxu1 %v10058_v11 }
 0x617   :  { %4084 = vmatprep.subr.bf16.mxu0 %v10065_v42  ;;  %4232 = vmatprep.subr.bf16.mxu1 %v10065_v42 }
 0x634   :  { %v3822_v32 = vpop.f32.mrb[52].mxu0  ;;  %v3970_v22 = vpop.f32.mrb[52].mxu1 }
 0x635   :  { %v5479_v58 = vadd.f32 %v3822_v32, %v9581_v46  ;;  %v5481_v3 = vadd.f32 %v3970_v22, %v9581_v46  ;;  %v3824_v10 = vpop.f32.mrb[53].mxu0  ;;  %v3972_v53 = vpop.f32.mrb[53].mxu1 }
 0x636   :  { %v5480_v59 = vadd.f32 %v3824_v10, %v9585_v7  ;;  %v5482_v11 = vadd.f32 %v3972_v53, %v9585_v7  ;;  %v3826_v50 = vpop.f32.mrb[54].mxu0  ;;  %v3974_v62 = vpop.f32.mrb[54].mxu1  ;;  %v10884_v10 = vunpack.i.h.bf16 %v9802_v13 }
 0x637   :  { %v10073_v4 = vmax.f32 %v5479_v58, %v5481_v3  ;;  %v3827_v1 = vpop.f32.mrb[55].mxu0  ;;  %v3975_v47 = vpop.f32.mrb[55].mxu1  ;;  %v10886_v62 = vunpack.i.l.bf16 %v9802_v13 }
 0x638   :  { %v10075_v57 = vmax.f32 %v5480_v59, %v5482_v11 }
 0x651   :  { %v6133_v42 = vpop.permute.xlu1 %6132  ;;  %v6128_v30 = vpop.permute.xlu0 %6127 }
 0x652   :  { %v10077_v34 = vunpack.i.h.bf16 %v6133_v42  ;;  %v10079_v32 = vunpack.i.l.bf16 %v6133_v42  ;;  %v6130_v22 = vunpack.i.h.bf16 %v6128_v30  ;;  %v6129_v46 = vunpack.i.l.bf16 %v6128_v30 }
 0x654   :  { %v4140_v53 = vsel %vm10885_vm5, %v10884_v10, %v6130_v22  ;;  %v3992_v3 = vsel %vm10887_vm9, %v10886_v62, %v6129_v46  ;;  %v3993_v47 = vsel %vm10888_vm7, %v6129_v46, %v10079_v32  ;;  %v4141_v1 = vsel %vm10889_vm8, %v6130_v22, %v10077_v34  ;;  %v10100_v46 = vld [vmem:[%s10643_s3 + $0x200] ss:$8 sps:$4 sm:$0xff]  }
 0x655   :  { %v6138_v58 = vpop.permute.xlu0 %6137  ;;  %v4144_v50 = vpack.c.bf16 %v4140_v53, %v4140_v53  ;;  %v3996_v59 = vpack.c.bf16 %v3992_v3, %v3992_v3  ;;  %v6143_v30 = vpop.permute.xlu1 %6142  ;;  %v3997_v7 = vpack.c.bf16 %v3993_v47, %v3993_v47  ;;  %v4145_v19 = vpack.c.bf16 %v4141_v1, %v4141_v1  ;;  %v10129_v47 = vld [vmem:[%s10643_s3 + $0x224] ss:$8 sps:$4 sm:$0xff]  }
 0x656   :  { %v6140_v11 = vunpack.i.h.bf16 %v6138_v58  ;;  %v6139_v42 = vunpack.i.l.bf16 %v6138_v58  ;;  %v6144_v62 = vunpack.i.l.bf16 %v6143_v30  ;;  %v10122_v58 = vld [vmem:[%s10643_s3 + $0x210] ss:$8 sps:$4 sm:$0xff]   ;;  %vm10894_vm5 = vcmask 916480  }
 0x657   :  { %4075 = vmatprep.mubr.bf16.mxu0 %v3997_v7  ;;  %4223 = vmatprep.mubr.bf16.mxu1 %v4145_v19  ;;  %v10109_v7 = vld [vmem:[%s10643_s3 + $0x214] ss:$8 sps:$4 sm:$0xff]   ;;  %v6145_v19 = vunpack.i.h.bf16 %v6143_v30  ;;  %v10172_v30 = vld [vmem:[%s10643_s3 + $0x240] ss:$8 sps:$4 sm:$0xff]   ;;  %vm10895_vm9 = vmmov %vm10894_vm5  ;;  %vm10898_vm8 = vcmask 818176  }
 0x658   :  { %v10092_v10 = vmax.f32 %v10868_v15, %v6140_v11  ;;  %v10095_v13 = vmax.f32 %v10867_v5, %v6139_v42  ;;  %4076 = vmatmul.mubr.bf16.vlgmr.msra.gmra.mrb[56].mxu0 %v3996_v59  ;;  %4224 = vmatmul.mubr.bf16.vlgmr.msra.gmra.mrb[56].mxu1 %v4144_v50  ;;  %v2792_v53 = vmax.f32 %v10867_v5, %v6144_v62  ;;  %v10140_v50 = vld [vmem:[%s10643_s3 + $0x220] ss:$8 sps:$4 sm:$0xff]   ;;  %v10147_v59 = vld [vmem:[%s10643_s3 + $0x234] ss:$8 sps:$4 sm:$0xff]   ;;  %v10163_v42 = vld [vmem:[%s10643_s3 + $0x244] ss:$8 sps:$4 sm:$0xff]  }
 0x659   :  { %4085 = vmatpush1.bf16.msra.mxu0 %v10100_v46  ;;  %4233 = vmatpush1.bf16.msra.mxu1 %v10100_v46  ;;  %v2793_v3 = vmax.f32 %v10869_v36, %v6144_v62  ;;  %v2856_v5 = vmax.f32 %v10868_v15, %v6145_v19  ;;  %v2857_v36 = vmax.f32 %v10870_v28, %v6145_v19  ;;  %v10156_v28 = vld [vmem:[%s10643_s3 + $0x230] ss:$8 sps:$4 sm:$0xff]   ;;  %v6569_v19 = vld [vmem:[%s10643_s3 + $0x4] ss:$8 sps:$4 sm:$0xff]  }
 0x65a   :  { %v6151_v22 = vpack.i.bf16 %v10092_v10, %v10095_v13  ;;  %4086 = vmatprep.subr.bf16.mxu0 %v10109_v7  ;;  %4234 = vmatprep.subr.bf16.mxu1 %v10109_v7  ;;  %v4146_v62 = vpack.c.bf16 %v10077_v34, %v10077_v34  ;;  %v6571_v34 = vld [vmem:[%s10643_s3 + $0x14] ss:$8 sps:$4 sm:$0xff]  }
 0x65b   :  { %4116 = vmatprep.mubr.bf16.mxu0 %v10832_v27  ;;  %4264 = vmatprep.mubr.bf16.mxu1 %v10832_v27  ;;  %v6171_v1 = vpack.i.bf16 %v2793_v3, %v2792_v53  ;;  %v6176_v15 = vpack.i.bf16 %v2857_v36, %v2856_v5  ;;  %v6181_v11 = vpack.i.bf16 %v2857_v36, %v2793_v3  ;;  %v6574_v53 = vld [vmem:[%s10643_s3 + $0x20] ss:$8 sps:$4 sm:$0xff]   ;;  %v6575_v3 = vld [vmem:[%s10643_s3 + $0x34] ss:$8 sps:$4 sm:$0xff]   ;;  %v6576_v5 = vld [vmem:[%s10643_s3 + $0x30] ss:$8 sps:$4 sm:$0xff]  }
 0x65c   :  { %6152 = vrot.lane.b32.xlu1 %v6151_v22, %s6623_s27  ;;  %6147 = vrot.lane.b32.xlu0 %v6151_v22, %s6620_s10  ;;  %v6577_v36 = vld [vmem:[%s10643_s3 + $0x44] ss:$8 sps:$4 sm:$0xff]  }
 0x65d   :  { %4087 = vmatpush1.bf16.msra.mxu0 %v10122_v58  ;;  %4235 = vmatpush1.bf16.msra.mxu1 %v10122_v58 }
 0x65e   :  { %4088 = vmatprep.subr.bf16.mxu0 %v10129_v47  ;;  %4236 = vmatprep.subr.bf16.mxu1 %v10129_v47 }
 0x660   :  { %6162 = vrot.lane.b32.xlu1 %v6151_v22, %s6624_s28  ;;  %6157 = vrot.lane.b32.xlu0 %v6151_v22, %s6622_s26 }
 0x661   :  { %4089 = vmatpush1.bf16.msra.mxu0 %v10140_v50  ;;  %4237 = vmatpush1.bf16.msra.mxu1 %v10140_v50 }
 0x662   :  { %4090 = vmatprep.subr.bf16.mxu0 %v10147_v59  ;;  %4238 = vmatprep.subr.bf16.mxu1 %v10147_v59 }
 0x664   :  { %6172 = vrot.lane.b32.xlu1 %v6171_v1, %s6621_s1  ;;  %6167 = vrot.lane.b32.xlu0 %v6151_v22, %s6625_s29  ;;  %v3998_v22 = vpack.c.bf16 %v10079_v32, %v10079_v32  ;;  %v6573_v32 = vld [vmem:[%s10643_s3 + $0x24] ss:$8 sps:$4 sm:$0xff]   ;;  %v6578_v1 = vld [vmem:[%s10643_s3 + $0x40] ss:$8 sps:$4 sm:$0xff]  }
 0x665   :  { %4091 = vmatpush1.bf16.msra.mxu0 %v10156_v28  ;;  %4239 = vmatpush1.bf16.msra.mxu1 %v10156_v28 }
 0x666   :  { %4092 = vmatprep.subr.bf16.mxu0 %v10163_v42  ;;  %4240 = vmatprep.subr.bf16.mxu1 %v10163_v42 }
 0x668   :  { %6182 = vrot.lane.b32.xlu1 %v6181_v11, %s6626_s30  ;;  %6177 = vrot.lane.b32.xlu0 %v6176_v15, %s6621_s1  ;;  %v6579_v15 = vld [vmem:[%s10643_s3 + $0x54] ss:$8 sps:$4 sm:$0xff]  }
 0x669   :  { %4093 = vmatpush1.bf16.msra.mxu0 %v10172_v30  ;;  %4241 = vmatpush1.bf16.msra.mxu1 %v10172_v30 }
 0x66a   :  { %5309 = vmatprep.subr.msk.bf16.mxu0 %vm3403_vm12, %v10833_v6  ;;  %5311 = vmatprep.subr.msk.bf16.mxu1 %vm3403_vm12, %v10833_v6 }
 0x66c   :  { %6192 = vrot.lane.b32.xlu1 %v9847_v24, %s6630_s2  ;;  %6187 = vrot.lane.b32.xlu0 %v6181_v11, %s6627_s11  ;;  %v6570_v24 = vld [vmem:[%s10643_s3] ss:$8 sps:$4 sm:$0xff]  }
 0x66d   :  { %4095 = vmatpush1.bf16.msra.mxu0 %v10834_v8  ;;  %4243 = vmatpush1.bf16.msra.mxu1 %v10834_v8 }
 0x66e   :  { %4298 = vmatprep.subr.bf16.mxu0 %v6569_v19  ;;  %4446 = vmatprep.subr.bf16.mxu1 %v6569_v19  ;;  %v6583_v19 = vld [vmem:[%s10643_s3 + $0x74] ss:$8 sps:$4 sm:$0xff]  }
 0x670   :  { %6197 = vrot.lane.b32.xlu1 %v6181_v11, %s6628_s12  ;;  %6202 = vrot.lane.b32.xlu0 %v9844_v2, %s6618_s23  ;;  %v6572_v2 = vld [vmem:[%s10643_s3 + $0x10] ss:$8 sps:$4 sm:$0xff]  }
 0x671   :  { %5310 = vmatmul.mubr.msk.bf16.vlgmr.msra.gmra.mrb[56].mxu0 %vm3399_vm10, %v3998_v22  ;;  %5312 = vmatmul.mubr.msk.bf16.vlgmr.msra.gmra.mrb[56].mxu1 %vm3399_vm10, %v4146_v62  ;;  %v6581_v62 = vld [vmem:[%s10643_s3 + $0x64] ss:$8 sps:$4 sm:$0xff]   ;;  %v6582_v22 = vld [vmem:[%s10643_s3 + $0x60] ss:$8 sps:$4 sm:$0xff]  }
 0x672   :  { %4299 = vmatpush1.bf16.msra.mxu0 %v6570_v24  ;;  %4447 = vmatpush1.bf16.msra.mxu1 %v6570_v24  ;;  %v6584_v24 = vld [vmem:[%s10643_s3 + $0x70] ss:$8 sps:$4 sm:$0xff]  }
 0x673   :  { %4300 = vmatprep.subr.bf16.mxu0 %v6571_v34  ;;  %4448 = vmatprep.subr.bf16.mxu1 %v6571_v34  ;;  %v6585_v34 = vld [vmem:[%s10643_s3 + $0x84] ss:$8 sps:$4 sm:$0xff]  }
 0x674   :  { %6212 = vrot.lane.b32.xlu1 %v6181_v11, %s6629_s13  ;;  %6207 = vrot.lane.b32.xlu0 %v6181_v11, %s6617_s16  ;;  %v6580_v11 = vld [vmem:[%s10643_s3 + $0x50] ss:$8 sps:$4 sm:$0xff]  }
 0x676   :  { %4301 = vmatpush1.bf16.msra.mxu0 %v6572_v2  ;;  %4449 = vmatpush1.bf16.msra.mxu1 %v6572_v2  ;;  %v6586_v2 = vld [vmem:[%s10643_s3 + $0x80] ss:$8 sps:$4 sm:$0xff]  }
 0x677   :  { %4302 = vmatprep.subr.bf16.mxu0 %v6573_v32  ;;  %4450 = vmatprep.subr.bf16.mxu1 %v6573_v32  ;;  %v6587_v32 = vld [vmem:[%s10643_s3 + $0x94] ss:$8 sps:$4 sm:$0xff]  }
 0x67a   :  { %4303 = vmatpush1.bf16.msra.mxu0 %v6574_v53  ;;  %4451 = vmatpush1.bf16.msra.mxu1 %v6574_v53  ;;  %v6588_v53 = vld [vmem:[%s10643_s3 + $0x90] ss:$8 sps:$4 sm:$0xff]  }
 0x67b   :  { %4304 = vmatprep.subr.bf16.mxu0 %v6575_v3  ;;  %4452 = vmatprep.subr.bf16.mxu1 %v6575_v3  ;;  %v6589_v3 = vld [vmem:[%s10643_s3 + $0xa4] ss:$8 sps:$4 sm:$0xff]  }
 0x67e   :  { %4305 = vmatpush1.bf16.msra.mxu0 %v6576_v5  ;;  %4453 = vmatpush1.bf16.msra.mxu1 %v6576_v5  ;;  %v6590_v5 = vld [vmem:[%s10643_s3 + $0xa0] ss:$8 sps:$4 sm:$0xff]  }
 0x67f   :  { %4306 = vmatprep.subr.bf16.mxu0 %v6577_v36  ;;  %4454 = vmatprep.subr.bf16.mxu1 %v6577_v36  ;;  %v6591_v36 = vld [vmem:[%s10643_s3 + $0xb4] ss:$8 sps:$4 sm:$0xff]  }
 0x682   :  { %4307 = vmatpush1.bf16.msra.mxu0 %v6578_v1  ;;  %4455 = vmatpush1.bf16.msra.mxu1 %v6578_v1 }
 0x683   :  { %4308 = vmatprep.subr.bf16.mxu0 %v6579_v15  ;;  %4456 = vmatprep.subr.bf16.mxu1 %v6579_v15 }
 0x686   :  { %4309 = vmatpush1.bf16.msra.mxu0 %v6580_v11  ;;  %4457 = vmatpush1.bf16.msra.mxu1 %v6580_v11 }
 0x687   :  { %4310 = vmatprep.subr.bf16.mxu0 %v6581_v62  ;;  %4458 = vmatprep.subr.bf16.mxu1 %v6581_v62 }
 0x68a   :  { %4311 = vmatpush1.bf16.msra.mxu0 %v6582_v22  ;;  %4459 = vmatpush1.bf16.msra.mxu1 %v6582_v22 }
 0x68b   :  { %4312 = vmatprep.subr.bf16.mxu0 %v6583_v19  ;;  %4460 = vmatprep.subr.bf16.mxu1 %v6583_v19 }
 0x68e   :  { %4313 = vmatpush1.bf16.msra.mxu0 %v6584_v24  ;;  %4461 = vmatpush1.bf16.msra.mxu1 %v6584_v24 }
 0x68f   :  { %4314 = vmatprep.subr.bf16.mxu0 %v6585_v34  ;;  %4462 = vmatprep.subr.bf16.mxu1 %v6585_v34 }
 0x692   :  { %4315 = vmatpush1.bf16.msra.mxu0 %v6586_v2  ;;  %4463 = vmatpush1.bf16.msra.mxu1 %v6586_v2 }
 0x693   :  { %4316 = vmatprep.subr.bf16.mxu0 %v6587_v32  ;;  %4464 = vmatprep.subr.bf16.mxu1 %v6587_v32 }
 0x696   :  { %4317 = vmatpush1.bf16.msra.mxu0 %v6588_v53  ;;  %4465 = vmatpush1.bf16.msra.mxu1 %v6588_v53 }
 0x697   :  { %4318 = vmatprep.subr.bf16.mxu0 %v6589_v3  ;;  %4466 = vmatprep.subr.bf16.mxu1 %v6589_v3 }
 0x69a   :  { %4319 = vmatpush1.bf16.msra.mxu0 %v6590_v5  ;;  %4467 = vmatpush1.bf16.msra.mxu1 %v6590_v5 }
 0x69b   :  { %4320 = vmatprep.subr.bf16.mxu0 %v6591_v36  ;;  %4468 = vmatprep.subr.bf16.mxu1 %v6591_v36 }
 0x69e   :  { %4321 = vmatpush1.bf16.msra.mxu0 %v9718_v44  ;;  %4469 = vmatpush1.bf16.msra.mxu1 %v9718_v44 }
 0x69f   :  { %4322 = vmatprep.subr.bf16.mxu0 %v9725_v23  ;;  %4470 = vmatprep.subr.bf16.mxu1 %v9725_v23 }
 0x6a2   :  { %4323 = vmatpush1.bf16.msra.mxu0 %v9732_v26  ;;  %4471 = vmatpush1.bf16.msra.mxu1 %v9732_v26 }
 0x6a3   :  { %4324 = vmatprep.subr.bf16.mxu0 %v9739_v45  ;;  %4472 = vmatprep.subr.bf16.mxu1 %v9739_v45 }
 0x6a6   :  { %4325 = vmatpush1.bf16.msra.mxu0 %v9746_v61  ;;  %4473 = vmatpush1.bf16.msra.mxu1 %v9746_v61 }
 0x6a7   :  { %4326 = vmatprep.subr.bf16.mxu0 %v9753_v35  ;;  %4474 = vmatprep.subr.bf16.mxu1 %v9753_v35 }
 0x6aa   :  { %4327 = vmatpush1.bf16.msra.mxu0 %v9760_v0  ;;  %4475 = vmatpush1.bf16.msra.mxu1 %v9760_v0 }
 0x6ab   :  { %4328 = vmatprep.subr.bf16.mxu0 %v9767_v37  ;;  %4476 = vmatprep.subr.bf16.mxu1 %v9767_v37 }
 0x6ae   :  { %4329 = vmatpush1.bf16.msra.mxu0 %v9774_v14  ;;  %4477 = vmatpush1.bf16.msra.mxu1 %v9774_v14 }
 0x6af   :  { %4339 = vmatprep.subr.bf16.mxu0 %v9781_v21  ;;  %4487 = vmatprep.subr.bf16.mxu1 %v9781_v21 }
 0x6ce   :  { %v6153_v44 = vpop.permute.xlu1 %6152  ;;  %v6148_v23 = vpop.permute.xlu0 %6147 }
 0x6cf   :  { %v6150_v26 = vunpack.i.h.bf16 %v6148_v23  ;;  %v6149_v45 = vunpack.i.l.bf16 %v6148_v23  ;;  %v6155_v1 = vunpack.i.h.bf16 %v6153_v44  ;;  %v6154_v0 = vunpack.i.l.bf16 %v6153_v44 }
 0x6d1   :  { %v2897_v15 = vsel %vm2182_vm13, %v10092_v10, %v6150_v26  ;;  %v2833_v37 = vsel %vm2182_vm13, %v10095_v13, %v6149_v45  ;;  %vm10890_vm13 = vcmask 982016  }
 0x6d2   :  { %v6163_v61 = vpop.permute.xlu1 %6162  ;;  %v6158_v35 = vpop.permute.xlu0 %6157  ;;  %v2834_v24 = vsel %vm2184_vm14, %v2833_v37, %v6154_v0  ;;  %v2898_v34 = vsel %vm2184_vm14, %v2897_v15, %v6155_v1 }
 0x6d3   :  { %v6160_v11 = vunpack.i.h.bf16 %v6158_v35  ;;  %v6159_v22 = vunpack.i.l.bf16 %v6158_v35  ;;  %v6165_v19 = vunpack.i.h.bf16 %v6163_v61  ;;  %v6164_v21 = vunpack.i.l.bf16 %v6163_v61 }
 0x6d5   :  { %v2899_v2 = vsel %vm2186_vm15, %v2898_v34, %v6160_v11  ;;  %v2835_v36 = vsel %vm2186_vm15, %v2834_v24, %v6159_v22  ;;  %vm10891_vm15 = vmmov %vm10890_vm13 }
 0x6d6   :  { %v6173_v14 = vpop.permute.xlu1 %6172  ;;  %v6168_v62 = vpop.permute.xlu0 %6167  ;;  %v2900_v26 = vsel %vm2188_vm0, %v2899_v2, %v6165_v19  ;;  %v2836_v35 = vsel %vm2188_vm0, %v2835_v36, %v6164_v21 }
 0x6d7   :  { %v6175_v32 = vunpack.i.h.bf16 %v6173_v14  ;;  %v6174_v53 = vunpack.i.l.bf16 %v6173_v14  ;;  %v6170_v3 = vunpack.i.h.bf16 %v6168_v62  ;;  %v6169_v13 = vunpack.i.l.bf16 %v6168_v62 }
 0x6d9   :  { %v2816_v61 = vsel %vm2164_vm2, %v6174_v53, %v6175_v32  ;;  %v2901_v1 = vsel %vm2190_vm1, %v2900_v26, %v6170_v3  ;;  %v2837_v37 = vsel %vm2190_vm1, %v2836_v35, %v6169_v13 }
 0x6da   :  { %v6183_v5 = vpop.permute.xlu1 %6182  ;;  %v6178_v10 = vpop.permute.xlu0 %6177  ;;  %v2838_v2 = vsel %vm2192_vm3, %v2837_v37, %v2816_v61 }
 0x6db   :  { %v6180_v44 = vunpack.i.h.bf16 %v6178_v10  ;;  %v6179_v23 = vunpack.i.l.bf16 %v6178_v10  ;;  %v6185_v22 = vunpack.i.h.bf16 %v6183_v5  ;;  %v6184_v24 = vunpack.i.l.bf16 %v6183_v5 }
 0x6dd   :  { %v2880_v45 = vsel %vm2164_vm2, %v6179_v23, %v6180_v44  ;;  %v2839_v5 = vsel %vm2194_vm4, %v2838_v2, %v6184_v24 }
 0x6de   :  { %v6193_v0 = vpop.permute.xlu1 %6192  ;;  %v6188_v15 = vpop.permute.xlu0 %6187  ;;  %v2902_v11 = vsel %vm2192_vm3, %v2901_v1, %v2880_v45 }
 0x6df   :  { %v6195_v14 = vunpack.i.h.bf16 %v6193_v0  ;;  %v6194_v62 = vunpack.i.l.bf16 %v6193_v0  ;;  %v6190_v34 = vunpack.i.h.bf16 %v6188_v15  ;;  %v6189_v19 = vunpack.i.l.bf16 %v6188_v15 }
 0x6e0   :  { %v2903_v32 = vsel %vm2194_vm4, %v2902_v11, %v6185_v22  ;;  %vm10896_vm4 = vcmask 736256  }
 0x6e1   :  { %v4434_v3 = vsel %vm10890_vm13, %v9494_v18, %v6195_v14  ;;  %v4286_v10 = vsel %vm10891_vm15, %v9492_v17, %v6194_v62  ;;  %v2840_v26 = vsel %vm10892_vm11, %v2839_v5, %v6189_v19  ;;  %v2904_v45 = vsel %vm10893_vm6, %v2903_v32, %v6190_v34  ;;  %vm10897_vm7 = vmmov %vm10896_vm4 }
 0x6e2   :  { %v6198_v53 = vpop.permute.xlu1 %6197  ;;  %v10302_v21 = vpop.permute.xlu0 %6202  ;;  %v4438_v18 = vpack.c.bf16 %v4434_v3, %v4434_v3  ;;  %v4290_v35 = vpack.c.bf16 %v4286_v10, %v4286_v10  ;;  %vm10899_vm13 = vmmov %vm10898_vm8  ;;  %vm10900_vm15 = vcmask 900096   ;;  %vm10918_vm6 = vcmask 850944  }
 0x6e3   :  { %v6205_v36 = vunpack.i.h.bf16 %v10302_v21  ;;  %v6204_v13 = vunpack.i.l.bf16 %v10302_v21  ;;  %v6200_v44 = vunpack.i.h.bf16 %v6198_v53  ;;  %v6199_v23 = vunpack.i.l.bf16 %v6198_v53  ;;  %vm10901_vm11 = vmmov %vm10900_vm15 }
 0x6e5   :  { %v4287_v61 = vsel %vm10894_vm5, %v6194_v62, %v6204_v13  ;;  %v4435_v17 = vsel %vm10895_vm9, %v6195_v14, %v6205_v36  ;;  %v2841_v34 = vsel %vm10896_vm4, %v2840_v26, %v6199_v23  ;;  %v2905_v2 = vsel %vm10897_vm7, %v2904_v45, %v6200_v44  ;;  %vm10919_vm5 = vmmov %vm10918_vm6 }
 0x6e6   :  { %v6213_v1 = vpop.permute.xlu1 %6212  ;;  %v6208_v0 = vpop.permute.xlu0 %6207  ;;  %v4291_v15 = vpack.c.bf16 %v4287_v61, %v4287_v61  ;;  %v4439_v37 = vpack.c.bf16 %v4435_v17, %v4435_v17  ;;  %v10902_v44 = vmax.f32 %v9825_v38, 0.0  ;;  %v10903_v38 = vld [vmem:[#allocation13_spill] sm:$0xff]  ;;  %v10917_v61 = vld [vmem:[#allocation12_spill] sm:$0xff]  ;;  %vm10920_vm9 = vcmask 785408  }
 0x6e7   :  { %v6215_v11 = vunpack.i.h.bf16 %v6213_v1  ;;  %v6214_v22 = vunpack.i.l.bf16 %v6213_v1  ;;  %v6210_v24 = vunpack.i.h.bf16 %v6208_v0  ;;  %v6209_v19 = vunpack.i.l.bf16 %v6208_v0  ;;  %vm10921_vm4 = vmmov %vm10920_vm9 }
 0x6e8   :  { %4330 = vmatprep.mubr.bf16.mxu0 %v4291_v15  ;;  %4478 = vmatprep.mubr.bf16.mxu1 %v4439_v37 }
 0x6e9   :  { %v2842_v62 = vsel %vm10898_vm8, %v2841_v34, %v6209_v19  ;;  %v2906_v14 = vsel %vm10899_vm13, %v2905_v2, %v6210_v24  ;;  %4331 = vmatmul.mubr.bf16.vlgmr.msra.gmra.mrb[60].mxu0 %v4290_v35  ;;  %4479 = vmatmul.mubr.bf16.vlgmr.msra.gmra.mrb[60].mxu1 %v4438_v18 }
 0x6ea   :  { %v2843_v32 = vsel %vm10900_vm15, %v2842_v62, %v6214_v22  ;;  %v2907_v53 = vsel %vm10901_vm11, %v2906_v14, %v6215_v11  ;;  %4340 = vmatpush1.bf16.msra.mxu0 %v9830_v40  ;;  %4488 = vmatpush1.bf16.msra.mxu1 %v9830_v40  ;;  %v6231_v40 = vpack.i.bf16 %v9593_v25, %v9591_v31 }
 0x6eb   :  { %v2844_v3 = vmax.f32 %v2843_v32, 0.0  ;;  %v2908_v10 = vmax.f32 %v2907_v53, 0.0  ;;  %4341 = vmatprep.subr.bf16.mxu0 %v9838_v12  ;;  %4489 = vmatprep.subr.bf16.mxu1 %v9838_v12  ;;  %v6226_v12 = vpack.i.bf16 %v10075_v57, %v10073_v4 }
 0x6ed   :  { %v6221_v5 = vpack.i.bf16 %v2908_v10, %v2844_v3  ;;  %v6216_v23 = vpack.i.bf16 %v2844_v3, %v10902_v44 }
 0x6ee   :  { %4342 = vmatpush1.bf16.msra.mxu0 %v9852_v16  ;;  %4490 = vmatpush1.bf16.msra.mxu1 %v9852_v16  ;;  %v10904_v16 = vld [vmem:[#allocation14_spill] sm:$0xff] }
 0x6ef   :  { %6222 = vrot.lane.b32.xlu1 %v6221_v5, %s6632_s20  ;;  %6217 = vrot.lane.b32.xlu0 %v6216_v23, %s6631_s17 }
 0x6f0   :  { %4343 = vmatprep.subr.bf16.mxu0 %v9863_v33  ;;  %4491 = vmatprep.subr.bf16.mxu1 %v9863_v33  ;;  %v10905_v33 = vld [vmem:[#allocation15_spill] sm:$0xff] }
 0x6f2   :  { %4344 = vmatpush1.bf16.msra.mxu0 %v9874_v41  ;;  %4492 = vmatpush1.bf16.msra.mxu1 %v9874_v41  ;;  %v10906_v41 = vld [vmem:[#allocation16_spill] sm:$0xff] }
 0x6f3   :  { %6227 = vrot.lane.b32.xlu0 %v6226_v12, %s6623_s27  ;;  %6232 = vrot.lane.b32.xlu1 %v6231_v40, %s6623_s27 }
 0x6f4   :  { %4345 = vmatprep.subr.bf16.mxu0 %v9883_v60  ;;  %4493 = vmatprep.subr.bf16.mxu1 %v9883_v60  ;;  %v10907_v60 = vld [vmem:[#allocation17_spill] sm:$0xff] }
 0x6f6   :  { %4346 = vmatpush1.bf16.msra.mxu0 %v9890_v43  ;;  %4494 = vmatpush1.bf16.msra.mxu1 %v9890_v43  ;;  %v10908_v43 = vld [vmem:[#allocation18_spill] sm:$0xff] }
 0x6f7   :  { %4347 = vmatprep.subr.bf16.mxu0 %v9897_v52  ;;  %4495 = vmatprep.subr.bf16.mxu1 %v9897_v52  ;;  %v10909_v52 = vld [vmem:[#allocation19_spill] sm:$0xff] }
 0x6fa   :  { %4348 = vmatpush1.bf16.msra.mxu0 %v9904_v54  ;;  %4496 = vmatpush1.bf16.msra.mxu1 %v9904_v54  ;;  %v10910_v54 = vld [vmem:[#allocation5_spill] sm:$0xff] }
 0x6fb   :  { %4349 = vmatprep.subr.bf16.mxu0 %v9911_v56  ;;  %4497 = vmatprep.subr.bf16.mxu1 %v9911_v56  ;;  %v10911_v56 = vld [vmem:[#allocation20_spill] sm:$0xff] }
 0x6fe   :  { %4350 = vmatpush1.bf16.msra.mxu0 %v9918_v9  ;;  %4498 = vmatpush1.bf16.msra.mxu1 %v9918_v9  ;;  %v10912_v9 = vld [vmem:[#allocation21_spill] sm:$0xff] }
 0x6ff   :  { %4351 = vmatprep.subr.bf16.mxu0 %v9925_v63  ;;  %4499 = vmatprep.subr.bf16.mxu1 %v9925_v63  ;;  %v10913_v63 = vld [vmem:[#allocation22_spill] sm:$0xff] }
 0x702   :  { %4352 = vmatpush1.bf16.msra.mxu0 %v9932_v39  ;;  %4500 = vmatpush1.bf16.msra.mxu1 %v9932_v39  ;;  %v10914_v39 = vld [vmem:[#allocation23_spill] sm:$0xff] }
 0x703   :  { %4353 = vmatprep.subr.bf16.mxu0 %v9939_v49  ;;  %4501 = vmatprep.subr.bf16.mxu1 %v9939_v49  ;;  %v10915_v49 = vld [vmem:[#allocation24_spill] sm:$0xff] }
 0x706   :  { %4354 = vmatpush1.bf16.msra.mxu0 %v9946_v51  ;;  %4502 = vmatpush1.bf16.msra.mxu1 %v9946_v51 }
 0x707   :  { %4355 = vmatprep.subr.bf16.mxu0 %v9953_v48  ;;  %4503 = vmatprep.subr.bf16.mxu1 %v9953_v48 }
 0x70a   :  { %4356 = vmatpush1.bf16.msra.mxu0 %v9960_v29  ;;  %4504 = vmatpush1.bf16.msra.mxu1 %v9960_v29  ;;  %v10916_v29 = vld [vmem:[#allocation11_spill] sm:$0xff] }
 0x70b   :  { %4357 = vmatprep.subr.bf16.mxu0 %v9967_v55  ;;  %4505 = vmatprep.subr.bf16.mxu1 %v9967_v55 }
 0x70e   :  { %4358 = vmatpush1.bf16.msra.mxu0 %v9974_v20  ;;  %4506 = vmatpush1.bf16.msra.mxu1 %v9974_v20 }
 0x70f   :  { %4359 = vmatprep.subr.bf16.mxu0 %v10903_v38  ;;  %4507 = vmatprep.subr.bf16.mxu1 %v10903_v38 }
 0x712   :  { %4360 = vmatpush1.bf16.msra.mxu0 %v10904_v16  ;;  %4508 = vmatpush1.bf16.msra.mxu1 %v10904_v16 }
 0x713   :  { %4361 = vmatprep.subr.bf16.mxu0 %v10905_v33  ;;  %4509 = vmatprep.subr.bf16.mxu1 %v10905_v33 }
 0x716   :  { %4362 = vmatpush1.bf16.msra.mxu0 %v10906_v41  ;;  %4510 = vmatpush1.bf16.msra.mxu1 %v10906_v41 }
 0x717   :  { %4363 = vmatprep.subr.bf16.mxu0 %v10907_v60  ;;  %4511 = vmatprep.subr.bf16.mxu1 %v10907_v60 }
 0x71a   :  { %4364 = vmatpush1.bf16.msra.mxu0 %v10908_v43  ;;  %4512 = vmatpush1.bf16.msra.mxu1 %v10908_v43 }
 0x71b   :  { %4365 = vmatprep.subr.bf16.mxu0 %v10909_v52  ;;  %4513 = vmatprep.subr.bf16.mxu1 %v10909_v52 }
 0x71e   :  { %4366 = vmatpush1.bf16.msra.mxu0 %v10910_v54  ;;  %4514 = vmatpush1.bf16.msra.mxu1 %v10910_v54 }
 0x71f   :  { %4367 = vmatprep.subr.bf16.mxu0 %v10911_v56  ;;  %4515 = vmatprep.subr.bf16.mxu1 %v10911_v56 }
 0x722   :  { %4368 = vmatpush1.bf16.msra.mxu0 %v10912_v9  ;;  %4516 = vmatpush1.bf16.msra.mxu1 %v10912_v9 }
 0x723   :  { %4369 = vmatprep.subr.bf16.mxu0 %v10913_v63  ;;  %4517 = vmatprep.subr.bf16.mxu1 %v10913_v63 }
 0x726   :  { %4370 = vmatpush1.bf16.msra.mxu0 %v10914_v39  ;;  %4518 = vmatpush1.bf16.msra.mxu1 %v10914_v39 }
 0x727   :  { %4380 = vmatprep.subr.bf16.mxu0 %v10915_v49  ;;  %4528 = vmatprep.subr.bf16.mxu1 %v10915_v49 }
 0x744   :  { %v4118_v51 = vpop.f32.mrb[56].mxu0  ;;  %v4266_v48 = vpop.f32.mrb[56].mxu1 }
 0x745   :  { %v5483_v55 = vadd.f32 %v4118_v51, %v10916_v29  ;;  %v5485_v20 = vadd.f32 %v4266_v48, %v10916_v29  ;;  %v4120_v26 = vpop.f32.mrb[57].mxu0  ;;  %v4268_v45 = vpop.f32.mrb[57].mxu1 }
 0x746   :  { %v5484_v17 = vadd.f32 %v4120_v26, %v10917_v61  ;;  %v5486_v18 = vadd.f32 %v4268_v45, %v10917_v61  ;;  %v4122_v35 = vpop.f32.mrb[58].mxu0  ;;  %v4270_v1 = vpop.f32.mrb[58].mxu1 }
 0x747   :  { %v10403_v0 = vmax.f32 %v5483_v55, %v5485_v20  ;;  %v4123_v15 = vpop.f32.mrb[59].mxu0  ;;  %v4271_v37 = vpop.f32.mrb[59].mxu1  ;;  %v6433_v20 = vld [vmem:[%s10645_s5 + $0x48] sm:$0xff]  }
 0x748   :  { %v10405_v11 = vmax.f32 %v5484_v17, %v5486_v18 }
 0x74a   :  { %v6236_v22 = vpack.i.bf16 %v10405_v11, %v10403_v0 }
 0x74c   :  { %6237 = vrot.lane.b32.xlu0 %v6236_v22, %s6623_s27 }
 0x761   :  { %v6223_v24 = vpop.permute.xlu1 %6222  ;;  %v6218_v19 = vpop.permute.xlu0 %6217 }
 0x762   :  { %v6225_v34 = vunpack.i.h.bf16 %v6223_v24  ;;  %v6224_v2 = vunpack.i.l.bf16 %v6223_v24  ;;  %v6220_v62 = vunpack.i.h.bf16 %v6218_v19  ;;  %v6219_v14 = vunpack.i.l.bf16 %v6218_v19 }
 0x764   :  { %v4436_v32 = vsel %vm10918_vm6, %v6205_v36, %v6220_v62  ;;  %v4288_v53 = vsel %vm10919_vm5, %v6204_v13, %v6219_v14  ;;  %v4289_v5 = vsel %vm10920_vm9, %v6219_v14, %v6224_v2  ;;  %v4437_v44 = vsel %vm10921_vm4, %v6220_v62, %v6225_v34 }
 0x765   :  { %v6228_v3 = vpop.permute.xlu0 %6227  ;;  %v10416_v10 = vpop.permute.xlu1 %6232  ;;  %v4440_v23 = vpack.c.bf16 %v4436_v32, %v4436_v32  ;;  %v4292_v40 = vpack.c.bf16 %v4288_v53, %v4288_v53  ;;  %v4293_v33 = vpack.c.bf16 %v4289_v5, %v4289_v5  ;;  %v4441_v41 = vpack.c.bf16 %v4437_v44, %v4437_v44 }
 0x766   :  { %v6229_v12 = vunpack.i.l.bf16 %v6228_v3  ;;  %v6234_v38 = vunpack.i.l.bf16 %v10416_v10  ;;  %v6230_v16 = vunpack.i.h.bf16 %v6228_v3  ;;  %v6235_v45 = vunpack.i.h.bf16 %v10416_v10 }
 0x767   :  { %4371 = vmatprep.mubr.bf16.mxu0 %v4293_v33  ;;  %4519 = vmatprep.mubr.bf16.mxu1 %v4441_v41 }
 0x768   :  { %v10422_v36 = vmax.f32 %v10073_v4, %v6229_v12  ;;  %v10425_v21 = vmax.f32 %v9591_v31, %v6234_v38  ;;  %4372 = vmatmul.mubr.bf16.vlgmr.msra.gmra.mrb[60].mxu0 %v4292_v40  ;;  %4520 = vmatmul.mubr.bf16.vlgmr.msra.gmra.mrb[60].mxu1 %v4440_v23  ;;  %v4612_v13 = vmax.f32 %v10073_v4, %v6230_v16 }
 0x769   :  { %v4613_v60 = vmax.f32 %v10075_v57, %v6230_v16  ;;  %4381 = vmatpush1.bf16.msra.mxu0 %v10100_v46  ;;  %4529 = vmatpush1.bf16.msra.mxu1 %v10100_v46  ;;  %v4294_v4 = vpack.c.bf16 %v6224_v2, %v6224_v2  ;;  %v6426_v46 = vld [vmem:[%s10645_s5 + $0x28] sm:$0xff]   ;;  %v4580_v18 = vmax.f32 %v9591_v31, %v6235_v45 }
 0x76a   :  { %v10433_v43 = vpack.i.bf16 %v10425_v21, %v10422_v36  ;;  %4382 = vmatprep.subr.bf16.mxu0 %v10109_v7  ;;  %4530 = vmatprep.subr.bf16.mxu1 %v10109_v7  ;;  %v6428_v7 = vld [vmem:[%s10645_s5] sm:$0xff]   ;;  %v4581_v35 = vmax.f32 %v9593_v25, %v6235_v45 }
 0x76b   :  { %4412 = vmatprep.mubr.bf16.mxu0 %v10832_v27  ;;  %4560 = vmatprep.mubr.bf16.mxu1 %v10832_v27  ;;  %v6256_v57 = vpack.i.bf16 %v4613_v60, %v4612_v13  ;;  %v4442_v27 = vpack.c.bf16 %v6225_v34, %v6225_v34 }
 0x76c   :  { %6247 = vrot.lane.b32.xlu0 %v10433_v43, %s6623_s27  ;;  %v6261_v1 = vpack.i.bf16 %v4581_v35, %v4580_v18 }
 0x76d   :  { %4383 = vmatpush1.bf16.msra.mxu0 %v10122_v58  ;;  %4531 = vmatpush1.bf16.msra.mxu1 %v10122_v58  ;;  %v6634_v58 = vmov 0.0  }
 0x76e   :  { %4384 = vmatprep.subr.bf16.mxu0 %v10129_v47  ;;  %4532 = vmatprep.subr.bf16.mxu1 %v10129_v47  ;;  %v6430_v47 = vld [vmem:[%s10645_s5 + $0x8] sm:$0xff]  }
 0x770   :  { %6257 = vrot.lane.b32.xlu0 %v6256_v57, %s6621_s1 }
 0x771   :  { %4385 = vmatpush1.bf16.msra.mxu0 %v10140_v50  ;;  %4533 = vmatpush1.bf16.msra.mxu1 %v10140_v50  ;;  %v6431_v50 = vld [vmem:[%s10645_s5 + $0x40] sm:$0xff]  }
 0x772   :  { %4386 = vmatprep.subr.bf16.mxu0 %v10147_v59  ;;  %4534 = vmatprep.subr.bf16.mxu1 %v10147_v59  ;;  %v6432_v59 = vld [vmem:[%s10645_s5 + $0x10] sm:$0xff]  }
 0x775   :  { %4387 = vmatpush1.bf16.msra.mxu0 %v10156_v28  ;;  %4535 = vmatpush1.bf16.msra.mxu1 %v10156_v28 }
 0x776   :  { %4388 = vmatprep.subr.bf16.mxu0 %v10163_v42  ;;  %4536 = vmatprep.subr.bf16.mxu1 %v10163_v42 }
 0x779   :  { %4389 = vmatpush1.bf16.msra.mxu0 %v10172_v30  ;;  %4537 = vmatpush1.bf16.msra.mxu1 %v10172_v30 }
 0x77a   :  { %5313 = vmatprep.subr.msk.bf16.mxu0 %vm3403_vm12, %v10833_v6  ;;  %5315 = vmatprep.subr.msk.bf16.mxu1 %vm3403_vm12, %v10833_v6  ;;  %v6427_v6 = vld [vmem:[%s10645_s5 + $0x30] sm:$0xff]   ;;  %vm10922_vm12 = vcmask 654336  }
 0x77b   :  { %vm10923_vm7 = vmmov %vm10922_vm12 }
 0x77c   :  { %vm10925_vm8 = vmmov %vm10923_vm7 }
 0x77d   :  { %4391 = vmatpush1.bf16.msra.mxu0 %v10834_v8  ;;  %4539 = vmatpush1.bf16.msra.mxu1 %v10834_v8  ;;  %v6429_v8 = vld [vmem:[%s10645_s5 + $0x38] sm:$0xff]  }
 0x77e   :  { %5407 = vmatprep.subr.bf16.mxu0 %v6634_v58  ;;  %5421 = vmatprep.subr.bf16.mxu1 %v6634_v58 }
 0x780   :  { %5314 = vmatmul.mubr.msk.bf16.vlgmr.msra.gmra.mrb[60].mxu0 %vm3399_vm10, %v4294_v4  ;;  %5316 = vmatmul.mubr.msk.bf16.vlgmr.msra.gmra.mrb[60].mxu1 %vm3399_vm10, %v4442_v27  ;;  %vm6635_vm10 = vmmov 0  }
 0x781   :  { %5408 = vmatpush3.bf16.msra.mxu0 %v6426_v46  ;;  %5422 = vmatpush3.bf16.msra.mxu1 %v6428_v7  ;;  %v6436_v46 = vld [vmem:[%s10645_s5 + $0x50] sm:$0xff]  }
 0x782   :  { %5409 = vmatprep.subr.bf16.mxu0 %v6634_v58  ;;  %5423 = vmatprep.subr.bf16.mxu1 %v6634_v58 }
 0x783   :  { %5417 = vmatprep.mubr.msk.bf16.mxu0 %vm6635_vm10, %v6634_v58  ;;  %5431 = vmatprep.mubr.msk.bf16.mxu1 %vm6635_vm10, %v6634_v58 }
 0x785   :  { %5410 = vmatpush3.bf16.msra.mxu0 %v6427_v6  ;;  %5424 = vmatpush3.bf16.msra.mxu1 %v6430_v47 }
 0x786   :  { %5411 = vmatprep.subr.bf16.mxu0 %v6634_v58  ;;  %5425 = vmatprep.subr.bf16.mxu1 %v6634_v58 }
 0x789   :  { %5412 = vmatpush3.bf16.msra.mxu0 %v6429_v8  ;;  %5426 = vmatpush3.bf16.msra.mxu1 %v6432_v59  ;;  %v6438_v59 = vld [vmem:[%s10645_s5 + $0x58] sm:$0xff]  }
 0x78a   :  { %5413 = vmatprep.subr.bf16.mxu0 %v6634_v58  ;;  %5427 = vmatprep.subr.bf16.mxu1 %v6634_v58 }
 0x78d   :  { %5414 = vmatpush3.bf16.msra.mxu0 %v6431_v50 }
 0x78e   :  { %5415 = vmatprep.subr.bf16.mxu0 %v6634_v58 }
 0x791   :  { %5416 = vmatpush3.bf16.msra.mxu0 %v6433_v20 }
 0x792   :  { %5435 = vmatprep.subr.bf16.mxu0 %v6634_v58 }
 0x7be   :  { %v6238_v15 = vpop.permute.xlu0 %6237 }
 0x7bf   :  { %v6239_v22 = vunpack.i.l.bf16 %v6238_v15  ;;  %v6240_v24 = vunpack.i.h.bf16 %v6238_v15 }
 0x7c1   :  { %v10522_v31 = vmax.f32 %v10403_v0, %v6239_v22  ;;  %v4644_v3 = vmax.f32 %v10403_v0, %v6240_v24  ;;  %v4645_v12 = vmax.f32 %v10405_v11, %v6240_v24 }
 0x7c3   :  { %v6271_v4 = vpack.i.bf16 %v4645_v12, %v4644_v3  ;;  %v6449_v3 = vld [vmem:[%s10647_s7 + $0x18] ss:$0 sps:$4 sm:$0x11]  }
 0x7de   :  { %v6248_v37 = vpop.permute.xlu0 %6247 }
 0x7df   :  { %v6249_v14 = vunpack.i.l.bf16 %v6248_v37  ;;  %v6250_v38 = vunpack.i.h.bf16 %v6248_v37 }
 0x7e1   :  { %v4629_v16 = vsel %vm2184_vm14, %v10422_v36, %v6249_v14  ;;  %v4597_v36 = vsel %vm2184_vm14, %v10425_v21, %v6250_v38  ;;  %v6437_v21 = vld [vmem:[%s10645_s5 + $0x78] sm:$0xff]  }
 0x7e2   :  { %v6258_v19 = vpop.permute.xlu0 %6257 }
 0x7e3   :  { %v6260_v25 = vunpack.i.h.bf16 %v6258_v19  ;;  %v6259_v32 = vunpack.i.l.bf16 %v6258_v19 }
 0x7e5   :  { %v4627_v33 = vsel %vm2164_vm2, %v6259_v32, %v6260_v25  ;;  %v6447_v32 = vld [vmem:[%s10647_s7 + $0x8] sm:$0xff]  }
 0x853   :  { %v4414_v28 = vpop.f32.mrb[60].mxu0  ;;  %v4562_v42 = vpop.f32.mrb[60].mxu1 }
 0x854   :  { %v5487_v30 = vadd.f32 %v4414_v28, %v10916_v29  ;;  %v5489_v52 = vadd.f32 %v4562_v42, %v10916_v29  ;;  %v4416_v54 = vpop.f32.mrb[61].mxu0  ;;  %v4564_v56 = vpop.f32.mrb[61].mxu1  ;;  %v6434_v29 = vld [vmem:[%s10645_s5 + $0x18] sm:$0xff]   ;;  %v6439_v42 = vld [vmem:[%s10645_s5 + $0x80] sm:$0xff]  }
 0x855   :  { %v5488_v9 = vadd.f32 %v4416_v54, %v10917_v61  ;;  %v5490_v63 = vadd.f32 %v4564_v56, %v10917_v61  ;;  %v4418_v39 = vpop.f32.mrb[62].mxu0  ;;  %v4566_v49 = vpop.f32.mrb[62].mxu1  ;;  %5428 = vmatpush3.bf16.msra.mxu1 %v6434_v29  ;;  %v6435_v61 = vld [vmem:[%s10645_s5 + $0x20] sm:$0xff]   ;;  %v6442_v54 = vld [vmem:[%s10645_s5 + $0x68] sm:$0xff]   ;;  %v6443_v56 = vld [vmem:[%s10645_s5 + $0x90] sm:$0xff]  }
 0x856   :  { %v4665_v51 = vmax.f32 %v5487_v30, %v5489_v52  ;;  %v4419_v48 = vpop.f32.mrb[63].mxu0  ;;  %v4567_v55 = vpop.f32.mrb[63].mxu1  ;;  %5429 = vmatprep.subr.bf16.mxu1 %v6634_v58  ;;  %v6440_v30 = vld [vmem:[%s10645_s5 + $0x60] sm:$0xff]   ;;  %v6441_v52 = vld [vmem:[%s10645_s5 + $0x88] sm:$0xff]  }
 0x857   :  { %v4666_v26 = vmax.f32 %v5488_v9, %v5490_v63  ;;  %v6444_v9 = vld [vmem:[%s10645_s5 + $0x70] sm:$0xff]   ;;  %v6445_v63 = vld [vmem:[%s10645_s5 + $0x98] sm:$0xff]  }
 0x859   :  { %v6241_v17 = vpack.i.bf16 %v4666_v26, %v4665_v51  ;;  %5430 = vmatpush3.bf16.msra.mxu1 %v6435_v61 }
 0x85a   :  { %5449 = vmatprep.subr.bf16.mxu1 %v6634_v58 }
 0x85b   :  { %6242 = vrot.lane.b32.xlu1 %v6241_v17, %s6623_s27 }
 0x85f   :  { %6252 = vrot.lane.b32.xlu1 %v10433_v43, %s6624_s28 }
 0x863   :  { %6262 = vrot.lane.b32.xlu1 %v6261_v1, %s6621_s1 }
 0x8cd   :  { %v6243_v34 = vpop.permute.xlu1 %6242 }
 0x8ce   :  { %v6245_v2 = vunpack.i.h.bf16 %v6243_v34  ;;  %v6244_v62 = vunpack.i.l.bf16 %v6243_v34 }
 0x8d0   :  { %v10524_v53 = vmax.f32 %v4665_v51, %v6244_v62  ;;  %v4676_v5 = vmax.f32 %v4665_v51, %v6245_v2  ;;  %v4677_v44 = vmax.f32 %v4666_v26, %v6245_v2 }
 0x8d1   :  { %v6253_v10 = vpop.permute.xlu1 %6252 }
 0x8d2   :  { %v6254_v23 = vunpack.i.l.bf16 %v6253_v10  ;;  %v6276_v40 = vpack.i.bf16 %v10524_v53, %v10522_v31  ;;  %v6255_v41 = vunpack.i.h.bf16 %v6253_v10  ;;  %v6281_v43 = vpack.i.bf16 %v4677_v44, %v4676_v5 }
 0x8d4   :  { %v4630_v13 = vsel %vm2188_vm0, %v4629_v16, %v6254_v23  ;;  %6277 = vrot.lane.b32.xlu1 %v6276_v40, %s6624_s28  ;;  %6267 = vrot.lane.b32.xlu0 %v6276_v40, %s6623_s27  ;;  %v4598_v7 = vsel %vm2188_vm0, %v4597_v36, %v6255_v41 }
 0x8d5   :  { %v4631_v0 = vsel %vm2192_vm3, %v4630_v13, %v4627_v33  ;;  %v6263_v60 = vpop.permute.xlu1 %6262 }
 0x8d6   :  { %v4632_v57 = vmax.f32 %v4631_v0, 0.0  ;;  %v6265_v27 = vunpack.i.h.bf16 %v6263_v60  ;;  %v6264_v11 = vunpack.i.l.bf16 %v6263_v60 }
 0x8d8   :  { %v4708_v6 = vpack.c.bf16 %v4632_v57, %v4632_v57  ;;  %v4595_v8 = vsel %vm2164_vm2, %v6264_v11, %v6265_v27  ;;  %6282 = vrot.lane.b32.xlu1 %v6281_v43, %s6621_s1  ;;  %6272 = vrot.lane.b32.xlu0 %v6271_v4, %s6621_s1  ;;  %v5371_v27 = vld [vmem:[%s10646_s6] ss:$0 sm:$0xff]  ;;  %s6636_s6 = smov [#allocation2]  }
 0x8d9   :  { %v4599_v47 = vsel %vm2192_vm3, %v4598_v7, %v4595_v8 }
 0x8da   :  { %v4600_v50 = vmax.f32 %v4599_v47, 0.0  ;;  %5418 = vmatmul.mubr.msk.bf16.vlgmr.msra.gmra.mrb[64].mxu0 %vm10922_vm12, %v4708_v6  ;;  %v5372_v47 = vld [vmem:[%s10648_s8] ss:$0 sm:$0xff]  ;;  %s5151_s8 = sshll.u32 %s6636_s6, 4  ;;  %s5152_s8 = int_to_ptr.vmem [resolvable:$true] %s5151_s8 }
 0x8db   :  { %5436 = vmatpush3.bf16.msra.mxu0 %v6436_v46  ;;  %5445 = vmatprep.mubr.msk.bf16.mxu0 %vm6635_vm10, %v6634_v58  ;;  %s6592_s10 = scalar_lea.vmem %s5152_s8, 32  ;;  %p6597_p1 = scmp.lt.s32.totalorder %s5152_s8, %s5152_s8 }
 0x8dc   :  { %v4697_v28 = vpack.c.bf16 %v4600_v50, %v4600_v50  ;;  %5437 = vmatprep.subr.bf16.mxu0 %v6634_v58  ;;  %p6593_p0 = scmp.ne.s32.totalorder %s5152_s8, %s6592_s10  ;;  %p6598_p2 = scmp.lt.s32.totalorder %s6592_s10, %s6592_s10 }
 0x8de   :  { %5432 = vmatmul.mubr.msk.bf16.vlgmr.msra.gmra.mrb[64].mxu1 %vm10923_vm7, %v4697_v28  ;;  %p6599_p3 = por %p6598_p2, %p6597_p1 }
 0x8df   :  { %5450 = vmatpush3.bf16.msra.mxu1 %v6437_v21  ;;  %5438 = vmatpush3.bf16.msra.mxu0 %v6438_v59 }
 0x8e0   :  { %5451 = vmatprep.subr.bf16.mxu1 %v6634_v58  ;;  %5439 = vmatprep.subr.bf16.mxu0 %v6634_v58  ;;  %p6600_p4 = pnand %p6599_p3, %p6593_p0 }
 0x8e1   :  { %5459 = vmatprep.mubr.msk.bf16.mxu1 %vm6635_vm10, %v6634_v58 }
 0x8e3   :  { %5452 = vmatpush3.bf16.msra.mxu1 %v6439_v42  ;;  %5440 = vmatpush3.bf16.msra.mxu0 %v6440_v30 }
 0x8e4   :  { %5453 = vmatprep.subr.bf16.mxu1 %v6634_v58  ;;  %5441 = vmatprep.subr.bf16.mxu0 %v6634_v58 }
 0x8e7   :  { %5454 = vmatpush3.bf16.msra.mxu1 %v6441_v52  ;;  %5442 = vmatpush3.bf16.msra.mxu0 %v6442_v54 }
 0x8e8   :  { %5455 = vmatprep.subr.bf16.mxu1 %v6634_v58  ;;  %5443 = vmatprep.subr.bf16.mxu0 %v6634_v58 }
 0x8eb   :  { %5456 = vmatpush3.bf16.msra.mxu1 %v6443_v56  ;;  %5444 = vmatpush3.bf16.msra.mxu0 %v6444_v9 }
 0x8ec   :  { %5457 = vmatprep.subr.bf16.mxu1 %v6634_v58  ;;  %5463 = vmatprep.subr.bf16.mxu0 %v6634_v58 }
 0x8ef   :  { %5458 = vmatpush3.bf16.msra.mxu1 %v6445_v63 }
 0x946   :  { %v6278_v39 = vpop.permute.xlu1 %6277  ;;  %v6268_v49 = vpop.permute.xlu0 %6267 }
 0x947   :  { %v6270_v51 = vunpack.i.h.bf16 %v6268_v49  ;;  %v6269_v48 = vunpack.i.l.bf16 %v6268_v49  ;;  %v6280_v55 = vunpack.i.h.bf16 %v6278_v39  ;;  %v6279_v20 = vunpack.i.l.bf16 %v6278_v39 }
 0x949   :  { %v4693_v29 = vsel %vm2184_vm14, %v10524_v53, %v6270_v51  ;;  %v4661_v45 = vsel %vm2184_vm14, %v10522_v31, %v6269_v48  ;;  %v6446_v31 = vld [vmem:[%s10647_s7] sm:$0xff]   ;;  %vm10924_vm14 = vmmov %vm10923_vm7  ;;  %v6448_v53 = vld [vmem:[%s10647_s7 + $0x10] sm:$0xff]  }
 0x94a   :  { %v6283_v26 = vpop.permute.xlu1 %6282  ;;  %v6273_v18 = vpop.permute.xlu0 %6272  ;;  %v4694_v15 = vsel %vm2188_vm0, %v4693_v29, %v6280_v55  ;;  %v4662_v22 = vsel %vm2188_vm0, %v4661_v45, %v6279_v20  ;;  %vm5086_vm0 = vcmask 1040384  }
 0x94b   :  { %v6285_v17 = vunpack.i.h.bf16 %v6283_v26  ;;  %v6284_v61 = vunpack.i.l.bf16 %v6283_v26  ;;  %v6275_v35 = vunpack.i.h.bf16 %v6273_v18  ;;  %v6274_v1 = vunpack.i.l.bf16 %v6273_v18 }
 0x94c   :  { %v5088_v44 = vsel %vm5086_vm0, %v6449_v3, 0 }
 0x94d   :  { %v4691_v37 = vsel %vm2164_vm2, %v6284_v61, %v6285_v17  ;;  %v4659_v19 = vsel %vm2164_vm2, %v6274_v1, %v6275_v35  ;;  %vm5130_vm2 = vcmask 74752  }
 0x94e   :  { %v4695_v24 = vsel %vm2192_vm3, %v4694_v15, %v4691_v37  ;;  %v4663_v2 = vsel %vm2192_vm3, %v4662_v22, %v4659_v19 }
 0x94f   :  { %v4696_v34 = vmax.f32 %v4695_v24, 0.0  ;;  %v4664_v62 = vmax.f32 %v4663_v2, 0.0 }
 0x951   :  { %v4952_v14 = vpack.c.bf16 %v4696_v34, %v4696_v34  ;;  %v4866_v25 = vpack.c.bf16 %v4664_v62, %v4664_v62 }
 0x953   :  { %5460 = vmatmul.mubr.msk.bf16.vlgmr.msra.gmra.mrb[68].mxu1 %vm10924_vm14, %v4952_v14  ;;  %5446 = vmatmul.mubr.msk.bf16.vlgmr.msra.gmra.mrb[68].mxu0 %vm10925_vm8, %v4866_v25 }
 0x954   :  { %5464 = vmatpush3.bf16.msra.mxu0 %v6446_v31  ;;  %5471 = vmatprep.mubr.msk.bf16.mxu0 %vm6635_vm10, %v6634_v58 }
 0x955   :  { %5465 = vmatprep.subr.bf16.mxu0 %v6634_v58 }
 0x958   :  { %5466 = vmatpush3.bf16.msra.mxu0 %v6447_v32 }
 0x959   :  { %5467 = vmatprep.subr.bf16.mxu0 %v6634_v58 }
 0x95c   :  { %5468 = vmatpush3.bf16.msra.mxu0 %v6448_v53 }
 0x95d   :  { %5469 = vmatprep.subr.bf16.mxu0 %v6634_v58 }
 0x960   :  { %5470 = vmatpush3.bf16.msra.mxu0 %v5088_v44 }
 0x9ad   :  { %v4787_v10 = vpop.f32.mrb[64].mxu0 }
 0x9ae   :  { %v5419_v5 = vpop.f32.mrb[65].mxu0 }
 0x9af   :  { %v4790_v23 = vpop.f32.mrb[66].mxu0 }
 0x9b0   :  { %v5420_v40 = vpop.f32.mrb[67].mxu0 }
 0x9b1   :  { %v4860_v12 = vpop.f32.mrb[64].mxu1 }
 0x9b2   :  { %v4861_v38 = vadd.f32 %v4860_v12, %v4787_v10  ;;  %v5433_v16 = vpop.f32.mrb[65].mxu1 }
 0x9b3   :  { %v4863_v33 = vpop.f32.mrb[66].mxu1 }
 0x9b4   :  { %v5434_v41 = vpop.f32.mrb[67].mxu1 }
 0xa26   :  { %v5031_v13 = vpop.f32.mrb[68].mxu1  ;;  %v4945_v0 = vpop.f32.mrb[68].mxu0 }
 0xa27   :  { %v5461_v60 = vpop.f32.mrb[69].mxu1  ;;  %v4951_v58 = vadd.f32 %v4945_v0, %v4861_v38  ;;  %v5447_v43 = vpop.f32.mrb[69].mxu0 }
 0xa28   :  { %v5034_v57 = vpop.f32.mrb[70].mxu1  ;;  %v4948_v11 = vpop.f32.mrb[70].mxu0 }
 0xa29   :  { %v5462_v4 = vpop.f32.mrb[71].mxu1  ;;  %v5037_v36 = vadd.f32 %v5031_v13, %v4951_v58  ;;  %v5448_v46 = vpop.f32.mrb[71].mxu0 }
 0xa2b   :  { %v5045_v7 = vadd.f32 %v5371_v27, %v5037_v36 }
 0xa2d   :  { %v5046_v6 = vmax.f32 %v5045_v7, 0.0 }
 0xa2f   :  { %v5047_v8 = vpack.c.bf16 %v5046_v6, %v5046_v6 }
 0xa31   :  { %5472 = vmatmul.mubr.msk.bf16.vlgmr.msra.gmra.mrb[72].mxu0 %vm2190_vm1, %v5047_v8 }
 0xb04   :  { %v5124_v50 = vpop.f32.mrb[72].mxu0 }
 0xb05   :  { %v5125_v21 = vadd.f32 %v5372_v47, %v5124_v50  ;;  %v5473_v59 = vpop.f32.mrb[73].mxu0 }
 0xb06   :  { %v5127_v28 = vpop.f32.mrb[74].mxu0 }
 0xb07   :  { %v5474_v42 = vpop.f32.mrb[75].mxu0  ;;  %v5131_v30 = vsel %vm5130_vm2, %v5125_v21, -inf }
 0xb08   :  { %5132 = vmax.xlane.f32.xlu0 %v5131_v30 }
 0xb95   :  { %v5133_v52 = vpop.xlane.xlu0 %5132 }
 0xb96   :  { %v5134_v54 = vsub.f32 %v5125_v21, %v5133_v52 }
 0xb98   :  { %v5135_v56 = vmul.f32 1.442695, %v5134_v54 }
 0xb9a   :  { %6450 = vpow2.f32 %v5135_v56 }
 0xba4   :  { %v6451_v9 = vpop.eup %6450 }
 0xba5   :  { %v5137_v63 = vsel %vm5130_vm2, %v6451_v9, 0.0 }
 0xba6   :  { %5138 = vadd.xlane.f32.xlu1 %v5137_v63 }
 0xc33   :  { %v5139_v39 = vpop.xlane.xlu1 %5138 }
 0xc34   :  { %6452 = vlog2.f32 %v5139_v39 }
 0xc3e   :  { %v6453_v49 = vpop.eup %6452 }
 0xc3f   :  { %v5141_v51 = vmul.f32 0.6931472, %v6453_v49 }
 0xc41   :  { %v5142_v48 = vadd.f32 %v5141_v51, %v5133_v52 }
 0xc43   :  { %v5143_v55 = vsub.f32 %v5125_v21, %v5142_v48 }
 0xc45   :  { %5144 = vst.msk [vmem:[#allocation2] sm:$0x3] %vm5130_vm2, %v5143_v55 }
 0xc46   :  { %6603 = shalt.err (!%p6600_p4)
}
 0xc47   :  { %s6604_s17 = scalar_lea.hbm %s10649_s9, 32 }
 0xc48   :  { %p6605_p5 = scmp.ne.s32.totalorder %s10649_s9, %s6604_s17  ;;  %p6608_p6 = scmp.lt.u32.totalorder %s6604_s17, %s10649_s9 }
 0xc4a   :  { %p6610_p7 = pnand %p6608_p6, %p6605_p5 }
 0xc4c   :  { %6613 = shalt.err (!%p6610_p7)
}
 0xc4d   :  { %5154 = dma.vmem_to_hbm [thread:$0]  %s5152_s8, 32, %s10649_s9, [#allocation3]  }
 0xc4e   :  { %6614 = dma.done.wait [#allocation3], 32  }
 0xc4f   :  { %6615 = vsyncadd [#allocation3], 4294967264 }
 0xc50   :  { %5158 = vsyncpa [#allocation3], 1 }

</bundles_post_ra>
